<compile_context>
chip_gen: v7x
topology: tpu7x:2x2x1
jax: 0.10.0
libtpu: 0.0.40
codegen_flags: <defaults>
</compile_context>

<pallas_src>
import jax
import jax.numpy as jnp
from jax import lax
from jax.experimental import pallas as pl
from jax.experimental.pallas import tpu as pltpu

EPS = 1e-5
_PW = 8  # left/right halo width; 8 keeps the f32 interior writes sublane-aligned


# ------------------------------ Pallas kernel -------------------------------

def _make_bottleneck_kernel(H, W, C_in, C_mid, C_out):
    """Fused [Conv2d(3x3,s1,p1) + BN(affine folded) + ReLU] x 2, one NHWC image."""
    HW = H * W

    def kernel(x_ref, w1_ref, b1_ref, w2_ref, b2_ref, o_ref,
               pad1_ref, pad2_ref, slab1_ref, slab2_ref, acc1_ref, acc2_ref):
        # Output-pixel validity masks for the boundary taps.  The staging
        # buffers' halo cells are uninitialized; any garbage read from them is
        # selected away here (VPU select, essentially free).
        row = lax.broadcasted_iota(jnp.int32, (H, W, 1), 0)
        col = lax.broadcasted_iota(jnp.int32, (H, W, 1), 1)
        row_lo, row_hi = row >= 1, row <= H - 2     # kh == 0 / kh == 2
        col_lo, col_hi = col >= 1, col <= W - 2     # kw == 0 / kw == 2

        def conv3x3(pad_ref, slab_ref, acc_ref, wcat_ref, C):
            # pad_ref  : (H+2, W+2*_PW, C) f32, image stored at [1:H+1, _PW:_PW+W]
            # slab_ref : (HW, 3*C) bf16   per-kw im2col slab (explicit scratch)
            # wcat_ref : (3, 3*C, Cout)   bf16 folded weights, [kw, kh*C + c, o]
            for kw in range(3):
                for kh in range(3):
                    win = pad_ref[kh:kh + H, kw + _PW - 1:kw + _PW - 1 + W, :]
                    valid = None
                    if kh == 0:
                        valid = row_lo
                    elif kh == 2:
                        valid = row_hi
                    if kw == 0:
                        valid = col_lo if valid is None else (valid & col_lo)
                    elif kw == 2:
                        valid = col_hi if valid is None else (valid & col_hi)
                    if valid is not None:
                        win = jnp.where(valid, win, 0.0)
                    # lane-aligned store (offsets are multiples of 128)
                    slab_ref[:, kh * C:(kh + 1) * C] = (
                        win.reshape(HW, C).astype(jnp.bfloat16))
                prod = jnp.dot(slab_ref[...], wcat_ref[kw],
                               preferred_element_type=jnp.float32)
                if kw == 0:
                    acc_ref[...] = prod          # first tap initializes (no zero-fill)
                else:
                    acc_ref[...] += prod

        # ------------------------------ conv block 1 ------------------------
        pad1_ref[1:H + 1, _PW:_PW + W, :] = x_ref[0].astype(jnp.float32)
        conv3x3(pad1_ref, slab1_ref, acc1_ref, w1_ref, C_in)
        y1 = jnp.maximum(acc1_ref[...] + b1_ref[...], 0.0)   # folded BN + ReLU

        # --------------- conv block 2 (intermediate stays in VMEM) ----------
        pad2_ref[1:H + 1, _PW:_PW + W, :] = y1.reshape(H, W, C_mid)
        conv3x3(pad2_ref, slab2_ref, acc2_ref, w2_ref, C_mid)
        y2 = jnp.maximum(acc2_ref[...] + b2_ref[...], 0.0)
        o_ref[0] = y2.reshape(H, W, C_out)

    return kernel


def bottleneck_pallas(x_nhwc, w1, b1, w2, b2):
    """x_nhwc: (N,H,W,Cin) bf16; w*: (3, 3*Cin', Cout) bf16; b*: (1, Cout) f32."""
    N, H, W, C_in = x_nhwc.shape
    C_mid = w1.shape[-1]
    C_out = w2.shape[-1]
    HW = H * W
    kernel = _make_bottleneck_kernel(H, W, C_in, C_mid, C_out)
    return pl.pallas_call(
        kernel,
        out_shape=jax.ShapeDtypeStruct((N, H, W, C_out), jnp.float32),
        grid=(N,),
        in_specs=[
            pl.BlockSpec((1, H, W, C_in), lambda n: (n, 0, 0, 0)),
            pl.BlockSpec((3, 3 * C_in, C_mid), lambda n: (0, 0, 0)),
            pl.BlockSpec((1, C_mid), lambda n: (0, 0)),
            pl.BlockSpec((3, 3 * C_mid, C_out), lambda n: (0, 0, 0)),
            pl.BlockSpec((1, C_out), lambda n: (0, 0)),
        ],
        out_specs=pl.BlockSpec((1, H, W, C_out), lambda n: (n, 0, 0, 0)),
        scratch_shapes=[
            pltpu.VMEM((H + 2, W + 2 * _PW, C_in), jnp.float32),   # staging 1
            pltpu.VMEM((H + 2, W + 2 * _PW, C_mid), jnp.float32),  # staging 2
            pltpu.VMEM((HW, 3 * C_in), jnp.bfloat16),              # im2col slab 1
            pltpu.VMEM((HW, 3 * C_mid), jnp.bfloat16),             # im2col slab 2
            pltpu.VMEM((HW, C_mid), jnp.float32),                  # f32 acc 1
            pltpu.VMEM((HW, C_out), jnp.float32),                  # f32 acc 2
        ],
        compiler_params=pltpu.CompilerParams(
            dimension_semantics=("parallel",)),   # images across TCs (v7x)
    )(x_nhwc, w1, b1, w2, b2)


# ------------------------------ glue / wrapper -------------------------------

def _fold_bn_concat(p):
    """Fold Conv bias + eval-mode BN into the weights (kw-major, kh-concat K)."""
    scale = p["gamma"] / jnp.sqrt(p["rvar"] + EPS)                 # (Cout,)
    bias = (p["b"] - p["rmean"]) * scale + p["beta"]               # (Cout,)
    # PyTorch (Cout, Cin, kh, kw) -> (kw, kh, Cin, Cout); fold scale in f32,
    # then cast bf16 so both convs feed the MXU with folded bf16 weights.
    w = (jnp.transpose(p["w"], (3, 2, 1, 0)) * scale).astype(jnp.bfloat16)
    cin, cout = w.shape[2], w.shape[3]
    wcat = w.reshape(3, 3 * cin, cout)                             # [kw, kh*Cin+c, o]
    return wcat, bias.reshape(1, cout).astype(jnp.float32)


def bottleneck_forward(params, x_nchw):
    """BottleNeck.forward: Convblock(128,256) -> Convblock(256,256). NCHW i/o."""
    w1, b1 = _fold_bn_concat(params["convb1"])
    w2, b2 = _fold_bn_concat(params["convb2"])
    # bf16 cast fused into the NCHW->NHWC boundary transpose (halves input DMA).
    x = jnp.transpose(x_nchw, (0, 2, 3, 1)).astype(jnp.bfloat16)
    y = bottleneck_pallas(x, w1, b1, w2, b2)
    return jnp.transpose(y, (0, 3, 1, 2))                          # -> NCHW


# --------------------------- parameters (synthetic) ---------------------------

def _make_convblock_params(key, cin, cout):
    k = jax.random.split(key, 6)
    return dict(
        w=jax.random.normal(k[0], (cout, cin, 3, 3), jnp.float32)
          * (1.0 / jnp.sqrt(cin * 9.0)),
        b=0.05 * jax.random.normal(k[1], (cout,), jnp.float32),
        gamma=1.0 + 0.1 * jax.random.normal(k[2], (cout,), jnp.float32),
        beta=0.1 * jax.random.normal(k[3], (cout,), jnp.float32),
        rmean=0.1 * jax.random.normal(k[4], (cout,), jnp.float32),
        rvar=1.0 + jax.nn.softplus(jax.random.normal(k[5], (cout,), jnp.float32)),
    )


def init_bottleneck_params(key):
    k1, k2 = jax.random.split(key)
    return dict(convb1=_make_convblock_params(k1, 128, 256),
                convb2=_make_convblock_params(k2, 256, 256))


# ------------------------------- pure-JAX reference --------------------------

def _fold_bn_hwio(p):
    scale = p["gamma"] / jnp.sqrt(p["rvar"] + EPS)
    bias = (p["b"] - p["rmean"]) * scale + p["beta"]
    w = (jnp.transpose(p["w"], (2, 3, 1, 0)) * scale).astype(jnp.bfloat16)
    return w, bias.astype(jnp.float32)


def bottleneck_reference(params, x_nchw):
    """Reference with identical bf16-input / folded-bf16-weight / f32-acc math."""
    x = jnp.transpose(x_nchw, (0, 2, 3, 1))
    for name in ("convb1", "convb2"):
        w, b = _fold_bn_hwio(params[name])
        y = lax.conv_general_dilated(
            x.astype(jnp.bfloat16), w, window_strides=(1, 1),
            padding=((1, 1), (1, 1)),
            dimension_numbers=("NHWC", "HWIO", "NHWC"),
            preferred_element_type=jnp.float32)
        x = jnp.maximum(y + b[None, None, None, :], 0.0)
    return jnp.transpose(x, (0, 3, 1, 2))


# ----------------------------------- main -------------------------------------

if __name__ == "__main__":
    key = jax.random.PRNGKey(0)
    kp, kx = jax.random.split(key)

    params = init_bottleneck_params(kp)

    # Bottleneck feature map: small spatial, 128 input channels (fixed by module).
    N, C_in, H, W = 2, 128, 16, 16
    x = jax.random.normal(kx, (N, C_in, H, W), jnp.float32)

    fwd = jax.jit(lambda a: bottleneck_forward(params, a))
    out = fwd(x)
    jax.block_until_ready(out)

    assert out.shape == (N, 256, H, W), out.shape
    assert out.dtype == jnp.float32

    ref = bottleneck_reference(params, x)
    max_err = float(jnp.max(jnp.abs(out - ref)))
    assert max_err < 2e-2, f"max abs error vs reference: {max_err}"

    print("KERNEL_OK")
</pallas_src>

<mosaic_0001>
module attributes {stable_mosaic.version = 11 : i64} {
  func.func @kernel(%arg0: i32, %arg1: memref<1x16x16x128xbf16, #tpu.memory_space<vmem>>, %arg2: memref<3x384x256xbf16, #tpu.memory_space<vmem>>, %arg3: memref<1x256xf32, #tpu.memory_space<vmem>>, %arg4: memref<3x768x256xbf16, #tpu.memory_space<vmem>>, %arg5: memref<1x256xf32, #tpu.memory_space<vmem>>, %arg6: memref<1x16x16x256xf32, #tpu.memory_space<vmem>>, %arg7: memref<18x32x128xf32, #tpu.memory_space<vmem>>, %arg8: memref<18x32x256xf32, #tpu.memory_space<vmem>>, %arg9: memref<256x384xbf16, #tpu.memory_space<vmem>>, %arg10: memref<256x768xbf16, #tpu.memory_space<vmem>>, %arg11: memref<256x256xf32, #tpu.memory_space<vmem>>, %arg12: memref<256x256xf32, #tpu.memory_space<vmem>>) attributes {dimension_semantics = [#tpu.dimension_semantics<parallel>], iteration_bounds = array<i64: 2>, scalar_prefetch = 0 : i64, scratch_operands = 6 : i64, tpu.core_type = #tpu.core_type<tc>, window_params = [{transform_indices = @transform_0, window_bounds = array<i64: 1, 16, 16, 128>}, {pipeline_mode = #tpu.pipeline_mode<synchronous>, transform_indices = @transform_1, window_bounds = array<i64: 3, 384, 256>}, {pipeline_mode = #tpu.pipeline_mode<synchronous>, transform_indices = @transform_2, window_bounds = array<i64: 1, 256>}, {pipeline_mode = #tpu.pipeline_mode<synchronous>, transform_indices = @transform_3, window_bounds = array<i64: 3, 768, 256>}, {pipeline_mode = #tpu.pipeline_mode<synchronous>, transform_indices = @transform_4, window_bounds = array<i64: 1, 256>}, {transform_indices = @transform_5, window_bounds = array<i64: 1, 16, 16, 256>}]} {
    %0 = tpu.iota {dimensions = array<i32: 0>} : vector<16x16x1xi32>
    %1 = tpu.iota {dimensions = array<i32: 1>} : vector<16x16x1xi32>
    %c1_i32 = arith.constant 1 : i32
    %2 = vector.broadcast %c1_i32 : i32 to vector<16x16x1xi32>
    %3 = arith.cmpi sge, %0, %2 : vector<16x16x1xi32>
    %c14_i32 = arith.constant 14 : i32
    %4 = vector.broadcast %c14_i32 : i32 to vector<16x16x1xi32>
    %5 = arith.cmpi sle, %0, %4 : vector<16x16x1xi32>
    %c1_i32_0 = arith.constant 1 : i32
    %6 = vector.broadcast %c1_i32_0 : i32 to vector<16x16x1xi32>
    %7 = arith.cmpi sge, %1, %6 : vector<16x16x1xi32>
    %c14_i32_1 = arith.constant 14 : i32
    %8 = vector.broadcast %c14_i32_1 : i32 to vector<16x16x1xi32>
    %9 = arith.cmpi sle, %1, %8 : vector<16x16x1xi32>
    %c0 = arith.constant 0 : index
    %c0_2 = arith.constant 0 : index
    %c0_3 = arith.constant 0 : index
    %c0_4 = arith.constant 0 : index
    %10 = vector.load %arg1[%c0, %c0_2, %c0_3, %c0_4] : memref<1x16x16x128xbf16, #tpu.memory_space<vmem>>, vector<1x16x16x128xbf16>
    %11 = vector.shape_cast %10 : vector<1x16x16x128xbf16> to vector<16x16x128xbf16>
    %12 = arith.extf %11 : vector<16x16x128xbf16> to vector<16x16x128xf32>
    %c1 = arith.constant 1 : index
    %c8 = arith.constant 8 : index
    %c0_5 = arith.constant 0 : index
    %13 = vector.load %arg7[%c1, %c8, %c0_5] : memref<18x32x128xf32, #tpu.memory_space<vmem>>, vector<16x16x128xf32>
    tpu.vector_store %arg7[%c1, %c8, %c0_5], %12 {strides = array<i32>} : memref<18x32x128xf32, #tpu.memory_space<vmem>>, vector<16x16x128xf32>,
    %c0_6 = arith.constant 0 : index
    %c7 = arith.constant 7 : index
    %c0_7 = arith.constant 0 : index
    %14 = vector.load %arg7[%c0_6, %c7, %c0_7] : memref<18x32x128xf32, #tpu.memory_space<vmem>>, vector<16x16x128xf32>
    %15 = arith.andi %3, %7 : vector<16x16x1xi1>
    %cst = arith.constant 0.000000e+00 : f32
    %16 = vector.shape_cast %15 : vector<16x16x1xi1> to vector<16x16x1xi1>
    %17 = vector.broadcast %16 : vector<16x16x1xi1> to vector<16x16x128xi1>
    %18 = vector.broadcast %cst : f32 to vector<16x16x128xf32>
    %19 = arith.select %17, %14, %18 : vector<16x16x128xi1>, vector<16x16x128xf32>
    %20 = vector.shape_cast %19 : vector<16x16x128xf32> to vector<256x128xf32>
    %21 = arith.truncf %20 : vector<256x128xf32> to vector<256x128xbf16>
    %c0_8 = arith.constant 0 : index
    %c0_9 = arith.constant 0 : index
    %22 = vector.load %arg9[%c0_8, %c0_9] : memref<256x384xbf16, #tpu.memory_space<vmem>>, vector<256x128xbf16>
    tpu.vector_store %arg9[%c0_8, %c0_9], %21 {strides = array<i32>} : memref<256x384xbf16, #tpu.memory_space<vmem>>, vector<256x128xbf16>,
    %c1_10 = arith.constant 1 : index
    %c7_11 = arith.constant 7 : index
    %c0_12 = arith.constant 0 : index
    %23 = vector.load %arg7[%c1_10, %c7_11, %c0_12] : memref<18x32x128xf32, #tpu.memory_space<vmem>>, vector<16x16x128xf32>
    %cst_13 = arith.constant 0.000000e+00 : f32
    %24 = vector.shape_cast %7 : vector<16x16x1xi1> to vector<16x16x1xi1>
    %25 = vector.broadcast %24 : vector<16x16x1xi1> to vector<16x16x128xi1>
    %26 = vector.broadcast %cst_13 : f32 to vector<16x16x128xf32>
    %27 = arith.select %25, %23, %26 : vector<16x16x128xi1>, vector<16x16x128xf32>
    %28 = vector.shape_cast %27 : vector<16x16x128xf32> to vector<256x128xf32>
    %29 = arith.truncf %28 : vector<256x128xf32> to vector<256x128xbf16>
    %c0_14 = arith.constant 0 : index
    %c128 = arith.constant 128 : index
    %30 = vector.load %arg9[%c0_14, %c128] : memref<256x384xbf16, #tpu.memory_space<vmem>>, vector<256x128xbf16>
    tpu.vector_store %arg9[%c0_14, %c128], %29 {strides = array<i32>} : memref<256x384xbf16, #tpu.memory_space<vmem>>, vector<256x128xbf16>,
    %c2 = arith.constant 2 : index
    %c7_15 = arith.constant 7 : index
    %c0_16 = arith.constant 0 : index
    %31 = vector.load %arg7[%c2, %c7_15, %c0_16] : memref<18x32x128xf32, #tpu.memory_space<vmem>>, vector<16x16x128xf32>
    %32 = arith.andi %5, %7 : vector<16x16x1xi1>
    %cst_17 = arith.constant 0.000000e+00 : f32
    %33 = vector.shape_cast %32 : vector<16x16x1xi1> to vector<16x16x1xi1>
    %34 = vector.broadcast %33 : vector<16x16x1xi1> to vector<16x16x128xi1>
    %35 = vector.broadcast %cst_17 : f32 to vector<16x16x128xf32>
    %36 = arith.select %34, %31, %35 : vector<16x16x128xi1>, vector<16x16x128xf32>
    %37 = vector.shape_cast %36 : vector<16x16x128xf32> to vector<256x128xf32>
    %38 = arith.truncf %37 : vector<256x128xf32> to vector<256x128xbf16>
    %c0_18 = arith.constant 0 : index
    %c256 = arith.constant 256 : index
    %39 = vector.load %arg9[%c0_18, %c256] : memref<256x384xbf16, #tpu.memory_space<vmem>>, vector<256x128xbf16>
    tpu.vector_store %arg9[%c0_18, %c256], %38 {strides = array<i32>} : memref<256x384xbf16, #tpu.memory_space<vmem>>, vector<256x128xbf16>,
    %c0_19 = arith.constant 0 : index
    %c0_20 = arith.constant 0 : index
    %40 = vector.load %arg9[%c0_19, %c0_20] : memref<256x384xbf16, #tpu.memory_space<vmem>>, vector<256x384xbf16>
    %c0_21 = arith.constant 0 : index
    %c0_22 = arith.constant 0 : index
    %c0_23 = arith.constant 0 : index
    %41 = vector.load %arg2[%c0_21, %c0_22, %c0_23] : memref<3x384x256xbf16, #tpu.memory_space<vmem>>, vector<1x384x256xbf16>
    %42 = vector.shape_cast %41 : vector<1x384x256xbf16> to vector<384x256xbf16>
    %cst_24 = arith.constant dense<0.000000e+00> : vector<256x256xf32>
    %43 = tpu.matmul %40, %42, %cst_24 {dimension_numbers = #tpu.dot_dimension_numbers<[1], [0], [0], [1], [0, 0, 1, 1], [], []>} : vector<256x384xbf16>, vector<384x256xbf16>, vector<256x256xf32> -> vector<256x256xf32>
    %c0_25 = arith.constant 0 : index
    %c0_26 = arith.constant 0 : index
    %44 = vector.load %arg11[%c0_25, %c0_26] : memref<256x256xf32, #tpu.memory_space<vmem>>, vector<256x256xf32>
    tpu.vector_store %arg11[%c0_25, %c0_26], %43 {strides = array<i32>} : memref<256x256xf32, #tpu.memory_space<vmem>>, vector<256x256xf32>,
    %c0_27 = arith.constant 0 : index
    %c8_28 = arith.constant 8 : index
    %c0_29 = arith.constant 0 : index
    %45 = vector.load %arg7[%c0_27, %c8_28, %c0_29] : memref<18x32x128xf32, #tpu.memory_space<vmem>>, vector<16x16x128xf32>
    %cst_30 = arith.constant 0.000000e+00 : f32
    %46 = vector.shape_cast %3 : vector<16x16x1xi1> to vector<16x16x1xi1>
    %47 = vector.broadcast %46 : vector<16x16x1xi1> to vector<16x16x128xi1>
    %48 = vector.broadcast %cst_30 : f32 to vector<16x16x128xf32>
    %49 = arith.select %47, %45, %48 : vector<16x16x128xi1>, vector<16x16x128xf32>
    %50 = vector.shape_cast %49 : vector<16x16x128xf32> to vector<256x128xf32>
    %51 = arith.truncf %50 : vector<256x128xf32> to vector<256x128xbf16>
    %c0_31 = arith.constant 0 : index
    %c0_32 = arith.constant 0 : index
    %52 = vector.load %arg9[%c0_31, %c0_32] : memref<256x384xbf16, #tpu.memory_space<vmem>>, vector<256x128xbf16>
    tpu.vector_store %arg9[%c0_31, %c0_32], %51 {strides = array<i32>} : memref<256x384xbf16, #tpu.memory_space<vmem>>, vector<256x128xbf16>,
    %c1_33 = arith.constant 1 : index
    %c8_34 = arith.constant 8 : index
    %c0_35 = arith.constant 0 : index
    %53 = vector.load %arg7[%c1_33, %c8_34, %c0_35] : memref<18x32x128xf32, #tpu.memory_space<vmem>>, vector<16x16x128xf32>
    %54 = vector.shape_cast %53 : vector<16x16x128xf32> to vector<256x128xf32>
    %55 = arith.truncf %54 : vector<256x128xf32> to vector<256x128xbf16>
    %c0_36 = arith.constant 0 : index
    %c128_37 = arith.constant 128 : index
    %56 = vector.load %arg9[%c0_36, %c128_37] : memref<256x384xbf16, #tpu.memory_space<vmem>>, vector<256x128xbf16>
    tpu.vector_store %arg9[%c0_36, %c128_37], %55 {strides = array<i32>} : memref<256x384xbf16, #tpu.memory_space<vmem>>, vector<256x128xbf16>,
    %c2_38 = arith.constant 2 : index
    %c8_39 = arith.constant 8 : index
    %c0_40 = arith.constant 0 : index
    %57 = vector.load %arg7[%c2_38, %c8_39, %c0_40] : memref<18x32x128xf32, #tpu.memory_space<vmem>>, vector<16x16x128xf32>
    %cst_41 = arith.constant 0.000000e+00 : f32
    %58 = vector.shape_cast %5 : vector<16x16x1xi1> to vector<16x16x1xi1>
    %59 = vector.broadcast %58 : vector<16x16x1xi1> to vector<16x16x128xi1>
    %60 = vector.broadcast %cst_41 : f32 to vector<16x16x128xf32>
    %61 = arith.select %59, %57, %60 : vector<16x16x128xi1>, vector<16x16x128xf32>
    %62 = vector.shape_cast %61 : vector<16x16x128xf32> to vector<256x128xf32>
    %63 = arith.truncf %62 : vector<256x128xf32> to vector<256x128xbf16>
    %c0_42 = arith.constant 0 : index
    %c256_43 = arith.constant 256 : index
    %64 = vector.load %arg9[%c0_42, %c256_43] : memref<256x384xbf16, #tpu.memory_space<vmem>>, vector<256x128xbf16>
    tpu.vector_store %arg9[%c0_42, %c256_43], %63 {strides = array<i32>} : memref<256x384xbf16, #tpu.memory_space<vmem>>, vector<256x128xbf16>,
    %c0_44 = arith.constant 0 : index
    %c0_45 = arith.constant 0 : index
    %65 = vector.load %arg9[%c0_44, %c0_45] : memref<256x384xbf16, #tpu.memory_space<vmem>>, vector<256x384xbf16>
    %c1_46 = arith.constant 1 : index
    %c0_47 = arith.constant 0 : index
    %c0_48 = arith.constant 0 : index
    %66 = vector.load %arg2[%c1_46, %c0_47, %c0_48] : memref<3x384x256xbf16, #tpu.memory_space<vmem>>, vector<1x384x256xbf16>
    %67 = vector.shape_cast %66 : vector<1x384x256xbf16> to vector<384x256xbf16>
    %cst_49 = arith.constant dense<0.000000e+00> : vector<256x256xf32>
    %68 = tpu.matmul %65, %67, %cst_49 {dimension_numbers = #tpu.dot_dimension_numbers<[1], [0], [0], [1], [0, 0, 1, 1], [], []>} : vector<256x384xbf16>, vector<384x256xbf16>, vector<256x256xf32> -> vector<256x256xf32>
    %c0_50 = arith.constant 0 : index
    %c0_51 = arith.constant 0 : index
    %69 = vector.load %arg11[%c0_50, %c0_51] : memref<256x256xf32, #tpu.memory_space<vmem>>, vector<256x256xf32>
    %70 = arith.addf %69, %68 : vector<256x256xf32>
    %c0_52 = arith.constant 0 : index
    %c0_53 = arith.constant 0 : index
    %71 = vector.load %arg11[%c0_52, %c0_53] : memref<256x256xf32, #tpu.memory_space<vmem>>, vector<256x256xf32>
    tpu.vector_store %arg11[%c0_52, %c0_53], %70 {strides = array<i32>} : memref<256x256xf32, #tpu.memory_space<vmem>>, vector<256x256xf32>,
    %c0_54 = arith.constant 0 : index
    %c9 = arith.constant 9 : index
    %c0_55 = arith.constant 0 : index
    %72 = vector.load %arg7[%c0_54, %c9, %c0_55] : memref<18x32x128xf32, #tpu.memory_space<vmem>>, vector<16x16x128xf32>
    %73 = arith.andi %3, %9 : vector<16x16x1xi1>
    %cst_56 = arith.constant 0.000000e+00 : f32
    %74 = vector.shape_cast %73 : vector<16x16x1xi1> to vector<16x16x1xi1>
    %75 = vector.broadcast %74 : vector<16x16x1xi1> to vector<16x16x128xi1>
    %76 = vector.broadcast %cst_56 : f32 to vector<16x16x128xf32>
    %77 = arith.select %75, %72, %76 : vector<16x16x128xi1>, vector<16x16x128xf32>
    %78 = vector.shape_cast %77 : vector<16x16x128xf32> to vector<256x128xf32>
    %79 = arith.truncf %78 : vector<256x128xf32> to vector<256x128xbf16>
    %c0_57 = arith.constant 0 : index
    %c0_58 = arith.constant 0 : index
    %80 = vector.load %arg9[%c0_57, %c0_58] : memref<256x384xbf16, #tpu.memory_space<vmem>>, vector<256x128xbf16>
    tpu.vector_store %arg9[%c0_57, %c0_58], %79 {strides = array<i32>} : memref<256x384xbf16, #tpu.memory_space<vmem>>, vector<256x128xbf16>,
    %c1_59 = arith.constant 1 : index
    %c9_60 = arith.constant 9 : index
    %c0_61 = arith.constant 0 : index
    %81 = vector.load %arg7[%c1_59, %c9_60, %c0_61] : memref<18x32x128xf32, #tpu.memory_space<vmem>>, vector<16x16x128xf32>
    %cst_62 = arith.constant 0.000000e+00 : f32
    %82 = vector.shape_cast %9 : vector<16x16x1xi1> to vector<16x16x1xi1>
    %83 = vector.broadcast %82 : vector<16x16x1xi1> to vector<16x16x128xi1>
    %84 = vector.broadcast %cst_62 : f32 to vector<16x16x128xf32>
    %85 = arith.select %83, %81, %84 : vector<16x16x128xi1>, vector<16x16x128xf32>
    %86 = vector.shape_cast %85 : vector<16x16x128xf32> to vector<256x128xf32>
    %87 = arith.truncf %86 : vector<256x128xf32> to vector<256x128xbf16>
    %c0_63 = arith.constant 0 : index
    %c128_64 = arith.constant 128 : index
    %88 = vector.load %arg9[%c0_63, %c128_64] : memref<256x384xbf16, #tpu.memory_space<vmem>>, vector<256x128xbf16>
    tpu.vector_store %arg9[%c0_63, %c128_64], %87 {strides = array<i32>} : memref<256x384xbf16, #tpu.memory_space<vmem>>, vector<256x128xbf16>,
    %c2_65 = arith.constant 2 : index
    %c9_66 = arith.constant 9 : index
    %c0_67 = arith.constant 0 : index
    %89 = vector.load %arg7[%c2_65, %c9_66, %c0_67] : memref<18x32x128xf32, #tpu.memory_space<vmem>>, vector<16x16x128xf32>
    %90 = arith.andi %5, %9 : vector<16x16x1xi1>
    %cst_68 = arith.constant 0.000000e+00 : f32
    %91 = vector.shape_cast %90 : vector<16x16x1xi1> to vector<16x16x1xi1>
    %92 = vector.broadcast %91 : vector<16x16x1xi1> to vector<16x16x128xi1>
    %93 = vector.broadcast %cst_68 : f32 to vector<16x16x128xf32>
    %94 = arith.select %92, %89, %93 : vector<16x16x128xi1>, vector<16x16x128xf32>
    %95 = vector.shape_cast %94 : vector<16x16x128xf32> to vector<256x128xf32>
    %96 = arith.truncf %95 : vector<256x128xf32> to vector<256x128xbf16>
    %c0_69 = arith.constant 0 : index
    %c256_70 = arith.constant 256 : index
    %97 = vector.load %arg9[%c0_69, %c256_70] : memref<256x384xbf16, #tpu.memory_space<vmem>>, vector<256x128xbf16>
    tpu.vector_store %arg9[%c0_69, %c256_70], %96 {strides = array<i32>} : memref<256x384xbf16, #tpu.memory_space<vmem>>, vector<256x128xbf16>,
    %c0_71 = arith.constant 0 : index
    %c0_72 = arith.constant 0 : index
    %98 = vector.load %arg9[%c0_71, %c0_72] : memref<256x384xbf16, #tpu.memory_space<vmem>>, vector<256x384xbf16>
    %c2_73 = arith.constant 2 : index
    %c0_74 = arith.constant 0 : index
    %c0_75 = arith.constant 0 : index
    %99 = vector.load %arg2[%c2_73, %c0_74, %c0_75] : memref<3x384x256xbf16, #tpu.memory_space<vmem>>, vector<1x384x256xbf16>
    %100 = vector.shape_cast %99 : vector<1x384x256xbf16> to vector<384x256xbf16>
    %cst_76 = arith.constant dense<0.000000e+00> : vector<256x256xf32>
    %101 = tpu.matmul %98, %100, %cst_76 {dimension_numbers = #tpu.dot_dimension_numbers<[1], [0], [0], [1], [0, 0, 1, 1], [], []>} : vector<256x384xbf16>, vector<384x256xbf16>, vector<256x256xf32> -> vector<256x256xf32>
    %c0_77 = arith.constant 0 : index
    %c0_78 = arith.constant 0 : index
    %102 = vector.load %arg11[%c0_77, %c0_78] : memref<256x256xf32, #tpu.memory_space<vmem>>, vector<256x256xf32>
    %103 = arith.addf %102, %101 : vector<256x256xf32>
    %c0_79 = arith.constant 0 : index
    %c0_80 = arith.constant 0 : index
    %104 = vector.load %arg11[%c0_79, %c0_80] : memref<256x256xf32, #tpu.memory_space<vmem>>, vector<256x256xf32>
    tpu.vector_store %arg11[%c0_79, %c0_80], %103 {strides = array<i32>} : memref<256x256xf32, #tpu.memory_space<vmem>>, vector<256x256xf32>,
    %c0_81 = arith.constant 0 : index
    %c0_82 = arith.constant 0 : index
    %105 = vector.load %arg11[%c0_81, %c0_82] : memref<256x256xf32, #tpu.memory_space<vmem>>, vector<256x256xf32>
    %c0_83 = arith.constant 0 : index
    %c0_84 = arith.constant 0 : index
    %106 = vector.load %arg3[%c0_83, %c0_84] : memref<1x256xf32, #tpu.memory_space<vmem>>, vector<1x256xf32>
    %107 = vector.broadcast %106 : vector<1x256xf32> to vector<256x256xf32>
    %108 = arith.addf %105, %107 : vector<256x256xf32>
    %cst_85 = arith.constant 0.000000e+00 : f32
    %109 = vector.broadcast %cst_85 : f32 to vector<256x256xf32>
    %110 = arith.maximumf %108, %109 : vector<256x256xf32>
    %111 = vector.shape_cast %110 : vector<256x256xf32> to vector<16x16x256xf32>
    %c1_86 = arith.constant 1 : index
    %c8_87 = arith.constant 8 : index
    %c0_88 = arith.constant 0 : index
    %112 = vector.load %arg8[%c1_86, %c8_87, %c0_88] : memref<18x32x256xf32, #tpu.memory_space<vmem>>, vector<16x16x256xf32>
    tpu.vector_store %arg8[%c1_86, %c8_87, %c0_88], %111 {strides = array<i32>} : memref<18x32x256xf32, #tpu.memory_space<vmem>>, vector<16x16x256xf32>,
    %c0_89 = arith.constant 0 : index
    %c7_90 = arith.constant 7 : index
    %c0_91 = arith.constant 0 : index
    %113 = vector.load %arg8[%c0_89, %c7_90, %c0_91] : memref<18x32x256xf32, #tpu.memory_space<vmem>>, vector<16x16x256xf32>
    %114 = arith.andi %3, %7 : vector<16x16x1xi1>
    %cst_92 = arith.constant 0.000000e+00 : f32
    %115 = vector.shape_cast %114 : vector<16x16x1xi1> to vector<16x16x1xi1>
    %116 = vector.broadcast %115 : vector<16x16x1xi1> to vector<16x16x256xi1>
    %117 = vector.broadcast %cst_92 : f32 to vector<16x16x256xf32>
    %118 = arith.select %116, %113, %117 : vector<16x16x256xi1>, vector<16x16x256xf32>
    %119 = vector.shape_cast %118 : vector<16x16x256xf32> to vector<256x256xf32>
    %120 = arith.truncf %119 : vector<256x256xf32> to vector<256x256xbf16>
    %c0_93 = arith.constant 0 : index
    %c0_94 = arith.constant 0 : index
    %121 = vector.load %arg10[%c0_93, %c0_94] : memref<256x768xbf16, #tpu.memory_space<vmem>>, vector<256x256xbf16>
    tpu.vector_store %arg10[%c0_93, %c0_94], %120 {strides = array<i32>} : memref<256x768xbf16, #tpu.memory_space<vmem>>, vector<256x256xbf16>,
    %c1_95 = arith.constant 1 : index
    %c7_96 = arith.constant 7 : index
    %c0_97 = arith.constant 0 : index
    %122 = vector.load %arg8[%c1_95, %c7_96, %c0_97] : memref<18x32x256xf32, #tpu.memory_space<vmem>>, vector<16x16x256xf32>
    %cst_98 = arith.constant 0.000000e+00 : f32
    %123 = vector.shape_cast %7 : vector<16x16x1xi1> to vector<16x16x1xi1>
    %124 = vector.broadcast %123 : vector<16x16x1xi1> to vector<16x16x256xi1>
    %125 = vector.broadcast %cst_98 : f32 to vector<16x16x256xf32>
    %126 = arith.select %124, %122, %125 : vector<16x16x256xi1>, vector<16x16x256xf32>
    %127 = vector.shape_cast %126 : vector<16x16x256xf32> to vector<256x256xf32>
    %128 = arith.truncf %127 : vector<256x256xf32> to vector<256x256xbf16>
    %c0_99 = arith.constant 0 : index
    %c256_100 = arith.constant 256 : index
    %129 = vector.load %arg10[%c0_99, %c256_100] : memref<256x768xbf16, #tpu.memory_space<vmem>>, vector<256x256xbf16>
    tpu.vector_store %arg10[%c0_99, %c256_100], %128 {strides = array<i32>} : memref<256x768xbf16, #tpu.memory_space<vmem>>, vector<256x256xbf16>,
    %c2_101 = arith.constant 2 : index
    %c7_102 = arith.constant 7 : index
    %c0_103 = arith.constant 0 : index
    %130 = vector.load %arg8[%c2_101, %c7_102, %c0_103] : memref<18x32x256xf32, #tpu.memory_space<vmem>>, vector<16x16x256xf32>
    %131 = arith.andi %5, %7 : vector<16x16x1xi1>
    %cst_104 = arith.constant 0.000000e+00 : f32
    %132 = vector.shape_cast %131 : vector<16x16x1xi1> to vector<16x16x1xi1>
    %133 = vector.broadcast %132 : vector<16x16x1xi1> to vector<16x16x256xi1>
    %134 = vector.broadcast %cst_104 : f32 to vector<16x16x256xf32>
    %135 = arith.select %133, %130, %134 : vector<16x16x256xi1>, vector<16x16x256xf32>
    %136 = vector.shape_cast %135 : vector<16x16x256xf32> to vector<256x256xf32>
    %137 = arith.truncf %136 : vector<256x256xf32> to vector<256x256xbf16>
    %c0_105 = arith.constant 0 : index
    %c512 = arith.constant 512 : index
    %138 = vector.load %arg10[%c0_105, %c512] : memref<256x768xbf16, #tpu.memory_space<vmem>>, vector<256x256xbf16>
    tpu.vector_store %arg10[%c0_105, %c512], %137 {strides = array<i32>} : memref<256x768xbf16, #tpu.memory_space<vmem>>, vector<256x256xbf16>,
    %c0_106 = arith.constant 0 : index
    %c0_107 = arith.constant 0 : index
    %139 = vector.load %arg10[%c0_106, %c0_107] : memref<256x768xbf16, #tpu.memory_space<vmem>>, vector<256x768xbf16>
    %c0_108 = arith.constant 0 : index
    %c0_109 = arith.constant 0 : index
    %c0_110 = arith.constant 0 : index
    %140 = vector.load %arg4[%c0_108, %c0_109, %c0_110] : memref<3x768x256xbf16, #tpu.memory_space<vmem>>, vector<1x768x256xbf16>
    %141 = vector.shape_cast %140 : vector<1x768x256xbf16> to vector<768x256xbf16>
    %cst_111 = arith.constant dense<0.000000e+00> : vector<256x256xf32>
    %142 = tpu.matmul %139, %141, %cst_111 {dimension_numbers = #tpu.dot_dimension_numbers<[1], [0], [0], [1], [0, 0, 1, 1], [], []>} : vector<256x768xbf16>, vector<768x256xbf16>, vector<256x256xf32> -> vector<256x256xf32>
    %c0_112 = arith.constant 0 : index
    %c0_113 = arith.constant 0 : index
    %143 = vector.load %arg12[%c0_112, %c0_113] : memref<256x256xf32, #tpu.memory_space<vmem>>, vector<256x256xf32>
    tpu.vector_store %arg12[%c0_112, %c0_113], %142 {strides = array<i32>} : memref<256x256xf32, #tpu.memory_space<vmem>>, vector<256x256xf32>,
    %c0_114 = arith.constant 0 : index
    %c8_115 = arith.constant 8 : index
    %c0_116 = arith.constant 0 : index
    %144 = vector.load %arg8[%c0_114, %c8_115, %c0_116] : memref<18x32x256xf32, #tpu.memory_space<vmem>>, vector<16x16x256xf32>
    %cst_117 = arith.constant 0.000000e+00 : f32
    %145 = vector.shape_cast %3 : vector<16x16x1xi1> to vector<16x16x1xi1>
    %146 = vector.broadcast %145 : vector<16x16x1xi1> to vector<16x16x256xi1>
    %147 = vector.broadcast %cst_117 : f32 to vector<16x16x256xf32>
    %148 = arith.select %146, %144, %147 : vector<16x16x256xi1>, vector<16x16x256xf32>
    %149 = vector.shape_cast %148 : vector<16x16x256xf32> to vector<256x256xf32>
    %150 = arith.truncf %149 : vector<256x256xf32> to vector<256x256xbf16>
    %c0_118 = arith.constant 0 : index
    %c0_119 = arith.constant 0 : index
    %151 = vector.load %arg10[%c0_118, %c0_119] : memref<256x768xbf16, #tpu.memory_space<vmem>>, vector<256x256xbf16>
    tpu.vector_store %arg10[%c0_118, %c0_119], %150 {strides = array<i32>} : memref<256x768xbf16, #tpu.memory_space<vmem>>, vector<256x256xbf16>,
    %c1_120 = arith.constant 1 : index
    %c8_121 = arith.constant 8 : index
    %c0_122 = arith.constant 0 : index
    %152 = vector.load %arg8[%c1_120, %c8_121, %c0_122] : memref<18x32x256xf32, #tpu.memory_space<vmem>>, vector<16x16x256xf32>
    %153 = vector.shape_cast %152 : vector<16x16x256xf32> to vector<256x256xf32>
    %154 = arith.truncf %153 : vector<256x256xf32> to vector<256x256xbf16>
    %c0_123 = arith.constant 0 : index
    %c256_124 = arith.constant 256 : index
    %155 = vector.load %arg10[%c0_123, %c256_124] : memref<256x768xbf16, #tpu.memory_space<vmem>>, vector<256x256xbf16>
    tpu.vector_store %arg10[%c0_123, %c256_124], %154 {strides = array<i32>} : memref<256x768xbf16, #tpu.memory_space<vmem>>, vector<256x256xbf16>,
    %c2_125 = arith.constant 2 : index
    %c8_126 = arith.constant 8 : index
    %c0_127 = arith.constant 0 : index
    %156 = vector.load %arg8[%c2_125, %c8_126, %c0_127] : memref<18x32x256xf32, #tpu.memory_space<vmem>>, vector<16x16x256xf32>
    %cst_128 = arith.constant 0.000000e+00 : f32
    %157 = vector.shape_cast %5 : vector<16x16x1xi1> to vector<16x16x1xi1>
    %158 = vector.broadcast %157 : vector<16x16x1xi1> to vector<16x16x256xi1>
    %159 = vector.broadcast %cst_128 : f32 to vector<16x16x256xf32>
    %160 = arith.select %158, %156, %159 : vector<16x16x256xi1>, vector<16x16x256xf32>
    %161 = vector.shape_cast %160 : vector<16x16x256xf32> to vector<256x256xf32>
    %162 = arith.truncf %161 : vector<256x256xf32> to vector<256x256xbf16>
    %c0_129 = arith.constant 0 : index
    %c512_130 = arith.constant 512 : index
    %163 = vector.load %arg10[%c0_129, %c512_130] : memref<256x768xbf16, #tpu.memory_space<vmem>>, vector<256x256xbf16>
    tpu.vector_store %arg10[%c0_129, %c512_130], %162 {strides = array<i32>} : memref<256x768xbf16, #tpu.memory_space<vmem>>, vector<256x256xbf16>,
    %c0_131 = arith.constant 0 : index
    %c0_132 = arith.constant 0 : index
    %164 = vector.load %arg10[%c0_131, %c0_132] : memref<256x768xbf16, #tpu.memory_space<vmem>>, vector<256x768xbf16>
    %c1_133 = arith.constant 1 : index
    %c0_134 = arith.constant 0 : index
    %c0_135 = arith.constant 0 : index
    %165 = vector.load %arg4[%c1_133, %c0_134, %c0_135] : memref<3x768x256xbf16, #tpu.memory_space<vmem>>, vector<1x768x256xbf16>
    %166 = vector.shape_cast %165 : vector<1x768x256xbf16> to vector<768x256xbf16>
    %cst_136 = arith.constant dense<0.000000e+00> : vector<256x256xf32>
    %167 = tpu.matmul %164, %166, %cst_136 {dimension_numbers = #tpu.dot_dimension_numbers<[1], [0], [0], [1], [0, 0, 1, 1], [], []>} : vector<256x768xbf16>, vector<768x256xbf16>, vector<256x256xf32> -> vector<256x256xf32>
    %c0_137 = arith.constant 0 : index
    %c0_138 = arith.constant 0 : index
    %168 = vector.load %arg12[%c0_137, %c0_138] : memref<256x256xf32, #tpu.memory_space<vmem>>, vector<256x256xf32>
    %169 = arith.addf %168, %167 : vector<256x256xf32>
    %c0_139 = arith.constant 0 : index
    %c0_140 = arith.constant 0 : index
    %170 = vector.load %arg12[%c0_139, %c0_140] : memref<256x256xf32, #tpu.memory_space<vmem>>, vector<256x256xf32>
    tpu.vector_store %arg12[%c0_139, %c0_140], %169 {strides = array<i32>} : memref<256x256xf32, #tpu.memory_space<vmem>>, vector<256x256xf32>,
    %c0_141 = arith.constant 0 : index
    %c9_142 = arith.constant 9 : index
    %c0_143 = arith.constant 0 : index
    %171 = vector.load %arg8[%c0_141, %c9_142, %c0_143] : memref<18x32x256xf32, #tpu.memory_space<vmem>>, vector<16x16x256xf32>
    %172 = arith.andi %3, %9 : vector<16x16x1xi1>
    %cst_144 = arith.constant 0.000000e+00 : f32
    %173 = vector.shape_cast %172 : vector<16x16x1xi1> to vector<16x16x1xi1>
    %174 = vector.broadcast %173 : vector<16x16x1xi1> to vector<16x16x256xi1>
    %175 = vector.broadcast %cst_144 : f32 to vector<16x16x256xf32>
    %176 = arith.select %174, %171, %175 : vector<16x16x256xi1>, vector<16x16x256xf32>
    %177 = vector.shape_cast %176 : vector<16x16x256xf32> to vector<256x256xf32>
    %178 = arith.truncf %177 : vector<256x256xf32> to vector<256x256xbf16>
    %c0_145 = arith.constant 0 : index
    %c0_146 = arith.constant 0 : index
    %179 = vector.load %arg10[%c0_145, %c0_146] : memref<256x768xbf16, #tpu.memory_space<vmem>>, vector<256x256xbf16>
    tpu.vector_store %arg10[%c0_145, %c0_146], %178 {strides = array<i32>} : memref<256x768xbf16, #tpu.memory_space<vmem>>, vector<256x256xbf16>,
    %c1_147 = arith.constant 1 : index
    %c9_148 = arith.constant 9 : index
    %c0_149 = arith.constant 0 : index
    %180 = vector.load %arg8[%c1_147, %c9_148, %c0_149] : memref<18x32x256xf32, #tpu.memory_space<vmem>>, vector<16x16x256xf32>
    %cst_150 = arith.constant 0.000000e+00 : f32
    %181 = vector.shape_cast %9 : vector<16x16x1xi1> to vector<16x16x1xi1>
    %182 = vector.broadcast %181 : vector<16x16x1xi1> to vector<16x16x256xi1>
    %183 = vector.broadcast %cst_150 : f32 to vector<16x16x256xf32>
    %184 = arith.select %182, %180, %183 : vector<16x16x256xi1>, vector<16x16x256xf32>
    %185 = vector.shape_cast %184 : vector<16x16x256xf32> to vector<256x256xf32>
    %186 = arith.truncf %185 : vector<256x256xf32> to vector<256x256xbf16>
    %c0_151 = arith.constant 0 : index
    %c256_152 = arith.constant 256 : index
    %187 = vector.load %arg10[%c0_151, %c256_152] : memref<256x768xbf16, #tpu.memory_space<vmem>>, vector<256x256xbf16>
    tpu.vector_store %arg10[%c0_151, %c256_152], %186 {strides = array<i32>} : memref<256x768xbf16, #tpu.memory_space<vmem>>, vector<256x256xbf16>,
    %c2_153 = arith.constant 2 : index
    %c9_154 = arith.constant 9 : index
    %c0_155 = arith.constant 0 : index
    %188 = vector.load %arg8[%c2_153, %c9_154, %c0_155] : memref<18x32x256xf32, #tpu.memory_space<vmem>>, vector<16x16x256xf32>
    %189 = arith.andi %5, %9 : vector<16x16x1xi1>
    %cst_156 = arith.constant 0.000000e+00 : f32
    %190 = vector.shape_cast %189 : vector<16x16x1xi1> to vector<16x16x1xi1>
    %191 = vector.broadcast %190 : vector<16x16x1xi1> to vector<16x16x256xi1>
    %192 = vector.broadcast %cst_156 : f32 to vector<16x16x256xf32>
    %193 = arith.select %191, %188, %192 : vector<16x16x256xi1>, vector<16x16x256xf32>
    %194 = vector.shape_cast %193 : vector<16x16x256xf32> to vector<256x256xf32>
    %195 = arith.truncf %194 : vector<256x256xf32> to vector<256x256xbf16>
    %c0_157 = arith.constant 0 : index
    %c512_158 = arith.constant 512 : index
    %196 = vector.load %arg10[%c0_157, %c512_158] : memref<256x768xbf16, #tpu.memory_space<vmem>>, vector<256x256xbf16>
    tpu.vector_store %arg10[%c0_157, %c512_158], %195 {strides = array<i32>} : memref<256x768xbf16, #tpu.memory_space<vmem>>, vector<256x256xbf16>,
    %c0_159 = arith.constant 0 : index
    %c0_160 = arith.constant 0 : index
    %197 = vector.load %arg10[%c0_159, %c0_160] : memref<256x768xbf16, #tpu.memory_space<vmem>>, vector<256x768xbf16>
    %c2_161 = arith.constant 2 : index
    %c0_162 = arith.constant 0 : index
    %c0_163 = arith.constant 0 : index
    %198 = vector.load %arg4[%c2_161, %c0_162, %c0_163] : memref<3x768x256xbf16, #tpu.memory_space<vmem>>, vector<1x768x256xbf16>
    %199 = vector.shape_cast %198 : vector<1x768x256xbf16> to vector<768x256xbf16>
    %cst_164 = arith.constant dense<0.000000e+00> : vector<256x256xf32>
    %200 = tpu.matmul %197, %199, %cst_164 {dimension_numbers = #tpu.dot_dimension_numbers<[1], [0], [0], [1], [0, 0, 1, 1], [], []>} : vector<256x768xbf16>, vector<768x256xbf16>, vector<256x256xf32> -> vector<256x256xf32>
    %c0_165 = arith.constant 0 : index
    %c0_166 = arith.constant 0 : index
    %201 = vector.load %arg12[%c0_165, %c0_166] : memref<256x256xf32, #tpu.memory_space<vmem>>, vector<256x256xf32>
    %202 = arith.addf %201, %200 : vector<256x256xf32>
    %c0_167 = arith.constant 0 : index
    %c0_168 = arith.constant 0 : index
    %203 = vector.load %arg12[%c0_167, %c0_168] : memref<256x256xf32, #tpu.memory_space<vmem>>, vector<256x256xf32>
    tpu.vector_store %arg12[%c0_167, %c0_168], %202 {strides = array<i32>} : memref<256x256xf32, #tpu.memory_space<vmem>>, vector<256x256xf32>,
    %c0_169 = arith.constant 0 : index
    %c0_170 = arith.constant 0 : index
    %204 = vector.load %arg12[%c0_169, %c0_170] : memref<256x256xf32, #tpu.memory_space<vmem>>, vector<256x256xf32>
    %c0_171 = arith.constant 0 : index
    %c0_172 = arith.constant 0 : index
    %205 = vector.load %arg5[%c0_171, %c0_172] : memref<1x256xf32, #tpu.memory_space<vmem>>, vector<1x256xf32>
    %206 = vector.broadcast %205 : vector<1x256xf32> to vector<256x256xf32>
    %207 = arith.addf %204, %206 : vector<256x256xf32>
    %cst_173 = arith.constant 0.000000e+00 : f32
    %208 = vector.broadcast %cst_173 : f32 to vector<256x256xf32>
    %209 = arith.maximumf %207, %208 : vector<256x256xf32>
    %210 = vector.shape_cast %209 : vector<256x256xf32> to vector<16x16x256xf32>
    %c0_174 = arith.constant 0 : index
    %c0_175 = arith.constant 0 : index
    %c0_176 = arith.constant 0 : index
    %c0_177 = arith.constant 0 : index
    %211 = vector.load %arg6[%c0_174, %c0_175, %c0_176, %c0_177] : memref<1x16x16x256xf32, #tpu.memory_space<vmem>>, vector<1x16x16x256xf32>
    %212 = vector.shape_cast %211 : vector<1x16x16x256xf32> to vector<16x16x256xf32>
    %213 = vector.shape_cast %210 : vector<16x16x256xf32> to vector<1x16x16x256xf32>
    tpu.vector_store %arg6[%c0_174, %c0_175, %c0_176, %c0_177], %213 {strides = array<i32>} : memref<1x16x16x256xf32, #tpu.memory_space<vmem>>, vector<1x16x16x256xf32>,
    return
  }
  func.func @transform_0(%arg0: i32) -> (i32, i32, i32, i32) {
    %c0_i32 = arith.constant 0 : i32
    %c0_i32_0 = arith.constant 0 : i32
    %c0_i32_1 = arith.constant 0 : i32
    %c0_i32_2 = arith.constant 0 : i32
    return %arg0, %c0_i32, %c0_i32_0, %c0_i32_1 : i32, i32, i32, i32
  }
  func.func @transform_1(%arg0: i32) -> (i32, i32, i32) {
    %c0_i32 = arith.constant 0 : i32
    %c0_i32_0 = arith.constant 0 : i32
    %c0_i32_1 = arith.constant 0 : i32
    %c0_i32_2 = arith.constant 0 : i32
    return %c0_i32, %c0_i32_0, %c0_i32_1 : i32, i32, i32
  }
  func.func @transform_2(%arg0: i32) -> (i32, i32) {
    %c0_i32 = arith.constant 0 : i32
    %c0_i32_0 = arith.constant 0 : i32
    %c0_i32_1 = arith.constant 0 : i32
    return %c0_i32, %c0_i32_0 : i32, i32
  }
  func.func @transform_3(%arg0: i32) -> (i32, i32, i32) {
    %c0_i32 = arith.constant 0 : i32
    %c0_i32_0 = arith.constant 0 : i32
    %c0_i32_1 = arith.constant 0 : i32
    %c0_i32_2 = arith.constant 0 : i32
    return %c0_i32, %c0_i32_0, %c0_i32_1 : i32, i32, i32
  }
  func.func @transform_4(%arg0: i32) -> (i32, i32) {
    %c0_i32 = arith.constant 0 : i32
    %c0_i32_0 = arith.constant 0 : i32
    %c0_i32_1 = arith.constant 0 : i32
    return %c0_i32, %c0_i32_0 : i32, i32
  }
  func.func @transform_5(%arg0: i32) -> (i32, i32, i32, i32) {
    %c0_i32 = arith.constant 0 : i32
    %c0_i32_0 = arith.constant 0 : i32
    %c0_i32_1 = arith.constant 0 : i32
    %c0_i32_2 = arith.constant 0 : i32
    return %arg0, %c0_i32, %c0_i32_0, %c0_i32_1 : i32, i32, i32, i32
  }
}

</mosaic_0001>

<bundles_post_ra>
// kernel: _lambda_.1
= control target key start
LH: loop header
LB: loop body
LE: loop exit
PB: predicated region body
PF: predicated region fallthrough
CT: control target
= control target key end

     0   :  { %10 = vsyncpa [#allocation9], 0  ;;  %s19445_s0 = inlined_call_operand.vmem [shape: bf16[2,16,16,128], index: 0, kind: input, shape index: {}]   ;;  %s19446_s1 = inlined_call_operand.vmem [shape: bf16[3,384,256], index: 1, kind: input, shape index: {}]   ;;  %s19447_s2 = inlined_call_operand.vmem [shape: f32[1,256], index: 2, kind: input, shape index: {}]   ;;  %s19448_s3 = inlined_call_operand.vmem [shape: bf16[3,768,256], index: 3, kind: input, shape index: {}]   ;;  %s19449_s4 = inlined_call_operand.vmem [shape: f32[1,256], index: 4, kind: input, shape index: {}]   ;;  %s19450_s5 = inlined_call_operand.hbm [shape: f32[2,16,16,256], index: 5, kind: output, shape index: {}]  }
   0x1   :  { %12 = vsyncpa [#allocation9 + $0x1], 0  ;;  %s15717_s18 = smov 0   ;;  %s15719_s19 = smov 0  }
   0x2   :  { %s15721_s20 = smov 0   ;;  %s15723_s21 = smov 0  }
   0x3 LB: > { %s15738_s22 = sadd.s32 4294967295, %s15679_s21   ;;  %s12404_s23 = sadd.s32 4294967294, %s15679_s21   ;;  %s15679_s21 = sphi %s15723_s21, %s19565_s21   ;;  %s15675_s20 = sphi %s15721_s20, %s19564_s20   ;;  %s15671_s19 = sphi %s15719_s19, %s19563_s19   ;;  %s15667_s18 = sphi %s15717_s18, %s19562_s18  }
   0x4   : > { %s15742_s24 = sadd.s32 1, %s15679_s21   ;;  %s135_s25 = sadd.s32 1, %s15675_s20 }
   0x5   : > { %s132_s26 = ssub.s32 %s15679_s21, %s15742_s24  ;;  %p145_p0 = scmp.ne.s32.totalorder %s15675_s20, %s15671_s19 }
   0x6   : > { %p133_p1 = scmp.eq.s32.totalorder %s132_s26, 0  ;;  %p146_p2 = scmp.eq.s32.totalorder %s15738_s22, 1 }
   0x7   : > { %p151_p3 = scmp.ne.s32.totalorder %s15671_s19, %s15667_s18  ;;  %p152_p4 = scmp.eq.s32.totalorder %s12404_s23, 1 }
   0x8   : > { %s15753_s27 = scalar_select %p133_p1, %s15675_s20, %s135_s25  }
   0x9   : > { %p15755_p5 = por %p146_p2, %p145_p0  ;;  %p15759_p6 = por %p152_p4, %p151_p3 }
   0xa   : > { %p12407_p7 = scmp.ge.s32.totalorder %s15679_s21, 1  ;;  %p190_p8 = scmp.lt.s32.totalorder %s15679_s21, 3 }
   0xc   : > { %p191_p9 = pnand %p12407_p7, %p190_p8 }
   0xe   : > { %194 = sbr.rel (%p191_p9) target bundleno = 2212 (0x8a4), region = 40 }
  0x15   : > { %v14953_v0 = vld [vmem:[%s19446_s1 + $0x4] ss:$8 sps:$4 sm:$0xff]   ;;  %v14955_v1 = vld [vmem:[%s19446_s1] ss:$8 sps:$4 sm:$0xff]   ;;  %v14956_v2 = vld [vmem:[%s19446_s1 + $0x14] ss:$8 sps:$4 sm:$0xff]   ;;  %v224_v12 = vlaneseq }
  0x16   : > { %969 = vmatprep.subr.bf16.mxu0 %v14953_v0  ;;  %v14958_v3 = vld [vmem:[%s19446_s1 + $0x10] ss:$8 sps:$4 sm:$0xff]   ;;  %v14959_v4 = vld [vmem:[%s19446_s1 + $0x24] ss:$8 sps:$4 sm:$0xff]   ;;  %v14961_v5 = vld [vmem:[%s19446_s1 + $0x20] ss:$8 sps:$4 sm:$0xff]  }
  0x17   : > { %970 = vmatpush1.bf16.msra.mxu0 %v14955_v1  ;;  %p218_p10 = scmp.lt.s32.totalorder %s15738_s22, 1  ;;  %v14962_v6 = vld [vmem:[%s19446_s1 + $0x34] ss:$8 sps:$4 sm:$0xff]   ;;  %v14964_v7 = vld [vmem:[%s19446_s1 + $0x30] ss:$8 sps:$4 sm:$0xff]   ;;  %v15815_v18 = vshrl.u32 %v224_v12, 7 }
  0x18   : > { %971 = vmatprep.subr.bf16.mxu0 %v14956_v2  ;;  %v14965_v8 = vld [vmem:[%s19446_s1 + $0x44] ss:$8 sps:$4 sm:$0xff]   ;;  %v14967_v9 = vld [vmem:[%s19446_s1 + $0x40] ss:$8 sps:$4 sm:$0xff]   ;;  %v14968_v10 = vld [vmem:[%s19446_s1 + $0x54] ss:$8 sps:$4 sm:$0xff]  }
  0x19   : > { %s219_s30 = scalar_select %p218_p10, %s15738_s22, 1  ;;  %v14970_v11 = vld [vmem:[%s19446_s1 + $0x50] ss:$8 sps:$4 sm:$0xff]   ;;  %v14971_v13 = vld [vmem:[%s19446_s1 + $0x64] ss:$8 sps:$4 sm:$0xff]   ;;  %vm227_vm0 = vcmp.ge.s32.totalorder %v15815_v18, 1 }
  0x1a   : > { %v14973_v17 = vld [vmem:[%s19446_s1 + $0x60] ss:$8 sps:$4 sm:$0xff]   ;;  %v14974_v21 = vld [vmem:[%s19446_s1 + $0x74] ss:$8 sps:$4 sm:$0xff]   ;;  %v14976_v32 = vld [vmem:[%s19446_s1 + $0x70] ss:$8 sps:$4 sm:$0xff]  }
  0x1b   : > { %972 = vmatpush1.bf16.msra.mxu0 %v14958_v3  ;;  %s13136_s10 = sshll.u32 %s219_s30, 7  ;;  %v14977_v35 = vld [vmem:[%s19446_s1 + $0x84] ss:$8 sps:$4 sm:$0xff]   ;;  %v14979_v40 = vld [vmem:[%s19446_s1 + $0x80] ss:$8 sps:$4 sm:$0xff]   ;;  %vm15681_vm1 = vmmov 1  }
  0x1c   : > { %973 = vmatprep.subr.bf16.mxu0 %v14959_v4  ;;  %s15803_s15 = scalar_lea.vmem %s19445_s0, %s13136_s10  ;;  %v14980_v43 = vld [vmem:[%s19446_s1 + $0x94] ss:$8 sps:$4 sm:$0xff]   ;;  %vm15844_vm2 = vmpackc.low %vm15681_vm1, %vm227_vm0  ;;  %v14982_v58 = vld [vmem:[%s19446_s1 + $0x90] ss:$8 sps:$4 sm:$0xff]   ;;  %vm4270_vm5 = vcmask 1040384   ;;  %vm9175_vm6 = vcmask 1046528  }
  0x1d   : > { %v13139_v14 = vld [vmem:[%s15803_s15] sm:$0xff]   ;;  %v13202_v19 = vld [vmem:[%s15803_s15 + $0x8] sm:$0xff]   ;;  %v13203_v20 = vld [vmem:[%s15803_s15 + $0x10] sm:$0xff]   ;;  %s215_s9 = sand.u32 1, %s15671_s19   ;;  %s13137_s11 = sshll.u32 %s15738_s22, 13 }
  0x1e   : > { %v13140_v15 = vunpack.c.l.bf16 %v13139_v14  ;;  %v13141_v16 = vunpack.c.h.bf16 %v13139_v14  ;;  %v13144_v22 = vunpack.c.l.bf16 %v13202_v19  ;;  %v13145_v23 = vunpack.c.h.bf16 %v13202_v19  ;;  %v13204_v26 = vld [vmem:[%s15803_s15 + $0x18] sm:$0xff]   ;;  %v13205_v27 = vld [vmem:[%s15803_s15 + $0x20] sm:$0xff]   ;;  %v13206_v33 = vld [vmem:[%s15803_s15 + $0x28] sm:$0xff]   ;;  %s12408_s10 = sshll.u32 %s215_s9, 9  ;;  %s19395_s16 = scalar_lea.hbm %s19450_s5, %s13137_s11 }
  0x1f   : > { %974 = vmatpush1.bf16.msra.mxu0 %v14961_v5  ;;  %v13148_v24 = vunpack.c.l.bf16 %v13203_v20  ;;  %v13149_v25 = vunpack.c.h.bf16 %v13203_v20  ;;  %v13152_v28 = vunpack.c.l.bf16 %v13204_v26  ;;  %v13153_v29 = vunpack.c.h.bf16 %v13204_v26  ;;  %v13207_v34 = vld [vmem:[%s15803_s15 + $0x30] sm:$0xff]   ;;  %v13208_v41 = vld [vmem:[%s15803_s15 + $0x38] sm:$0xff]   ;;  %v13209_v42 = vld [vmem:[%s15803_s15 + $0x40] sm:$0xff]   ;;  %s19404_s22 = scalar_lea.sflag [#allocation9], %s215_s9  ;;  %s15684_s23 = smov [#allocation8]  }
  0x20   : > { %975 = vmatprep.subr.bf16.mxu0 %v14962_v6  ;;  %296 = vst [vmem:[#allocation2 + $0x28] sm:$0xff] %v13140_v15  ;;  %297 = vst [vmem:[#allocation2 + $0x30] sm:$0xff] %v13141_v16  ;;  %v13156_v30 = vunpack.c.l.bf16 %v13205_v27  ;;  %v13157_v31 = vunpack.c.h.bf16 %v13205_v27  ;;  %v13160_v36 = vunpack.c.l.bf16 %v13206_v33  ;;  %v13161_v37 = vunpack.c.h.bf16 %v13206_v33  ;;  %v13210_v52 = vld [vmem:[%s15803_s15 + $0x48] sm:$0xff]   ;;  %v13211_v53 = vld [vmem:[%s15803_s15 + $0x50] sm:$0xff]   ;;  %s15621_s25 = sshll.u32 %s15684_s23, 4  ;;  %s15622_s25 = int_to_ptr.vmem [resolvable:$false] %s15621_s25 }
  0x21   : > { %298 = vst [vmem:[#allocation2 + $0x48] sm:$0xff] %v13144_v22  ;;  %299 = vst [vmem:[#allocation2 + $0x50] sm:$0xff] %v13145_v23  ;;  %v13164_v38 = vunpack.c.l.bf16 %v13207_v34  ;;  %v13165_v39 = vunpack.c.h.bf16 %v13207_v34  ;;  %v13168_v44 = vunpack.c.l.bf16 %v13208_v41  ;;  %v13169_v45 = vunpack.c.h.bf16 %v13208_v41  ;;  %v14983_v59 = vld [vmem:[%s19446_s1 + $0xa4] ss:$8 sps:$4 sm:$0xff]   ;;  %v13212_v60 = vld [vmem:[%s15803_s15 + $0x58] sm:$0xff]   ;;  %s15623_s26 = scalar_lea.vmem %s15622_s25, 16384 }
  0x22   : > { %300 = vst [vmem:[#allocation2 + $0x68] sm:$0xff] %v13148_v24  ;;  %301 = vst [vmem:[#allocation2 + $0x70] sm:$0xff] %v13149_v25  ;;  %v13172_v46 = vunpack.c.l.bf16 %v13209_v42  ;;  %v13173_v47 = vunpack.c.h.bf16 %v13209_v42  ;;  %v13176_v54 = vunpack.c.l.bf16 %v13210_v52  ;;  %v13177_v55 = vunpack.c.h.bf16 %v13210_v52  ;;  %v13213_v63 = vld [vmem:[%s15803_s15 + $0x60] sm:$0xff]   ;;  %v14986_v3 = vld [vmem:[%s19446_s1 + $0xb4] ss:$8 sps:$4 sm:$0xff]  }
  0x23   : > { %976 = vmatpush1.bf16.msra.mxu0 %v14964_v7  ;;  %302 = vst [vmem:[#allocation2 + $0x88] sm:$0xff] %v13152_v28  ;;  %303 = vst [vmem:[#allocation2 + $0x90] sm:$0xff] %v13153_v29  ;;  %v13180_v56 = vunpack.c.l.bf16 %v13211_v53  ;;  %v13181_v57 = vunpack.c.h.bf16 %v13211_v53  ;;  %v13184_v61 = vunpack.c.l.bf16 %v13212_v60  ;;  %v13185_v62 = vunpack.c.h.bf16 %v13212_v60  ;;  %v14985_v0 = vld [vmem:[%s19446_s1 + $0xa0] ss:$8 sps:$4 sm:$0xff]   ;;  %v13215_v5 = vld [vmem:[%s15803_s15 + $0x70] sm:$0xff]  }
  0x24   : > { %977 = vmatprep.subr.bf16.mxu0 %v14965_v8  ;;  %304 = vst [vmem:[#allocation2 + $0xa8] sm:$0xff] %v13156_v30  ;;  %305 = vst [vmem:[#allocation2 + $0xb0] sm:$0xff] %v13157_v31  ;;  %v13188_v1 = vunpack.c.l.bf16 %v13213_v63  ;;  %v13189_v2 = vunpack.c.h.bf16 %v13213_v63  ;;  %v13214_v4 = vld [vmem:[%s15803_s15 + $0x68] sm:$0xff]   ;;  %v14988_v6 = vld [vmem:[%s19446_s1 + $0xb0] ss:$8 sps:$4 sm:$0xff]   ;;  %v19453_v30 = vmov 0.0|0.0  }
  0x25   : > { %306 = vst [vmem:[#allocation2 + $0xc8] sm:$0xff] %v13160_v36  ;;  %307 = vst [vmem:[#allocation2 + $0xd0] sm:$0xff] %v13161_v37  ;;  %v13192_v7 = vunpack.c.l.bf16 %v13214_v4  ;;  %v13193_v8 = vunpack.c.h.bf16 %v13214_v4  ;;  %v13216_v12 = vld [vmem:[%s15803_s15 + $0x78] sm:$0xff]   ;;  %v14991_v15 = vld [vmem:[%s19446_s1 + $0xc0] ss:$8 sps:$4 sm:$0xff]  }
  0x26   : > { %308 = vst [vmem:[#allocation2 + $0xe8] sm:$0xff] %v13164_v38  ;;  %309 = vst [vmem:[#allocation2 + $0xf0] sm:$0xff] %v13165_v39  ;;  %v13201_v14 = vunpack.c.h.bf16 %v13216_v12  ;;  %v14992_v16 = vld [vmem:[%s19446_s1 + $0xd4] ss:$8 sps:$4 sm:$0xff]   ;;  %v14995_v19 = vld [vmem:[%s19446_s1 + $0xe4] ss:$8 sps:$4 sm:$0xff]  }
  0x27   : > { %978 = vmatpush1.bf16.msra.mxu0 %v14967_v9  ;;  %v436_v48 = vld [vmem:[#allocation2 + $0x27] sm:$0xff]  ;;  %v437_v49 = vld [vmem:[#allocation2 + $0x2f] sm:$0xff]  ;;  %310 = vst [vmem:[#allocation2 + $0x108] sm:$0xff] %v13168_v44  ;;  %311 = vst [vmem:[#allocation2 + $0x110] sm:$0xff] %v13169_v45  ;;  %v13196_v9 = vunpack.c.l.bf16 %v13215_v5 }
  0x28   : > { %979 = vmatprep.subr.bf16.mxu0 %v14968_v10  ;;  %v15848_v51 = vpack.c.bf16 %v437_v49, %v436_v48  ;;  %312 = vst [vmem:[#allocation2 + $0x128] sm:$0xff] %v13172_v46  ;;  %313 = vst [vmem:[#allocation2 + $0x130] sm:$0xff] %v13173_v47  ;;  %v13197_v10 = vunpack.c.h.bf16 %v13215_v5  ;;  %v14997_v20 = vld [vmem:[%s19446_s1 + $0xe0] ss:$8 sps:$4 sm:$0xff]   ;;  %v15000_v22 = vld [vmem:[%s19446_s1 + $0xf0] ss:$8 sps:$4 sm:$0xff]  }
  0x29   : > { %314 = vst [vmem:[#allocation2 + $0x148] sm:$0xff] %v13176_v54  ;;  %315 = vst [vmem:[#allocation2 + $0x150] sm:$0xff] %v13177_v55  ;;  %v15003_v23 = vld [vmem:[%s19446_s1 + $0x104] ss:$8 sps:$4 sm:$0xff]   ;;  %v15001_v26 = vld [vmem:[%s19446_s1 + $0x100] ss:$8 sps:$4 sm:$0xff]  }
  0x2a   : > { %13219 = vmatprep.mubr.msk.bf16.mxu0 %vm15844_vm2, %v15848_v51  ;;  %316 = vst [vmem:[#allocation2 + $0x168] sm:$0xff] %v13180_v56  ;;  %317 = vst [vmem:[#allocation2 + $0x170] sm:$0xff] %v13181_v57  ;;  %v438_v24 = vld [vmem:[#allocation2 + $0x47] sm:$0xff]  ;;  %v439_v25 = vld [vmem:[#allocation2 + $0x4f] sm:$0xff] }
  0x2b   : > { %980 = vmatpush1.bf16.msra.mxu0 %v14970_v11  ;;  %318 = vst [vmem:[#allocation2 + $0x188] sm:$0xff] %v13184_v61  ;;  %319 = vst [vmem:[#allocation2 + $0x190] sm:$0xff] %v13185_v62  ;;  %v14989_v11 = vld [vmem:[%s19446_s1 + $0xc4] ss:$8 sps:$4 sm:$0xff]   ;;  %v15006_v27 = vld [vmem:[%s19446_s1 + $0x114] ss:$8 sps:$4 sm:$0xff]   ;;  %v15908_v28 = vpack.c.bf16 %v439_v25, %v438_v24 }
  0x2c   : > { %981 = vmatprep.subr.bf16.mxu0 %v14971_v13  ;;  %320 = vst [vmem:[#allocation2 + $0x1a8] sm:$0xff] %v13188_v1  ;;  %321 = vst [vmem:[#allocation2 + $0x1b0] sm:$0xff] %v13189_v2  ;;  %v13200_v13 = vunpack.c.l.bf16 %v13216_v12  ;;  %v15004_v29 = vld [vmem:[%s19446_s1 + $0x110] ss:$8 sps:$4 sm:$0xff]   ;;  %v440_v31 = vld [vmem:[#allocation2 + $0x67] sm:$0xff]  ;;  %v15683_v24 = vmov 0  }
  0x2d   : > { %322 = vst [vmem:[#allocation2 + $0x1c8] sm:$0xff] %v13192_v7  ;;  %323 = vst [vmem:[#allocation2 + $0x1d0] sm:$0xff] %v13193_v8  ;;  %v15009_v33 = vld [vmem:[%s19446_s1 + $0x124] ss:$8 sps:$4 sm:$0xff]   ;;  %v15007_v34 = vld [vmem:[%s19446_s1 + $0x120] ss:$8 sps:$4 sm:$0xff]  }
  0x2e   : > { %324 = vst [vmem:[#allocation2 + $0x1e8] sm:$0xff] %v13196_v9  ;;  %325 = vst [vmem:[#allocation2 + $0x1f0] sm:$0xff] %v13197_v10  ;;  %v15010_v37 = vld [vmem:[%s19446_s1 + $0x130] ss:$8 sps:$4 sm:$0xff]   ;;  %v442_v38 = vld [vmem:[#allocation2 + $0x87] sm:$0xff] }
  0x2f   : > { %982 = vmatpush1.bf16.msra.mxu0 %v14973_v17  ;;  %326 = vst [vmem:[#allocation2 + $0x208] sm:$0xff] %v13200_v13  ;;  %327 = vst [vmem:[#allocation2 + $0x210] sm:$0xff] %v13201_v14  ;;  %v14994_v17 = vld [vmem:[%s19446_s1 + $0xd0] ss:$8 sps:$4 sm:$0xff]   ;;  %v15013_v41 = vld [vmem:[%s19446_s1 + $0x140] ss:$8 sps:$4 sm:$0xff]  }
  0x30   : > { %983 = vmatprep.subr.bf16.mxu0 %v14974_v21  ;;  %v14998_v21 = vld [vmem:[%s19446_s1 + $0xf4] ss:$8 sps:$4 sm:$0xff]   ;;  %v15016_v44 = vld [vmem:[%s19446_s1 + $0x150] ss:$8 sps:$4 sm:$0xff]   ;;  %v444_v45 = vld [vmem:[#allocation2 + $0xa7] sm:$0xff] }
  0x31   : > { %v443_v39 = vld [vmem:[#allocation2 + $0x8f] sm:$0xff]  ;;  %v15019_v48 = vld [vmem:[%s19446_s1 + $0x160] ss:$8 sps:$4 sm:$0xff]  }
  0x32   : > { %v15018_v42 = vld [vmem:[%s19446_s1 + $0x154] ss:$8 sps:$4 sm:$0xff]   ;;  %v15021_v47 = vld [vmem:[%s19446_s1 + $0x164] ss:$8 sps:$4 sm:$0xff]   ;;  %v15022_v54 = vld [vmem:[%s19446_s1 + $0x170] ss:$8 sps:$4 sm:$0xff]  }
  0x33   : > { %984 = vmatpush1.bf16.msra.mxu0 %v14976_v32  ;;  %v441_v32 = vld [vmem:[#allocation2 + $0x6f] sm:$0xff]  ;;  %v446_v52 = vld [vmem:[#allocation2 + $0xc7] sm:$0xff] }
  0x34   : > { %985 = vmatprep.subr.bf16.mxu0 %v14977_v35  ;;  %v15012_v35 = vld [vmem:[%s19446_s1 + $0x134] ss:$8 sps:$4 sm:$0xff]   ;;  %v15926_v36 = vpack.c.bf16 %v441_v32, %v440_v31  ;;  %v15027_v55 = vld [vmem:[%s19446_s1 + $0x184] ss:$8 sps:$4 sm:$0xff]   ;;  %v15025_v25 = vld [vmem:[%s19446_s1 + $0x180] ss:$8 sps:$4 sm:$0xff]  }
  0x35   : > { %v445_v46 = vld [vmem:[#allocation2 + $0xaf] sm:$0xff]  ;;  %v448_v57 = vld [vmem:[#allocation2 + $0xe7] sm:$0xff] }
  0x36   : > { %v15024_v49 = vld [vmem:[%s19446_s1 + $0x174] ss:$8 sps:$4 sm:$0xff]   ;;  %v450_v60 = vld [vmem:[#allocation2 + $0x107] sm:$0xff]  ;;  %v15034_v32 = vld [vmem:[%s19446_s1 + $0x1b0] ss:$8 sps:$4 sm:$0xff]  }
  0x37   : > { %986 = vmatpush1.bf16.msra.mxu0 %v14979_v40  ;;  %v15015_v40 = vld [vmem:[%s19446_s1 + $0x144] ss:$8 sps:$4 sm:$0xff]   ;;  %v15031_v31 = vld [vmem:[%s19446_s1 + $0x1a0] ss:$8 sps:$4 sm:$0xff]   ;;  %v15380_v50 = vld [vmem:[%s19448_s3 + $0x410] ss:$8 sps:$4 sm:$0xff]  }
  0x38   : > { %987 = vmatprep.subr.bf16.mxu0 %v14980_v43  ;;  %v15946_v43 = vpack.c.bf16 %v443_v39, %v442_v38  ;;  %v447_v53 = vld [vmem:[#allocation2 + $0xcf] sm:$0xff]  ;;  %v452_v63 = vld [vmem:[#allocation2 + $0x127] sm:$0xff] }
  0x39   : > { %v15980_v56 = vpack.c.bf16 %v447_v53, %v446_v52  ;;  %v451_v61 = vld [vmem:[#allocation2 + $0x10f] sm:$0xff]  ;;  %v454_v2 = vld [vmem:[#allocation2 + $0x147] sm:$0xff] }
  0x3a   : > { %v15996_v62 = vpack.c.bf16 %v451_v61, %v450_v60  ;;  %v456_v5 = vld [vmem:[#allocation2 + $0x167] sm:$0xff]  ;;  %v459_v9 = vld [vmem:[#allocation2 + $0x18f] sm:$0xff] }
  0x3b   : > { %988 = vmatpush1.bf16.msra.mxu0 %v14982_v58  ;;  %v449_v58 = vld [vmem:[#allocation2 + $0xef] sm:$0xff]  ;;  %v458_v8 = vld [vmem:[#allocation2 + $0x187] sm:$0xff] }
  0x3c   : > { %989 = vmatprep.subr.bf16.mxu0 %v14983_v59  ;;  %v15988_v59 = vpack.c.bf16 %v449_v58, %v448_v57  ;;  %v16028_v10 = vpack.c.bf16 %v459_v9, %v458_v8  ;;  %v461_v12 = vld [vmem:[#allocation2 + $0x1af] sm:$0xff]  ;;  %v462_v14 = vld [vmem:[#allocation2 + $0x1c7] sm:$0xff] }
  0x3d   : > { %v15043_v38 = vld [vmem:[%s19446_s1 + $0x1e0] ss:$8 sps:$4 sm:$0xff]   ;;  %v15048_v39 = vld [vmem:[%s19446_s1 + $0x1f4] ss:$8 sps:$4 sm:$0xff]   ;;  %v15064_v53 = vld [vmem:[%s19446_s1 + $0x250] ss:$8 sps:$4 sm:$0xff]  }
  0x3e   : > { %v15066_v52 = vld [vmem:[%s19446_s1 + $0x254] ss:$8 sps:$4 sm:$0xff]   ;;  %v15070_v57 = vld [vmem:[%s19446_s1 + $0x270] ss:$8 sps:$4 sm:$0xff]   ;;  %v15076_v58 = vld [vmem:[%s19446_s1 + $0x284] ss:$8 sps:$4 sm:$0xff]  }
  0x3f   : > { %990 = vmatpush1.bf16.msra.mxu0 %v14985_v0  ;;  %v453_v0 = vld [vmem:[#allocation2 + $0x12f] sm:$0xff]  ;;  %v15074_v60 = vld [vmem:[%s19446_s1 + $0x280] ss:$8 sps:$4 sm:$0xff]  }
  0x40   : > { %991 = vmatprep.subr.bf16.mxu0 %v14986_v3  ;;  %v16004_v1 = vpack.c.bf16 %v453_v0, %v452_v63  ;;  %v455_v3 = vld [vmem:[#allocation2 + $0x14f] sm:$0xff] }
  0x41   : > { %v16012_v4 = vpack.c.bf16 %v455_v3, %v454_v2  ;;  %v15077_v61 = vld [vmem:[%s15803_s15 + $0x8] sm:$0xff]  ;;  %v15079_v63 = vld [vmem:[%s19446_s1 + $0x290] ss:$8 sps:$4 sm:$0xff]   ;;  %v15091_v3 = vld [vmem:[%s19446_s1 + $0x2b4] ss:$8 sps:$4 sm:$0xff]  }
  0x42   : > { %v15086_v0 = vld [vmem:[%s19446_s1 + $0x2a4] ss:$8 sps:$4 sm:$0xff]   ;;  %v15084_v2 = vld [vmem:[%s19446_s1 + $0x2a0] ss:$8 sps:$4 sm:$0xff]   ;;  %v15101_v8 = vld [vmem:[%s19446_s1 + $0x2d4] ss:$8 sps:$4 sm:$0xff]  }
  0x43   : > { %992 = vmatpush1.bf16.msra.mxu0 %v14988_v6  ;;  %v457_v6 = vld [vmem:[#allocation2 + $0x16f] sm:$0xff] }
  0x44   : > { %993 = vmatprep.subr.bf16.mxu0 %v14989_v11  ;;  %v16020_v7 = vpack.c.bf16 %v457_v6, %v456_v5  ;;  %v460_v11 = vld [vmem:[#allocation2 + $0x1a7] sm:$0xff]  ;;  %v15082_v6 = vld [vmem:[%s15803_s15 + $0x18] sm:$0xff] }
  0x45   : > { %v16036_v13 = vpack.c.bf16 %v461_v12, %v460_v11  ;;  %v15096_v5 = vld [vmem:[%s19446_s1 + $0x2c4] ss:$8 sps:$4 sm:$0xff]   ;;  %v15099_v9 = vld [vmem:[%s19446_s1 + $0x2d0] ss:$8 sps:$4 sm:$0xff]   ;;  %v15104_v12 = vld [vmem:[%s19446_s1 + $0x2e0] ss:$8 sps:$4 sm:$0xff]  }
  0x46   : > { %v15083_v11 = vld [vmem:[%s15803_s15 + $0x20] sm:$0xff] }
  0x47   : > { %994 = vmatpush1.bf16.msra.mxu0 %v14991_v15  ;;  %v463_v15 = vld [vmem:[#allocation2 + $0x1cf] sm:$0xff] }
  0x48   : > { %995 = vmatprep.subr.bf16.mxu0 %v14992_v16  ;;  %v16044_v16 = vpack.c.bf16 %v463_v15, %v462_v14  ;;  %v15109_v14 = vld [vmem:[%s19446_s1 + $0x2f0] ss:$8 sps:$4 sm:$0xff]   ;;  %v15115_v15 = vld [vmem:[%s19446_s1 + $0x304] ss:$8 sps:$4 sm:$0xff]  }
  0x4b   : > { %996 = vmatpush1.bf16.msra.mxu0 %v14994_v17  ;;  %v464_v17 = vld [vmem:[#allocation2 + $0x1e7] sm:$0xff] }
  0x4c   : > { %997 = vmatprep.subr.bf16.mxu0 %v14995_v19  ;;  %v465_v19 = vld [vmem:[#allocation2 + $0x1ef] sm:$0xff] }
  0x4f   : > { %998 = vmatpush1.bf16.msra.mxu0 %v14997_v20  ;;  %v16052_v20 = vpack.c.bf16 %v465_v19, %v464_v17  ;;  %v15088_v17 = vld [vmem:[%s15803_s15 + $0x30] sm:$0xff]  ;;  %v15092_v19 = vld [vmem:[%s15803_s15 + $0x38] sm:$0xff] }
  0x50   : > { %999 = vmatprep.subr.bf16.mxu0 %v14998_v21  ;;  %v466_v21 = vld [vmem:[#allocation2 + $0x207] sm:$0xff] }
  0x53   : > { %1000 = vmatpush1.bf16.msra.mxu0 %v15000_v22  ;;  %v467_v22 = vld [vmem:[#allocation2 + $0x20f] sm:$0xff] }
  0x54   : > { %1162 = vmatprep.subr.bf16.mxu0 %v15003_v23  ;;  %v16060_v23 = vpack.c.bf16 %v467_v22, %v466_v21  ;;  %v15097_v21 = vld [vmem:[%s15803_s15 + $0x48] sm:$0xff]  ;;  %v15098_v22 = vld [vmem:[%s15803_s15 + $0x50] sm:$0xff] }
  0x56   : > { %1002 = vmatmul.mubr.bf16.vlgmr.msra.gmra.mrb[0].mxu0 %v19453_v30 }
  0x57   : > { %1163 = vmatpush1.bf16.msra.mxu0 %v15001_v26  ;;  %13222 = vmatprep.mubr.msk.bf16.mxu0 %vm15844_vm2, %v15908_v28  ;;  %v15030_v26 = vld [vmem:[%s19446_s1 + $0x194] ss:$8 sps:$4 sm:$0xff]  }
  0x58   : > { %1164 = vmatprep.subr.bf16.mxu0 %v15006_v27  ;;  %v15028_v27 = vld [vmem:[%s19446_s1 + $0x190] ss:$8 sps:$4 sm:$0xff]  }
  0x5b   : > { %1165 = vmatpush1.bf16.msra.mxu0 %v15004_v29  ;;  %v15033_v29 = vld [vmem:[%s19446_s1 + $0x1a4] ss:$8 sps:$4 sm:$0xff]  }
  0x5c   : > { %1166 = vmatprep.subr.bf16.mxu0 %v15009_v33  ;;  %v15039_v33 = vld [vmem:[%s19446_s1 + $0x1c4] ss:$8 sps:$4 sm:$0xff]  }
  0x5e   : > { %13225 = vmatmul.mubr.msk.bf16.gmra.mrb[4].mxu0 %vm15844_vm2, %v15848_v51  ;;  %v15966_v51 = vpack.c.bf16 %v445_v46, %v444_v45  ;;  %v15057_v45 = vld [vmem:[%s19446_s1 + $0x224] ss:$8 sps:$4 sm:$0xff]   ;;  %v15055_v46 = vld [vmem:[%s19446_s1 + $0x220] ss:$8 sps:$4 sm:$0xff]  }
  0x5f   : > { %13228 = vmatprep.mubr.msk.bf16.mxu0 %vm15844_vm2, %v15926_v36  ;;  %1167 = vmatpush1.bf16.msra.mxu0 %v15007_v34  ;;  %v15037_v34 = vld [vmem:[%s19446_s1 + $0x1c0] ss:$8 sps:$4 sm:$0xff]  }
  0x60   : > { %1168 = vmatprep.subr.bf16.mxu0 %v15012_v35  ;;  %v15042_v35 = vld [vmem:[%s19446_s1 + $0x1d4] ss:$8 sps:$4 sm:$0xff]  }
  0x63   : > { %1169 = vmatpush1.bf16.msra.mxu0 %v15010_v37  ;;  %v15045_v37 = vld [vmem:[%s19446_s1 + $0x1e4] ss:$8 sps:$4 sm:$0xff]  }
  0x64   : > { %1170 = vmatprep.subr.bf16.mxu0 %v15015_v40  ;;  %v15046_v40 = vld [vmem:[%s19446_s1 + $0x1f0] ss:$8 sps:$4 sm:$0xff]  }
  0x66   : > { %13231 = vmatmul.mubr.msk.bf16.gmra.mrb[8].mxu0 %vm15844_vm2, %v15908_v28 }
  0x67   : > { %13234 = vmatprep.mubr.msk.bf16.mxu0 %vm15844_vm2, %v15946_v43  ;;  %1171 = vmatpush1.bf16.msra.mxu0 %v15013_v41  ;;  %v15051_v41 = vld [vmem:[%s19446_s1 + $0x204] ss:$8 sps:$4 sm:$0xff]  }
  0x68   : > { %1172 = vmatprep.subr.bf16.mxu0 %v15018_v42  ;;  %v15049_v42 = vld [vmem:[%s19446_s1 + $0x200] ss:$8 sps:$4 sm:$0xff]  }
  0x6b   : > { %1173 = vmatpush1.bf16.msra.mxu0 %v15016_v44  ;;  %v15052_v44 = vld [vmem:[%s19446_s1 + $0x210] ss:$8 sps:$4 sm:$0xff]  }
  0x6c   : > { %1174 = vmatprep.subr.bf16.mxu0 %v15021_v47  ;;  %v15060_v47 = vld [vmem:[%s19446_s1 + $0x234] ss:$8 sps:$4 sm:$0xff]  }
  0x6e   : > { %13237 = vmatmul.mubr.msk.bf16.gmra.mrb[12].mxu0 %vm15844_vm2, %v15926_v36 }
  0x6f   : > { %13240 = vmatprep.mubr.msk.bf16.mxu0 %vm15844_vm2, %v15966_v51  ;;  %1175 = vmatpush1.bf16.msra.mxu0 %v15019_v48  ;;  %v15058_v48 = vld [vmem:[%s19446_s1 + $0x230] ss:$8 sps:$4 sm:$0xff]  }
  0x70   : > { %1176 = vmatprep.subr.bf16.mxu0 %v15024_v49  ;;  %v15063_v49 = vld [vmem:[%s19446_s1 + $0x244] ss:$8 sps:$4 sm:$0xff]  }
  0x73   : > { %1177 = vmatpush1.bf16.msra.mxu0 %v15022_v54  ;;  %v15069_v54 = vld [vmem:[%s19446_s1 + $0x264] ss:$8 sps:$4 sm:$0xff]  }
  0x74   : > { %2012 = vmatprep.subr.bf16.mxu0 %v15027_v55  ;;  %v15067_v55 = vld [vmem:[%s19446_s1 + $0x260] ss:$8 sps:$4 sm:$0xff]  }
  0x76   : > { %13243 = vmatmul.mubr.msk.bf16.gmra.mrb[16].mxu0 %vm15844_vm2, %v15946_v43 }
  0x77   : > { %13246 = vmatprep.mubr.msk.bf16.mxu0 %vm15844_vm2, %v15980_v56 }
  0x7e   : > { %13249 = vmatmul.mubr.msk.bf16.gmra.mrb[20].mxu0 %vm15844_vm2, %v15966_v51 }
  0x7f   : > { %13252 = vmatprep.mubr.msk.bf16.mxu0 %vm15844_vm2, %v15988_v59 }
  0x86   : > { %13255 = vmatmul.mubr.msk.bf16.gmra.mrb[24].mxu0 %vm15844_vm2, %v15980_v56 }
  0x87   : > { %13258 = vmatprep.mubr.msk.bf16.mxu0 %vm15844_vm2, %v15996_v62 }
  0x8e   : > { %13261 = vmatmul.mubr.msk.bf16.gmra.mrb[28].mxu0 %vm15844_vm2, %v15988_v59 }
  0x8f   : > { %13264 = vmatprep.mubr.msk.bf16.mxu0 %vm15844_vm2, %v16004_v1 }
  0x96   : > { %13267 = vmatmul.mubr.msk.bf16.gmra.mrb[32].mxu0 %vm15844_vm2, %v15996_v62 }
  0x97   : > { %13270 = vmatprep.mubr.msk.bf16.mxu0 %vm15844_vm2, %v16012_v4 }
  0x9e   : > { %13273 = vmatmul.mubr.msk.bf16.gmra.mrb[36].mxu0 %vm15844_vm2, %v16004_v1 }
  0x9f   : > { %13276 = vmatprep.mubr.msk.bf16.mxu0 %vm15844_vm2, %v16020_v7 }
  0xa6   : > { %13279 = vmatmul.mubr.msk.bf16.gmra.mrb[40].mxu0 %vm15844_vm2, %v16012_v4 }
  0xa7   : > { %13282 = vmatprep.mubr.msk.bf16.mxu0 %vm15844_vm2, %v16028_v10 }
  0xae   : > { %13285 = vmatmul.mubr.msk.bf16.gmra.mrb[44].mxu0 %vm15844_vm2, %v16020_v7 }
  0xaf   : > { %13288 = vmatprep.mubr.msk.bf16.mxu0 %vm15844_vm2, %v16036_v13 }
  0xb6   : > { %13291 = vmatmul.mubr.msk.bf16.gmra.mrb[48].mxu0 %vm15844_vm2, %v16028_v10 }
  0xb7   : > { %13294 = vmatprep.mubr.msk.bf16.mxu0 %vm15844_vm2, %v16044_v16 }
  0xbe   : > { %13297 = vmatmul.mubr.msk.bf16.gmra.mrb[52].mxu0 %vm15844_vm2, %v16036_v13 }
  0xbf   : > { %13300 = vmatprep.mubr.msk.bf16.mxu0 %vm15844_vm2, %v16052_v20 }
  0xc6   : > { %13303 = vmatmul.mubr.msk.bf16.gmra.mrb[56].mxu0 %vm15844_vm2, %v16044_v16 }
  0xc7   : > { %13306 = vmatprep.mubr.msk.bf16.mxu0 %vm15844_vm2, %v16060_v23 }
  0xce   : > { %13309 = vmatmul.mubr.msk.bf16.gmra.mrb[60].mxu0 %vm15844_vm2, %v16052_v20 }
  0xcf   : > { %1194 = vmatprep.mubr.bf16.mxu0 %v15683_v24 }
  0xd6   : > { %13312 = vmatmul.mubr.msk.bf16.vlgmr.msra.gmra.mrb[0].mxu0 %vm15844_vm2, %v15908_v28  ;;  %v15036_v28 = vld [vmem:[%s19446_s1 + $0x1b4] ss:$8 sps:$4 sm:$0xff]  }
  0xd7   : > { %2013 = vmatpush1.bf16.msra.mxu0 %v15025_v25  ;;  %1204 = vmatprep.mubr.bf16.mxu0 %v15683_v24  ;;  %v15103_v25 = vld [vmem:[%s15803_s15 + $0x60] sm:$0xff] }
  0xd8   : > { %2014 = vmatprep.subr.bf16.mxu0 %v15030_v26  ;;  %v15107_v26 = vld [vmem:[%s15803_s15 + $0x68] sm:$0xff] }
  0xdb   : > { %2015 = vmatpush1.bf16.msra.mxu0 %v15028_v27  ;;  %v15108_v27 = vld [vmem:[%s15803_s15 + $0x70] sm:$0xff] }
  0xdc   : > { %2016 = vmatprep.subr.bf16.mxu0 %v15033_v29  ;;  %v16294_v29 = vld [vmem:[%s15803_s15 + $0x78] sm:$0xff] }
  0xde   : > { %13315 = vmatmul.mubr.msk.bf16.gmra.mrb[4].mxu0 %vm15844_vm2, %v15926_v36  ;;  %v15040_v36 = vld [vmem:[%s19446_s1 + $0x1d0] ss:$8 sps:$4 sm:$0xff]  }
  0xdf   : > { %1214 = vmatprep.mubr.bf16.mxu0 %v15683_v24  ;;  %2017 = vmatpush1.bf16.msra.mxu0 %v15031_v31  ;;  %v1579_v31 = vld [vmem:[#allocation2 + $0x48] sm:$0xff] }
  0xe0   : > { %2018 = vmatprep.subr.bf16.mxu0 %v15036_v28  ;;  %v1580_v28 = vld [vmem:[#allocation2 + $0x50] sm:$0xff] }
  0xe3   : > { %2019 = vmatpush1.bf16.msra.mxu0 %v15034_v32  ;;  %v1643_v32 = vpack.c.bf16 %v1580_v28, %v1579_v31  ;;  %v1597_v31 = vld [vmem:[#allocation2 + $0x168] sm:$0xff]  ;;  %v1598_v28 = vld [vmem:[#allocation2 + $0x170] sm:$0xff] }
  0xe4   : > { %2020 = vmatprep.subr.bf16.mxu0 %v15039_v33  ;;  %v15113_v33 = vld [vmem:[%s19446_s1 + $0x300] ss:$8 sps:$4 sm:$0xff]  }
  0xe6   : > { %13318 = vmatmul.mubr.msk.bf16.gmra.mrb[8].mxu0 %vm15844_vm2, %v15946_v43  ;;  %v15054_v43 = vld [vmem:[%s19446_s1 + $0x214] ss:$8 sps:$4 sm:$0xff]  }
  0xe7   : > { %1224 = vmatprep.mubr.bf16.mxu0 %v15683_v24  ;;  %2021 = vmatpush1.bf16.msra.mxu0 %v15037_v34  ;;  %v15118_v34 = vld [vmem:[%s19446_s1 + $0x314] ss:$8 sps:$4 sm:$0xff]  }
  0xe8   : > { %2022 = vmatprep.subr.bf16.mxu0 %v15042_v35  ;;  %v1581_v35 = vld [vmem:[#allocation2 + $0x68] sm:$0xff] }
  0xeb   : > { %2023 = vmatpush1.bf16.msra.mxu0 %v15040_v36  ;;  %v1582_v36 = vld [vmem:[#allocation2 + $0x70] sm:$0xff] }
  0xec   : > { %2024 = vmatprep.subr.bf16.mxu0 %v15045_v37  ;;  %v15116_v37 = vld [vmem:[%s19446_s1 + $0x310] ss:$8 sps:$4 sm:$0xff]  }
  0xee   : > { %13321 = vmatmul.mubr.msk.bf16.gmra.mrb[12].mxu0 %vm15844_vm2, %v15966_v51  ;;  %v15061_v51 = vld [vmem:[%s19446_s1 + $0x240] ss:$8 sps:$4 sm:$0xff]  }
  0xef   : > { %1234 = vmatprep.mubr.bf16.mxu0 %v15683_v24  ;;  %2025 = vmatpush1.bf16.msra.mxu0 %v15043_v38  ;;  %v15121_v38 = vld [vmem:[%s19446_s1 + $0x324] ss:$8 sps:$4 sm:$0xff]  }
  0xf0   : > { %2026 = vmatprep.subr.bf16.mxu0 %v15048_v39  ;;  %v1644_v39 = vpack.c.bf16 %v1582_v36, %v1581_v35  ;;  %v1601_v36 = vld [vmem:[#allocation2 + $0x1a8] sm:$0xff] }
  0xf3   : > { %2027 = vmatpush1.bf16.msra.mxu0 %v15046_v40  ;;  %v15119_v40 = vld [vmem:[%s19446_s1 + $0x320] ss:$8 sps:$4 sm:$0xff]  }
  0xf4   : > { %2028 = vmatprep.subr.bf16.mxu0 %v15051_v41  ;;  %v15124_v41 = vld [vmem:[%s19446_s1 + $0x334] ss:$8 sps:$4 sm:$0xff]  }
  0xf6   : > { %13324 = vmatmul.mubr.msk.bf16.gmra.mrb[16].mxu0 %vm15844_vm2, %v15980_v56  ;;  %v15072_v56 = vld [vmem:[%s19446_s1 + $0x274] ss:$8 sps:$4 sm:$0xff]  }
  0xf7   : > { %1244 = vmatprep.mubr.bf16.mxu0 %v15683_v24  ;;  %2029 = vmatpush1.bf16.msra.mxu0 %v15049_v42  ;;  %v1583_v42 = vld [vmem:[#allocation2 + $0x88] sm:$0xff] }
  0xf8   : > { %2030 = vmatprep.subr.bf16.mxu0 %v15054_v43  ;;  %v1584_v43 = vld [vmem:[#allocation2 + $0x90] sm:$0xff] }
  0xfb   : > { %2031 = vmatpush1.bf16.msra.mxu0 %v15052_v44  ;;  %v15122_v44 = vld [vmem:[%s19446_s1 + $0x330] ss:$8 sps:$4 sm:$0xff]  }
  0xfc   : > { %2032 = vmatprep.subr.bf16.mxu0 %v15057_v45  ;;  %v15127_v45 = vld [vmem:[%s19446_s1 + $0x344] ss:$8 sps:$4 sm:$0xff]  }
  0xfe   : > { %13327 = vmatmul.mubr.msk.bf16.gmra.mrb[20].mxu0 %vm15844_vm2, %v15988_v59  ;;  %v15073_v59 = vld [vmem:[%s15803_s15] sm:$0xff] }
  0xff   : > { %1254 = vmatprep.mubr.bf16.mxu0 %v15683_v24  ;;  %2033 = vmatpush1.bf16.msra.mxu0 %v15055_v46  ;;  %v1645_v46 = vpack.c.bf16 %v1584_v43, %v1583_v42  ;;  %v1605_v42 = vld [vmem:[#allocation2 + $0x1e8] sm:$0xff]  ;;  %v1606_v43 = vld [vmem:[#allocation2 + $0x1f0] sm:$0xff] }
 0x100   : > { %2034 = vmatprep.subr.bf16.mxu0 %v15060_v47  ;;  %v15125_v47 = vld [vmem:[%s19446_s1 + $0x340] ss:$8 sps:$4 sm:$0xff]  }
 0x103   : > { %2035 = vmatpush1.bf16.msra.mxu0 %v15058_v48  ;;  %v15130_v48 = vld [vmem:[%s19446_s1 + $0x354] ss:$8 sps:$4 sm:$0xff]  }
 0x104   : > { %2036 = vmatprep.subr.bf16.mxu0 %v15063_v49  ;;  %v1585_v49 = vld [vmem:[#allocation2 + $0xa8] sm:$0xff] }
 0x106   : > { %13330 = vmatmul.mubr.msk.bf16.gmra.mrb[24].mxu0 %vm15844_vm2, %v15996_v62  ;;  %v15081_v62 = vld [vmem:[%s19446_s1 + $0x294] ss:$8 sps:$4 sm:$0xff]  }
 0x107   : > { %1264 = vmatprep.mubr.bf16.mxu0 %v15683_v24  ;;  %2037 = vmatpush1.bf16.msra.mxu0 %v15061_v51  ;;  %v1586_v51 = vld [vmem:[#allocation2 + $0xb0] sm:$0xff] }
 0x108   : > { %2038 = vmatprep.subr.bf16.mxu0 %v15066_v52  ;;  %v15128_v52 = vld [vmem:[%s19446_s1 + $0x350] ss:$8 sps:$4 sm:$0xff]  }
 0x10b   : > { %2039 = vmatpush1.bf16.msra.mxu0 %v15064_v53  ;;  %v15133_v53 = vld [vmem:[%s19446_s1 + $0x364] ss:$8 sps:$4 sm:$0xff]  }
 0x10c   : > { %2040 = vmatprep.subr.bf16.mxu0 %v15069_v54  ;;  %v1646_v54 = vpack.c.bf16 %v1586_v51, %v1585_v49  ;;  %v2700_v51 = vld [vmem:[#allocation2 + $0x49] sm:$0xff] }
 0x10e   : > { %13333 = vmatmul.mubr.msk.bf16.gmra.mrb[28].mxu0 %vm15844_vm2, %v16004_v1  ;;  %v15078_v1 = vld [vmem:[%s15803_s15 + $0x10] sm:$0xff] }
 0x10f   : > { %1274 = vmatprep.mubr.bf16.mxu0 %v15683_v24  ;;  %2041 = vmatpush1.bf16.msra.mxu0 %v15067_v55  ;;  %v15131_v55 = vld [vmem:[%s19446_s1 + $0x360] ss:$8 sps:$4 sm:$0xff]  }
 0x110   : > { %2042 = vmatprep.subr.bf16.mxu0 %v15072_v56  ;;  %v15136_v56 = vld [vmem:[%s19446_s1 + $0x374] ss:$8 sps:$4 sm:$0xff]  }
 0x113   : > { %2043 = vmatpush1.bf16.msra.mxu0 %v15070_v57  ;;  %v1587_v57 = vld [vmem:[#allocation2 + $0xc8] sm:$0xff] }
 0x114   : > { %2205 = vmatprep.subr.bf16.mxu0 %v15076_v58  ;;  %v1588_v58 = vld [vmem:[#allocation2 + $0xd0] sm:$0xff] }
 0x116   : > { %13336 = vmatmul.mubr.msk.bf16.gmra.mrb[32].mxu0 %vm15844_vm2, %v16012_v4  ;;  %v15089_v4 = vld [vmem:[%s19446_s1 + $0x2b0] ss:$8 sps:$4 sm:$0xff]  }
 0x117   : > { %1284 = vmatprep.mubr.bf16.mxu0 %v15683_v24 }
 0x11e   : > { %13339 = vmatmul.mubr.msk.bf16.gmra.mrb[36].mxu0 %vm15844_vm2, %v16020_v7  ;;  %v15094_v7 = vld [vmem:[%s19446_s1 + $0x2c0] ss:$8 sps:$4 sm:$0xff]  }
 0x11f   : > { %1294 = vmatprep.mubr.bf16.mxu0 %v15683_v24 }
 0x126   : > { %13342 = vmatmul.mubr.msk.bf16.gmra.mrb[40].mxu0 %vm15844_vm2, %v16028_v10  ;;  %v15106_v10 = vld [vmem:[%s19446_s1 + $0x2e4] ss:$8 sps:$4 sm:$0xff]  }
 0x127   : > { %1304 = vmatprep.mubr.bf16.mxu0 %v15683_v24 }
 0x12e   : > { %13345 = vmatmul.mubr.msk.bf16.gmra.mrb[44].mxu0 %vm15844_vm2, %v16036_v13  ;;  %v15111_v13 = vld [vmem:[%s19446_s1 + $0x2f4] ss:$8 sps:$4 sm:$0xff]  }
 0x12f   : > { %1314 = vmatprep.mubr.bf16.mxu0 %v15683_v24 }
 0x136   : > { %13348 = vmatmul.mubr.msk.bf16.gmra.mrb[48].mxu0 %vm15844_vm2, %v16044_v16  ;;  %v15087_v16 = vld [vmem:[%s15803_s15 + $0x28] sm:$0xff] }
 0x137   : > { %1324 = vmatprep.mubr.bf16.mxu0 %v15683_v24 }
 0x13e   : > { %13351 = vmatmul.mubr.msk.bf16.gmra.mrb[52].mxu0 %vm15844_vm2, %v16052_v20  ;;  %v15093_v20 = vld [vmem:[%s15803_s15 + $0x40] sm:$0xff] }
 0x13f   : > { %1334 = vmatprep.mubr.bf16.mxu0 %v15683_v24 }
 0x146   : > { %13354 = vmatmul.mubr.msk.bf16.gmra.mrb[56].mxu0 %vm15844_vm2, %v16060_v23  ;;  %v15102_v23 = vld [vmem:[%s15803_s15 + $0x58] sm:$0xff]  ;;  %s19207_s15 = scalar_lea.vmem [#allocation8], %s12408_s10 }
 0x147   : > { %1344 = vmatprep.mubr.bf16.mxu0 %v15683_v24  ;;  %s12342_s12 = sshll.u32 %s19207_s15, 4  ;;  %s19397_s12 = int_to_ptr.vmem [resolvable:$true] %s12342_s12 }
 0x148   : > { %s15617_s17 = scalar_lea.vmem %s19397_s12, 8192  ;;  %p15624_p0 = scmp.lt.s32.totalorder %s19397_s12, %s15622_s25 }
 0x149   : > { %p15618_p11 = scmp.ne.s32.totalorder %s19397_s12, %s15617_s17  ;;  %p15625_p1 = scmp.lt.s32.totalorder %s15623_s26, %s15617_s17 }
 0x14b   : > { %p15619_p12 = pnand %p15618_p11, %p15755_p5  ;;  %p15626_p2 = por %p15625_p1, %p15624_p0 }
 0x14d   : > { %p15620_p13 = pneg %p15619_p12 }
 0x14e   : > { %1345 = vmatmul.mubr.bf16.gmra.mrb[60].mxu0 %v19453_v30 }
 0x14f   : > { %2044 = vmatprep.mubr.bf16.mxu0 %v15073_v59  ;;  %p15627_p3 = pnand %p15626_p2, %p15620_p13 }
 0x156   : > { %2045 = vmatmul.mubr.bf16.vlgmr.msra.gmra.mrb[0].mxu0 %v19453_v30 }
 0x157   : > { %2206 = vmatpush1.bf16.msra.mxu0 %v15074_v60  ;;  %2054 = vmatprep.mubr.bf16.mxu0 %v15077_v61  ;;  %v15139_v60 = vld [vmem:[%s19446_s1 + $0x384] ss:$8 sps:$4 sm:$0xff]  }
 0x158   : > { %2207 = vmatprep.subr.bf16.mxu0 %v15081_v62  ;;  %v15137_v62 = vld [vmem:[%s19446_s1 + $0x380] ss:$8 sps:$4 sm:$0xff]  }
 0x15b   : > { %2208 = vmatpush1.bf16.msra.mxu0 %v15079_v63  ;;  %v15142_v63 = vld [vmem:[%s19446_s1 + $0x394] ss:$8 sps:$4 sm:$0xff]  }
 0x15c   : > { %2209 = vmatprep.subr.bf16.mxu0 %v15086_v0  ;;  %v1589_v0 = vld [vmem:[#allocation2 + $0xe8] sm:$0xff] }
 0x15e   : > { %2055 = vmatmul.mubr.bf16.gmra.mrb[4].mxu0 %v15073_v59  ;;  %v15134_v59 = vld [vmem:[%s19446_s1 + $0x370] ss:$8 sps:$4 sm:$0xff]  }
 0x15f   : > { %2064 = vmatprep.mubr.bf16.mxu0 %v15078_v1  ;;  %2210 = vmatpush1.bf16.msra.mxu0 %v15084_v2  ;;  %v15140_v2 = vld [vmem:[%s19446_s1 + $0x390] ss:$8 sps:$4 sm:$0xff]  }
 0x160   : > { %2211 = vmatprep.subr.bf16.mxu0 %v15091_v3  ;;  %v15145_v3 = vld [vmem:[%s19446_s1 + $0x3a4] ss:$8 sps:$4 sm:$0xff]  }
 0x163   : > { %2212 = vmatpush1.bf16.msra.mxu0 %v15089_v4 }
 0x164   : > { %2213 = vmatprep.subr.bf16.mxu0 %v15096_v5  ;;  %v15143_v5 = vld [vmem:[%s19446_s1 + $0x3a0] ss:$8 sps:$4 sm:$0xff]  }
 0x166   : > { %2065 = vmatmul.mubr.bf16.gmra.mrb[8].mxu0 %v15077_v61  ;;  %v1647_v61 = vpack.c.bf16 %v1588_v58, %v1587_v57  ;;  %v2703_v57 = vld [vmem:[#allocation2 + $0x71] sm:$0xff]  ;;  %v15169_v58 = vld [vmem:[%s19446_s1 + $0x424] ss:$8 sps:$4 sm:$0xff]  }
 0x167   : > { %2074 = vmatprep.mubr.bf16.mxu0 %v15082_v6  ;;  %2214 = vmatpush1.bf16.msra.mxu0 %v15094_v7  ;;  %v1591_v7 = vld [vmem:[#allocation2 + $0x108] sm:$0xff] }
 0x168   : > { %2215 = vmatprep.subr.bf16.mxu0 %v15101_v8  ;;  %v1592_v8 = vld [vmem:[#allocation2 + $0x110] sm:$0xff] }
 0x16b   : > { %2216 = vmatpush1.bf16.msra.mxu0 %v15099_v9  ;;  %v15146_v9 = vld [vmem:[%s19446_s1 + $0x3b0] ss:$8 sps:$4 sm:$0xff]  }
 0x16c   : > { %2217 = vmatprep.subr.bf16.mxu0 %v15106_v10  ;;  %v15151_v10 = vld [vmem:[%s19446_s1 + $0x3c4] ss:$8 sps:$4 sm:$0xff]  }
 0x16e   : > { %2075 = vmatmul.mubr.bf16.gmra.mrb[12].mxu0 %v15078_v1  ;;  %v1590_v1 = vld [vmem:[#allocation2 + $0xf0] sm:$0xff] }
 0x16f   : > { %2084 = vmatprep.mubr.bf16.mxu0 %v15083_v11  ;;  %2218 = vmatpush1.bf16.msra.mxu0 %v15104_v12  ;;  %v1648_v4 = vpack.c.bf16 %v1590_v1, %v1589_v0  ;;  %v15149_v12 = vld [vmem:[%s19446_s1 + $0x3c0] ss:$8 sps:$4 sm:$0xff]   ;;  %v2705_v0 = vld [vmem:[#allocation2 + $0x91] sm:$0xff]  ;;  %v15175_v1 = vld [vmem:[%s19446_s1 + $0x444] ss:$8 sps:$4 sm:$0xff]  }
 0x170   : > { %2219 = vmatprep.subr.bf16.mxu0 %v15111_v13  ;;  %v15154_v13 = vld [vmem:[%s19446_s1 + $0x3d4] ss:$8 sps:$4 sm:$0xff]  }
 0x173   : > { %2220 = vmatpush1.bf16.msra.mxu0 %v15109_v14  ;;  %v1593_v14 = vld [vmem:[#allocation2 + $0x128] sm:$0xff] }
 0x174   : > { %3231 = vmatprep.subr.bf16.mxu0 %v15115_v15  ;;  %v1594_v15 = vld [vmem:[#allocation2 + $0x130] sm:$0xff] }
 0x176   : > { %2085 = vmatmul.mubr.bf16.gmra.mrb[16].mxu0 %v15082_v6  ;;  %v15148_v6 = vld [vmem:[%s19446_s1 + $0x3b4] ss:$8 sps:$4 sm:$0xff]  }
 0x177   : > { %2094 = vmatprep.mubr.bf16.mxu0 %v15087_v16 }
 0x17e   : > { %2095 = vmatmul.mubr.bf16.gmra.mrb[20].mxu0 %v15083_v11  ;;  %v1649_v11 = vpack.c.bf16 %v1592_v8, %v1591_v7  ;;  %v2707_v7 = vld [vmem:[#allocation2 + $0xb1] sm:$0xff]  ;;  %v15181_v8 = vld [vmem:[%s19446_s1 + $0x464] ss:$8 sps:$4 sm:$0xff]  }
 0x17f   : > { %2104 = vmatprep.mubr.bf16.mxu0 %v15088_v17 }
 0x186   : > { %2105 = vmatmul.mubr.bf16.gmra.mrb[24].mxu0 %v15087_v16  ;;  %v15152_v16 = vld [vmem:[%s19446_s1 + $0x3d0] ss:$8 sps:$4 sm:$0xff]  }
 0x187   : > { %2114 = vmatprep.mubr.bf16.mxu0 %v15092_v19 }
 0x18e   : > { %2115 = vmatmul.mubr.bf16.gmra.mrb[28].mxu0 %v15088_v17  ;;  %v15157_v17 = vld [vmem:[%s19446_s1 + $0x3e4] ss:$8 sps:$4 sm:$0xff]  }
 0x18f   : > { %2124 = vmatprep.mubr.bf16.mxu0 %v15093_v20 }
 0x196   : > { %2125 = vmatmul.mubr.bf16.gmra.mrb[32].mxu0 %v15092_v19  ;;  %v1650_v19 = vpack.c.bf16 %v1594_v15, %v1593_v14  ;;  %v2709_v14 = vld [vmem:[#allocation2 + $0xd1] sm:$0xff] }
 0x197   : > { %2134 = vmatprep.mubr.bf16.mxu0 %v15097_v21 }
 0x19e   : > { %2135 = vmatmul.mubr.bf16.gmra.mrb[36].mxu0 %v15093_v20  ;;  %v15155_v20 = vld [vmem:[%s19446_s1 + $0x3e0] ss:$8 sps:$4 sm:$0xff]  }
 0x19f   : > { %2144 = vmatprep.mubr.bf16.mxu0 %v15098_v22 }
 0x1a6   : > { %2145 = vmatmul.mubr.bf16.gmra.mrb[40].mxu0 %v15097_v21  ;;  %v15160_v21 = vld [vmem:[%s19446_s1 + $0x3f4] ss:$8 sps:$4 sm:$0xff]  }
 0x1a7   : > { %2154 = vmatprep.mubr.bf16.mxu0 %v15102_v23 }
 0x1ae   : > { %2155 = vmatmul.mubr.bf16.gmra.mrb[44].mxu0 %v15098_v22  ;;  %v1595_v22 = vld [vmem:[#allocation2 + $0x148] sm:$0xff] }
 0x1af   : > { %2164 = vmatprep.mubr.bf16.mxu0 %v15103_v25 }
 0x1b6   : > { %2165 = vmatmul.mubr.bf16.gmra.mrb[48].mxu0 %v15102_v23  ;;  %v1596_v23 = vld [vmem:[#allocation2 + $0x150] sm:$0xff] }
 0x1b7   : > { %2174 = vmatprep.mubr.bf16.mxu0 %v15107_v26 }
 0x1be   : > { %2175 = vmatmul.mubr.bf16.gmra.mrb[52].mxu0 %v15103_v25  ;;  %v15158_v25 = vld [vmem:[%s19446_s1 + $0x3f0] ss:$8 sps:$4 sm:$0xff]  }
 0x1bf   : > { %2184 = vmatprep.mubr.bf16.mxu0 %v15108_v27 }
 0x1c6   : > { %2185 = vmatmul.mubr.bf16.gmra.mrb[56].mxu0 %v15107_v26  ;;  %v15163_v26 = vld [vmem:[%s19446_s1 + $0x404] ss:$8 sps:$4 sm:$0xff]  }
 0x1c7   : > { %2194 = vmatprep.mubr.bf16.mxu0 %v16294_v29 }
 0x1ce   : > { %2195 = vmatmul.mubr.bf16.gmra.mrb[60].mxu0 %v15108_v27  ;;  %v1651_v27 = vpack.c.bf16 %v1596_v23, %v1595_v22  ;;  %v2714_v23 = vld [vmem:[#allocation2 + $0x129] sm:$0xff] }
 0x1cf   : > { %2237 = vmatprep.mubr.bf16.mxu0 %v15683_v24 }
 0x1d6   : > { %2238 = vmatmul.mubr.bf16.vlgmr.msra.gmra.mrb[0].mxu0 %v1643_v32  ;;  %v1652_v32 = vpack.c.bf16 %v1598_v28, %v1597_v31  ;;  %v2717_v31 = vld [vmem:[#allocation2 + $0x151] sm:$0xff] }
 0x1d7   : > { %3232 = vmatpush1.bf16.msra.mxu0 %v15113_v33  ;;  %2247 = vmatprep.mubr.bf16.mxu0 %v15683_v24  ;;  %v1599_v33 = vld [vmem:[#allocation2 + $0x188] sm:$0xff] }
 0x1d8   : > { %3233 = vmatprep.subr.bf16.mxu0 %v15118_v34  ;;  %v1600_v34 = vld [vmem:[#allocation2 + $0x190] sm:$0xff] }
 0x1d9   : > { %v1653_v35 = vpack.c.bf16 %v1600_v34, %v1599_v33  ;;  %v2719_v33 = vld [vmem:[#allocation2 + $0x171] sm:$0xff] }
 0x1db   : > { %3234 = vmatpush1.bf16.msra.mxu0 %v15116_v37  ;;  %v1602_v37 = vld [vmem:[#allocation2 + $0x1b0] sm:$0xff] }
 0x1dc   : > { %3235 = vmatprep.subr.bf16.mxu0 %v15121_v38  ;;  %v1654_v38 = vpack.c.bf16 %v1602_v37, %v1601_v36  ;;  %v2721_v36 = vld [vmem:[#allocation2 + $0x191] sm:$0xff] }
 0x1de   : > { %2248 = vmatmul.mubr.bf16.gmra.mrb[4].mxu0 %v1644_v39  ;;  %v1603_v39 = vld [vmem:[#allocation2 + $0x1c8] sm:$0xff] }
 0x1df   : > { %2257 = vmatprep.mubr.bf16.mxu0 %v15683_v24  ;;  %3236 = vmatpush1.bf16.msra.mxu0 %v15119_v40  ;;  %v1604_v40 = vld [vmem:[#allocation2 + $0x1d0] sm:$0xff] }
 0x1e0   : > { %3237 = vmatprep.subr.bf16.mxu0 %v15124_v41  ;;  %v1655_v41 = vpack.c.bf16 %v1604_v40, %v1603_v39  ;;  %v2723_v39 = vld [vmem:[#allocation2 + $0x1b1] sm:$0xff] }
 0x1e3   : > { %3238 = vmatpush1.bf16.msra.mxu0 %v15122_v44  ;;  %v1656_v44 = vpack.c.bf16 %v1606_v43, %v1605_v42  ;;  %v2725_v42 = vld [vmem:[#allocation2 + $0x1d1] sm:$0xff] }
 0x1e4   : > { %3239 = vmatprep.subr.bf16.mxu0 %v15127_v45  ;;  %v226_v45 = vadd.s32 8, %v15815_v18 }
 0x1e6   : > { %2258 = vmatmul.mubr.bf16.gmra.mrb[8].mxu0 %v1645_v46  ;;  %v2698_v46 = vld [vmem:[#allocation2 + $0x29] sm:$0xff]  ;;  %vm230_vm3 = vcmp.le.s32.totalorder %v226_v45, 14  ;;  %v2727_v45 = vld [vmem:[#allocation2 + $0x1f1] sm:$0xff] }
 0x1e7   : > { %2267 = vmatprep.mubr.bf16.mxu0 %v15683_v24  ;;  %3240 = vmatpush1.bf16.msra.mxu0 %v15125_v47  ;;  %v2699_v47 = vld [vmem:[#allocation2 + $0x31] sm:$0xff]  ;;  %vm16412_vm4 = vmpackc.low %vm230_vm3, %vm15681_vm1 }
 0x1e8   : > { %3241 = vmatprep.subr.bf16.mxu0 %v15130_v48  ;;  %v13356_v48 = vpack.c.bf16 %v2699_v47, %v2698_v46  ;;  %v2728_v47 = vld [vmem:[#allocation2 + $0x209] sm:$0xff] }
 0x1eb   : > { %3242 = vmatpush1.bf16.msra.mxu0 %v15128_v52  ;;  %v2701_v52 = vld [vmem:[#allocation2 + $0x51] sm:$0xff] }
 0x1ec   : > { %3243 = vmatprep.subr.bf16.mxu0 %v15133_v53  ;;  %v16422_v53 = vpack.c.bf16 %v2701_v52, %v2700_v51  ;;  %v15187_v52 = vld [vmem:[%s19448_s3 + $0x4] ss:$8 sps:$4 sm:$0xff]  }
 0x1ee   : > { %2268 = vmatmul.mubr.bf16.gmra.mrb[12].mxu0 %v1646_v54  ;;  %v15166_v54 = vld [vmem:[%s19446_s1 + $0x414] ss:$8 sps:$4 sm:$0xff]  }
 0x1ef   : > { %2277 = vmatprep.mubr.bf16.mxu0 %v15683_v24  ;;  %3244 = vmatpush1.bf16.msra.mxu0 %v15131_v55  ;;  %v15164_v55 = vld [vmem:[%s19446_s1 + $0x410] ss:$8 sps:$4 sm:$0xff]  }
 0x1f0   : > { %3245 = vmatprep.subr.bf16.mxu0 %v15136_v56  ;;  %v2702_v56 = vld [vmem:[#allocation2 + $0x69] sm:$0xff] }
 0x1f3   : > { %3246 = vmatpush1.bf16.msra.mxu0 %v15134_v59  ;;  %v16437_v59 = vpack.c.bf16 %v2703_v57, %v2702_v56  ;;  %v15193_v56 = vld [vmem:[%s19448_s3 + $0x24] ss:$8 sps:$4 sm:$0xff]   ;;  %v15191_v57 = vld [vmem:[%s19448_s3 + $0x20] ss:$8 sps:$4 sm:$0xff]  }
 0x1f4   : > { %3247 = vmatprep.subr.bf16.mxu0 %v15139_v60  ;;  %v15167_v60 = vld [vmem:[%s19446_s1 + $0x420] ss:$8 sps:$4 sm:$0xff]  }
 0x1f6   : > { %2278 = vmatmul.mubr.bf16.gmra.mrb[16].mxu0 %v1647_v61  ;;  %v15172_v61 = vld [vmem:[%s19446_s1 + $0x434] ss:$8 sps:$4 sm:$0xff]  }
 0x1f7   : > { %2287 = vmatprep.mubr.bf16.mxu0 %v15683_v24  ;;  %3248 = vmatpush1.bf16.msra.mxu0 %v15137_v62  ;;  %v15170_v62 = vld [vmem:[%s19446_s1 + $0x430] ss:$8 sps:$4 sm:$0xff]  }
 0x1f8   : > { %3249 = vmatprep.subr.bf16.mxu0 %v15142_v63  ;;  %v2704_v63 = vld [vmem:[#allocation2 + $0x89] sm:$0xff] }
 0x1fb   : > { %3250 = vmatpush1.bf16.msra.mxu0 %v15140_v2  ;;  %v16456_v2 = vpack.c.bf16 %v2705_v0, %v2704_v63  ;;  %v15205_v63 = vld [vmem:[%s19448_s3 + $0x64] ss:$8 sps:$4 sm:$0xff]   ;;  %v15203_v0 = vld [vmem:[%s19448_s3 + $0x60] ss:$8 sps:$4 sm:$0xff]  }
 0x1fc   : > { %3251 = vmatprep.subr.bf16.mxu0 %v15145_v3  ;;  %v15173_v3 = vld [vmem:[%s19446_s1 + $0x440] ss:$8 sps:$4 sm:$0xff]  }
 0x1fe   : > { %2288 = vmatmul.mubr.bf16.gmra.mrb[20].mxu0 %v1648_v4  ;;  %v15178_v4 = vld [vmem:[%s19446_s1 + $0x454] ss:$8 sps:$4 sm:$0xff]  }
 0x1ff   : > { %2297 = vmatprep.mubr.bf16.mxu0 %v15683_v24  ;;  %3252 = vmatpush1.bf16.msra.mxu0 %v15143_v5  ;;  %v15176_v5 = vld [vmem:[%s19446_s1 + $0x450] ss:$8 sps:$4 sm:$0xff]  }
 0x200   : > { %3253 = vmatprep.subr.bf16.mxu0 %v15148_v6  ;;  %v2706_v6 = vld [vmem:[#allocation2 + $0xa9] sm:$0xff] }
 0x203   : > { %3254 = vmatpush1.bf16.msra.mxu0 %v15146_v9  ;;  %v16476_v9 = vpack.c.bf16 %v2707_v7, %v2706_v6  ;;  %v15212_v6 = vld [vmem:[%s19448_s3 + $0x90] ss:$8 sps:$4 sm:$0xff]   ;;  %v15217_v7 = vld [vmem:[%s19448_s3 + $0xa4] ss:$8 sps:$4 sm:$0xff]  }
 0x204   : > { %3255 = vmatprep.subr.bf16.mxu0 %v15151_v10  ;;  %v15179_v10 = vld [vmem:[%s19446_s1 + $0x460] ss:$8 sps:$4 sm:$0xff]  }
 0x206   : > { %2298 = vmatmul.mubr.bf16.gmra.mrb[24].mxu0 %v1649_v11  ;;  %v15184_v11 = vld [vmem:[%s19446_s1 + $0x474] ss:$8 sps:$4 sm:$0xff]  }
 0x207   : > { %2307 = vmatprep.mubr.bf16.mxu0 %v15683_v24  ;;  %3256 = vmatpush1.bf16.msra.mxu0 %v15149_v12  ;;  %v15182_v12 = vld [vmem:[%s19446_s1 + $0x470] ss:$8 sps:$4 sm:$0xff]  }
 0x208   : > { %3257 = vmatprep.subr.bf16.mxu0 %v15154_v13  ;;  %v2708_v13 = vld [vmem:[#allocation2 + $0xc9] sm:$0xff] }
 0x209   : > { %v16493_v15 = vpack.c.bf16 %v2709_v14, %v2708_v13  ;;  %v15226_v13 = vld [vmem:[%s19448_s3 + $0xd4] ss:$8 sps:$4 sm:$0xff]   ;;  %v15224_v14 = vld [vmem:[%s19448_s3 + $0xd0] ss:$8 sps:$4 sm:$0xff]  }
 0x20b   : > { %3258 = vmatpush1.bf16.msra.mxu0 %v15152_v16  ;;  %v2710_v16 = vld [vmem:[#allocation2 + $0xe9] sm:$0xff] }
 0x20c   : > { %3259 = vmatprep.subr.bf16.mxu0 %v15157_v17  ;;  %v2711_v17 = vld [vmem:[#allocation2 + $0xf1] sm:$0xff] }
 0x20e   : > { %2308 = vmatmul.mubr.bf16.gmra.mrb[28].mxu0 %v1650_v19  ;;  %v16501_v19 = vpack.c.bf16 %v2711_v17, %v2710_v16  ;;  %v15227_v16 = vld [vmem:[%s19448_s3 + $0xe0] ss:$8 sps:$4 sm:$0xff]   ;;  %v15232_v17 = vld [vmem:[%s19448_s3 + $0xf4] ss:$8 sps:$4 sm:$0xff]  }
 0x20f   : > { %2317 = vmatprep.mubr.bf16.mxu0 %v15683_v24  ;;  %3260 = vmatpush1.bf16.msra.mxu0 %v15155_v20  ;;  %v2712_v20 = vld [vmem:[#allocation2 + $0x109] sm:$0xff] }
 0x210   : > { %3261 = vmatprep.subr.bf16.mxu0 %v15160_v21  ;;  %v2713_v21 = vld [vmem:[#allocation2 + $0x111] sm:$0xff] }
 0x211   : > { %v16509_v22 = vpack.c.bf16 %v2713_v21, %v2712_v20  ;;  %v15233_v20 = vld [vmem:[%s19448_s3 + $0x104] ss:$8 sps:$4 sm:$0xff]   ;;  %v15235_v21 = vld [vmem:[%s19448_s3 + $0x100] ss:$8 sps:$4 sm:$0xff]  }
 0x212   : > { %14045 = vmatprep.subr.bf16.mxu1 %v15233_v20 }
 0x213   : > { %3262 = vmatpush1.bf16.msra.mxu0 %v15158_v25  ;;  %v2715_v25 = vld [vmem:[#allocation2 + $0x131] sm:$0xff]  ;;  %14061 = vmatpush1.bf16.msra.mxu1 %v15235_v21 }
 0x214   : > { %3424 = vmatprep.subr.bf16.mxu0 %v15163_v26  ;;  %v16517_v26 = vpack.c.bf16 %v2715_v25, %v2714_v23  ;;  %v15238_v23 = vld [vmem:[%s19448_s3 + $0x110] ss:$8 sps:$4 sm:$0xff]   ;;  %v15239_v25 = vld [vmem:[%s19448_s3 + $0x124] ss:$8 sps:$4 sm:$0xff]  }
 0x216   : > { %2318 = vmatmul.mubr.bf16.gmra.mrb[32].mxu0 %v1651_v27  ;;  %v2716_v27 = vld [vmem:[#allocation2 + $0x149] sm:$0xff] }
 0x217   : > { %2327 = vmatprep.mubr.bf16.mxu0 %v15683_v24  ;;  %v16525_v28 = vpack.c.bf16 %v2717_v31, %v2716_v27  ;;  %v15242_v27 = vld [vmem:[%s19448_s3 + $0x134] ss:$8 sps:$4 sm:$0xff]   ;;  %v15244_v31 = vld [vmem:[%s19448_s3 + $0x130] ss:$8 sps:$4 sm:$0xff]  }
 0x21e   : > { %2328 = vmatmul.mubr.bf16.gmra.mrb[36].mxu0 %v1652_v32  ;;  %v2718_v32 = vld [vmem:[#allocation2 + $0x169] sm:$0xff] }
 0x21f   : > { %2337 = vmatprep.mubr.bf16.mxu0 %v15683_v24  ;;  %v16533_v34 = vpack.c.bf16 %v2719_v33, %v2718_v32  ;;  %v15248_v32 = vld [vmem:[%s19448_s3 + $0x154] ss:$8 sps:$4 sm:$0xff]   ;;  %v15250_v33 = vld [vmem:[%s19448_s3 + $0x150] ss:$8 sps:$4 sm:$0xff]  }
 0x226   : > { %2338 = vmatmul.mubr.bf16.gmra.mrb[40].mxu0 %v1653_v35  ;;  %v2720_v35 = vld [vmem:[#allocation2 + $0x189] sm:$0xff] }
 0x227   : > { %2347 = vmatprep.mubr.bf16.mxu0 %v15683_v24  ;;  %v16541_v37 = vpack.c.bf16 %v2721_v36, %v2720_v35  ;;  %v15253_v35 = vld [vmem:[%s19448_s3 + $0x160] ss:$8 sps:$4 sm:$0xff]   ;;  %v15254_v36 = vld [vmem:[%s19448_s3 + $0x174] ss:$8 sps:$4 sm:$0xff]  }
 0x22e   : > { %2348 = vmatmul.mubr.bf16.gmra.mrb[44].mxu0 %v1654_v38  ;;  %v2722_v38 = vld [vmem:[#allocation2 + $0x1a9] sm:$0xff] }
 0x22f   : > { %2357 = vmatprep.mubr.bf16.mxu0 %v15683_v24  ;;  %v16549_v40 = vpack.c.bf16 %v2723_v39, %v2722_v38  ;;  %v15257_v38 = vld [vmem:[%s19448_s3 + $0x184] ss:$8 sps:$4 sm:$0xff]   ;;  %v15259_v39 = vld [vmem:[%s19448_s3 + $0x180] ss:$8 sps:$4 sm:$0xff]  }
 0x236   : > { %2358 = vmatmul.mubr.bf16.gmra.mrb[48].mxu0 %v1655_v41  ;;  %v2724_v41 = vld [vmem:[#allocation2 + $0x1c9] sm:$0xff] }
 0x237   : > { %2367 = vmatprep.mubr.bf16.mxu0 %v15683_v24  ;;  %v16557_v43 = vpack.c.bf16 %v2725_v42, %v2724_v41  ;;  %v15262_v41 = vld [vmem:[%s19448_s3 + $0x190] ss:$8 sps:$4 sm:$0xff]   ;;  %v15263_v42 = vld [vmem:[%s19448_s3 + $0x1a4] ss:$8 sps:$4 sm:$0xff]  }
 0x23e   : > { %2368 = vmatmul.mubr.bf16.gmra.mrb[52].mxu0 %v1656_v44  ;;  %v2726_v44 = vld [vmem:[#allocation2 + $0x1e9] sm:$0xff] }
 0x23f   : > { %2377 = vmatprep.mubr.bf16.mxu0 %v15683_v24  ;;  %v16565_v46 = vpack.c.bf16 %v2727_v45, %v2726_v44  ;;  %v15266_v44 = vld [vmem:[%s19448_s3 + $0x1b4] ss:$8 sps:$4 sm:$0xff]   ;;  %v15268_v45 = vld [vmem:[%s19448_s3 + $0x1b0] ss:$8 sps:$4 sm:$0xff]  }
 0x246   : > { %2378 = vmatmul.mubr.bf16.gmra.mrb[56].mxu0 %v16294_v29  ;;  %v15161_v29 = vld [vmem:[%s19446_s1 + $0x400] ss:$8 sps:$4 sm:$0xff]  }
 0x247   : > { %2387 = vmatprep.mubr.bf16.mxu0 %v15683_v24 }
 0x24e   : > { %2388 = vmatmul.mubr.bf16.gmra.mrb[60].mxu0 %v19453_v30 }
 0x24f   : > { %13357 = vmatprep.mubr.msk.bf16.mxu0 %vm16412_vm4, %v13356_v48 }
 0x256   : > { %3264 = vmatmul.mubr.bf16.vlgmr.msra.gmra.mrb[0].mxu0 %v19453_v30 }
 0x257   : > { %3425 = vmatpush1.bf16.msra.mxu0 %v15161_v29  ;;  %13360 = vmatprep.mubr.msk.bf16.mxu0 %vm16412_vm4, %v16422_v53  ;;  %v15185_v29 = vld [vmem:[%s19448_s3] ss:$8 sps:$4 sm:$0xff]  }
 0x258   : > { %3426 = vmatprep.subr.bf16.mxu0 %v15166_v54  ;;  %v15190_v54 = vld [vmem:[%s19448_s3 + $0x14] ss:$8 sps:$4 sm:$0xff]  }
 0x25b   : > { %3427 = vmatpush1.bf16.msra.mxu0 %v15164_v55  ;;  %v15188_v55 = vld [vmem:[%s19448_s3 + $0x10] ss:$8 sps:$4 sm:$0xff]  }
 0x25c   : > { %3428 = vmatprep.subr.bf16.mxu0 %v15169_v58  ;;  %v15194_v58 = vld [vmem:[%s19448_s3 + $0x30] ss:$8 sps:$4 sm:$0xff]  }
 0x25e   : > { %13363 = vmatmul.mubr.msk.bf16.gmra.mrb[4].mxu0 %vm16412_vm4, %v13356_v48  ;;  %v2729_v48 = vld [vmem:[#allocation2 + $0x211] sm:$0xff] }
 0x25f   : > { %13366 = vmatprep.mubr.msk.bf16.mxu0 %vm16412_vm4, %v16437_v59  ;;  %3429 = vmatpush1.bf16.msra.mxu0 %v15167_v60  ;;  %v16573_v51 = vpack.c.bf16 %v2729_v48, %v2728_v47  ;;  %v15199_v60 = vld [vmem:[%s19448_s3 + $0x44] ss:$8 sps:$4 sm:$0xff]   ;;  %v15271_v47 = vld [vmem:[%s19448_s3 + $0x1c0] ss:$8 sps:$4 sm:$0xff]   ;;  %v15272_v48 = vld [vmem:[%s19448_s3 + $0x1d4] ss:$8 sps:$4 sm:$0xff]  }
 0x260   : > { %3430 = vmatprep.subr.bf16.mxu0 %v15172_v61  ;;  %v15197_v61 = vld [vmem:[%s19448_s3 + $0x40] ss:$8 sps:$4 sm:$0xff]  }
 0x263   : > { %3431 = vmatpush1.bf16.msra.mxu0 %v15170_v62  ;;  %v15200_v62 = vld [vmem:[%s19448_s3 + $0x50] ss:$8 sps:$4 sm:$0xff]  }
 0x264   : > { %3432 = vmatprep.subr.bf16.mxu0 %v15175_v1  ;;  %v15208_v1 = vld [vmem:[%s19448_s3 + $0x74] ss:$8 sps:$4 sm:$0xff]  }
 0x266   : > { %13369 = vmatmul.mubr.msk.bf16.gmra.mrb[8].mxu0 %vm16412_vm4, %v16422_v53 }
 0x267   : > { %13372 = vmatprep.mubr.msk.bf16.mxu0 %vm16412_vm4, %v16456_v2  ;;  %3433 = vmatpush1.bf16.msra.mxu0 %v15173_v3  ;;  %v15211_v3 = vld [vmem:[%s19448_s3 + $0x84] ss:$8 sps:$4 sm:$0xff]  }
 0x268   : > { %3434 = vmatprep.subr.bf16.mxu0 %v15178_v4  ;;  %v15209_v4 = vld [vmem:[%s19448_s3 + $0x80] ss:$8 sps:$4 sm:$0xff]  }
 0x26b   : > { %3435 = vmatpush1.bf16.msra.mxu0 %v15176_v5  ;;  %v15214_v5 = vld [vmem:[%s19448_s3 + $0x94] ss:$8 sps:$4 sm:$0xff]  }
 0x26c   : > { %3436 = vmatprep.subr.bf16.mxu0 %v15181_v8  ;;  %v15215_v8 = vld [vmem:[%s19448_s3 + $0xa0] ss:$8 sps:$4 sm:$0xff]  }
 0x26e   : > { %13375 = vmatmul.mubr.msk.bf16.gmra.mrb[12].mxu0 %vm16412_vm4, %v16437_v59 }
 0x26f   : > { %13378 = vmatprep.mubr.msk.bf16.mxu0 %vm16412_vm4, %v16476_v9  ;;  %3437 = vmatpush1.bf16.msra.mxu0 %v15179_v10  ;;  %v15218_v10 = vld [vmem:[%s19448_s3 + $0xb0] ss:$8 sps:$4 sm:$0xff]  }
 0x270   : > { %3438 = vmatprep.subr.bf16.mxu0 %v15184_v11  ;;  %v15223_v11 = vld [vmem:[%s19448_s3 + $0xc4] ss:$8 sps:$4 sm:$0xff]  }
 0x273   : > { %3439 = vmatpush1.bf16.msra.mxu0 %v15182_v12  ;;  %v15221_v12 = vld [vmem:[%s19448_s3 + $0xc0] ss:$8 sps:$4 sm:$0xff]  }
 0x274   : > { %6384 = vmatprep.subr.bf16.mxu0 %v15187_v52  ;;  %v15275_v52 = vld [vmem:[%s19448_s3 + $0x1e4] ss:$8 sps:$4 sm:$0xff]  }
 0x276   : > { %13381 = vmatmul.mubr.msk.bf16.gmra.mrb[16].mxu0 %vm16412_vm4, %v16456_v2 }
 0x277   : > { %13384 = vmatprep.mubr.msk.bf16.mxu0 %vm16412_vm4, %v16493_v15 }
 0x27e   : > { %13387 = vmatmul.mubr.msk.bf16.gmra.mrb[20].mxu0 %vm16412_vm4, %v16476_v9 }
 0x27f   : > { %13390 = vmatprep.mubr.msk.bf16.mxu0 %vm16412_vm4, %v16501_v19 }
 0x286   : > { %13393 = vmatmul.mubr.msk.bf16.gmra.mrb[24].mxu0 %vm16412_vm4, %v16493_v15 }
 0x287   : > { %13396 = vmatprep.mubr.msk.bf16.mxu0 %vm16412_vm4, %v16509_v22 }
 0x28e   : > { %13399 = vmatmul.mubr.msk.bf16.gmra.mrb[28].mxu0 %vm16412_vm4, %v16501_v19 }
 0x28f   : > { %13402 = vmatprep.mubr.msk.bf16.mxu0 %vm16412_vm4, %v16517_v26 }
 0x296   : > { %13405 = vmatmul.mubr.msk.bf16.gmra.mrb[32].mxu0 %vm16412_vm4, %v16509_v22 }
 0x297   : > { %13408 = vmatprep.mubr.msk.bf16.mxu0 %vm16412_vm4, %v16525_v28 }
 0x29e   : > { %13411 = vmatmul.mubr.msk.bf16.gmra.mrb[36].mxu0 %vm16412_vm4, %v16517_v26 }
 0x29f   : > { %13414 = vmatprep.mubr.msk.bf16.mxu0 %vm16412_vm4, %v16533_v34 }
 0x2a6   : > { %13417 = vmatmul.mubr.msk.bf16.gmra.mrb[40].mxu0 %vm16412_vm4, %v16525_v28 }
 0x2a7   : > { %13420 = vmatprep.mubr.msk.bf16.mxu0 %vm16412_vm4, %v16541_v37 }
 0x2ae   : > { %13423 = vmatmul.mubr.msk.bf16.gmra.mrb[44].mxu0 %vm16412_vm4, %v16533_v34 }
 0x2af   : > { %13426 = vmatprep.mubr.msk.bf16.mxu0 %vm16412_vm4, %v16549_v40 }
 0x2b6   : > { %13429 = vmatmul.mubr.msk.bf16.gmra.mrb[48].mxu0 %vm16412_vm4, %v16541_v37 }
 0x2b7   : > { %13432 = vmatprep.mubr.msk.bf16.mxu0 %vm16412_vm4, %v16557_v43 }
 0x2be   : > { %13435 = vmatmul.mubr.msk.bf16.gmra.mrb[52].mxu0 %vm16412_vm4, %v16549_v40 }
 0x2bf   : > { %13438 = vmatprep.mubr.msk.bf16.mxu0 %vm16412_vm4, %v16565_v46 }
 0x2c6   : > { %13441 = vmatmul.mubr.msk.bf16.gmra.mrb[56].mxu0 %vm16412_vm4, %v16557_v43 }
 0x2c7   : > { %13444 = vmatprep.mubr.msk.bf16.mxu0 %vm16412_vm4, %v16573_v51 }
 0x2ce   : > { %13447 = vmatmul.mubr.msk.bf16.gmra.mrb[60].mxu0 %vm16412_vm4, %v16565_v46 }
 0x2cf   : > { %3456 = vmatprep.mubr.bf16.mxu0 %v15683_v24 }
 0x2d6   : > { %13450 = vmatmul.mubr.msk.bf16.vlgmr.msra.gmra.mrb[0].mxu0 %vm16412_vm4, %v16422_v53  ;;  %v15196_v53 = vld [vmem:[%s19448_s3 + $0x34] ss:$8 sps:$4 sm:$0xff]  }
 0x2d7   : > { %3466 = vmatprep.mubr.bf16.mxu0 %v15683_v24  ;;  %6385 = vmatpush1.bf16.msra.mxu0 %v15185_v29  ;;  %v15277_v29 = vld [vmem:[%s19448_s3 + $0x1e0] ss:$8 sps:$4 sm:$0xff]  }
 0x2d8   : > { %6386 = vmatprep.subr.bf16.mxu0 %v15190_v54  ;;  %v15278_v54 = vld [vmem:[%s19448_s3 + $0x1f4] ss:$8 sps:$4 sm:$0xff]  }
 0x2db   : > { %6387 = vmatpush1.bf16.msra.mxu0 %v15188_v55  ;;  %v15280_v55 = vld [vmem:[%s19448_s3 + $0x1f0] ss:$8 sps:$4 sm:$0xff]  }
 0x2dc   : > { %6388 = vmatprep.subr.bf16.mxu0 %v15193_v56  ;;  %v15283_v56 = vld [vmem:[%s19448_s3 + $0x204] ss:$8 sps:$4 sm:$0xff]  }
 0x2de   : > { %13453 = vmatmul.mubr.msk.bf16.gmra.mrb[4].mxu0 %vm16412_vm4, %v16437_v59  ;;  %v15202_v59 = vld [vmem:[%s19448_s3 + $0x54] ss:$8 sps:$4 sm:$0xff]  }
 0x2df   : > { %3476 = vmatprep.mubr.bf16.mxu0 %v15683_v24  ;;  %6389 = vmatpush1.bf16.msra.mxu0 %v15191_v57  ;;  %v19452_v57 = vsub.s32 0, %v15815_v18 }
 0x2e0   : > { %6390 = vmatprep.subr.bf16.mxu0 %v15196_v53  ;;  %v3873_v53 = vld [vmem:[%s19447_s2] sm:$0x3] }
 0x2e3   : > { %6391 = vmatpush1.bf16.msra.mxu0 %v15194_v58  ;;  %v19451_v58 = vsub.s32 1, %v15815_v18 }
 0x2e4   : > { %6392 = vmatprep.subr.bf16.mxu0 %v15199_v60  ;;  %v16850_v60 = vrot.slane %v3873_v53, %v19452_v57 }
 0x2e6   : > { %13456 = vmatmul.mubr.msk.bf16.gmra.mrb[8].mxu0 %vm16412_vm4, %v16456_v2  ;;  %v15206_v2 = vld [vmem:[%s19448_s3 + $0x70] ss:$8 sps:$4 sm:$0xff]  }
 0x2e7   : > { %3486 = vmatprep.mubr.bf16.mxu0 %v15683_v24  ;;  %6393 = vmatpush1.bf16.msra.mxu0 %v15197_v61  ;;  %v16854_v61 = vrot.slane %v3873_v53, %v19451_v58 }
 0x2e8   : > { %6394 = vmatprep.subr.bf16.mxu0 %v15202_v59 }
 0x2eb   : > { %6395 = vmatpush1.bf16.msra.mxu0 %v15200_v62 }
 0x2ec   : > { %6396 = vmatprep.subr.bf16.mxu0 %v15205_v63 }
 0x2ee   : > { %13459 = vmatmul.mubr.msk.bf16.gmra.mrb[12].mxu0 %vm16412_vm4, %v16476_v9  ;;  %v15220_v9 = vld [vmem:[%s19448_s3 + $0xb4] ss:$8 sps:$4 sm:$0xff]  }
 0x2ef   : > { %3496 = vmatprep.mubr.bf16.mxu0 %v15683_v24  ;;  %6397 = vmatpush1.bf16.msra.mxu0 %v15203_v0 }
 0x2f0   : > { %6398 = vmatprep.subr.bf16.mxu0 %v15208_v1 }
 0x2f3   : > { %6399 = vmatpush1.bf16.msra.mxu0 %v15206_v2 }
 0x2f4   : > { %6400 = vmatprep.subr.bf16.mxu0 %v15211_v3 }
 0x2f6   : > { %13462 = vmatmul.mubr.msk.bf16.gmra.mrb[16].mxu0 %vm16412_vm4, %v16493_v15  ;;  %v15229_v15 = vld [vmem:[%s19448_s3 + $0xe4] ss:$8 sps:$4 sm:$0xff]  }
 0x2f7   : > { %3506 = vmatprep.mubr.bf16.mxu0 %v15683_v24  ;;  %6401 = vmatpush1.bf16.msra.mxu0 %v15209_v4 }
 0x2f8   : > { %6402 = vmatprep.subr.bf16.mxu0 %v15214_v5 }
 0x2fb   : > { %6403 = vmatpush1.bf16.msra.mxu0 %v15212_v6 }
 0x2fc   : > { %6404 = vmatprep.subr.bf16.mxu0 %v15217_v7 }
 0x2fe   : > { %13465 = vmatmul.mubr.msk.bf16.gmra.mrb[20].mxu0 %vm16412_vm4, %v16501_v19  ;;  %v15230_v19 = vld [vmem:[%s19448_s3 + $0xf0] ss:$8 sps:$4 sm:$0xff]  }
 0x2ff   : > { %3516 = vmatprep.mubr.bf16.mxu0 %v15683_v24  ;;  %6405 = vmatpush1.bf16.msra.mxu0 %v15215_v8 }
 0x300   : > { %6406 = vmatprep.subr.bf16.mxu0 %v15220_v9 }
 0x303   : > { %6407 = vmatpush1.bf16.msra.mxu0 %v15218_v10 }
 0x304   : > { %6408 = vmatprep.subr.bf16.mxu0 %v15223_v11 }
 0x306   : > { %13468 = vmatmul.mubr.msk.bf16.gmra.mrb[24].mxu0 %vm16412_vm4, %v16509_v22  ;;  %v15236_v22 = vld [vmem:[%s19448_s3 + $0x114] ss:$8 sps:$4 sm:$0xff]  }
 0x307   : > { %3526 = vmatprep.mubr.bf16.mxu0 %v15683_v24  ;;  %6409 = vmatpush1.bf16.msra.mxu0 %v15221_v12 }
 0x308   : > { %6410 = vmatprep.subr.bf16.mxu0 %v15226_v13  ;;  %14046 = vmatprep.subr.bf16.mxu1 %v15236_v22 }
 0x309   : > { %14062 = vmatpush1.bf16.msra.mxu1 %v15238_v23 }
 0x30a   : > { %14047 = vmatprep.subr.bf16.mxu1 %v15239_v25 }
 0x30b   : > { %6411 = vmatpush1.bf16.msra.mxu0 %v15224_v14 }
 0x30c   : > { %6412 = vmatprep.subr.bf16.mxu0 %v15229_v15 }
 0x30e   : > { %13471 = vmatmul.mubr.msk.bf16.gmra.mrb[28].mxu0 %vm16412_vm4, %v16517_v26  ;;  %v15241_v26 = vld [vmem:[%s19448_s3 + $0x120] ss:$8 sps:$4 sm:$0xff]  }
 0x30f   : > { %3536 = vmatprep.mubr.bf16.mxu0 %v15683_v24  ;;  %6413 = vmatpush1.bf16.msra.mxu0 %v15227_v16 }
 0x310   : > { %6414 = vmatprep.subr.bf16.mxu0 %v15232_v17  ;;  %14063 = vmatpush1.bf16.msra.mxu1 %v15241_v26  ;;  %v4085_v17 = vld [vmem:[#allocation3 + $0x48] sm:$0x80] }
 0x311   : > { %14048 = vmatprep.subr.bf16.mxu1 %v15242_v27 }
 0x313   : > { %6415 = vmatpush1.bf16.msra.mxu0 %v15230_v19 }
 0x314   : > { %6577 = vmatprep.subr.bf16.mxu0 %v15233_v20  ;;  %14064 = vmatpush1.bf16.msra.mxu1 %v15244_v31 }
 0x316   : > { %13474 = vmatmul.mubr.msk.bf16.gmra.mrb[32].mxu0 %vm16412_vm4, %v16525_v28  ;;  %v15245_v28 = vld [vmem:[%s19448_s3 + $0x144] ss:$8 sps:$4 sm:$0xff]  }
 0x317   : > { %3546 = vmatprep.mubr.bf16.mxu0 %v15683_v24  ;;  %14049 = vmatprep.subr.bf16.mxu1 %v15245_v28 }
 0x31e   : > { %13477 = vmatmul.mubr.msk.bf16.gmra.mrb[36].mxu0 %vm16412_vm4, %v16533_v34  ;;  %v15251_v34 = vld [vmem:[%s19448_s3 + $0x164] ss:$8 sps:$4 sm:$0xff]  }
 0x31f   : > { %3556 = vmatprep.mubr.bf16.mxu0 %v15683_v24 }
 0x326   : > { %13480 = vmatmul.mubr.msk.bf16.gmra.mrb[40].mxu0 %vm16412_vm4, %v16541_v37  ;;  %v15256_v37 = vld [vmem:[%s19448_s3 + $0x170] ss:$8 sps:$4 sm:$0xff]  }
 0x327   : > { %3566 = vmatprep.mubr.bf16.mxu0 %v15683_v24 }
 0x32e   : > { %13483 = vmatmul.mubr.msk.bf16.gmra.mrb[44].mxu0 %vm16412_vm4, %v16549_v40  ;;  %v15260_v40 = vld [vmem:[%s19448_s3 + $0x194] ss:$8 sps:$4 sm:$0xff]  }
 0x32f   : > { %3576 = vmatprep.mubr.bf16.mxu0 %v15683_v24 }
 0x336   : > { %13486 = vmatmul.mubr.msk.bf16.gmra.mrb[48].mxu0 %vm16412_vm4, %v16557_v43  ;;  %v15265_v43 = vld [vmem:[%s19448_s3 + $0x1a0] ss:$8 sps:$4 sm:$0xff]  }
 0x337   : > { %3586 = vmatprep.mubr.bf16.mxu0 %v15683_v24 }
 0x33e   : > { %13489 = vmatmul.mubr.msk.bf16.gmra.mrb[52].mxu0 %vm16412_vm4, %v16565_v46  ;;  %v15269_v46 = vld [vmem:[%s19448_s3 + $0x1c4] ss:$8 sps:$4 sm:$0xff]  }
 0x33f   : > { %3596 = vmatprep.mubr.bf16.mxu0 %v15683_v24 }
 0x346   : > { %13492 = vmatmul.mubr.msk.bf16.gmra.mrb[56].mxu0 %vm16412_vm4, %v16573_v51  ;;  %v15274_v51 = vld [vmem:[%s19448_s3 + $0x1d0] ss:$8 sps:$4 sm:$0xff]  }
 0x347   : > { %3606 = vmatprep.mubr.bf16.mxu0 %v15683_v24  ;;  %v15247_v24 = vld [vmem:[%s19448_s3 + $0x140] ss:$8 sps:$4 sm:$0xff]  }
 0x348   : > { %14065 = vmatpush1.bf16.msra.mxu1 %v15247_v24 }
 0x349   : > { %14050 = vmatprep.subr.bf16.mxu1 %v15248_v32 }
 0x34c   : > { %14066 = vmatpush1.bf16.msra.mxu1 %v15250_v33 }
 0x34d   : > { %14051 = vmatprep.subr.bf16.mxu1 %v15251_v34 }
 0x34e   : > { %3607 = vmatmul.mubr.bf16.gmra.mrb[60].mxu0 %v19453_v30 }
 0x34f   : > { %6416 = vmatprep.mubr.bf16.mxu0 %v19453_v30 }
 0x350   : > { %14067 = vmatpush1.bf16.msra.mxu1 %v15253_v35 }
 0x351   : > { %14052 = vmatprep.subr.bf16.mxu1 %v15254_v36 }
 0x354   : > { %14068 = vmatpush1.bf16.msra.mxu1 %v15256_v37 }
 0x355   : > { %14053 = vmatprep.subr.bf16.mxu1 %v15257_v38 }
 0x356   : > { %6417 = vmatmul.mubr.bf16.vlgmr.msra.gmra.mrb[64].mxu0 %v19453_v30 }
 0x357   : > { %6578 = vmatpush1.bf16.msra.mxu0 %v15235_v21  ;;  %v4084_v21 = vld [vmem:[#allocation3 + $0x40] sm:$0x80] }
 0x358   : > { %6579 = vmatprep.subr.bf16.mxu0 %v15236_v22  ;;  %14069 = vmatpush1.bf16.msra.mxu1 %v15259_v39 }
 0x359   : > { %14054 = vmatprep.subr.bf16.mxu1 %v15260_v40 }
 0x35b   : > { %6580 = vmatpush1.bf16.msra.mxu0 %v15238_v23 }
 0x35c   : > { %6581 = vmatprep.subr.bf16.mxu0 %v15239_v25  ;;  %14070 = vmatpush1.bf16.msra.mxu1 %v15262_v41  ;;  %v4284_v25 = vrot.slane %v4085_v17, 7 }
 0x35d   : > { %14055 = vmatprep.subr.bf16.mxu1 %v15263_v42 }
 0x35f   : > { %6582 = vmatpush1.bf16.msra.mxu0 %v15241_v26 }
 0x360   : > { %6583 = vmatprep.subr.bf16.mxu0 %v15242_v27  ;;  %14071 = vmatpush1.bf16.msra.mxu1 %v15265_v43 }
 0x361   : > { %14056 = vmatprep.subr.bf16.mxu1 %v15266_v44 }
 0x363   : > { %6584 = vmatpush1.bf16.msra.mxu0 %v15244_v31 }
 0x364   : > { %6585 = vmatprep.subr.bf16.mxu0 %v15245_v28  ;;  %14072 = vmatpush1.bf16.msra.mxu1 %v15268_v45  ;;  %v4281_v28 = vrot.slane %v4084_v21, 7  ;;  %v4096_v21 = vld [vmem:[#allocation3 + $0xc0] sm:$0x80] }
 0x365   : > { %14057 = vmatprep.subr.bf16.mxu1 %v15269_v46 }
 0x367   : > { %6586 = vmatpush1.bf16.msra.mxu0 %v15247_v24 }
 0x368   : > { %6587 = vmatprep.subr.bf16.mxu0 %v15248_v32  ;;  %14073 = vmatpush1.bf16.msra.mxu1 %v15271_v47 }
 0x369   : > { %14058 = vmatprep.subr.bf16.mxu1 %v15272_v48 }
 0x36b   : > { %6588 = vmatpush1.bf16.msra.mxu0 %v15250_v33 }
 0x36c   : > { %6589 = vmatprep.subr.bf16.mxu0 %v15251_v34  ;;  %14074 = vmatpush1.bf16.msra.mxu1 %v15274_v51 }
 0x36d   : > { %14059 = vmatprep.subr.bf16.mxu1 %v15275_v52 }
 0x36f   : > { %6590 = vmatpush1.bf16.msra.mxu0 %v15253_v35 }
 0x370   : > { %6591 = vmatprep.subr.bf16.mxu0 %v15254_v36  ;;  %14075 = vmatpush1.bf16.msra.mxu1 %v15277_v29 }
 0x371   : > { %14060 = vmatprep.subr.bf16.mxu1 %v15278_v54 }
 0x373   : > { %6592 = vmatpush1.bf16.msra.mxu0 %v15256_v37 }
 0x374   : > { %6593 = vmatprep.subr.bf16.mxu0 %v15257_v38  ;;  %14076 = vmatpush1.bf16.msra.mxu1 %v15280_v55 }
 0x375   : > { %6770 = vmatprep.subr.bf16.mxu1 %v15283_v56 }
 0x377   : > { %6594 = vmatpush1.bf16.msra.mxu0 %v15259_v39 }
 0x378   : > { %6595 = vmatprep.subr.bf16.mxu0 %v15260_v40 }
 0x37b   : > { %6596 = vmatpush1.bf16.msra.mxu0 %v15262_v41 }
 0x37c   : > { %6597 = vmatprep.subr.bf16.mxu0 %v15263_v42 }
 0x37f   : > { %6598 = vmatpush1.bf16.msra.mxu0 %v15265_v43 }
 0x380   : > { %6599 = vmatprep.subr.bf16.mxu0 %v15266_v44 }
 0x383   : > { %6600 = vmatpush1.bf16.msra.mxu0 %v15268_v45 }
 0x384   : > { %6601 = vmatprep.subr.bf16.mxu0 %v15269_v46 }
 0x387   : > { %6602 = vmatpush1.bf16.msra.mxu0 %v15271_v47  ;;  %v4091_v47 = vld [vmem:[#allocation3 + $0x88] sm:$0x80] }
 0x388   : > { %6603 = vmatprep.subr.bf16.mxu0 %v15272_v48  ;;  %v4294_v56 = vrot.slane %v4091_v47, 7  ;;  %v4103_v47 = vld [vmem:[#allocation3 + $0x108] sm:$0x80] }
 0x38b   : > { %6604 = vmatpush1.bf16.msra.mxu0 %v15274_v51 }
 0x38c   : > { %6605 = vmatprep.subr.bf16.mxu0 %v15275_v52 }
 0x38f   : > { %6606 = vmatpush1.bf16.msra.mxu0 %v15277_v29  ;;  %v4090_v29 = vld [vmem:[#allocation3 + $0x80] sm:$0x80] }
 0x390   : > { %6607 = vmatprep.subr.bf16.mxu0 %v15278_v54 }
 0x393   : > { %6608 = vmatpush1.bf16.msra.mxu0 %v15280_v55 }
 0x3a9   : > { %v3458_v59 = vpop.f32.mrb[0].mxu0 }
 0x3aa   : > { %v3885_v62 = vadd.f32 %v16850_v60, %v3458_v59  ;;  %v3460_v63 = vpop.f32.mrb[1].mxu0 }
 0x3ab   : > { %v3886_v0 = vadd.f32 %v16854_v61, %v3460_v63  ;;  %v3462_v1 = vpop.f32.mrb[2].mxu0  ;;  %v4291_v63 = vrot.slane %v4090_v29, 7  ;;  %v4102_v29 = vld [vmem:[#allocation3 + $0x100] sm:$0x80] }
 0x3ac   : > { %v3949_v2 = vmax.f32 %v3885_v62, 0.0  ;;  %v3887_v3 = vadd.f32 %v16850_v60, %v3462_v1  ;;  %v3464_v4 = vpop.f32.mrb[3].mxu0 }
 0x3ad   : > { %v3950_v5 = vmax.f32 %v3886_v0, 0.0  ;;  %v3888_v6 = vadd.f32 %v16854_v61, %v3464_v4 }
 0x3ae   : > { %4014 = vst [vmem:[#allocation3 + $0x50] sm:$0xff] %v3949_v2  ;;  %v3951_v7 = vmax.f32 %v3887_v3, 0.0  ;;  %v4282_v24 = vrot.slane %v3949_v2, 7 }
 0x3af   : > { %4015 = vst [vmem:[#allocation3 + $0x58] sm:$0xff] %v3950_v5  ;;  %v3952_v8 = vmax.f32 %v3888_v6, 0.0  ;;  %v4285_v26 = vrot.slane %v3950_v5, 7 }
 0x3b0   : > { %4016 = vst [vmem:[#allocation3 + $0x60] sm:$0xff] %v3951_v7  ;;  %v4283_v46 = vsel %vm4270_vm5, %v4281_v28, %v4282_v24  ;;  %v4301_v28 = vrot.slane %v4096_v21, 7  ;;  %v4108_v21 = vld [vmem:[#allocation3 + $0x140] sm:$0x80] }
 0x3b1   : > { %4017 = vst [vmem:[#allocation3 + $0x68] sm:$0xff] %v3952_v8  ;;  %v3468_v9 = vpop.f32.mrb[4].mxu0  ;;  %v4286_v40 = vsel %vm4270_vm5, %v4284_v25, %v4285_v26 }
 0x3b2   : > { %v3889_v10 = vadd.f32 %v16850_v60, %v3468_v9  ;;  %v3470_v11 = vpop.f32.mrb[5].mxu0 }
 0x3b3   : > { %v3890_v12 = vadd.f32 %v16854_v61, %v3470_v11  ;;  %v3472_v13 = vpop.f32.mrb[6].mxu0 }
 0x3b4   : > { %v3953_v14 = vmax.f32 %v3889_v10, 0.0  ;;  %v3891_v15 = vadd.f32 %v16850_v60, %v3472_v13  ;;  %v3474_v16 = vpop.f32.mrb[7].mxu0 }
 0x3b5   : > { %v3954_v19 = vmax.f32 %v3890_v12, 0.0  ;;  %v3892_v20 = vadd.f32 %v16854_v61, %v3474_v16  ;;  %v4097_v16 = vld [vmem:[#allocation3 + $0xc8] sm:$0x80] }
 0x3b6   : > { %4018 = vst [vmem:[#allocation3 + $0x90] sm:$0xff] %v3953_v14  ;;  %v3955_v22 = vmax.f32 %v3891_v15, 0.0  ;;  %v4292_v0 = vrot.slane %v3953_v14, 7  ;;  %v4304_v25 = vrot.slane %v4097_v16, 7  ;;  %v4109_v16 = vld [vmem:[#allocation3 + $0x148] sm:$0x80] }
 0x3b7   : > { %4019 = vst [vmem:[#allocation3 + $0x98] sm:$0xff] %v3954_v19  ;;  %v3956_v23 = vmax.f32 %v3892_v20, 0.0  ;;  %v4088_v27 = vld [vmem:[#allocation3 + $0x60] sm:$0x7f]  ;;  %v4295_v53 = vrot.slane %v3954_v19, 7 }
 0x3b8   : > { %4020 = vst [vmem:[#allocation3 + $0xa0] sm:$0xff] %v3955_v22  ;;  %v4089_v31 = vld [vmem:[#allocation3 + $0x68] sm:$0x7f]  ;;  %v4287_v32 = vrot.slane %v4088_v27, 7  ;;  %v4293_v15 = vsel %vm4270_vm5, %v4291_v63, %v4292_v0  ;;  %v4311_v63 = vrot.slane %v4102_v29, 7 }
 0x3b9   : > { %4021 = vst [vmem:[#allocation3 + $0xa8] sm:$0xff] %v3956_v23  ;;  %v3478_v33 = vpop.f32.mrb[8].mxu0  ;;  %v4289_v34 = vrot.slane %v4089_v31, 7  ;;  %v4296_v9 = vsel %vm4270_vm5, %v4294_v56, %v4295_v53  ;;  %v4314_v56 = vrot.slane %v4103_v47, 7  ;;  %v4115_v47 = vld [vmem:[#allocation3 + $0x188] sm:$0x80] }
 0x3ba   : > { %v16865_v35 = vadd.f32 %v16850_v60, %v3478_v33  ;;  %v3480_v36 = vpop.f32.mrb[9].mxu0  ;;  %v4288_v37 = vsel %vm4270_vm5, %v4282_v24, %v4287_v32  ;;  %v4114_v29 = vld [vmem:[#allocation3 + $0x180] sm:$0x80] }
 0x3bb   : > { %v3894_v38 = vadd.f32 %v16854_v61, %v3480_v36  ;;  %v3482_v39 = vpop.f32.mrb[10].mxu0  ;;  %v4290_v41 = vsel %vm4270_vm5, %v4285_v26, %v4289_v34  ;;  %v13497_v52 = vpack.c.bf16 %v4288_v37, %v4283_v46 }
 0x3bc   : > { %v3957_v42 = vmax.f32 %v16865_v35, 0.0  ;;  %v3895_v43 = vadd.f32 %v16850_v60, %v3482_v39  ;;  %v3484_v44 = vpop.f32.mrb[11].mxu0  ;;  %v13494_v45 = vpack.c.bf16 %v4290_v41, %v4286_v40 }
 0x3bd   : > { %v3958_v48 = vmax.f32 %v3894_v38, 0.0  ;;  %v3896_v51 = vadd.f32 %v16854_v61, %v3484_v44 }
 0x3be   : > { %4022 = vst [vmem:[#allocation3 + $0xd0] sm:$0xff] %v3957_v42  ;;  %v3959_v54 = vmax.f32 %v3895_v43, 0.0  ;;  %13495 = vmatprep.mubr.msk.bf16.mxu0 %vm15844_vm2, %v13494_v45  ;;  %v4302_v24 = vrot.slane %v3957_v42, 7 }
 0x3bf   : > { %4023 = vst [vmem:[#allocation3 + $0xd8] sm:$0xff] %v3958_v48  ;;  %v3960_v55 = vmax.f32 %v3896_v51, 0.0  ;;  %13498 = vmatmul.mubr.msk.bf16.gmra.mrb[68].mxu0 %vm15844_vm2, %v13497_v52  ;;  %v4094_v59 = vld [vmem:[#allocation3 + $0xa0] sm:$0x7f]  ;;  %v4305_v26 = vrot.slane %v3958_v48, 7 }
 0x3c0   : > { %4024 = vst [vmem:[#allocation3 + $0xe0] sm:$0xff] %v3959_v54  ;;  %v4095_v62 = vld [vmem:[#allocation3 + $0xa8] sm:$0x7f]  ;;  %v4297_v1 = vrot.slane %v4094_v59, 7  ;;  %v4303_v46 = vsel %vm4270_vm5, %v4301_v28, %v4302_v24  ;;  %v4321_v28 = vrot.slane %v4108_v21, 7 }
 0x3c1   : > { %4025 = vst [vmem:[#allocation3 + $0xe8] sm:$0xff] %v3960_v55  ;;  %v3488_v2 = vpop.f32.mrb[12].mxu0  ;;  %v4299_v3 = vrot.slane %v4095_v62, 7  ;;  %v4306_v40 = vsel %vm4270_vm5, %v4304_v25, %v4305_v26  ;;  %v4324_v25 = vrot.slane %v4109_v16, 7  ;;  %v4121_v16 = vld [vmem:[#allocation3 + $0x1c8] sm:$0x80] }
 0x3c2   : > { %v16880_v4 = vadd.f32 %v16850_v60, %v3488_v2  ;;  %v3490_v5 = vpop.f32.mrb[13].mxu0  ;;  %v4298_v6 = vsel %vm4270_vm5, %v4292_v0, %v4297_v1  ;;  %v4120_v21 = vld [vmem:[#allocation3 + $0x1c0] sm:$0x80] }
 0x3c3   : > { %v3898_v7 = vadd.f32 %v16854_v61, %v3490_v5  ;;  %v3492_v8 = vpop.f32.mrb[14].mxu0  ;;  %v4300_v10 = vsel %vm4270_vm5, %v4295_v53, %v4299_v3  ;;  %v13503_v20 = vpack.c.bf16 %v4298_v6, %v4293_v15 }
 0x3c4   : > { %v3961_v11 = vmax.f32 %v16880_v4, 0.0  ;;  %v3899_v12 = vadd.f32 %v16850_v60, %v3492_v8  ;;  %v3494_v13 = vpop.f32.mrb[15].mxu0  ;;  %v13500_v14 = vpack.c.bf16 %v4300_v10, %v4296_v9 }
 0x3c5   : > { %v3962_v17 = vmax.f32 %v3898_v7, 0.0  ;;  %v3900_v19 = vadd.f32 %v16854_v61, %v3494_v13 }
 0x3c6   : > { %4026 = vst [vmem:[#allocation3 + $0x110] sm:$0xff] %v3961_v11  ;;  %v3963_v22 = vmax.f32 %v3899_v12, 0.0  ;;  %13501 = vmatprep.mubr.msk.bf16.mxu0 %vm15844_vm2, %v13500_v14  ;;  %v4312_v0 = vrot.slane %v3961_v11, 7 }
 0x3c7   : > { %4027 = vst [vmem:[#allocation3 + $0x118] sm:$0xff] %v3962_v17  ;;  %v3964_v23 = vmax.f32 %v3900_v19, 0.0  ;;  %13504 = vmatmul.mubr.msk.bf16.gmra.mrb[72].mxu0 %vm15844_vm2, %v13503_v20  ;;  %v4100_v27 = vld [vmem:[#allocation3 + $0xe0] sm:$0x7f]  ;;  %v4315_v53 = vrot.slane %v3962_v17, 7 }
 0x3c8   : > { %4028 = vst [vmem:[#allocation3 + $0x120] sm:$0xff] %v3963_v22  ;;  %v4101_v31 = vld [vmem:[#allocation3 + $0xe8] sm:$0x7f]  ;;  %v4307_v32 = vrot.slane %v4100_v27, 7  ;;  %v4313_v15 = vsel %vm4270_vm5, %v4311_v63, %v4312_v0  ;;  %v4331_v63 = vrot.slane %v4114_v29, 7 }
 0x3c9   : > { %4029 = vst [vmem:[#allocation3 + $0x128] sm:$0xff] %v3964_v23  ;;  %v3498_v33 = vpop.f32.mrb[16].mxu0  ;;  %v4309_v34 = vrot.slane %v4101_v31, 7  ;;  %v4316_v9 = vsel %vm4270_vm5, %v4314_v56, %v4315_v53  ;;  %v4334_v56 = vrot.slane %v4115_v47, 7 }
 0x3ca   : > { %v16895_v35 = vadd.f32 %v16850_v60, %v3498_v33  ;;  %v3500_v36 = vpop.f32.mrb[17].mxu0  ;;  %v4308_v37 = vsel %vm4270_vm5, %v4302_v24, %v4307_v32 }
 0x3cb   : > { %v3902_v38 = vadd.f32 %v16854_v61, %v3500_v36  ;;  %v3502_v39 = vpop.f32.mrb[18].mxu0  ;;  %v4310_v41 = vsel %vm4270_vm5, %v4305_v26, %v4309_v34  ;;  %v13509_v52 = vpack.c.bf16 %v4308_v37, %v4303_v46 }
 0x3cc   : > { %v3965_v43 = vmax.f32 %v16895_v35, 0.0  ;;  %v3903_v42 = vadd.f32 %v16850_v60, %v3502_v39  ;;  %v3504_v44 = vpop.f32.mrb[19].mxu0  ;;  %v13506_v45 = vpack.c.bf16 %v4310_v41, %v4306_v40 }
 0x3cd   : > { %v3966_v48 = vmax.f32 %v3902_v38, 0.0  ;;  %v3904_v51 = vadd.f32 %v16854_v61, %v3504_v44 }
 0x3ce   : > { %4030 = vst [vmem:[#allocation3 + $0x150] sm:$0xff] %v3965_v43  ;;  %v3967_v54 = vmax.f32 %v3903_v42, 0.0  ;;  %13507 = vmatprep.mubr.msk.bf16.mxu0 %vm15844_vm2, %v13506_v45  ;;  %v4322_v24 = vrot.slane %v3965_v43, 7 }
 0x3cf   : > { %4031 = vst [vmem:[#allocation3 + $0x158] sm:$0xff] %v3966_v48  ;;  %v3968_v55 = vmax.f32 %v3904_v51, 0.0  ;;  %13510 = vmatmul.mubr.msk.bf16.gmra.mrb[76].mxu0 %vm15844_vm2, %v13509_v52  ;;  %v4106_v59 = vld [vmem:[#allocation3 + $0x120] sm:$0x7f]  ;;  %v4325_v26 = vrot.slane %v3966_v48, 7 }
 0x3d0   : > { %4032 = vst [vmem:[#allocation3 + $0x160] sm:$0xff] %v3967_v54  ;;  %v4107_v62 = vld [vmem:[#allocation3 + $0x128] sm:$0x7f]  ;;  %v4317_v1 = vrot.slane %v4106_v59, 7  ;;  %v4323_v46 = vsel %vm4270_vm5, %v4321_v28, %v4322_v24  ;;  %v4341_v28 = vrot.slane %v4120_v21, 7 }
 0x3d1   : > { %4033 = vst [vmem:[#allocation3 + $0x168] sm:$0xff] %v3968_v55  ;;  %v3508_v2 = vpop.f32.mrb[20].mxu0  ;;  %v4319_v3 = vrot.slane %v4107_v62, 7  ;;  %v4326_v40 = vsel %vm4270_vm5, %v4324_v25, %v4325_v26  ;;  %v4344_v25 = vrot.slane %v4121_v16, 7 }
 0x3d2   : > { %v16910_v4 = vadd.f32 %v16850_v60, %v3508_v2  ;;  %v3510_v5 = vpop.f32.mrb[21].mxu0  ;;  %v4318_v6 = vsel %vm4270_vm5, %v4312_v0, %v4317_v1 }
 0x3d3   : > { %v3906_v7 = vadd.f32 %v16854_v61, %v3510_v5  ;;  %v3512_v8 = vpop.f32.mrb[22].mxu0  ;;  %v4320_v10 = vsel %vm4270_vm5, %v4315_v53, %v4319_v3  ;;  %v13515_v20 = vpack.c.bf16 %v4318_v6, %v4313_v15 }
 0x3d4   : > { %v3969_v12 = vmax.f32 %v16910_v4, 0.0  ;;  %v3907_v11 = vadd.f32 %v16850_v60, %v3512_v8  ;;  %v3514_v13 = vpop.f32.mrb[23].mxu0  ;;  %v13512_v14 = vpack.c.bf16 %v4320_v10, %v4316_v9 }
 0x3d5   : > { %v3970_v17 = vmax.f32 %v3906_v7, 0.0  ;;  %v3908_v19 = vadd.f32 %v16854_v61, %v3514_v13 }
 0x3d6   : > { %4034 = vst [vmem:[#allocation3 + $0x190] sm:$0xff] %v3969_v12  ;;  %v3971_v22 = vmax.f32 %v3907_v11, 0.0  ;;  %13513 = vmatprep.mubr.msk.bf16.mxu0 %vm15844_vm2, %v13512_v14  ;;  %v4332_v0 = vrot.slane %v3969_v12, 7 }
 0x3d7   : > { %4035 = vst [vmem:[#allocation3 + $0x198] sm:$0xff] %v3970_v17  ;;  %v3972_v23 = vmax.f32 %v3908_v19, 0.0  ;;  %13516 = vmatmul.mubr.msk.bf16.gmra.mrb[80].mxu0 %vm15844_vm2, %v13515_v20  ;;  %v4112_v27 = vld [vmem:[#allocation3 + $0x160] sm:$0x7f]  ;;  %v4335_v53 = vrot.slane %v3970_v17, 7 }
 0x3d8   : > { %4036 = vst [vmem:[#allocation3 + $0x1a0] sm:$0xff] %v3971_v22  ;;  %v4113_v31 = vld [vmem:[#allocation3 + $0x168] sm:$0x7f]  ;;  %v4327_v32 = vrot.slane %v4112_v27, 7  ;;  %v4333_v15 = vsel %vm4270_vm5, %v4331_v63, %v4332_v0  ;;  %v16972_v63 = vld [vmem:[#allocation3 + $0x280] sm:$0x80] }
 0x3d9   : > { %4037 = vst [vmem:[#allocation3 + $0x1a8] sm:$0xff] %v3972_v23  ;;  %v3518_v33 = vpop.f32.mrb[24].mxu0  ;;  %v4329_v34 = vrot.slane %v4113_v31, 7  ;;  %v4336_v9 = vsel %vm4270_vm5, %v4334_v56, %v4335_v53  ;;  %v16966_v56 = vld [vmem:[#allocation3 + $0x240] sm:$0x80] }
 0x3da   : > { %v16925_v35 = vadd.f32 %v16850_v60, %v3518_v33  ;;  %v3520_v36 = vpop.f32.mrb[25].mxu0  ;;  %v4328_v37 = vsel %vm4270_vm5, %v4322_v24, %v4327_v32  ;;  %v4895_v16 = vrot.slane %v16966_v56, 7 }
 0x3db   : > { %v3910_v38 = vadd.f32 %v16854_v61, %v3520_v36  ;;  %v3522_v39 = vpop.f32.mrb[26].mxu0  ;;  %v4330_v41 = vsel %vm4270_vm5, %v4325_v26, %v4329_v34  ;;  %v13521_v52 = vpack.c.bf16 %v4328_v37, %v4323_v46 }
 0x3dc   : > { %v3973_v42 = vmax.f32 %v16925_v35, 0.0  ;;  %v3911_v43 = vadd.f32 %v16850_v60, %v3522_v39  ;;  %v3524_v44 = vpop.f32.mrb[27].mxu0  ;;  %v13518_v45 = vpack.c.bf16 %v4330_v41, %v4326_v40 }
 0x3dd   : > { %v3974_v48 = vmax.f32 %v3910_v38, 0.0  ;;  %v3912_v51 = vadd.f32 %v16854_v61, %v3524_v44 }
 0x3de   : > { %4038 = vst [vmem:[#allocation3 + $0x1d0] sm:$0xff] %v3973_v42  ;;  %v3975_v54 = vmax.f32 %v3911_v43, 0.0  ;;  %13519 = vmatprep.mubr.msk.bf16.mxu0 %vm15844_vm2, %v13518_v45  ;;  %v4342_v24 = vrot.slane %v3973_v42, 7  ;;  %v4126_v43 = vld [vmem:[#allocation3 + $0x200] sm:$0x80] }
 0x3df   : > { %4039 = vst [vmem:[#allocation3 + $0x1d8] sm:$0xff] %v3974_v48  ;;  %v3976_v55 = vmax.f32 %v3912_v51, 0.0  ;;  %13522 = vmatmul.mubr.msk.bf16.gmra.mrb[84].mxu0 %vm15844_vm2, %v13521_v52  ;;  %v4118_v59 = vld [vmem:[#allocation3 + $0x1a0] sm:$0x7f]  ;;  %v4345_v26 = vrot.slane %v3974_v48, 7 }
 0x3e0   : > { %4040 = vst [vmem:[#allocation3 + $0x1e0] sm:$0xff] %v3975_v54  ;;  %v4119_v62 = vld [vmem:[#allocation3 + $0x1a8] sm:$0x7f]  ;;  %v4337_v1 = vrot.slane %v4118_v59, 7  ;;  %v4343_v47 = vsel %vm4270_vm5, %v4341_v28, %v4342_v24  ;;  %v4127_v48 = vld [vmem:[#allocation3 + $0x208] sm:$0x80] }
 0x3e1   : > { %4041 = vst [vmem:[#allocation3 + $0x1e8] sm:$0xff] %v3976_v55  ;;  %v3528_v2 = vpop.f32.mrb[28].mxu0  ;;  %v4339_v3 = vrot.slane %v4119_v62, 7  ;;  %v4346_v40 = vsel %vm4270_vm5, %v4344_v25, %v4345_v26  ;;  %v16961_v51 = vld [vmem:[#allocation3 + $0x240] sm:$0x80]  ;;  %v4351_v59 = vrot.slane %v4126_v43, 7 }
 0x3e2   : > { %v16940_v4 = vadd.f32 %v16850_v60, %v3528_v2  ;;  %v3530_v5 = vpop.f32.mrb[29].mxu0  ;;  %v4338_v6 = vsel %vm4270_vm5, %v4332_v0, %v4337_v1  ;;  %v16964_v55 = vld [vmem:[#allocation3 + $0x248] sm:$0x80]  ;;  %v4354_v1 = vrot.slane %v4127_v48, 7 }
 0x3e3   : > { %v3914_v7 = vadd.f32 %v16854_v61, %v3530_v5  ;;  %v3532_v8 = vpop.f32.mrb[30].mxu0  ;;  %v4340_v10 = vsel %vm4270_vm5, %v4335_v53, %v4339_v3  ;;  %v13527_v20 = vpack.c.bf16 %v4338_v6, %v4333_v15  ;;  %v16970_v62 = vld [vmem:[#allocation3 + $0x248] sm:$0x80] }
 0x3e4   : > { %v3977_v11 = vmax.f32 %v16940_v4, 0.0  ;;  %v3915_v12 = vadd.f32 %v16850_v60, %v3532_v8  ;;  %v3534_v13 = vpop.f32.mrb[31].mxu0  ;;  %v13524_v14 = vpack.c.bf16 %v4340_v10, %v4336_v9  ;;  %v4364_v9 = vrot.slane %v16964_v55, 7  ;;  %v16989_v25 = vld [vmem:[#allocation3 + $0x288] sm:$0x80] }
 0x3e5   : > { %v3978_v17 = vmax.f32 %v3914_v7, 0.0  ;;  %v3916_v19 = vadd.f32 %v16854_v61, %v3534_v13  ;;  %v4898_v10 = vrot.slane %v16970_v62, 7 }
 0x3e6   : > { %4042 = vst [vmem:[#allocation3 + $0x210] sm:$0xff] %v3977_v11  ;;  %v3979_v22 = vmax.f32 %v3915_v12, 0.0  ;;  %13525 = vmatprep.mubr.msk.bf16.mxu0 %vm15844_vm2, %v13524_v14  ;;  %v4352_v4 = vrot.slane %v3977_v11, 7  ;;  %v4361_v12 = vrot.slane %v16961_v51, 7  ;;  %v4371_v11 = vrot.slane %v16972_v63, 7 }
 0x3e7   : > { %4043 = vst [vmem:[#allocation3 + $0x218] sm:$0xff] %v3978_v17  ;;  %v3980_v23 = vmax.f32 %v3916_v19, 0.0  ;;  %13528 = vmatmul.mubr.msk.bf16.gmra.mrb[88].mxu0 %vm15844_vm2, %v13527_v20  ;;  %v4124_v27 = vld [vmem:[#allocation3 + $0x1e0] sm:$0x7f]  ;;  %v4355_v2 = vrot.slane %v3978_v17, 7 }
 0x3e8   : > { %4044 = vst [vmem:[#allocation3 + $0x220] sm:$0xff] %v3979_v22  ;;  %v4125_v31 = vld [vmem:[#allocation3 + $0x1e8] sm:$0x7f]  ;;  %v4347_v32 = vrot.slane %v4124_v27, 7  ;;  %v16983_v17 = vld [vmem:[#allocation3 + $0x280] sm:$0x80] }
 0x3e9   : > { %4045 = vst [vmem:[#allocation3 + $0x228] sm:$0xff] %v3980_v23  ;;  %v3538_v33 = vpop.f32.mrb[32].mxu0  ;;  %v4349_v34 = vrot.slane %v4125_v31, 7  ;;  %v4356_v21 = vsel %vm4270_vm5, %v4354_v1, %v4355_v2  ;;  %v4353_v23 = vsel %vm4270_vm5, %v4351_v59, %v4352_v4 }
 0x3ea   : > { %v3917_v35 = vadd.f32 %v16850_v60, %v3538_v33  ;;  %v3540_v36 = vpop.f32.mrb[33].mxu0  ;;  %v4348_v37 = vsel %vm4270_vm5, %v4342_v24, %v4347_v32  ;;  %v16994_v33 = vld [vmem:[#allocation3 + $0x2c8] sm:$0x80] }
 0x3eb   : > { %v3918_v38 = vadd.f32 %v16854_v61, %v3540_v36  ;;  %v3542_v39 = vpop.f32.mrb[34].mxu0  ;;  %v4350_v41 = vsel %vm4270_vm5, %v4345_v26, %v4349_v34  ;;  %v13533_v54 = vpack.c.bf16 %v4348_v37, %v4343_v47  ;;  %v16991_v26 = vld [vmem:[#allocation3 + $0x288] sm:$0x80] }
 0x3ec   : > { %v3981_v44 = vmax.f32 %v3917_v35, 0.0  ;;  %v3919_v42 = vadd.f32 %v16850_v60, %v3542_v39  ;;  %v3544_v45 = vpop.f32.mrb[35].mxu0  ;;  %v13530_v46 = vpack.c.bf16 %v4350_v41, %v4346_v40  ;;  %v4374_v39 = vrot.slane %v16989_v25, 7 }
 0x3ed   : > { %v3982_v52 = vmax.f32 %v3918_v38, 0.0  ;;  %v3920_v29 = vadd.f32 %v16854_v61, %v3544_v45  ;;  %v4908_v40 = vrot.slane %v16991_v26, 7  ;;  %v4905_v41 = vrot.slane %v16983_v17, 7 }
 0x3ee   : > { %4046 = vst [vmem:[#allocation3 + $0x250] sm:$0xff] %v3981_v44  ;;  %v3983_v53 = vmax.f32 %v3919_v42, 0.0  ;;  %13531 = vmatprep.mubr.msk.bf16.mxu0 %vm15844_vm2, %v13530_v46  ;;  %v4362_v32 = vrot.slane %v3981_v44, 7  ;;  %v4384_v45 = vrot.slane %v16994_v33, 7 }
 0x3ef   : > { %4047 = vst [vmem:[#allocation3 + $0x258] sm:$0xff] %v3982_v52  ;;  %v3984_v0 = vmax.f32 %v3920_v29, 0.0  ;;  %13534 = vmatmul.mubr.msk.bf16.gmra.mrb[92].mxu0 %vm15844_vm2, %v13533_v54  ;;  %v4130_v3 = vld [vmem:[#allocation3 + $0x220] sm:$0x7f]  ;;  %v4365_v37 = vrot.slane %v3982_v52, 7 }
 0x3f0   : > { %4048 = vst [vmem:[#allocation3 + $0x260] sm:$0xff] %v3983_v53  ;;  %v4131_v5 = vld [vmem:[#allocation3 + $0x228] sm:$0x7f]  ;;  %v4357_v6 = vrot.slane %v4130_v3, 7  ;;  %v4363_v48 = vsel %vm4270_vm5, %v4361_v12, %v4362_v32  ;;  %v4897_v52 = vsel %vm4270_vm5, %v4895_v16, %v4362_v32  ;;  %v17019_v12 = vld [vmem:[#allocation3 + $0x2c0] sm:$0x80] }
 0x3f1   : > { %4049 = vst [vmem:[#allocation3 + $0x268] sm:$0xff] %v3984_v0  ;;  %v3548_v7 = vpop.f32.mrb[36].mxu0  ;;  %v4359_v8 = vrot.slane %v4131_v5, 7  ;;  %v4366_v55 = vsel %vm4270_vm5, %v4364_v9, %v4365_v37  ;;  %v4900_v53 = vsel %vm4270_vm5, %v4898_v10, %v4365_v37  ;;  %v17017_v10 = vld [vmem:[#allocation3 + $0x2c8] sm:$0x80] }
 0x3f2   : > { %v3921_v13 = vadd.f32 %v16850_v60, %v3548_v7  ;;  %v3550_v14 = vpop.f32.mrb[37].mxu0  ;;  %v4358_v15 = vsel %vm4270_vm5, %v4352_v4, %v4357_v6  ;;  %v17012_v4 = vld [vmem:[#allocation3 + $0x2c0] sm:$0x80]  ;;  %v17938_v57 = vld [vmem:[#allocation3 + $0x228] sm:$0xff] }
 0x3f3   : > { %v3922_v19 = vadd.f32 %v16854_v61, %v3550_v14  ;;  %v3552_v20 = vpop.f32.mrb[38].mxu0  ;;  %v4360_v22 = vsel %vm4270_vm5, %v4355_v2, %v4359_v8  ;;  %v13539_v36 = vpack.c.bf16 %v4358_v15, %v4353_v23 }
 0x3f4   : > { %v3985_v27 = vmax.f32 %v3921_v13, 0.0  ;;  %v3923_v31 = vadd.f32 %v16850_v60, %v3552_v20  ;;  %v3554_v28 = vpop.f32.mrb[39].mxu0  ;;  %v13536_v24 = vpack.c.bf16 %v4360_v22, %v4356_v21  ;;  %v15281_v20 = vld [vmem:[%s19448_s3 + $0x200] ss:$8 sps:$4 sm:$0xff]   ;;  %v17025_v21 = vld [vmem:[#allocation3 + $0x308] sm:$0x80] }
 0x3f5   : > { %v3986_v34 = vmax.f32 %v3922_v19, 0.0  ;;  %v3924_v35 = vadd.f32 %v16854_v61, %v3554_v28  ;;  %v15286_v28 = vld [vmem:[%s19448_s3 + $0x214] ss:$8 sps:$4 sm:$0xff]  }
 0x3f6   : > { %4050 = vst [vmem:[#allocation3 + $0x290] sm:$0xff] %v3985_v27  ;;  %v3987_v38 = vmax.f32 %v3923_v31, 0.0  ;;  %13537 = vmatprep.mubr.msk.bf16.mxu0 %vm15844_vm2, %v13536_v24  ;;  %v4372_v3 = vrot.slane %v3985_v27, 7 }
 0x3f7   : > { %4051 = vst [vmem:[#allocation3 + $0x298] sm:$0xff] %v3986_v34  ;;  %v3988_v43 = vmax.f32 %v3924_v35, 0.0  ;;  %13540 = vmatmul.mubr.msk.bf16.gmra.mrb[96].mxu0 %vm15844_vm2, %v13539_v36  ;;  %v4136_v44 = vld [vmem:[#allocation3 + $0x260] sm:$0x7f]  ;;  %v4375_v9 = vrot.slane %v3986_v34, 7  ;;  %v4918_v34 = vrot.slane %v17017_v10, 7 }
 0x3f8   : > { %v4675_v42 = vld [vmem:[#allocation3 + $0x260] sm:$0x7f]  ;;  %4052 = vst [vmem:[#allocation3 + $0x2a0] sm:$0xff] %v3987_v38  ;;  %v4137_v46 = vld [vmem:[#allocation3 + $0x268] sm:$0x7f]  ;;  %v4367_v51 = vrot.slane %v4136_v44, 7 }
 0x3f9   : > { %v4676_v47 = vld [vmem:[#allocation3 + $0x268] sm:$0x7f]  ;;  %v4901_v29 = vrot.slane %v4675_v42, 7  ;;  %4053 = vst [vmem:[#allocation3 + $0x2a8] sm:$0xff] %v3988_v43  ;;  %v3558_v54 = vpop.f32.mrb[40].mxu0  ;;  %v4369_v56 = vrot.slane %v4137_v46, 7  ;;  %v4910_v63 = vsel %vm4270_vm5, %v4908_v40, %v4375_v9 }
 0x3fa   : > { %v4903_v59 = vrot.slane %v4676_v47, 7  ;;  %v3925_v62 = vadd.f32 %v16850_v60, %v3558_v54  ;;  %v3560_v0 = vpop.f32.mrb[41].mxu0  ;;  %v4368_v1 = vsel %vm4270_vm5, %v4362_v32, %v4367_v51  ;;  %v4381_v35 = vrot.slane %v17012_v4, 7 }
 0x3fb   : > { %v4902_v2 = vsel %vm4270_vm5, %v4362_v32, %v4901_v29  ;;  %v3926_v5 = vadd.f32 %v16854_v61, %v3560_v0  ;;  %v3562_v6 = vpop.f32.mrb[42].mxu0  ;;  %v4370_v7 = vsel %vm4270_vm5, %v4365_v37, %v4369_v56  ;;  %v13545_v27 = vpack.c.bf16 %v4368_v1, %v4363_v48  ;;  %v15284_v32 = vld [vmem:[%s19448_s3 + $0x210] ss:$8 sps:$4 sm:$0xff]  }
 0x3fc   : > { %v4904_v8 = vsel %vm4270_vm5, %v4365_v37, %v4903_v59  ;;  %v3989_v13 = vmax.f32 %v3925_v62, 0.0  ;;  %v3927_v14 = vadd.f32 %v16850_v60, %v3562_v6  ;;  %v3564_v15 = vpop.f32.mrb[43].mxu0  ;;  %v13542_v16 = vpack.c.bf16 %v4370_v7, %v4366_v55 }
 0x3fd   : > { %v13632_v19 = vpack.c.bf16 %v4904_v8, %v4900_v53  ;;  %v3990_v22 = vmax.f32 %v3926_v5, 0.0  ;;  %v3928_v23 = vadd.f32 %v16854_v61, %v3564_v15  ;;  %v13635_v31 = vpack.c.bf16 %v4902_v2, %v4897_v52  ;;  %v17073_v2 = vld [vmem:[#allocation3 + $0x308] sm:$0x80]  ;;  %v17075_v5 = vld [vmem:[#allocation3 + $0x300] sm:$0x80] }
 0x3fe   : > { %4054 = vst [vmem:[#allocation3 + $0x2d0] sm:$0xff] %v3989_v13  ;;  %v3991_v24 = vmax.f32 %v3927_v14, 0.0  ;;  %13543 = vmatprep.mubr.msk.bf16.mxu0 %vm15844_vm2, %v13542_v16  ;;  %v4915_v36 = vrot.slane %v17019_v12, 7  ;;  %v4394_v44 = vrot.slane %v17025_v21, 7  ;;  %v4373_v47 = vsel %vm4270_vm5, %v4371_v11, %v4372_v3  ;;  %v15289_v11 = vld [vmem:[%s19448_s3 + $0x224] ss:$8 sps:$4 sm:$0xff]  }
 0x3ff   : > { %13633 = vmatprep.mubr.msk.bf16.mxu1 %vm15844_vm2, %v13632_v19  ;;  %4055 = vst [vmem:[#allocation3 + $0x2d8] sm:$0xff] %v3990_v22  ;;  %v3992_v37 = vmax.f32 %v3928_v23, 0.0  ;;  %13546 = vmatmul.mubr.msk.bf16.gmra.mrb[100].mxu0 %vm15844_vm2, %v13545_v27  ;;  %v4142_v38 = vld [vmem:[#allocation3 + $0x2a0] sm:$0x7f]  ;;  %v4907_v51 = vsel %vm4270_vm5, %v4905_v41, %v4372_v3  ;;  %v4376_v54 = vsel %vm4270_vm5, %v4374_v39, %v4375_v9  ;;  %v4382_v59 = vrot.slane %v3989_v13, 7 }
 0x400   : > { %13636 = vmatmul.mubr.msk.bf16.vlgmr.msra.gmra.mrb[0].mxu1 %vm15844_vm2, %v13635_v31  ;;  %v4681_v43 = vld [vmem:[#allocation3 + $0x2a0] sm:$0x7f]  ;;  %4056 = vst [vmem:[#allocation3 + $0x2e0] sm:$0xff] %v3991_v24  ;;  %v4143_v42 = vld [vmem:[#allocation3 + $0x2a8] sm:$0x7f]  ;;  %v4377_v48 = vrot.slane %v4142_v38, 7 }
 0x401   : > { %6771 = vmatpush1.bf16.msra.mxu1 %v15281_v20  ;;  %v4682_v46 = vld [vmem:[#allocation3 + $0x2a8] sm:$0x7f]  ;;  %v4911_v52 = vrot.slane %v4681_v43, 7  ;;  %4057 = vst [vmem:[#allocation3 + $0x2e8] sm:$0xff] %v3992_v37  ;;  %v3568_v29 = vpop.f32.mrb[44].mxu0  ;;  %v4379_v55 = vrot.slane %v4143_v42, 7 }
 0x402   : > { %6772 = vmatprep.subr.bf16.mxu1 %v15286_v28  ;;  %v4913_v56 = vrot.slane %v4682_v46, 7  ;;  %v17062_v17 = vadd.f32 %v16850_v60, %v3568_v29  ;;  %v3570_v41 = vpop.f32.mrb[45].mxu0  ;;  %v4378_v53 = vsel %vm4270_vm5, %v4372_v3, %v4377_v48  ;;  %v17066_v39 = vld [vmem:[#allocation3 + $0x300] sm:$0x80]  ;;  %v4385_v1 = vrot.slane %v3990_v22, 7 }
 0x403   : > { %v4912_v25 = vsel %vm4270_vm5, %v4372_v3, %v4911_v52  ;;  %v17069_v26 = vadd.f32 %v16854_v61, %v3570_v41  ;;  %v3572_v40 = vpop.f32.mrb[46].mxu0  ;;  %v4380_v62 = vsel %vm4270_vm5, %v4375_v9, %v4379_v55  ;;  %v15287_v14 = vld [vmem:[%s19448_s3 + $0x220] ss:$8 sps:$4 sm:$0xff]   ;;  %v17082_v15 = vld [vmem:[#allocation3 + $0x348] sm:$0x80]  ;;  %v13551_v19 = vpack.c.bf16 %v4378_v53, %v4373_v47 }
 0x404   : > { %v4914_v0 = vsel %vm4270_vm5, %v4375_v9, %v4913_v56  ;;  %v3993_v6 = vmax.f32 %v17062_v17, 0.0  ;;  %v3931_v3 = vadd.f32 %v16850_v60, %v3572_v40  ;;  %v3574_v7 = vpop.f32.mrb[47].mxu0  ;;  %v13548_v8 = vpack.c.bf16 %v4380_v62, %v4376_v54  ;;  %v15292_v22 = vld [vmem:[%s19448_s3 + $0x234] ss:$8 sps:$4 sm:$0xff]   ;;  %v15290_v27 = vld [vmem:[%s19448_s3 + $0x230] ss:$8 sps:$4 sm:$0xff]  }
 0x405   : > { %6773 = vmatpush1.bf16.msra.mxu1 %v15284_v32  ;;  %v13638_v13 = vpack.c.bf16 %v4914_v0, %v4910_v63  ;;  %v3994_v9 = vmax.f32 %v17069_v26, 0.0  ;;  %v3932_v16 = vadd.f32 %v16854_v61, %v3574_v7  ;;  %v13641_v20 = vpack.c.bf16 %v4912_v25, %v4907_v51  ;;  %v15295_v12 = vld [vmem:[%s19448_s3 + $0x244] ss:$8 sps:$4 sm:$0xff]  }
 0x406   : > { %6774 = vmatprep.subr.bf16.mxu1 %v15289_v11  ;;  %4058 = vst [vmem:[#allocation3 + $0x310] sm:$0xff] %v3993_v6  ;;  %v3995_v23 = vmax.f32 %v3931_v3, 0.0  ;;  %13549 = vmatprep.mubr.msk.bf16.mxu0 %vm15844_vm2, %v13548_v8  ;;  %v4928_v31 = vrot.slane %v17073_v2, 7  ;;  %v4391_v28 = vrot.slane %v17066_v39, 7  ;;  %v4925_v24 = vrot.slane %v17075_v5, 7 }
 0x407   : > { %13639 = vmatprep.mubr.msk.bf16.mxu1 %vm15844_vm2, %v13638_v13  ;;  %4059 = vst [vmem:[#allocation3 + $0x318] sm:$0xff] %v3994_v9  ;;  %v3996_v32 = vmax.f32 %v3932_v16, 0.0  ;;  %13552 = vmatmul.mubr.msk.bf16.gmra.mrb[104].mxu0 %vm15844_vm2, %v13551_v19  ;;  %v4148_v37 = vld [vmem:[#allocation3 + $0x2e0] sm:$0x7f]  ;;  %v4404_v43 = vrot.slane %v17082_v15, 7  ;;  %v4383_v47 = vsel %vm4270_vm5, %v4381_v35, %v4382_v59  ;;  %v4917_v51 = vsel %vm4270_vm5, %v4915_v36, %v4382_v59 }
 0x408   : > { %13642 = vmatmul.mubr.msk.bf16.gmra.mrb[4].mxu1 %vm15844_vm2, %v13641_v20  ;;  %v4687_v38 = vld [vmem:[#allocation3 + $0x2e0] sm:$0x7f]  ;;  %4060 = vst [vmem:[#allocation3 + $0x320] sm:$0xff] %v3995_v23  ;;  %v4149_v42 = vld [vmem:[#allocation3 + $0x2e8] sm:$0x7f]  ;;  %v4387_v48 = vrot.slane %v4148_v37, 7  ;;  %v4386_v54 = vsel %vm4270_vm5, %v4384_v45, %v4385_v1  ;;  %v4920_v4 = vsel %vm4270_vm5, %v4918_v34, %v4385_v1 }
 0x409   : > { %6775 = vmatpush1.bf16.msra.mxu1 %v15287_v14  ;;  %v4688_v46 = vld [vmem:[#allocation3 + $0x2e8] sm:$0x7f]  ;;  %v4921_v52 = vrot.slane %v4687_v38, 7  ;;  %4061 = vst [vmem:[#allocation3 + $0x328] sm:$0xff] %v3996_v32  ;;  %v3578_v29 = vpop.f32.mrb[48].mxu0  ;;  %v4389_v55 = vrot.slane %v4149_v42, 7 }
 0x40a   : > { %6776 = vmatprep.subr.bf16.mxu1 %v15292_v22  ;;  %v4923_v63 = vrot.slane %v4688_v46, 7  ;;  %v17120_v35 = vadd.f32 %v16850_v60, %v3578_v29  ;;  %v3580_v36 = vpop.f32.mrb[49].mxu0  ;;  %v4388_v56 = vsel %vm4270_vm5, %v4382_v59, %v4387_v48  ;;  %v4392_v11 = vrot.slane %v3993_v6, 7  ;;  %v17124_v45 = vld [vmem:[#allocation3 + $0x340] sm:$0x80] }
 0x40b   : > { %v4922_v33 = vsel %vm4270_vm5, %v4382_v59, %v4921_v52  ;;  %v17127_v10 = vadd.f32 %v16854_v61, %v3580_v36  ;;  %v3582_v34 = vpop.f32.mrb[50].mxu0  ;;  %v4390_v17 = vsel %vm4270_vm5, %v4385_v1, %v4389_v55  ;;  %v4395_v53 = vrot.slane %v3994_v9, 7  ;;  %v17131_v25 = vld [vmem:[#allocation3 + $0x348] sm:$0x80]  ;;  %v17133_v26 = vld [vmem:[#allocation3 + $0x340] sm:$0x80] }
 0x40c   : > { %v4924_v41 = vsel %vm4270_vm5, %v4385_v1, %v4923_v63  ;;  %v3997_v40 = vmax.f32 %v17120_v35, 0.0  ;;  %v3935_v59 = vadd.f32 %v16850_v60, %v3582_v34  ;;  %v3584_v62 = vpop.f32.mrb[51].mxu0  ;;  %v13554_v0 = vpack.c.bf16 %v4390_v17, %v4386_v54  ;;  %v15293_v3 = vld [vmem:[%s19448_s3 + $0x240] ss:$8 sps:$4 sm:$0xff]   ;;  %v17140_v7 = vld [vmem:[#allocation3 + $0x388] sm:$0x80] }
 0x40d   : > { %6777 = vmatpush1.bf16.msra.mxu1 %v15290_v27  ;;  %v13644_v6 = vpack.c.bf16 %v4924_v41, %v4920_v4  ;;  %v3998_v1 = vmax.f32 %v17127_v10, 0.0  ;;  %v3936_v8 = vadd.f32 %v16854_v61, %v3584_v62  ;;  %v13557_v13 = vpack.c.bf16 %v4388_v56, %v4383_v47  ;;  %v15298_v9 = vld [vmem:[%s19448_s3 + $0x254] ss:$8 sps:$4 sm:$0xff]   ;;  %v15296_v19 = vld [vmem:[%s19448_s3 + $0x250] ss:$8 sps:$4 sm:$0xff]  }
 0x40e   : > { %v13647_v14 = vpack.c.bf16 %v4922_v33, %v4917_v51  ;;  %6778 = vmatprep.subr.bf16.mxu1 %v15295_v12  ;;  %4062 = vst [vmem:[#allocation3 + $0x350] sm:$0xff] %v3997_v40  ;;  %v3999_v16 = vmax.f32 %v3935_v59, 0.0  ;;  %13555 = vmatprep.mubr.msk.bf16.mxu0 %vm15844_vm2, %v13554_v0  ;;  %v4938_v20 = vrot.slane %v17131_v25, 7  ;;  %v4401_v22 = vrot.slane %v17124_v45, 7  ;;  %v15301_v5 = vld [vmem:[%s19448_s3 + $0x264] ss:$8 sps:$4 sm:$0xff]  }
 0x40f   : > { %13645 = vmatprep.mubr.msk.bf16.mxu1 %vm15844_vm2, %v13644_v6  ;;  %v4935_v23 = vrot.slane %v17133_v26, 7  ;;  %4063 = vst [vmem:[#allocation3 + $0x358] sm:$0xff] %v3998_v1  ;;  %v4000_v27 = vmax.f32 %v3936_v8, 0.0  ;;  %13558 = vmatmul.mubr.msk.bf16.gmra.mrb[108].mxu0 %vm15844_vm2, %v13557_v13  ;;  %v4154_v32 = vld [vmem:[#allocation3 + $0x320] sm:$0x7f]  ;;  %v4414_v38 = vrot.slane %v17140_v7, 7  ;;  %v4393_v47 = vsel %vm4270_vm5, %v4391_v28, %v4392_v11 }
 0x410   : > { %13648 = vmatmul.mubr.msk.bf16.gmra.mrb[8].mxu1 %vm15844_vm2, %v13647_v14  ;;  %v4693_v37 = vld [vmem:[#allocation3 + $0x320] sm:$0x7f]  ;;  %4064 = vst [vmem:[#allocation3 + $0x360] sm:$0xff] %v3999_v16  ;;  %v4155_v42 = vld [vmem:[#allocation3 + $0x328] sm:$0x7f]  ;;  %v4397_v48 = vrot.slane %v4154_v32, 7  ;;  %v4927_v51 = vsel %vm4270_vm5, %v4925_v24, %v4392_v11  ;;  %v4396_v54 = vsel %vm4270_vm5, %v4394_v44, %v4395_v53  ;;  %v4930_v39 = vsel %vm4270_vm5, %v4928_v31, %v4395_v53 }
 0x411   : > { %6779 = vmatpush1.bf16.msra.mxu1 %v15293_v3  ;;  %v4694_v46 = vld [vmem:[#allocation3 + $0x328] sm:$0x7f]  ;;  %v4931_v52 = vrot.slane %v4693_v37, 7  ;;  %4065 = vst [vmem:[#allocation3 + $0x368] sm:$0xff] %v4000_v27  ;;  %v3588_v29 = vpop.f32.mrb[52].mxu0  ;;  %v4399_v55 = vrot.slane %v4155_v42, 7 }
 0x412   : > { %6780 = vmatprep.subr.bf16.mxu1 %v15298_v9  ;;  %v4933_v4 = vrot.slane %v4694_v46, 7  ;;  %v17178_v28 = vadd.f32 %v16850_v60, %v3588_v29  ;;  %v3590_v24 = vpop.f32.mrb[53].mxu0  ;;  %v4398_v63 = vsel %vm4270_vm5, %v4392_v11, %v4397_v48  ;;  %v4402_v12 = vrot.slane %v3997_v40, 7  ;;  %v17182_v44 = vld [vmem:[#allocation3 + $0x380] sm:$0x80] }
 0x413   : > { %v4932_v21 = vsel %vm4270_vm5, %v4392_v11, %v4931_v52  ;;  %v17185_v2 = vadd.f32 %v16854_v61, %v3590_v24  ;;  %v3592_v31 = vpop.f32.mrb[54].mxu0  ;;  %v4400_v35 = vsel %vm4270_vm5, %v4395_v53, %v4399_v55  ;;  %v4405_v56 = vrot.slane %v3998_v1, 7  ;;  %v17189_v33 = vld [vmem:[#allocation3 + $0x388] sm:$0x80]  ;;  %v17191_v10 = vld [vmem:[#allocation3 + $0x380] sm:$0x80] }
 0x414   : > { %v4934_v36 = vsel %vm4270_vm5, %v4395_v53, %v4933_v4  ;;  %v4001_v34 = vmax.f32 %v17178_v28, 0.0  ;;  %v3939_v11 = vadd.f32 %v16850_v60, %v3592_v31  ;;  %v3594_v17 = vpop.f32.mrb[55].mxu0  ;;  %v13560_v41 = vpack.c.bf16 %v4400_v35, %v4396_v54  ;;  %v15299_v59 = vld [vmem:[%s19448_s3 + $0x260] ss:$8 sps:$4 sm:$0xff]   ;;  %v17198_v62 = vld [vmem:[#allocation3 + $0x3c8] sm:$0x80] }
 0x415   : > { %6781 = vmatpush1.bf16.msra.mxu1 %v15296_v19  ;;  %v13650_v40 = vpack.c.bf16 %v4934_v36, %v4930_v39  ;;  %v4002_v53 = vmax.f32 %v17185_v2, 0.0  ;;  %v3940_v0 = vadd.f32 %v16854_v61, %v3594_v17  ;;  %v13563_v6 = vpack.c.bf16 %v4398_v63, %v4393_v47  ;;  %v15304_v1 = vld [vmem:[%s19448_s3 + $0x274] ss:$8 sps:$4 sm:$0xff]   ;;  %v15302_v13 = vld [vmem:[%s19448_s3 + $0x270] ss:$8 sps:$4 sm:$0xff]  }
 0x416   : > { %v13653_v3 = vpack.c.bf16 %v4932_v21, %v4927_v51  ;;  %6782 = vmatprep.subr.bf16.mxu1 %v15301_v5  ;;  %4066 = vst [vmem:[#allocation3 + $0x390] sm:$0xff] %v4001_v34  ;;  %v4003_v8 = vmax.f32 %v3939_v11, 0.0  ;;  %13561 = vmatprep.mubr.msk.bf16.mxu0 %vm15844_vm2, %v13560_v41  ;;  %v4948_v14 = vrot.slane %v17189_v33, 7  ;;  %v4411_v9 = vrot.slane %v17182_v44, 7  ;;  %v15307_v45 = vld [vmem:[%s19448_s3 + $0x284] ss:$8 sps:$4 sm:$0xff]  }
 0x417   : > { %13651 = vmatprep.mubr.msk.bf16.mxu1 %vm15844_vm2, %v13650_v40  ;;  %v4945_v16 = vrot.slane %v17191_v10, 7  ;;  %4067 = vst [vmem:[#allocation3 + $0x398] sm:$0xff] %v4002_v53  ;;  %v4004_v19 = vmax.f32 %v3940_v0, 0.0  ;;  %13564 = vmatmul.mubr.msk.bf16.gmra.mrb[112].mxu0 %vm15844_vm2, %v13563_v6  ;;  %v4160_v27 = vld [vmem:[#allocation3 + $0x360] sm:$0x7f]  ;;  %v4424_v37 = vrot.slane %v17198_v62, 7  ;;  %v4403_v47 = vsel %vm4270_vm5, %v4401_v22, %v4402_v12 }
 0x418   : > { %13654 = vmatmul.mubr.msk.bf16.gmra.mrb[12].mxu1 %vm15844_vm2, %v13653_v3  ;;  %v4699_v32 = vld [vmem:[#allocation3 + $0x360] sm:$0x7f]  ;;  %4068 = vst [vmem:[#allocation3 + $0x3a0] sm:$0xff] %v4003_v8  ;;  %v4161_v42 = vld [vmem:[#allocation3 + $0x368] sm:$0x7f]  ;;  %v4407_v48 = vrot.slane %v4160_v27, 7  ;;  %v4406_v29 = vsel %vm4270_vm5, %v4404_v43, %v4405_v56  ;;  %v4937_v39 = vsel %vm4270_vm5, %v4935_v23, %v4402_v12  ;;  %v4940_v15 = vsel %vm4270_vm5, %v4938_v20, %v4405_v56 }
 0x419   : > { %6783 = vmatpush1.bf16.msra.mxu1 %v15299_v59  ;;  %v4700_v46 = vld [vmem:[#allocation3 + $0x368] sm:$0x7f]  ;;  %v4941_v51 = vrot.slane %v4699_v32, 7  ;;  %4069 = vst [vmem:[#allocation3 + $0x3a8] sm:$0xff] %v4004_v19  ;;  %v3598_v52 = vpop.f32.mrb[56].mxu0  ;;  %v4409_v54 = vrot.slane %v4161_v42, 7 }
 0x41a   : > { %6784 = vmatprep.subr.bf16.mxu1 %v15304_v1  ;;  %v4943_v55 = vrot.slane %v4700_v46, 7  ;;  %v17235_v22 = vadd.f32 %v16850_v60, %v3598_v52  ;;  %v3600_v4 = vpop.f32.mrb[57].mxu0  ;;  %v4408_v43 = vsel %vm4270_vm5, %v4402_v12, %v4407_v48  ;;  %v4412_v63 = vrot.slane %v4001_v34, 7  ;;  %v17247_v21 = vld [vmem:[#allocation3 + $0x3c8] sm:$0x80] }
 0x41b   : > { %v4942_v5 = vsel %vm4270_vm5, %v4402_v12, %v4941_v51  ;;  %v17243_v26 = vadd.f32 %v16854_v61, %v3600_v4  ;;  %v3602_v23 = vpop.f32.mrb[58].mxu0  ;;  %v4410_v28 = vsel %vm4270_vm5, %v4405_v56, %v4409_v54  ;;  %v17249_v31 = vld [vmem:[#allocation3 + $0x3c0] sm:$0x80]  ;;  %v15305_v11 = vld [vmem:[%s19448_s3 + $0x280] ss:$8 sps:$4 sm:$0xff]   ;;  %v13569_v41 = vpack.c.bf16 %v4408_v43, %v4403_v47 }
 0x41c   : > { %v4944_v24 = vsel %vm4270_vm5, %v4405_v56, %v4943_v55  ;;  %v4005_v25 = vmax.f32 %v17235_v22, 0.0  ;;  %v3943_v20 = vadd.f32 %v16850_v60, %v3602_v23  ;;  %v3604_v35 = vpop.f32.mrb[59].mxu0  ;;  %v13566_v12 = vpack.c.bf16 %v4410_v28, %v4406_v29  ;;  %v17256_v17 = vld [vmem:[#allocation3 + $0x3c0] sm:$0x80]  ;;  %v15310_v59 = vld [vmem:[%s19448_s3 + $0x294] ss:$8 sps:$4 sm:$0xff]  }
 0x41d   : > { %6785 = vmatpush1.bf16.msra.mxu1 %v15302_v13  ;;  %v13656_v36 = vpack.c.bf16 %v4944_v24, %v4940_v15  ;;  %v4006_v56 = vmax.f32 %v17243_v26, 0.0  ;;  %v3944_v34 = vadd.f32 %v16854_v61, %v3604_v35  ;;  %v13659_v40 = vpack.c.bf16 %v4942_v5, %v4937_v39  ;;  %v15308_v6 = vld [vmem:[%s19448_s3 + $0x290] ss:$8 sps:$4 sm:$0xff]   ;;  %v15313_v54 = vld [vmem:[%s19448_s3 + $0x2a4] ss:$8 sps:$4 sm:$0xff]  }
 0x41e   : > { %6786 = vmatprep.subr.bf16.mxu1 %v15307_v45  ;;  %4070 = vst [vmem:[#allocation3 + $0x3d0] sm:$0xff] %v4005_v25  ;;  %v4007_v0 = vmax.f32 %v3943_v20, 0.0  ;;  %13567 = vmatprep.mubr.msk.bf16.mxu0 %vm15844_vm2, %v13566_v12  ;;  %v4415_v3 = vrot.slane %v4002_v53, 7  ;;  %v4958_v1 = vrot.slane %v17247_v21, 7  ;;  %v4421_v8 = vrot.slane %v17249_v31, 7  ;;  %v17308_v5 = vld [vmem:[#allocation3 + $0x58] sm:$0xff] }
 0x41f   : > { %13657 = vmatprep.mubr.msk.bf16.mxu1 %vm15844_vm2, %v13656_v36  ;;  %4071 = vst [vmem:[#allocation3 + $0x3d8] sm:$0xff] %v4006_v56  ;;  %v4008_v13 = vmax.f32 %v3944_v34, 0.0  ;;  %13570 = vmatmul.mubr.msk.bf16.gmra.mrb[116].mxu0 %vm15844_vm2, %v13569_v41  ;;  %v4166_v19 = vld [vmem:[#allocation3 + $0x3a0] sm:$0x7f]  ;;  %v4955_v32 = vrot.slane %v17256_v17, 7  ;;  %v4413_v52 = vsel %vm4270_vm5, %v4411_v9, %v4412_v63  ;;  %v4947_v29 = vsel %vm4270_vm5, %v4945_v16, %v4412_v63 }
 0x420   : > { %13660 = vmatmul.mubr.msk.bf16.gmra.mrb[16].mxu1 %vm15844_vm2, %v13659_v40  ;;  %v4705_v27 = vld [vmem:[#allocation3 + $0x3a0] sm:$0x7f]  ;;  %4072 = vst [vmem:[#allocation3 + $0x3e0] sm:$0xff] %v4007_v0  ;;  %v4167_v2 = vld [vmem:[#allocation3 + $0x3a8] sm:$0x7f]  ;;  %v4417_v42 = vrot.slane %v4166_v19, 7  ;;  %v4416_v45 = vsel %vm4270_vm5, %v4414_v38, %v4415_v3  ;;  %v4950_v15 = vsel %vm4270_vm5, %v4948_v14, %v4415_v3 }
 0x421   : > { %6787 = vmatpush1.bf16.msra.mxu1 %v15305_v11  ;;  %v4706_v53 = vld [vmem:[#allocation3 + $0x3a8] sm:$0x7f]  ;;  %v4951_v46 = vrot.slane %v4705_v27, 7  ;;  %4073 = vst [vmem:[#allocation3 + $0x3e8] sm:$0xff] %v4008_v13  ;;  %v3608_v47 = vpop.f32.mrb[60].mxu0  ;;  %v4419_v48 = vrot.slane %v4167_v2, 7 }
 0x422   : > { %6788 = vmatprep.subr.bf16.mxu1 %v15310_v59  ;;  %v4953_v51 = vrot.slane %v4706_v53, 7  ;;  %v17293_v55 = vadd.f32 %v16850_v60, %v3608_v47  ;;  %v3610_v39 = vpop.f32.mrb[61].mxu0  ;;  %v4418_v44 = vsel %vm4270_vm5, %v4412_v63, %v4417_v42  ;;  %v4628_v7 = vld [vmem:[#allocation3 + $0x68] sm:$0x7f]  ;;  %v15316_v36 = vld [vmem:[%s19448_s3 + $0x2b4] ss:$8 sps:$4 sm:$0xff]  }
 0x423   : > { %v4952_v9 = vsel %vm4270_vm5, %v4412_v63, %v4951_v46  ;;  %v17301_v10 = vadd.f32 %v16854_v61, %v3610_v39  ;;  %v3612_v16 = vpop.f32.mrb[62].mxu0  ;;  %v4420_v4 = vsel %vm4270_vm5, %v4415_v3, %v4419_v48  ;;  %v15311_v20 = vld [vmem:[%s19448_s3 + $0x2a0] ss:$8 sps:$4 sm:$0xff]   ;;  %v13575_v35 = vpack.c.bf16 %v4418_v44, %v4413_v52  ;;  %v15319_v53 = vld [vmem:[%s19448_s3 + $0x2c4] ss:$8 sps:$4 sm:$0xff]  }
 0x424   : > { %v4954_v43 = vsel %vm4270_vm5, %v4415_v3, %v4953_v51  ;;  %v4009_v38 = vmax.f32 %v17293_v55, 0.0  ;;  %v3947_v23 = vadd.f32 %v16850_v60, %v3612_v16  ;;  %v3614_v28 = vpop.f32.mrb[63].mxu0  ;;  %v13572_v24 = vpack.c.bf16 %v4420_v4, %v4416_v45  ;;  %v4624_v60 = vld [vmem:[#allocation3 + $0x48] sm:$0x80]  ;;  %v17346_v47 = vld [vmem:[#allocation3 + $0x40] sm:$0x80] }
 0x425   : > { %6789 = vmatpush1.bf16.msra.mxu1 %v15308_v6  ;;  %v13662_v63 = vpack.c.bf16 %v4954_v43, %v4950_v15  ;;  %v4010_v33 = vmax.f32 %v17301_v10, 0.0  ;;  %v3948_v14 = vadd.f32 %v16854_v61, %v3614_v28  ;;  %v13665_v12 = vpack.c.bf16 %v4952_v9, %v4947_v29  ;;  %v15314_v61 = vld [vmem:[%s19448_s3 + $0x2b0] ss:$8 sps:$4 sm:$0xff]   ;;  %v4627_v39 = vld [vmem:[#allocation3 + $0x60] sm:$0x7f] }
 0x426   : > { %6790 = vmatprep.subr.bf16.mxu1 %v15313_v54  ;;  %4074 = vst [vmem:[#allocation3 + $0x410] sm:$0xff] %v4009_v38  ;;  %v4011_v11 = vmax.f32 %v3947_v23, 0.0  ;;  %13573 = vmatprep.mubr.msk.bf16.mxu0 %vm15844_vm2, %v13572_v24  ;;  %v4422_v34 = vrot.slane %v4005_v25, 7  ;;  %v4819_v41 = vrot.slane %v17308_v5, 7  ;;  %v4823_v40 = vrot.slane %v4628_v7, 7  ;;  %v4632_v24 = vld [vmem:[#allocation3 + $0x98] sm:$0xff] }
 0x427   : > { %13663 = vmatprep.mubr.msk.bf16.mxu1 %vm15844_vm2, %v13662_v63  ;;  %4075 = vst [vmem:[#allocation3 + $0x418] sm:$0xff] %v4010_v33  ;;  %v4012_v59 = vmax.f32 %v3948_v14, 0.0  ;;  %13576 = vmatmul.mubr.msk.bf16.gmra.mrb[120].mxu0 %vm15844_vm2, %v13575_v35  ;;  %v4425_v0 = vrot.slane %v4006_v56, 7  ;;  %v4172_v6 = vld [vmem:[#allocation3 + $0x3e0] sm:$0x7f]  ;;  %v4818_v42 = vrot.slane %v4624_v60, 7 }
 0x428   : > { %13666 = vmatmul.mubr.msk.bf16.gmra.mrb[20].mxu1 %vm15844_vm2, %v13665_v12  ;;  %v4711_v3 = vld [vmem:[#allocation3 + $0x3e0] sm:$0x7f]  ;;  %4076 = vst [vmem:[#allocation3 + $0x420] sm:$0xff] %v4011_v11  ;;  %v4173_v22 = vld [vmem:[#allocation3 + $0x3e8] sm:$0x7f]  ;;  %v4427_v13 = vrot.slane %v4172_v6, 7  ;;  %v4824_v46 = vsel %vm4270_vm5, %v4819_v41, %v4823_v40  ;;  %v4423_v62 = vsel %vm4270_vm5, %v4421_v8, %v4422_v34 }
 0x429   : > { %6791 = vmatpush1.bf16.msra.mxu1 %v15311_v20  ;;  %v4712_v25 = vld [vmem:[#allocation3 + $0x3e8] sm:$0x7f]  ;;  %v4961_v19 = vrot.slane %v4711_v3, 7  ;;  %4077 = vst [vmem:[#allocation3 + $0x428] sm:$0xff] %v4012_v59  ;;  %v4429_v27 = vrot.slane %v4173_v22, 7  ;;  %v4426_v48 = vsel %vm4270_vm5, %v4424_v37, %v4425_v0  ;;  %v4960_v52 = vsel %vm4270_vm5, %v4958_v1, %v4425_v0  ;;  %v4625_v8 = vld [vmem:[#allocation3 + $0x50] sm:$0xff] }
 0x42a   : > { %6792 = vmatprep.subr.bf16.mxu1 %v15316_v36  ;;  %v4963_v2 = vrot.slane %v4712_v25, 7  ;;  %v4428_v26 = vsel %vm4270_vm5, %v4422_v34, %v4427_v13  ;;  %v4714_v54 = vld [vmem:[#allocation3 + $0x408] sm:$0x80]  ;;  %v4713_v45 = vld [vmem:[#allocation3 + $0x400] sm:$0x80]  ;;  %v4957_v37 = vsel %vm4270_vm5, %v4955_v32, %v4422_v34  ;;  %v4820_v43 = vsel %vm4270_vm5, %v4818_v42, %v4819_v41 }
 0x42b   : > { %v4962_v56 = vsel %vm4270_vm5, %v4422_v34, %v4961_v19  ;;  %v4430_v51 = vsel %vm4270_vm5, %v4425_v0, %v4429_v27  ;;  %v15317_v21 = vld [vmem:[%s19448_s3 + $0x2c0] ss:$8 sps:$4 sm:$0xff]   ;;  %v4630_v1 = vld [vmem:[#allocation3 + $0x88] sm:$0x80]  ;;  %v13581_v4 = vpack.c.bf16 %v4428_v26, %v4423_v62  ;;  %v15322_v31 = vld [vmem:[%s19448_s3 + $0x2d4] ss:$8 sps:$4 sm:$0xff]   ;;  %v13584_v32 = vpack.c.bf16 %v4824_v46, %v4820_v43 }
 0x42c   : > { %v4964_v29 = vsel %vm4270_vm5, %v4425_v0, %v4963_v2  ;;  %v13578_v44 = vpack.c.bf16 %v4430_v51, %v4426_v48  ;;  %v4634_v16 = vld [vmem:[#allocation3 + $0xa8] sm:$0x7f]  ;;  %v13671_v15 = vpack.c.bf16 %v4962_v56, %v4957_v37  ;;  %v4815_v17 = vrot.slane %v17346_v47, 7  ;;  %v5169_v63 = vld [vmem:[#allocation3 + $0x88] sm:$0x80]  ;;  %v4638_v62 = vld [vmem:[#allocation3 + $0xd8] sm:$0xff] }
 0x42d   : > { %6793 = vmatpush1.bf16.msra.mxu1 %v15314_v61  ;;  %v13668_v9 = vpack.c.bf16 %v4964_v29, %v4960_v52  ;;  %v5173_v5 = vld [vmem:[#allocation3 + $0xa8] sm:$0x7f]  ;;  %v4968_v7 = vrot.slane %v4714_v54, 7  ;;  %v4821_v23 = vrot.slane %v4627_v39, 7  ;;  %v4965_v28 = vrot.slane %v4713_v45, 7  ;;  %v4631_v29 = vld [vmem:[#allocation3 + $0x90] sm:$0xff] }
 0x42e   : > { %6794 = vmatprep.subr.bf16.mxu1 %v15319_v53  ;;  %13579 = vmatprep.mubr.msk.bf16.mxu0 %vm15844_vm2, %v13578_v44  ;;  %v15320_v20 = vld [vmem:[%s19448_s3 + $0x2d0] ss:$8 sps:$4 sm:$0xff]   ;;  %v4969_v14 = vrot.slane %v4010_v33, 7  ;;  %v4833_v12 = vrot.slane %v4634_v16, 7  ;;  %v4816_v60 = vrot.slane %v4625_v8, 7  ;;  %v4966_v11 = vrot.slane %v4009_v38, 7 }
 0x42f   : > { %13669 = vmatprep.mubr.msk.bf16.mxu1 %vm15844_vm2, %v13668_v9  ;;  %13582 = vmatmul.mubr.msk.bf16.gmra.mrb[124].mxu0 %vm15844_vm2, %v13581_v4  ;;  %v4717_v35 = vld [vmem:[#allocation3 + $0x420] sm:$0x7f]  ;;  %v5368_v34 = vrot.slane %v5173_v5, 7  ;;  %v4828_v33 = vrot.slane %v4630_v1, 7  ;;  %v4829_v40 = vrot.slane %v4632_v24, 7  ;;  %v5363_v6 = vrot.slane %v5169_v63, 7 }
 0x430   : > { %13672 = vmatmul.mubr.msk.bf16.gmra.mrb[24].mxu1 %vm15844_vm2, %v13671_v15  ;;  %13585 = vmatprep.mubr.msk.bf16.mxu0 %vm15844_vm2, %v13584_v32  ;;  %v4718_v36 = vld [vmem:[#allocation3 + $0x428] sm:$0x7f]  ;;  %v4971_v61 = vrot.slane %v4717_v35, 7  ;;  %v4822_v59 = vsel %vm4270_vm5, %v4816_v60, %v4821_v23  ;;  %v4970_v3 = vsel %vm4270_vm5, %v4968_v7, %v4969_v14  ;;  %v4629_v22 = vld [vmem:[#allocation3 + $0x80] sm:$0x80]  ;;  %v4817_v2 = vsel %vm4270_vm5, %v4815_v17, %v4816_v60 }
 0x431   : > { %6795 = vmatpush1.bf16.msra.mxu1 %v15317_v21  ;;  %v4973_v41 = vrot.slane %v4718_v36, 7  ;;  %v15325_v10 = vld [vmem:[%s19448_s3 + $0x2e4] ss:$8 sps:$4 sm:$0xff]   ;;  %v4834_v38 = vsel %vm4270_vm5, %v4829_v40, %v4833_v12  ;;  %v4967_v53 = vsel %vm4270_vm5, %v4965_v28, %v4966_v11  ;;  %v15323_v42 = vld [vmem:[%s19448_s3 + $0x2e0] ss:$8 sps:$4 sm:$0xff]   ;;  %v5369_v26 = vsel %vm4270_vm5, %v4829_v40, %v5368_v34 }
 0x432   : > { %6796 = vmatprep.subr.bf16.mxu1 %v15322_v31  ;;  %v4972_v0 = vsel %vm4270_vm5, %v4966_v11, %v4971_v61  ;;  %v4633_v25 = vld [vmem:[#allocation3 + $0xa0] sm:$0x7f]  ;;  %v5168_v13 = vld [vmem:[#allocation3 + $0x80] sm:$0x80]  ;;  %v4640_v56 = vld [vmem:[#allocation3 + $0xe8] sm:$0x7f]  ;;  %v13587_v47 = vpack.c.bf16 %v4822_v59, %v4817_v2  ;;  %v4830_v51 = vsel %vm4270_vm5, %v4828_v33, %v4829_v40  ;;  %v5365_v45 = vsel %vm4270_vm5, %v5363_v6, %v4829_v40 }
 0x433   : > { %v4974_v55 = vsel %vm4270_vm5, %v4969_v14, %v4973_v41  ;;  %v5172_v19 = vld [vmem:[#allocation3 + $0xa0] sm:$0x7f]  ;;  %v5179_v46 = vld [vmem:[#allocation3 + $0xe8] sm:$0x7f]  ;;  %v13677_v48 = vpack.c.bf16 %v4972_v0, %v4967_v53  ;;  %v15328_v52 = vld [vmem:[%s19448_s3 + $0x2f4] ss:$8 sps:$4 sm:$0xff]   ;;  %v13590_v39 = vpack.c.bf16 %v4834_v38, %v4830_v51  ;;  %v13680_v21 = vpack.c.bf16 %v5369_v26, %v5365_v45 }
 0x434   : > { %v13674_v27 = vpack.c.bf16 %v4974_v55, %v4970_v3  ;;  %v4636_v54 = vld [vmem:[#allocation3 + $0xc8] sm:$0x80]  ;;  %v4831_v44 = vrot.slane %v4633_v25, 7  ;;  %v5366_v9 = vrot.slane %v5172_v19, 7  ;;  %v4843_v1 = vrot.slane %v4640_v56, 7  ;;  %v4637_v59 = vld [vmem:[#allocation3 + $0xd0] sm:$0xff] }
 0x435   : > { %6797 = vmatpush1.bf16.msra.mxu1 %v15320_v20  ;;  %v5175_v37 = vld [vmem:[#allocation3 + $0xc8] sm:$0x80]  ;;  %v5378_v16 = vrot.slane %v5179_v46, 7  ;;  %v15326_v4 = vld [vmem:[%s19448_s3 + $0x2f0] ss:$8 sps:$4 sm:$0xff]   ;;  %v4825_v15 = vrot.slane %v4629_v22, 7 }
 0x436   : > { %6798 = vmatprep.subr.bf16.mxu1 %v15325_v10  ;;  %13675 = vmatprep.mubr.msk.bf16.mxu1 %vm15844_vm2, %v13674_v27  ;;  %v4826_v43 = vrot.slane %v4631_v29, 7  ;;  %v5360_v31 = vrot.slane %v5168_v13, 7  ;;  %v15331_v8 = vld [vmem:[%s19448_s3 + $0x304] ss:$8 sps:$4 sm:$0xff]   ;;  %v4838_v17 = vrot.slane %v4636_v54, 7  ;;  %v4839_v5 = vrot.slane %v4638_v62, 7 }
 0x437   : > { %13588 = vmatmul.mubr.msk.bf16.vlgmr.msra.gmra.mrb[64].mxu0 %vm15844_vm2, %v13587_v47  ;;  %v5373_v32 = vrot.slane %v5175_v37, 7  ;;  %v4635_v63 = vld [vmem:[#allocation3 + $0xc0] sm:$0x80]  ;;  %v4639_v20 = vld [vmem:[#allocation3 + $0xe0] sm:$0x7f]  ;;  %v17436_v25 = vld [vmem:[#allocation3 + $0x118] sm:$0xff] }
 0x438   : > { %13678 = vmatmul.mubr.msk.bf16.gmra.mrb[28].mxu1 %vm15844_vm2, %v13677_v48  ;;  %13591 = vmatprep.mubr.msk.bf16.mxu0 %vm15844_vm2, %v13590_v39  ;;  %v4832_v7 = vsel %vm4270_vm5, %v4826_v43, %v4831_v44  ;;  %v5367_v23 = vsel %vm4270_vm5, %v4826_v43, %v5366_v9  ;;  %v4844_v28 = vsel %vm4270_vm5, %v4839_v5, %v4843_v1  ;;  %v5174_v14 = vld [vmem:[#allocation3 + $0xc0] sm:$0x80]  ;;  %v5178_v35 = vld [vmem:[#allocation3 + $0xe0] sm:$0x7f]  ;;  %v4642_v60 = vld [vmem:[#allocation3 + $0x108] sm:$0x80] }
 0x439   : > { %6799 = vmatpush1.bf16.msra.mxu1 %v15323_v42  ;;  %13681 = vmatprep.mubr.msk.bf16.mxu1 %vm15844_vm2, %v13680_v21  ;;  %v5379_v24 = vsel %vm4270_vm5, %v4839_v5, %v5378_v16  ;;  %v4827_v12 = vsel %vm4270_vm5, %v4825_v15, %v4826_v43  ;;  %v5362_v36 = vsel %vm4270_vm5, %v5360_v31, %v4826_v43  ;;  %v4646_v11 = vld [vmem:[#allocation3 + $0x128] sm:$0x7f]  ;;  %v5181_v0 = vld [vmem:[#allocation3 + $0x108] sm:$0x80]  ;;  %v4841_v55 = vrot.slane %v4639_v20, 7  ;;  %v17461_v31 = vld [vmem:[#allocation3 + $0x110] sm:$0xff] }
 0x43a   : > { %6800 = vmatprep.subr.bf16.mxu1 %v15328_v52  ;;  %v5185_v61 = vld [vmem:[#allocation3 + $0x128] sm:$0x7f]  ;;  %v13593_v34 = vpack.c.bf16 %v4832_v7, %v4827_v12  ;;  %v13683_v41 = vpack.c.bf16 %v5367_v23, %v5362_v36  ;;  %v4840_v33 = vsel %vm4270_vm5, %v4838_v17, %v4839_v5  ;;  %v5375_v40 = vsel %vm4270_vm5, %v5373_v32, %v4839_v5  ;;  %v15334_v22 = vld [vmem:[%s19448_s3 + $0x314] ss:$8 sps:$4 sm:$0xff]   ;;  %v15332_v42 = vld [vmem:[%s19448_s3 + $0x310] ss:$8 sps:$4 sm:$0xff]  }
 0x43b   : > { %v15329_v10 = vld [vmem:[%s19448_s3 + $0x300] ss:$8 sps:$4 sm:$0xff]   ;;  %v13596_v6 = vpack.c.bf16 %v4844_v28, %v4840_v33  ;;  %v13686_v3 = vpack.c.bf16 %v5379_v24, %v5375_v40  ;;  %v5376_v38 = vrot.slane %v5178_v35, 7  ;;  %v4853_v13 = vrot.slane %v4646_v11, 7  ;;  %v15337_v51 = vld [vmem:[%s19448_s3 + $0x324] ss:$8 sps:$4 sm:$0xff]  }
 0x43c   : > { %v5388_v19 = vrot.slane %v5185_v61, 7  ;;  %v4835_v27 = vrot.slane %v4635_v63, 7  ;;  %v4836_v2 = vrot.slane %v4637_v59, 7  ;;  %v5370_v53 = vrot.slane %v5174_v14, 7  ;;  %v4641_v54 = vld [vmem:[#allocation3 + $0x100] sm:$0x80] }
 0x43d   : > { %6801 = vmatpush1.bf16.msra.mxu1 %v15326_v4  ;;  %v4848_v26 = vrot.slane %v4642_v60, 7  ;;  %v4849_v56 = vrot.slane %v17436_v25, 7  ;;  %v5383_v46 = vrot.slane %v5181_v0, 7  ;;  %v4645_v39 = vld [vmem:[#allocation3 + $0x120] sm:$0x7f]  ;;  %v17466_v28 = vld [vmem:[#allocation3 + $0x158] sm:$0xff] }
 0x43e   : > { %8212 = vmatprep.subr.bf16.mxu1 %v15331_v8  ;;  %v4842_v47 = vsel %vm4270_vm5, %v4836_v2, %v4841_v55  ;;  %v5377_v48 = vsel %vm4270_vm5, %v4836_v2, %v5376_v38  ;;  %v5180_v45 = vld [vmem:[#allocation3 + $0x100] sm:$0x80]  ;;  %v5184_v44 = vld [vmem:[#allocation3 + $0x120] sm:$0x7f]  ;;  %v4837_v9 = vsel %vm4270_vm5, %v4835_v27, %v4836_v2  ;;  %v5372_v62 = vsel %vm4270_vm5, %v5370_v53, %v4836_v2  ;;  %v4648_v37 = vld [vmem:[#allocation3 + $0x148] sm:$0x80] }
 0x43f   : > { %13594 = vmatmul.mubr.msk.bf16.gmra.mrb[68].mxu0 %vm15844_vm2, %v13593_v34  ;;  %v4854_v52 = vsel %vm4270_vm5, %v4849_v56, %v4853_v13  ;;  %v5389_v29 = vsel %vm4270_vm5, %v4849_v56, %v5388_v19  ;;  %v4652_v21 = vld [vmem:[#allocation3 + $0x168] sm:$0x7f]  ;;  %v13599_v16 = vpack.c.bf16 %v4842_v47, %v4837_v9  ;;  %v13689_v4 = vpack.c.bf16 %v5377_v48, %v5372_v62  ;;  %v5187_v17 = vld [vmem:[#allocation3 + $0x148] sm:$0x80]  ;;  %v15340_v24 = vld [vmem:[%s19448_s3 + $0x334] ss:$8 sps:$4 sm:$0xff]  }
 0x440   : > { %13684 = vmatmul.mubr.msk.bf16.vlgmr.msra.gmra.mrb[32].mxu1 %vm15844_vm2, %v13683_v41  ;;  %13597 = vmatprep.mubr.msk.bf16.mxu0 %vm15844_vm2, %v13596_v6  ;;  %v5191_v1 = vld [vmem:[#allocation3 + $0x168] sm:$0x7f]  ;;  %v4850_v15 = vsel %vm4270_vm5, %v4848_v26, %v4849_v56  ;;  %v5385_v43 = vsel %vm4270_vm5, %v5383_v46, %v4849_v56  ;;  %v4851_v7 = vrot.slane %v4645_v39, 7  ;;  %v5386_v23 = vrot.slane %v5184_v44, 7  ;;  %v15338_v61 = vld [vmem:[%s19448_s3 + $0x330] ss:$8 sps:$4 sm:$0xff]  }
 0x441   : > { %13687 = vmatprep.mubr.msk.bf16.mxu1 %vm15844_vm2, %v13686_v3  ;;  %8213 = vmatpush1.bf16.msra.mxu1 %v15329_v10  ;;  %v15335_v8 = vld [vmem:[%s19448_s3 + $0x320] ss:$8 sps:$4 sm:$0xff]   ;;  %v13602_v5 = vpack.c.bf16 %v4854_v52, %v4850_v15  ;;  %v13692_v32 = vpack.c.bf16 %v5389_v29, %v5385_v43  ;;  %v4863_v63 = vrot.slane %v4652_v21, 7  ;;  %v5398_v20 = vrot.slane %v5191_v1, 7  ;;  %v15343_v10 = vld [vmem:[%s19448_s3 + $0x344] ss:$8 sps:$4 sm:$0xff]  }
 0x442   : > { %8214 = vmatprep.subr.bf16.mxu1 %v15334_v22  ;;  %v4845_v14 = vrot.slane %v4641_v54, 7  ;;  %v4846_v35 = vrot.slane %v17461_v31, 7  ;;  %v5380_v12 = vrot.slane %v5180_v45, 7  ;;  %v4858_v36 = vrot.slane %v4648_v37, 7  ;;  %v4647_v59 = vld [vmem:[#allocation3 + $0x140] sm:$0x80] }
 0x443   : > { %v4859_v60 = vrot.slane %v17466_v28, 7  ;;  %v5393_v11 = vrot.slane %v5187_v17, 7  ;;  %v4651_v0 = vld [vmem:[#allocation3 + $0x160] sm:$0x7f]  ;;  %v5186_v6 = vld [vmem:[#allocation3 + $0x140] sm:$0x80] }
 0x444   : > { %v4852_v34 = vsel %vm4270_vm5, %v4846_v35, %v4851_v7  ;;  %v5387_v41 = vsel %vm4270_vm5, %v4846_v35, %v5386_v23  ;;  %v5190_v3 = vld [vmem:[#allocation3 + $0x160] sm:$0x7f]  ;;  %v4847_v55 = vsel %vm4270_vm5, %v4845_v14, %v4846_v35  ;;  %v5382_v38 = vsel %vm4270_vm5, %v5380_v12, %v4846_v35  ;;  %v4654_v22 = vld [vmem:[#allocation3 + $0x188] sm:$0x80]  ;;  %v4658_v13 = vld [vmem:[#allocation3 + $0x1a8] sm:$0x7f] }
 0x445   : > { %8215 = vmatpush1.bf16.msra.mxu1 %v15332_v42  ;;  %v4864_v33 = vsel %vm4270_vm5, %v4859_v60, %v4863_v63  ;;  %v5399_v40 = vsel %vm4270_vm5, %v4859_v60, %v5398_v20  ;;  %v5197_v19 = vld [vmem:[#allocation3 + $0x1a8] sm:$0x7f]  ;;  %v13605_v27 = vpack.c.bf16 %v4852_v34, %v4847_v55  ;;  %v13695_v2 = vpack.c.bf16 %v5387_v41, %v5382_v38  ;;  %v17495_v26 = vld [vmem:[#allocation3 + $0x150] sm:$0xff]  ;;  %v5193_v56 = vld [vmem:[#allocation3 + $0x188] sm:$0x80] }
 0x446   : > { %8216 = vmatprep.subr.bf16.mxu1 %v15337_v51  ;;  %v4860_v53 = vsel %vm4270_vm5, %v4858_v36, %v4859_v60  ;;  %v5395_v42 = vsel %vm4270_vm5, %v5393_v11, %v4859_v60  ;;  %v15341_v46 = vld [vmem:[%s19448_s3 + $0x340] ss:$8 sps:$4 sm:$0xff]   ;;  %v4861_v51 = vrot.slane %v4651_v0, 7  ;;  %v5396_v52 = vrot.slane %v5190_v3, 7  ;;  %v17500_v29 = vld [vmem:[#allocation3 + $0x198] sm:$0xff] }
 0x447   : > { %13600 = vmatmul.mubr.msk.bf16.gmra.mrb[72].mxu0 %vm15844_vm2, %v13599_v16  ;;  %v13608_v47 = vpack.c.bf16 %v4864_v33, %v4860_v53  ;;  %v13698_v48 = vpack.c.bf16 %v5399_v40, %v5395_v42  ;;  %v15346_v54 = vld [vmem:[%s19448_s3 + $0x354] ss:$8 sps:$4 sm:$0xff]   ;;  %v4873_v39 = vrot.slane %v4658_v13, 7  ;;  %v5408_v45 = vrot.slane %v5197_v19, 7  ;;  %v15344_v16 = vld [vmem:[%s19448_s3 + $0x350] ss:$8 sps:$4 sm:$0xff]  }
 0x448   : > { %13690 = vmatmul.mubr.msk.bf16.gmra.mrb[36].mxu1 %vm15844_vm2, %v13689_v4  ;;  %13603 = vmatprep.mubr.msk.bf16.mxu0 %vm15844_vm2, %v13602_v5  ;;  %v4855_v44 = vrot.slane %v4647_v59, 7  ;;  %v4856_v9 = vrot.slane %v17495_v26, 7  ;;  %v5390_v62 = vrot.slane %v5186_v6, 7  ;;  %v4868_v37 = vrot.slane %v4654_v22, 7  ;;  %v15349_v43 = vld [vmem:[%s19448_s3 + $0x364] ss:$8 sps:$4 sm:$0xff]  }
 0x449   : > { %13693 = vmatprep.mubr.msk.bf16.mxu1 %vm15844_vm2, %v13692_v32  ;;  %8217 = vmatpush1.bf16.msra.mxu1 %v15335_v8  ;;  %v4869_v21 = vrot.slane %v17500_v29, 7  ;;  %v5403_v1 = vrot.slane %v5193_v56, 7  ;;  %v4653_v5 = vld [vmem:[#allocation3 + $0x180] sm:$0x80]  ;;  %v4657_v32 = vld [vmem:[#allocation3 + $0x1a0] sm:$0x7f] }
 0x44a   : > { %8218 = vmatprep.subr.bf16.mxu1 %v15340_v24  ;;  %v4862_v4 = vsel %vm4270_vm5, %v4856_v9, %v4861_v51  ;;  %v5397_v15 = vsel %vm4270_vm5, %v4856_v9, %v5396_v52  ;;  %v5192_v7 = vld [vmem:[#allocation3 + $0x180] sm:$0x80]  ;;  %v5196_v23 = vld [vmem:[#allocation3 + $0x1a0] sm:$0x7f]  ;;  %v4857_v24 = vsel %vm4270_vm5, %v4855_v44, %v4856_v9  ;;  %v5392_v63 = vsel %vm4270_vm5, %v5390_v62, %v4856_v9  ;;  %v4660_v20 = vld [vmem:[#allocation3 + $0x1c8] sm:$0x80] }
 0x44b   : > { %v4874_v8 = vsel %vm4270_vm5, %v4869_v21, %v4873_v39  ;;  %v5409_v17 = vsel %vm4270_vm5, %v4869_v21, %v5408_v45  ;;  %v4664_v14 = vld [vmem:[#allocation3 + $0x1e8] sm:$0x7f]  ;;  %v13611_v12 = vpack.c.bf16 %v4862_v4, %v4857_v24  ;;  %v13701_v36 = vpack.c.bf16 %v5397_v15, %v5392_v63  ;;  %v5199_v34 = vld [vmem:[#allocation3 + $0x1c8] sm:$0x80]  ;;  %v17534_v0 = vld [vmem:[#allocation3 + $0x1d8] sm:$0xff] }
 0x44c   : > { %v5203_v35 = vld [vmem:[#allocation3 + $0x1e8] sm:$0x7f]  ;;  %v4870_v60 = vsel %vm4270_vm5, %v4868_v37, %v4869_v21  ;;  %v5405_v11 = vsel %vm4270_vm5, %v5403_v1, %v4869_v21  ;;  %v4871_v40 = vrot.slane %v4657_v32, 7  ;;  %v5406_v59 = vrot.slane %v5196_v23, 7  ;;  %v15352_v6 = vld [vmem:[%s19448_s3 + $0x374] ss:$8 sps:$4 sm:$0xff]  }
 0x44d   : > { %8219 = vmatpush1.bf16.msra.mxu1 %v15338_v61  ;;  %v17529_v61 = vld [vmem:[#allocation3 + $0x190] sm:$0xff]  ;;  %v15347_v41 = vld [vmem:[%s19448_s3 + $0x360] ss:$8 sps:$4 sm:$0xff]   ;;  %v13704_v33 = vpack.c.bf16 %v5409_v17, %v5405_v11  ;;  %v4883_v3 = vrot.slane %v4664_v14, 7  ;;  %v5418_v55 = vrot.slane %v5203_v35, 7  ;;  %v4865_v38 = vrot.slane %v4653_v5, 7 }
 0x44e   : > { %8220 = vmatprep.subr.bf16.mxu1 %v15343_v10  ;;  %v13614_v10 = vpack.c.bf16 %v4874_v8, %v4870_v60  ;;  %v4866_v22 = vrot.slane %v17529_v61, 7  ;;  %v5400_v13 = vrot.slane %v5192_v7, 7  ;;  %v4878_v19 = vrot.slane %v4660_v20, 7  ;;  %v15350_v53 = vld [vmem:[%s19448_s3 + $0x370] ss:$8 sps:$4 sm:$0xff]  }
 0x44f   : > { %13606 = vmatmul.mubr.msk.bf16.gmra.mrb[76].mxu0 %vm15844_vm2, %v13605_v27  ;;  %v4879_v27 = vrot.slane %v17534_v0, 7  ;;  %v4659_v51 = vld [vmem:[#allocation3 + $0x1c0] sm:$0x80]  ;;  %v4663_v52 = vld [vmem:[#allocation3 + $0x1e0] sm:$0x7f]  ;;  %v17563_v15 = vld [vmem:[#allocation3 + $0x1d0] sm:$0xff] }
 0x450   : > { %13696 = vmatmul.mubr.msk.bf16.gmra.mrb[40].mxu1 %vm15844_vm2, %v13695_v2  ;;  %13609 = vmatprep.mubr.msk.bf16.mxu0 %vm15844_vm2, %v13608_v47  ;;  %v5413_v2 = vrot.slane %v5199_v34, 7  ;;  %v4872_v42 = vsel %vm4270_vm5, %v4866_v22, %v4871_v40  ;;  %v5407_v56 = vsel %vm4270_vm5, %v4866_v22, %v5406_v59  ;;  %v5202_v39 = vld [vmem:[#allocation3 + $0x1e0] sm:$0x7f]  ;;  %v4867_v45 = vsel %vm4270_vm5, %v4865_v38, %v4866_v22  ;;  %v4666_v9 = vld [vmem:[#allocation3 + $0x208] sm:$0x80]  ;;  %v17568_v23 = vld [vmem:[#allocation3 + $0x218] sm:$0xff] }
 0x451   : > { %13699 = vmatprep.mubr.msk.bf16.mxu1 %vm15844_vm2, %v13698_v48  ;;  %8221 = vmatpush1.bf16.msra.mxu1 %v15341_v46  ;;  %v15355_v46 = vld [vmem:[%s19448_s3 + $0x384] ss:$8 sps:$4 sm:$0xff]   ;;  %v4884_v47 = vsel %vm4270_vm5, %v4879_v27, %v4883_v3  ;;  %v5419_v48 = vsel %vm4270_vm5, %v4879_v27, %v5418_v55  ;;  %v5402_v44 = vsel %vm4270_vm5, %v5400_v13, %v4866_v22  ;;  %v15353_v8 = vld [vmem:[%s19448_s3 + $0x380] ss:$8 sps:$4 sm:$0xff]   ;;  %v4881_v32 = vrot.slane %v4663_v52, 7 }
 0x452   : > { %8222 = vmatprep.subr.bf16.mxu1 %v15346_v54  ;;  %v5198_v54 = vld [vmem:[#allocation3 + $0x1c0] sm:$0x80]  ;;  %v4670_v62 = vld [vmem:[#allocation3 + $0x228] sm:$0x7f]  ;;  %v13617_v21 = vpack.c.bf16 %v4872_v42, %v4867_v45  ;;  %v13707_v1 = vpack.c.bf16 %v5407_v56, %v5402_v44  ;;  %v5415_v4 = vsel %vm4270_vm5, %v5413_v2, %v4879_v27  ;;  %v5416_v7 = vrot.slane %v5202_v39, 7  ;;  %v17597_v56 = vld [vmem:[#allocation3 + $0x210] sm:$0xff] }
 0x453   : > { %v5209_v37 = vld [vmem:[#allocation3 + $0x228] sm:$0x7f]  ;;  %v13710_v5 = vpack.c.bf16 %v5419_v48, %v5415_v4  ;;  %v15358_v24 = vld [vmem:[%s19448_s3 + $0x394] ss:$8 sps:$4 sm:$0xff]   ;;  %v4893_v63 = vrot.slane %v4670_v62, 7  ;;  %v4875_v14 = vrot.slane %v4659_v51, 7 }
 0x454   : > { %v5428_v20 = vrot.slane %v5209_v37, 7  ;;  %v4876_v35 = vrot.slane %v17563_v15, 7  ;;  %v4889_v60 = vrot.slane %v17568_v23, 7  ;;  %v15356_v34 = vld [vmem:[%s19448_s3 + $0x390] ss:$8 sps:$4 sm:$0xff]   ;;  %v4886_v62 = vrot.slane %v17597_v56, 7 }
 0x455   : > { %8223 = vmatpush1.bf16.msra.mxu1 %v15344_v16  ;;  %v4880_v16 = vsel %vm4270_vm5, %v4878_v19, %v4879_v27  ;;  %v5208_v3 = vld [vmem:[#allocation3 + $0x220] sm:$0x7f]  ;;  %v4665_v22 = vld [vmem:[#allocation3 + $0x200] sm:$0x80]  ;;  %v5215_v19 = vld [vmem:[#allocation3 + $0x268] sm:$0x7f] }
 0x456   : > { %8224 = vmatprep.subr.bf16.mxu1 %v15349_v43  ;;  %v5205_v43 = vld [vmem:[#allocation3 + $0x208] sm:$0x80]  ;;  %v13620_v17 = vpack.c.bf16 %v4884_v47, %v4880_v16  ;;  %v4894_v40 = vsel %vm4270_vm5, %v4889_v60, %v4893_v63  ;;  %v5429_v59 = vsel %vm4270_vm5, %v4889_v60, %v5428_v20  ;;  %v4877_v55 = vsel %vm4270_vm5, %v4875_v14, %v4876_v35  ;;  %v5204_v13 = vld [vmem:[#allocation3 + $0x200] sm:$0x80]  ;;  %v15359_v47 = vld [vmem:[%s19448_s3 + $0x3a0] ss:$8 sps:$4 sm:$0xff]  }
 0x457   : > { %13612 = vmatmul.mubr.msk.bf16.gmra.mrb[80].mxu0 %vm15844_vm2, %v13611_v12  ;;  %v5410_v12 = vrot.slane %v5198_v54, 7  ;;  %v5423_v11 = vrot.slane %v5205_v43, 7  ;;  %v5426_v54 = vrot.slane %v5208_v3, 7  ;;  %v17602_v39 = vld [vmem:[#allocation3 + $0x258] sm:$0xff]  ;;  %v5438_v44 = vrot.slane %v5215_v19, 7 }
 0x458   : > { %13702 = vmatmul.mubr.msk.bf16.gmra.mrb[44].mxu1 %vm15844_vm2, %v13701_v36  ;;  %13615 = vmatprep.mubr.msk.bf16.mxu0 %vm15844_vm2, %v13614_v10  ;;  %v4888_v36 = vrot.slane %v4666_v9, 7  ;;  %v5417_v10 = vsel %vm4270_vm5, %v4876_v35, %v5416_v7  ;;  %v15364_v45 = vld [vmem:[%s19448_s3 + $0x3b4] ss:$8 sps:$4 sm:$0xff]   ;;  %v4885_v9 = vrot.slane %v4665_v22, 7  ;;  %v5420_v37 = vrot.slane %v5204_v13, 7 }
 0x459   : > { %13705 = vmatprep.mubr.msk.bf16.mxu1 %vm15844_vm2, %v13704_v33  ;;  %8225 = vmatpush1.bf16.msra.mxu1 %v15347_v41  ;;  %v4882_v41 = vsel %vm4270_vm5, %v4876_v35, %v4881_v32  ;;  %v15361_v33 = vld [vmem:[%s19448_s3 + $0x3a4] ss:$8 sps:$4 sm:$0xff]   ;;  %v5412_v38 = vsel %vm4270_vm5, %v5410_v12, %v4876_v35  ;;  %v5425_v42 = vsel %vm4270_vm5, %v5423_v11, %v4889_v60  ;;  %v15362_v16 = vld [vmem:[%s19448_s3 + $0x3b0] ss:$8 sps:$4 sm:$0xff]  }
 0x45a   : > { %8226 = vmatprep.subr.bf16.mxu1 %v15352_v6  ;;  %v4669_v6 = vld [vmem:[#allocation3 + $0x220] sm:$0x7f]  ;;  %v13623_v27 = vpack.c.bf16 %v4882_v41, %v4877_v55  ;;  %v13713_v2 = vpack.c.bf16 %v5417_v10, %v5412_v38  ;;  %v13716_v51 = vpack.c.bf16 %v5429_v59, %v5425_v42  ;;  %v5427_v43 = vsel %vm4270_vm5, %v4886_v62, %v5426_v54  ;;  %v5210_v35 = vld [vmem:[#allocation3 + $0x240] sm:$0x80]  ;;  %v17629_v12 = vld [vmem:[#allocation3 + $0x250] sm:$0xff] }
 0x45b   : > { %v4891_v52 = vrot.slane %v4669_v6, 7  ;;  %v4887_v32 = vsel %vm4270_vm5, %v4885_v9, %v4886_v62  ;;  %v5422_v7 = vsel %vm4270_vm5, %v5420_v37, %v4886_v62  ;;  %v17634_v41 = vld [vmem:[#allocation3 + $0x298] sm:$0xff]  ;;  %v5431_v59 = vrot.slane %v17629_v12, 7  ;;  %v15373_v22 = vld [vmem:[%s19448_s3 + $0x3e4] ss:$8 sps:$4 sm:$0xff]  }
 0x45c   : > { %v13719_v20 = vpack.c.bf16 %v5427_v43, %v5422_v7  ;;  %v15370_v10 = vld [vmem:[%s19448_s3 + $0x3d4] ss:$8 sps:$4 sm:$0xff]   ;;  %v5444_v3 = vrot.slane %v17634_v41, 7  ;;  %v15368_v55 = vld [vmem:[%s19448_s3 + $0x3d0] ss:$8 sps:$4 sm:$0xff]  }
 0x45d   : > { %8227 = vmatpush1.bf16.msra.mxu1 %v15350_v53  ;;  %v4890_v53 = vsel %vm4270_vm5, %v4888_v36, %v4889_v60  ;;  %v4892_v4 = vsel %vm4270_vm5, %v4886_v62, %v4891_v52  ;;  %v15365_v36 = vld [vmem:[%s19448_s3 + $0x3c0] ss:$8 sps:$4 sm:$0xff]   ;;  %v5223_v54 = vld [vmem:[#allocation3 + $0x2c8] sm:$0x80] }
 0x45e   : > { %8228 = vmatprep.subr.bf16.mxu1 %v15355_v46  ;;  %v5211_v46 = vld [vmem:[#allocation3 + $0x248] sm:$0x80]  ;;  %v13626_v48 = vpack.c.bf16 %v4894_v40, %v4890_v53  ;;  %v13629_v63 = vpack.c.bf16 %v4892_v4, %v4887_v32  ;;  %v5430_v40 = vrot.slane %v5210_v35, 7  ;;  %v5220_v19 = vld [vmem:[#allocation3 + $0x2a0] sm:$0x7f] }
 0x45f   : > { %13618 = vmatmul.mubr.msk.bf16.gmra.mrb[84].mxu0 %vm15844_vm2, %v13617_v21  ;;  %v5433_v21 = vrot.slane %v5211_v46, 7  ;;  %v5216_v46 = vld [vmem:[#allocation3 + $0x280] sm:$0x80]  ;;  %v5446_v52 = vrot.slane %v5220_v19, 7  ;;  %v5233_v32 = vld [vmem:[#allocation3 + $0x328] sm:$0x7f] }
 0x460   : > { %13708 = vmatmul.mubr.msk.bf16.gmra.mrb[48].mxu1 %vm15844_vm2, %v13707_v1  ;;  %13621 = vmatprep.mubr.msk.bf16.mxu0 %vm15844_vm2, %v13620_v17  ;;  %v5434_v1 = vrot.slane %v17602_v39, 7  ;;  %v5440_v62 = vrot.slane %v5216_v46, 7  ;;  %v15379_v43 = vld [vmem:[%s19448_s3 + $0x404] ss:$8 sps:$4 sm:$0xff]   ;;  %v17699_v46 = vld [vmem:[#allocation3 + $0x358] sm:$0xff] }
 0x461   : > { %13711 = vmatprep.mubr.msk.bf16.mxu1 %vm15844_vm2, %v13710_v5  ;;  %8229 = vmatpush1.bf16.msra.mxu1 %v15353_v8  ;;  %v15367_v8 = vld [vmem:[%s19448_s3 + $0x3c4] ss:$8 sps:$4 sm:$0xff]  }
 0x462   : > { %8230 = vmatprep.subr.bf16.mxu1 %v15358_v24  ;;  %v5439_v17 = vsel %vm4270_vm5, %v5434_v1, %v5438_v44  ;;  %v5214_v5 = vld [vmem:[#allocation3 + $0x260] sm:$0x7f]  ;;  %v5221_v24 = vld [vmem:[#allocation3 + $0x2a8] sm:$0x7f]  ;;  %v5435_v14 = vsel %vm4270_vm5, %v5433_v21, %v5434_v1  ;;  %v15376_v44 = vld [vmem:[%s19448_s3 + $0x3f4] ss:$8 sps:$4 sm:$0xff]  }
 0x463   : > { %v13722_v60 = vpack.c.bf16 %v5439_v17, %v5435_v14  ;;  %v5436_v11 = vrot.slane %v5214_v5, 7  ;;  %v5453_v21 = vrot.slane %v5223_v54, 7  ;;  %v5226_v17 = vld [vmem:[#allocation3 + $0x2e0] sm:$0x7f]  ;;  %v5228_v19 = vld [vmem:[#allocation3 + $0x300] sm:$0x80] }
 0x464   : > { %v5456_v35 = vrot.slane %v5226_v17, 7 }
 0x465   : > { %8231 = vmatpush1.bf16.msra.mxu1 %v15356_v34  ;;  %v5217_v34 = vld [vmem:[#allocation3 + $0x288] sm:$0x80]  ;;  %v5437_v38 = vsel %vm4270_vm5, %v5431_v59, %v5436_v11  ;;  %v5468_v11 = vrot.slane %v5233_v32, 7 }
 0x466   : > { %8232 = vmatprep.subr.bf16.mxu1 %v15361_v33  ;;  %v5448_v33 = vrot.slane %v5221_v24, 7  ;;  %v5443_v6 = vrot.slane %v5217_v34, 7  ;;  %v5241_v32 = vld [vmem:[#allocation3 + $0x388] sm:$0x80] }
 0x467   : > { %13624 = vmatmul.mubr.msk.bf16.gmra.mrb[88].mxu0 %vm15844_vm2, %v13623_v27  ;;  %v5432_v27 = vsel %vm4270_vm5, %v5430_v40, %v5431_v59 }
 0x468   : > { %13714 = vmatmul.mubr.msk.bf16.gmra.mrb[52].mxu1 %vm15844_vm2, %v13713_v2  ;;  %13627 = vmatprep.mubr.msk.bf16.mxu0 %vm15844_vm2, %v13626_v48  ;;  %v5449_v13 = vsel %vm4270_vm5, %v5444_v3, %v5448_v33  ;;  %v5227_v2 = vld [vmem:[#allocation3 + $0x2e8] sm:$0x7f]  ;;  %v13725_v53 = vpack.c.bf16 %v5437_v38, %v5432_v27  ;;  %v5445_v42 = vsel %vm4270_vm5, %v5443_v6, %v5444_v3  ;;  %v5232_v3 = vld [vmem:[#allocation3 + $0x320] sm:$0x7f]  ;;  %v17697_v27 = vld [vmem:[#allocation3 + $0x310] sm:$0xff] }
 0x469   : > { %13717 = vmatprep.mubr.msk.bf16.mxu1 %vm15844_vm2, %v13716_v51  ;;  %8233 = vmatpush1.bf16.msra.mxu1 %v15359_v47  ;;  %v17657_v47 = vld [vmem:[#allocation3 + $0x290] sm:$0xff]  ;;  %v15371_v48 = vld [vmem:[%s19448_s3 + $0x3e0] ss:$8 sps:$4 sm:$0xff]   ;;  %v13728_v51 = vpack.c.bf16 %v5449_v13, %v5445_v42  ;;  %v5458_v9 = vrot.slane %v5227_v2, 7  ;;  %v5235_v42 = vld [vmem:[#allocation3 + $0x348] sm:$0x80] }
 0x46a   : > { %8234 = vmatprep.subr.bf16.mxu1 %v15364_v45  ;;  %v17662_v45 = vld [vmem:[#allocation3 + $0x2d8] sm:$0xff]  ;;  %v5441_v37 = vrot.slane %v17657_v47, 7  ;;  %v5239_v38 = vld [vmem:[#allocation3 + $0x368] sm:$0x7f]  ;;  %v5473_v54 = vrot.slane %v5235_v42, 7 }
 0x46b   : > { %v5454_v1 = vrot.slane %v17662_v45, 7 }
 0x46c   : > { %v5447_v4 = vsel %vm4270_vm5, %v5441_v37, %v5446_v52  ;;  %v5442_v5 = vsel %vm4270_vm5, %v5440_v62, %v5441_v37  ;;  %v5461_v52 = vrot.slane %v17697_v27, 7  ;;  %v5238_v37 = vld [vmem:[#allocation3 + $0x360] sm:$0x7f] }
 0x46d   : > { %8235 = vmatpush1.bf16.msra.mxu1 %v15362_v16  ;;  %v15374_v16 = vld [vmem:[%s19448_s3 + $0x3f0] ss:$8 sps:$4 sm:$0xff]   ;;  %v13731_v7 = vpack.c.bf16 %v5447_v4, %v5442_v5  ;;  %v5455_v24 = vsel %vm4270_vm5, %v5453_v21, %v5454_v1  ;;  %v5476_v5 = vrot.slane %v5238_v37, 7 }
 0x46e   : > { %8236 = vmatprep.subr.bf16.mxu1 %v15367_v8  ;;  %v5459_v8 = vsel %vm4270_vm5, %v5454_v1, %v5458_v9  ;;  %v5245_v1 = vld [vmem:[#allocation3 + $0x3a8] sm:$0x7f] }
 0x46f   : > { %13630 = vmatmul.mubr.msk.bf16.gmra.mrb[92].mxu0 %vm15844_vm2, %v13629_v63  ;;  %v5222_v63 = vld [vmem:[#allocation3 + $0x2c0] sm:$0x80]  ;;  %v13734_v14 = vpack.c.bf16 %v5459_v8, %v5455_v24  ;;  %v17711_v8 = vld [vmem:[#allocation3 + $0x350] sm:$0xff]  ;;  %v5488_v24 = vrot.slane %v5245_v1, 7 }
 0x470   : > { %13720 = vmatmul.mubr.msk.bf16.gmra.mrb[56].mxu1 %vm15844_vm2, %v13719_v20  ;;  %v17683_v20 = vld [vmem:[#allocation3 + $0x2d0] sm:$0xff]  ;;  %v5450_v34 = vrot.slane %v5222_v63, 7  ;;  %v5246_v1 = vld [vmem:[#allocation3 + $0x3c0] sm:$0x80] }
 0x471   : > { %13723 = vmatprep.mubr.msk.bf16.mxu1 %vm15844_vm2, %v13722_v60  ;;  %8237 = vmatpush1.bf16.msra.mxu1 %v15365_v36  ;;  %v5229_v36 = vld [vmem:[#allocation3 + $0x308] sm:$0x80]  ;;  %v17685_v60 = vld [vmem:[#allocation3 + $0x318] sm:$0xff] }
 0x472   : > { %8238 = vmatprep.subr.bf16.mxu1 %v15370_v10  ;;  %v5451_v10 = vrot.slane %v17683_v20, 7  ;;  %v5463_v33 = vrot.slane %v5229_v36, 7  ;;  %v5464_v40 = vrot.slane %v17685_v60, 7 }
 0x474   : > { %v5457_v59 = vsel %vm4270_vm5, %v5451_v10, %v5456_v35  ;;  %v5469_v6 = vsel %vm4270_vm5, %v5464_v40, %v5468_v11  ;;  %v5465_v13 = vsel %vm4270_vm5, %v5463_v33, %v5464_v40  ;;  %v5483_v35 = vrot.slane %v5241_v32, 7  ;;  %v5251_v40 = vld [vmem:[#allocation3 + $0x3e8] sm:$0x7f] }
 0x475   : > { %8239 = vmatpush1.bf16.msra.mxu1 %v15368_v55  ;;  %v5452_v55 = vsel %vm4270_vm5, %v5450_v34, %v5451_v10  ;;  %v13740_v2 = vpack.c.bf16 %v5469_v6, %v5465_v13  ;;  %v5244_v10 = vld [vmem:[#allocation3 + $0x3a0] sm:$0x7f]  ;;  %v5247_v13 = vld [vmem:[#allocation3 + $0x3c8] sm:$0x80] }
 0x476   : > { %8240 = vmatprep.subr.bf16.mxu1 %v15373_v22  ;;  %v13737_v22 = vpack.c.bf16 %v5457_v59, %v5452_v55  ;;  %v17725_v55 = vld [vmem:[#allocation3 + $0x390] sm:$0xff] }
 0x477   : > { %v5481_v42 = vrot.slane %v17725_v55, 7 }
 0x478   : > { %13726 = vmatmul.mubr.msk.bf16.gmra.mrb[60].mxu1 %vm15844_vm2, %v13725_v53  ;;  %v5466_v53 = vrot.slane %v5232_v3, 7  ;;  %v5240_v3 = vld [vmem:[#allocation3 + $0x380] sm:$0x80] }
 0x479   : > { %13729 = vmatprep.mubr.msk.bf16.mxu1 %vm15844_vm2, %v13728_v51  ;;  %8241 = vmatpush1.bf16.msra.mxu1 %v15371_v48  ;;  %v5478_v48 = vrot.slane %v5239_v38, 7  ;;  %v5460_v51 = vrot.slane %v5228_v19, 7  ;;  %v17727_v19 = vld [vmem:[#allocation3 + $0x3d8] sm:$0xff] }
 0x47a   : > { %8242 = vmatprep.subr.bf16.mxu1 %v15376_v44  ;;  %v5474_v44 = vrot.slane %v17699_v46, 7  ;;  %v5467_v9 = vsel %vm4270_vm5, %v5461_v52, %v5466_v53  ;;  %v5480_v53 = vrot.slane %v5240_v3, 7 }
 0x47b   : > { %v5462_v21 = vsel %vm4270_vm5, %v5460_v51, %v5461_v52  ;;  %v5494_v51 = vrot.slane %v17727_v19, 7 }
 0x47c   : > { %v5479_v62 = vsel %vm4270_vm5, %v5474_v44, %v5478_v48  ;;  %v5475_v4 = vsel %vm4270_vm5, %v5473_v54, %v5474_v44  ;;  %v5493_v48 = vrot.slane %v5247_v13, 7  ;;  %v5250_v44 = vld [vmem:[#allocation3 + $0x3e0] sm:$0x7f] }
 0x47d   : > { %8243 = vmatpush1.bf16.msra.mxu1 %v15374_v16  ;;  %v13743_v16 = vpack.c.bf16 %v5467_v9, %v5462_v21  ;;  %v13746_v17 = vpack.c.bf16 %v5479_v62, %v5475_v4  ;;  %v5482_v9 = vsel %vm4270_vm5, %v5480_v53, %v5481_v42  ;;  %v5257_v62 = vld [vmem:[#allocation3 + $0x428] sm:$0x7f] }
 0x47e   : > { %8405 = vmatprep.subr.bf16.mxu1 %v15379_v43  ;;  %v5234_v43 = vld [vmem:[#allocation3 + $0x340] sm:$0x80]  ;;  %v5495_v21 = vsel %vm4270_vm5, %v5493_v48, %v5494_v51  ;;  %v5508_v32 = vrot.slane %v5257_v62, 7  ;;  %v7034_v48 = vld [vmem:[#allocation3 + $0x68] sm:$0xff] }
 0x47f   : > { %v5470_v63 = vrot.slane %v5234_v43, 7  ;;  %v5496_v43 = vrot.slane %v5250_v44, 7  ;;  %v7033_v62 = vld [vmem:[#allocation3 + $0x60] sm:$0xff] }
 0x480   : > { %13732 = vmatmul.mubr.msk.bf16.gmra.mrb[0].mxu1 %vm15844_vm2, %v13731_v7  ;;  %v17713_v7 = vld [vmem:[#allocation3 + $0x398] sm:$0xff] }
 0x481   : > { %13735 = vmatprep.mubr.msk.bf16.mxu1 %vm15844_vm2, %v13734_v14  ;;  %v5471_v14 = vrot.slane %v17711_v8, 7  ;;  %v5484_v36 = vrot.slane %v17713_v7, 7 }
 0x483   : > { %v5477_v11 = vsel %vm4270_vm5, %v5471_v14, %v5476_v5  ;;  %v5489_v34 = vsel %vm4270_vm5, %v5484_v36, %v5488_v24  ;;  %v5472_v33 = vsel %vm4270_vm5, %v5470_v63, %v5471_v14  ;;  %v5485_v6 = vsel %vm4270_vm5, %v5483_v35, %v5484_v36  ;;  %v5255_v5 = vld [vmem:[#allocation3 + $0x418] sm:$0xff] }
 0x484   : > { %v13749_v59 = vpack.c.bf16 %v5477_v11, %v5472_v33  ;;  %v13752_v38 = vpack.c.bf16 %v5489_v34, %v5485_v6  ;;  %v5490_v24 = vrot.slane %v5246_v1, 7  ;;  %v5504_v35 = vrot.slane %v5255_v5, 7  ;;  %v5256_v34 = vld [vmem:[#allocation3 + $0x420] sm:$0x7f]  ;;  %v5254_v6 = vld [vmem:[#allocation3 + $0x410] sm:$0xff] }
 0x485   : > { %v5501_v13 = vrot.slane %v5254_v6, 7  ;;  %v15383_v1 = vld [vmem:[%s19448_s3 + $0x420] ss:$8 sps:$4 sm:$0xff]   ;;  %v15394_v6 = vld [vmem:[%s19448_s3 + $0x454] ss:$8 sps:$4 sm:$0xff]  }
 0x486   : > { %v5509_v11 = vsel %vm4270_vm5, %v5504_v35, %v5508_v32  ;;  %v15386_v32 = vld [vmem:[%s19448_s3 + $0x430] ss:$8 sps:$4 sm:$0xff]  }
 0x488   : > { %13738 = vmatmul.mubr.msk.bf16.gmra.mrb[4].mxu1 %vm15844_vm2, %v13737_v22  ;;  %v5486_v22 = vrot.slane %v5244_v10, 7 }
 0x489   : > { %13741 = vmatprep.mubr.msk.bf16.mxu1 %vm15844_vm2, %v13740_v2  ;;  %v5498_v2 = vrot.slane %v5251_v40, 7 }
 0x48a   : > { %v5487_v52 = vsel %vm4270_vm5, %v5481_v42, %v5486_v22 }
 0x48b   : > { %v5499_v54 = vsel %vm4270_vm5, %v5494_v51, %v5498_v2  ;;  %v13755_v37 = vpack.c.bf16 %v5487_v52, %v5482_v9  ;;  %v15377_v51 = vld [vmem:[%s19448_s3 + $0x400] ss:$8 sps:$4 sm:$0xff]   ;;  %v7032_v52 = vld [vmem:[#allocation3 + $0x58] sm:$0xff]  ;;  %v15385_v9 = vld [vmem:[%s19448_s3 + $0x424] ss:$8 sps:$4 sm:$0xff]  }
 0x48c   : > { %v13758_v4 = vpack.c.bf16 %v5499_v54, %v5495_v21  ;;  %v15382_v54 = vld [vmem:[%s19448_s3 + $0x414] ss:$8 sps:$4 sm:$0xff]   ;;  %v17767_v44 = vpack.c.bf16 %v7034_v48, %v7032_v52  ;;  %v15395_v52 = vld [vmem:[%s19448_s3 + $0x460] ss:$8 sps:$4 sm:$0xff]  }
 0x48d   : > { %v7031_v21 = vld [vmem:[#allocation3 + $0x50] sm:$0xff] }
 0x490   : > { %13744 = vmatmul.mubr.msk.bf16.gmra.mrb[8].mxu1 %vm15844_vm2, %v13743_v16  ;;  %v17739_v16 = vld [vmem:[#allocation3 + $0x3d0] sm:$0xff] }
 0x491   : > { %13747 = vmatprep.mubr.msk.bf16.mxu1 %vm15844_vm2, %v13746_v17  ;;  %v5253_v17 = vld [vmem:[#allocation3 + $0x408] sm:$0x80]  ;;  %v5491_v63 = vrot.slane %v17739_v16, 7 }
 0x492   : > { %v5503_v14 = vrot.slane %v5253_v17, 7  ;;  %v15388_v17 = vld [vmem:[%s19448_s3 + $0x434] ss:$8 sps:$4 sm:$0xff]  }
 0x493   : > { %v5497_v36 = vsel %vm4270_vm5, %v5491_v63, %v5496_v43  ;;  %v5492_v10 = vsel %vm4270_vm5, %v5490_v24, %v5491_v63  ;;  %v7036_v43 = vld [vmem:[#allocation3 + $0x98] sm:$0xff]  ;;  %v15391_v24 = vld [vmem:[%s19448_s3 + $0x444] ss:$8 sps:$4 sm:$0xff]  }
 0x494   : > { %v13761_v33 = vpack.c.bf16 %v5497_v36, %v5492_v10  ;;  %v5505_v40 = vsel %vm4270_vm5, %v5503_v14, %v5504_v35  ;;  %v7037_v14 = vld [vmem:[#allocation3 + $0xa0] sm:$0xff]  ;;  %v7042_v36 = vld [vmem:[#allocation3 + $0xe8] sm:$0xff] }
 0x495   : > { %v13764_v3 = vpack.c.bf16 %v5509_v11, %v5505_v40  ;;  %v15389_v10 = vld [vmem:[%s19448_s3 + $0x440] ss:$8 sps:$4 sm:$0xff]  }
 0x498   : > { %13750 = vmatmul.mubr.msk.bf16.gmra.mrb[12].mxu1 %vm15844_vm2, %v13749_v59  ;;  %v5252_v59 = vld [vmem:[#allocation3 + $0x400] sm:$0x80] }
 0x499   : > { %13753 = vmatprep.mubr.msk.bf16.mxu1 %vm15844_vm2, %v13752_v38  ;;  %v5506_v38 = vrot.slane %v5256_v34, 7  ;;  %v5500_v22 = vrot.slane %v5252_v59, 7  ;;  %v7035_v34 = vld [vmem:[#allocation3 + $0x90] sm:$0xff]  ;;  %v7040_v59 = vld [vmem:[#allocation3 + $0xd8] sm:$0xff] }
 0x49a   : > { %v17806_v40 = vpack.c.bf16 %v7037_v14, %v7035_v34  ;;  %v15406_v34 = vld [vmem:[%s19448_s3 + $0x494] ss:$8 sps:$4 sm:$0xff]  }
 0x49b   : > { %v5507_v2 = vsel %vm4270_vm5, %v5501_v13, %v5506_v38  ;;  %v5502_v53 = vsel %vm4270_vm5, %v5500_v22, %v5501_v13  ;;  %v15392_v38 = vld [vmem:[%s19448_s3 + $0x450] ss:$8 sps:$4 sm:$0xff]   ;;  %v15397_v22 = vld [vmem:[%s19448_s3 + $0x464] ss:$8 sps:$4 sm:$0xff]  }
 0x49c   : > { %v13767_v42 = vpack.c.bf16 %v5507_v2, %v5502_v53  ;;  %v7041_v2 = vld [vmem:[#allocation3 + $0xe0] sm:$0xff] }
 0x4a0   : > { %13756 = vmatmul.mubr.msk.bf16.gmra.mrb[16].mxu1 %vm15844_vm2, %v13755_v37  ;;  %v7038_v37 = vld [vmem:[#allocation3 + $0xa8] sm:$0xff] }
 0x4a1   : > { %13759 = vmatprep.mubr.msk.bf16.mxu1 %vm15844_vm2, %v13758_v4  ;;  %v17780_v4 = vpack.c.bf16 %v7033_v62, %v7031_v21  ;;  %v17785_v5 = vpack.c.bf16 %v7038_v37, %v7036_v43  ;;  %v15398_v37 = vld [vmem:[%s19448_s3 + $0x470] ss:$8 sps:$4 sm:$0xff]   ;;  %v15403_v21 = vld [vmem:[%s19448_s3 + $0x484] ss:$8 sps:$4 sm:$0xff]  }
 0x4a2   : > { %v17850_v43 = vld [vmem:[#allocation3 + $0x120] sm:$0xff] }
 0x4a8   : > { %13762 = vmatmul.mubr.msk.bf16.gmra.mrb[20].mxu1 %vm15844_vm2, %v13761_v33 }
 0x4a9   : > { %13765 = vmatprep.mubr.msk.bf16.mxu1 %vm15844_vm2, %v13764_v3  ;;  %v17811_v3 = vpack.c.bf16 %v7042_v36, %v7040_v59  ;;  %v7163_v36 = vpack.c.bf16 %v17850_v43, %v17461_v31  ;;  %v15404_v59 = vld [vmem:[%s19448_s3 + $0x490] ss:$8 sps:$4 sm:$0xff]   ;;  %v15409_v31 = vld [vmem:[%s19448_s3 + $0x4a4] ss:$8 sps:$4 sm:$0xff]  }
 0x4b0   : > { %13768 = vmatmul.mubr.msk.bf16.gmra.mrb[24].mxu1 %vm15844_vm2, %v13767_v42  ;;  %v17825_v42 = vld [vmem:[#allocation3 + $0x128] sm:$0xff] }
 0x4b1   : > { %6952 = vmatprep.mubr.bf16.mxu1 %v19453_v30  ;;  %v7164_v62 = vpack.c.bf16 %v17825_v42, %v17436_v25  ;;  %v17854_v25 = vld [vmem:[#allocation3 + $0x168] sm:$0xff] }
 0x4b8   : > { %6953 = vmatmul.mubr.bf16.gmra.mrb[28].mxu1 %v19453_v30 }
 0x4b9   : > { %8244 = vmatprep.mubr.bf16.mxu1 %v19453_v30 }
 0x4c0   : > { %8245 = vmatmul.mubr.bf16.vlgmr.msra.gmra.mrb[32].mxu1 %v19453_v30  ;;  %v7172_v30 = vpack.c.bf16 %v17938_v57, %v17568_v23 }
 0x4c1   : > { %8254 = vmatprep.mubr.bf16.mxu1 %v17767_v44  ;;  %8406 = vmatpush1.bf16.msra.mxu1 %v15377_v51  ;;  %v7039_v51 = vld [vmem:[#allocation3 + $0xd0] sm:$0xff] }
 0x4c2   : > { %8407 = vmatprep.subr.bf16.mxu1 %v15382_v54 }
 0x4c5   : > { %8408 = vmatpush1.bf16.msra.mxu1 %v15380_v50  ;;  %v17834_v50 = vpack.c.bf16 %v7041_v2, %v7039_v51  ;;  %v17882_v2 = vld [vmem:[#allocation3 + $0x1a8] sm:$0xff] }
 0x4c6   : > { %8409 = vmatprep.subr.bf16.mxu1 %v15385_v9  ;;  %v15400_v9 = vld [vmem:[%s19448_s3 + $0x474] ss:$8 sps:$4 sm:$0xff]   ;;  %v15407_v51 = vld [vmem:[%s19448_s3 + $0x4a0] ss:$8 sps:$4 sm:$0xff]  }
 0x4c8   : > { %8255 = vmatmul.mubr.bf16.gmra.mrb[36].mxu1 %v17780_v4 }
 0x4c9   : > { %8264 = vmatprep.mubr.bf16.mxu1 %v17785_v5  ;;  %8410 = vmatpush1.bf16.msra.mxu1 %v15383_v1 }
 0x4ca   : > { %8411 = vmatprep.subr.bf16.mxu1 %v15388_v17  ;;  %v17795_v63 = vpop.f32.mrb[96].mxu0 }
 0x4cb   : > { %19461 = vst [vmem:[#allocation11_spill] sm:$0xff] %v17795_v63  ;;  %v17797_v35 = vpop.f32.mrb[97].mxu0  ;;  %v15430_v63 = vld [vmem:[%s19448_s3 + $0x514] ss:$8 sps:$4 sm:$0xff]  }
 0x4cc   : > { %19462 = vst [vmem:[#allocation12_spill] sm:$0xff] %v17797_v35  ;;  %v17799_v11 = vpop.f32.mrb[98].mxu0 }
 0x4cd   : > { %19463 = vst [vmem:[#allocation13_spill] sm:$0xff] %v17799_v11  ;;  %8412 = vmatpush1.bf16.msra.mxu1 %v15386_v32  ;;  %v17804_v33 = vpop.f32.mrb[99].mxu0 }
 0x4ce   : > { %19464 = vst [vmem:[#allocation14_spill] sm:$0xff] %v17804_v33  ;;  %8413 = vmatprep.subr.bf16.mxu1 %v15391_v24  ;;  %v15401_v24 = vld [vmem:[%s19448_s3 + $0x480] ss:$8 sps:$4 sm:$0xff]  }
 0x4d0   : > { %8265 = vmatmul.mubr.bf16.gmra.mrb[40].mxu1 %v17806_v40 }
 0x4d1   : > { %8274 = vmatprep.mubr.bf16.mxu1 %v17811_v3  ;;  %8414 = vmatpush1.bf16.msra.mxu1 %v15389_v10  ;;  %v7166_v10 = vpack.c.bf16 %v17854_v25, %v17466_v28 }
 0x4d2   : > { %8415 = vmatprep.subr.bf16.mxu1 %v15394_v6  ;;  %v17821_v13 = vpop.f32.mrb[100].mxu0 }
 0x4d3   : > { %19465 = vst [vmem:[#allocation15_spill] sm:$0xff] %v17821_v13  ;;  %v17823_v53 = vpop.f32.mrb[101].mxu0 }
 0x4d4   : > { %19466 = vst [vmem:[#allocation16_spill] sm:$0xff] %v17823_v53  ;;  %v17827_v48 = vpop.f32.mrb[102].mxu0 }
 0x4d5   : > { %19467 = vst [vmem:[#allocation17_spill] sm:$0xff] %v17827_v48  ;;  %8416 = vmatpush1.bf16.msra.mxu1 %v15392_v38  ;;  %v17832_v54 = vpop.f32.mrb[103].mxu0  ;;  %v17878_v38 = vld [vmem:[#allocation3 + $0x160] sm:$0xff] }
 0x4d6   : > { %19468 = vst [vmem:[#allocation18_spill] sm:$0xff] %v17832_v54  ;;  %8417 = vmatprep.subr.bf16.mxu1 %v15397_v22 }
 0x4d8   : > { %8275 = vmatmul.mubr.bf16.gmra.mrb[44].mxu1 %v17834_v50 }
 0x4d9   : > { %8284 = vmatprep.mubr.bf16.mxu1 %v7164_v62  ;;  %8418 = vmatpush1.bf16.msra.mxu1 %v15395_v52  ;;  %v15412_v62 = vld [vmem:[%s19448_s3 + $0x4b4] ss:$8 sps:$4 sm:$0xff]  }
 0x4da   : > { %8419 = vmatprep.subr.bf16.mxu1 %v15400_v9  ;;  %v17848_v1 = vpop.f32.mrb[104].mxu0  ;;  %v7165_v9 = vpack.c.bf16 %v17878_v38, %v17495_v26  ;;  %v15415_v26 = vld [vmem:[%s19448_s3 + $0x4c4] ss:$8 sps:$4 sm:$0xff]  }
 0x4db   : > { %19469 = vst [vmem:[#allocation19_spill] sm:$0xff] %v17848_v1  ;;  %v17852_v17 = vpop.f32.mrb[105].mxu0  ;;  %v18062_v1 = vld [vmem:[#allocation3 + $0x3e8] sm:$0xff] }
 0x4dc   : > { %19470 = vst [vmem:[#allocation20_spill] sm:$0xff] %v17852_v17  ;;  %v17856_v32 = vpop.f32.mrb[106].mxu0 }
 0x4dd   : > { %19471 = vst [vmem:[#allocation21_spill] sm:$0xff] %v17856_v32  ;;  %8420 = vmatpush1.bf16.msra.mxu1 %v15398_v37  ;;  %v17861_v14 = vpop.f32.mrb[107].mxu0  ;;  %v7168_v37 = vpack.c.bf16 %v17882_v2, %v17500_v29 }
 0x4de   : > { %19472 = vst [vmem:[#allocation22_spill] sm:$0xff] %v17861_v14  ;;  %8421 = vmatprep.subr.bf16.mxu1 %v15403_v21  ;;  %v15410_v21 = vld [vmem:[%s19448_s3 + $0x4b0] ss:$8 sps:$4 sm:$0xff]  }
 0x4e0   : > { %8285 = vmatmul.mubr.bf16.gmra.mrb[48].mxu1 %v7163_v36  ;;  %v17906_v36 = vld [vmem:[#allocation3 + $0x1a0] sm:$0xff] }
 0x4e1   : > { %8294 = vmatprep.mubr.bf16.mxu1 %v7166_v10  ;;  %8422 = vmatpush1.bf16.msra.mxu1 %v15401_v24  ;;  %v17910_v10 = vld [vmem:[#allocation3 + $0x1e8] sm:$0xff] }
 0x4e2   : > { %8423 = vmatprep.subr.bf16.mxu1 %v15406_v34  ;;  %v17876_v6 = vpop.f32.mrb[108].mxu0 }
 0x4e3   : > { %19473 = vst [vmem:[#allocation23_spill] sm:$0xff] %v17876_v6  ;;  %v17880_v22 = vpop.f32.mrb[109].mxu0  ;;  %v18046_v6 = vld [vmem:[#allocation3 + $0x3a8] sm:$0xff] }
 0x4e4   : > { %19474 = vst [vmem:[#allocation24_spill] sm:$0xff] %v17880_v22  ;;  %v17884_v28 = vpop.f32.mrb[110].mxu0 }
 0x4e5   : > { %19475 = vst [vmem:[#allocation25_spill] sm:$0xff] %v17884_v28  ;;  %8424 = vmatpush1.bf16.msra.mxu1 %v15404_v59  ;;  %v17889_v52 = vpop.f32.mrb[111].mxu0  ;;  %v15413_v59 = vld [vmem:[%s19448_s3 + $0x4c0] ss:$8 sps:$4 sm:$0xff]  }
 0x4e6   : > { %19476 = vst [vmem:[#allocation26_spill] sm:$0xff] %v17889_v52  ;;  %8425 = vmatprep.subr.bf16.mxu1 %v15409_v31 }
 0x4e8   : > { %8295 = vmatmul.mubr.bf16.gmra.mrb[52].mxu1 %v7165_v9  ;;  %v15418_v9 = vld [vmem:[%s19448_s3 + $0x4d4] ss:$8 sps:$4 sm:$0xff]  }
 0x4e9   : > { %8304 = vmatprep.mubr.bf16.mxu1 %v7168_v37  ;;  %8426 = vmatpush1.bf16.msra.mxu1 %v15407_v51  ;;  %v7167_v51 = vpack.c.bf16 %v17906_v36, %v17529_v61  ;;  %v15416_v37 = vld [vmem:[%s19448_s3 + $0x4d0] ss:$8 sps:$4 sm:$0xff]   ;;  %v15421_v61 = vld [vmem:[%s19448_s3 + $0x4e4] ss:$8 sps:$4 sm:$0xff]  }
 0x4ea   : > { %8427 = vmatprep.subr.bf16.mxu1 %v15412_v62  ;;  %v17904_v24 = vpop.f32.mrb[112].mxu0  ;;  %v7170_v62 = vpack.c.bf16 %v17910_v10, %v17534_v0 }
 0x4eb   : > { %19477 = vst [vmem:[#allocation27_spill] sm:$0xff] %v17904_v24  ;;  %v17908_v34 = vpop.f32.mrb[113].mxu0  ;;  %v18030_v24 = vld [vmem:[#allocation3 + $0x368] sm:$0xff] }
 0x4ec   : > { %19478 = vst [vmem:[#allocation28_spill] sm:$0xff] %v17908_v34  ;;  %v17912_v29 = vpop.f32.mrb[114].mxu0 }
 0x4ed   : > { %19479 = vst [vmem:[#allocation29_spill] sm:$0xff] %v17912_v29  ;;  %8428 = vmatpush1.bf16.msra.mxu1 %v15410_v21  ;;  %v17917_v31 = vpop.f32.mrb[115].mxu0 }
 0x4ee   : > { %19480 = vst [vmem:[#allocation30_spill] sm:$0xff] %v17917_v31  ;;  %8429 = vmatprep.subr.bf16.mxu1 %v15415_v26  ;;  %v17934_v26 = vld [vmem:[#allocation3 + $0x1e0] sm:$0xff] }
 0x4f0   : > { %8305 = vmatmul.mubr.bf16.gmra.mrb[56].mxu1 %v7167_v51 }
 0x4f1   : > { %8314 = vmatprep.mubr.bf16.mxu1 %v7170_v62  ;;  %8430 = vmatpush1.bf16.msra.mxu1 %v15413_v59  ;;  %v15419_v59 = vld [vmem:[%s19448_s3 + $0x4e0] ss:$8 sps:$4 sm:$0xff]   ;;  %v15424_v62 = vld [vmem:[%s19448_s3 + $0x4f4] ss:$8 sps:$4 sm:$0xff]  }
 0x4f2   : > { %8431 = vmatprep.subr.bf16.mxu1 %v15418_v9  ;;  %v17932_v21 = vpop.f32.mrb[116].mxu0  ;;  %v7169_v9 = vpack.c.bf16 %v17934_v26, %v17563_v15  ;;  %v15427_v15 = vld [vmem:[%s19448_s3 + $0x504] ss:$8 sps:$4 sm:$0xff]  }
 0x4f3   : > { %19481 = vst [vmem:[#allocation31_spill] sm:$0xff] %v17932_v21  ;;  %v17936_v58 = vpop.f32.mrb[117].mxu0  ;;  %v17982_v21 = vld [vmem:[#allocation3 + $0x2a8] sm:$0xff] }
 0x4f4   : > { %19482 = vst [vmem:[#allocation32_spill] sm:$0xff] %v17936_v58  ;;  %v17940_v0 = vpop.f32.mrb[118].mxu0  ;;  %v17966_v58 = vld [vmem:[#allocation3 + $0x268] sm:$0xff] }
 0x4f5   : > { %19483 = vst [vmem:[#allocation33_spill] sm:$0xff] %v17940_v0  ;;  %8432 = vmatpush1.bf16.msra.mxu1 %v15416_v37  ;;  %v17945_v51 = vpop.f32.mrb[119].mxu0  ;;  %v15422_v37 = vld [vmem:[%s19448_s3 + $0x4f0] ss:$8 sps:$4 sm:$0xff]  }
 0x4f6   : > { %19484 = vst [vmem:[#allocation34_spill] sm:$0xff] %v17945_v51  ;;  %8433 = vmatprep.subr.bf16.mxu1 %v15421_v61  ;;  %v17962_v51 = vld [vmem:[#allocation3 + $0x220] sm:$0xff] }
 0x4f8   : > { %8315 = vmatmul.mubr.bf16.gmra.mrb[60].mxu1 %v7169_v9  ;;  %v7174_v9 = vpack.c.bf16 %v17966_v58, %v17602_v39  ;;  %v7176_v39 = vpack.c.bf16 %v17982_v21, %v17634_v41 }
 0x4f9   : > { %8324 = vmatprep.mubr.bf16.mxu1 %v7172_v30  ;;  %8434 = vmatpush1.bf16.msra.mxu1 %v15419_v59  ;;  %v7171_v59 = vpack.c.bf16 %v17962_v51, %v17597_v56 }
 0x4fa   : > { %8435 = vmatprep.subr.bf16.mxu1 %v15424_v62  ;;  %v17960_v61 = vpop.f32.mrb[120].mxu0 }
 0x4fb   : > { %19485 = vst [vmem:[#allocation35_spill] sm:$0xff] %v17960_v61  ;;  %v17964_v0 = vpop.f32.mrb[121].mxu0  ;;  %v17978_v61 = vld [vmem:[#allocation3 + $0x260] sm:$0xff] }
 0x4fc   : > { %19486 = vst [vmem:[#allocation36_spill] sm:$0xff] %v17964_v0  ;;  %v17968_v23 = vpop.f32.mrb[122].mxu0  ;;  %v7173_v56 = vpack.c.bf16 %v17978_v61, %v17629_v12 }
 0x4fd   : > { %19487 = vst [vmem:[#allocation37_spill] sm:$0xff] %v17968_v23  ;;  %8436 = vmatpush1.bf16.msra.mxu1 %v15422_v37  ;;  %v17970_v30 = vpop.f32.mrb[123].mxu0  ;;  %v18014_v23 = vld [vmem:[#allocation3 + $0x328] sm:$0xff] }
 0x4fe   : > { %19488 = vst [vmem:[#allocation38_spill] sm:$0xff] %v17970_v30  ;;  %8598 = vmatprep.subr.bf16.mxu1 %v15427_v15 }
 0x500   : > { %8325 = vmatmul.mubr.bf16.gmra.mrb[0].mxu1 %v7171_v59  ;;  %v17994_v59 = vld [vmem:[#allocation3 + $0x2a0] sm:$0xff] }
 0x501   : > { %8334 = vmatprep.mubr.bf16.mxu1 %v7174_v9  ;;  %v7175_v12 = vpack.c.bf16 %v17994_v59, %v17657_v47 }
 0x502   : > { %v17976_v62 = vpop.f32.mrb[124].mxu0 }
 0x503   : > { %19489 = vst [vmem:[#allocation39_spill] sm:$0xff] %v17976_v62  ;;  %v17980_v0 = vpop.f32.mrb[125].mxu0 }
 0x504   : > { %19490 = vst [vmem:[#allocation40_spill] sm:$0xff] %v17980_v0  ;;  %v17984_v37 = vpop.f32.mrb[126].mxu0  ;;  %v17998_v0 = vld [vmem:[#allocation3 + $0x2e8] sm:$0xff] }
 0x505   : > { %19491 = vst [vmem:[#allocation41_spill] sm:$0xff] %v17984_v37  ;;  %v17986_v30 = vpop.f32.mrb[127].mxu0  ;;  %v7178_v41 = vpack.c.bf16 %v17998_v0, %v17662_v45  ;;  %v7180_v45 = vpack.c.bf16 %v18014_v23, %v17685_v60  ;;  %v7182_v60 = vpack.c.bf16 %v18030_v24, %v17699_v46  ;;  %v7184_v46 = vpack.c.bf16 %v18046_v6, %v17713_v7 }
 0x506   : > { %19492 = vst [vmem:[#allocation42_spill] sm:$0xff] %v17986_v30  ;;  %v7186_v7 = vpack.c.bf16 %v18062_v1, %v17727_v19 }
 0x508   : > { %8335 = vmatmul.mubr.bf16.gmra.mrb[4].mxu1 %v7173_v56 }
 0x509   : > { %8344 = vmatprep.mubr.bf16.mxu1 %v7176_v39  ;;  %v18010_v39 = vld [vmem:[#allocation3 + $0x2e0] sm:$0xff] }
 0x50a   : > { %v17992_v15 = vpop.f32.mrb[64].mxu0  ;;  %v7177_v47 = vpack.c.bf16 %v18010_v39, %v17683_v20 }
 0x50b   : > { %v17996_v9 = vpop.f32.mrb[65].mxu0 }
 0x50c   : > { %v18000_v62 = vpop.f32.mrb[66].mxu0 }
 0x50d   : > { %v18002_v37 = vpop.f32.mrb[67].mxu0 }
 0x510   : > { %8345 = vmatmul.mubr.bf16.gmra.mrb[8].mxu1 %v7175_v12 }
 0x511   : > { %8354 = vmatprep.mubr.bf16.mxu1 %v7178_v41  ;;  %v18026_v41 = vld [vmem:[#allocation3 + $0x320] sm:$0xff] }
 0x512   : > { %v18008_v56 = vpop.f32.mrb[68].mxu0  ;;  %v7179_v20 = vpack.c.bf16 %v18026_v41, %v17697_v27 }
 0x513   : > { %v18012_v30 = vpop.f32.mrb[69].mxu0 }
 0x514   : > { %v18016_v31 = vpop.f32.mrb[70].mxu0 }
 0x515   : > { %v18018_v29 = vpop.f32.mrb[71].mxu0 }
 0x518   : > { %8355 = vmatmul.mubr.bf16.gmra.mrb[12].mxu1 %v7177_v47 }
 0x519   : > { %8364 = vmatprep.mubr.bf16.mxu1 %v7180_v45  ;;  %v18042_v45 = vld [vmem:[#allocation3 + $0x360] sm:$0xff] }
 0x51a   : > { %v18024_v12 = vpop.f32.mrb[72].mxu0  ;;  %v7181_v27 = vpack.c.bf16 %v18042_v45, %v17711_v8 }
 0x51b   : > { %v18028_v34 = vpop.f32.mrb[73].mxu0 }
 0x51c   : > { %v18032_v52 = vpop.f32.mrb[74].mxu0 }
 0x51d   : > { %v18034_v28 = vpop.f32.mrb[75].mxu0 }
 0x520   : > { %8365 = vmatmul.mubr.bf16.gmra.mrb[16].mxu1 %v7179_v20 }
 0x521   : > { %8374 = vmatprep.mubr.bf16.mxu1 %v7182_v60  ;;  %v18058_v60 = vld [vmem:[#allocation3 + $0x3a0] sm:$0xff] }
 0x522   : > { %v18040_v47 = vpop.f32.mrb[76].mxu0  ;;  %v7183_v8 = vpack.c.bf16 %v18058_v60, %v17725_v55 }
 0x523   : > { %v18044_v22 = vpop.f32.mrb[77].mxu0 }
 0x524   : > { %v18048_v14 = vpop.f32.mrb[78].mxu0 }
 0x525   : > { %v18050_v32 = vpop.f32.mrb[79].mxu0 }
 0x526   : > { %19493 = vst [vmem:[#allocation43_spill] sm:$0xff] %v18050_v32  ;;  %v9529_v32 = vld [vmem:[#allocation3 + $0x58] sm:$0xfe] }
 0x528   : > { %8375 = vmatmul.mubr.bf16.gmra.mrb[20].mxu1 %v7181_v27 }
 0x529   : > { %8384 = vmatprep.mubr.bf16.mxu1 %v7184_v46  ;;  %v18074_v46 = vld [vmem:[#allocation3 + $0x3e0] sm:$0xff] }
 0x52a   : > { %v18056_v20 = vpop.f32.mrb[80].mxu0  ;;  %v7185_v11 = vpack.c.bf16 %v18074_v46, %v17739_v16  ;;  %v15428_v16 = vld [vmem:[%s19448_s3 + $0x510] ss:$8 sps:$4 sm:$0xff]  }
 0x52b   : > { %19494 = vst [vmem:[#allocation44_spill] sm:$0xff] %v18056_v20  ;;  %v18060_v17 = vpop.f32.mrb[81].mxu0 }
 0x52c   : > { %19495 = vst [vmem:[#allocation45_spill] sm:$0xff] %v18060_v17  ;;  %v18064_v54 = vpop.f32.mrb[82].mxu0 }
 0x52d   : > { %19496 = vst [vmem:[#allocation46_spill] sm:$0xff] %v18064_v54  ;;  %v18066_v48 = vpop.f32.mrb[83].mxu0 }
 0x52e   : > { %19497 = vst [vmem:[#allocation47_spill] sm:$0xff] %v18066_v48 }
 0x530   : > { %8385 = vmatmul.mubr.bf16.gmra.mrb[24].mxu1 %v7183_v8 }
 0x531   : > { %8394 = vmatprep.mubr.bf16.mxu1 %v7186_v7  ;;  %v15425_v7 = vld [vmem:[%s19448_s3 + $0x500] ss:$8 sps:$4 sm:$0xff]  }
 0x532   : > { %v18072_v27 = vpop.f32.mrb[84].mxu0 }
 0x533   : > { %19498 = vst [vmem:[#allocation48_spill] sm:$0xff] %v18072_v27  ;;  %v18076_v53 = vpop.f32.mrb[85].mxu0 }
 0x534   : > { %19499 = vst [vmem:[#allocation49_spill] sm:$0xff] %v18076_v53  ;;  %v18078_v13 = vpop.f32.mrb[86].mxu0 }
 0x535   : > { %19500 = vst [vmem:[#allocation50_spill] sm:$0xff] %v18078_v13  ;;  %v18080_v33 = vpop.f32.mrb[87].mxu0 }
 0x536   : > { %19501 = vst [vmem:[#allocation51_spill] sm:$0xff] %v18080_v33 }
 0x538   : > { %8395 = vmatmul.mubr.bf16.gmra.mrb[28].mxu1 %v7185_v11 }
 0x539   : > { %8437 = vmatprep.mubr.bf16.mxu1 %v17767_v44  ;;  %v15433_v44 = vld [vmem:[%s19448_s3 + $0x524] ss:$8 sps:$4 sm:$0xff]  }
 0x53a   : > { %v18085_v55 = vpop.f32.mrb[88].mxu0 }
 0x53b   : > { %19502 = vst [vmem:[#allocation52_spill] sm:$0xff] %v18085_v55  ;;  %v18087_v19 = vpop.f32.mrb[89].mxu0 }
 0x53c   : > { %19503 = vst [vmem:[#allocation53_spill] sm:$0xff] %v18087_v19  ;;  %v18089_v8 = vpop.f32.mrb[90].mxu0  ;;  %v7260_v19 = vld [vmem:[#allocation3 + $0x2d8] sm:$0xff] }
 0x53d   : > { %19504 = vst [vmem:[#allocation54_spill] sm:$0xff] %v18089_v8  ;;  %v18094_v35 = vpop.f32.mrb[91].mxu0  ;;  %v18258_v55 = vpack.c.bf16 %v17998_v0, %v7260_v19  ;;  %v7268_v19 = vld [vmem:[#allocation3 + $0x358] sm:$0xff] }
 0x53e   : > { %19505 = vst [vmem:[#allocation55_spill] sm:$0xff] %v18094_v35 }
 0x540   : > { %8438 = vmatmul.mubr.bf16.vlgmr.msra.gmra.mrb[32].mxu1 %v17780_v4  ;;  %v15431_v4 = vld [vmem:[%s19448_s3 + $0x520] ss:$8 sps:$4 sm:$0xff]  }
 0x541   : > { %8447 = vmatprep.mubr.bf16.mxu1 %v17785_v5  ;;  %8599 = vmatpush1.bf16.msra.mxu1 %v15425_v7 }
 0x542   : > { %8600 = vmatprep.subr.bf16.mxu1 %v15430_v63  ;;  %v18107_v11 = vpop.f32.mrb[92].mxu0  ;;  %v15436_v63 = vld [vmem:[%s19448_s3 + $0x534] ss:$8 sps:$4 sm:$0xff]  }
 0x543   : > { %19506 = vst [vmem:[#allocation56_spill] sm:$0xff] %v18107_v11  ;;  %v18109_v35 = vpop.f32.mrb[93].mxu0  ;;  %v7236_v11 = vld [vmem:[#allocation3 + $0x158] sm:$0xff] }
 0x544   : > { %19507 = vst [vmem:[#allocation57_spill] sm:$0xff] %v18109_v35  ;;  %v18111_v8 = vpop.f32.mrb[94].mxu0 }
 0x545   : > { %19508 = vst [vmem:[#allocation58_spill] sm:$0xff] %v18111_v8  ;;  %8601 = vmatpush1.bf16.msra.mxu1 %v15428_v16  ;;  %v18116_v7 = vpop.f32.mrb[95].mxu0  ;;  %v15434_v16 = vld [vmem:[%s19448_s3 + $0x530] ss:$8 sps:$4 sm:$0xff]   ;;  %v15439_v8 = vld [vmem:[%s19448_s3 + $0x544] ss:$8 sps:$4 sm:$0xff]  }
 0x546   : > { %19509 = vst [vmem:[#allocation59_spill] sm:$0xff] %v18116_v7  ;;  %8602 = vmatprep.subr.bf16.mxu1 %v15433_v44  ;;  %v15437_v44 = vld [vmem:[%s19448_s3 + $0x540] ss:$8 sps:$4 sm:$0xff]   ;;  %v7232_v7 = vld [vmem:[#allocation3 + $0x118] sm:$0xff] }
 0x547   : > { %v18136_v35 = vpack.c.bf16 %v17825_v42, %v7232_v7  ;;  %v15443_v42 = vld [vmem:[%s19448_s3 + $0x560] ss:$8 sps:$4 sm:$0xff]  }
 0x548   : > { %8448 = vmatmul.mubr.bf16.gmra.mrb[36].mxu1 %v17806_v40 }
 0x549   : > { %8457 = vmatprep.mubr.bf16.mxu1 %v17811_v3  ;;  %8603 = vmatpush1.bf16.msra.mxu1 %v15431_v4  ;;  %v15442_v4 = vld [vmem:[%s19448_s3 + $0x554] ss:$8 sps:$4 sm:$0xff]  }
 0x54a   : > { %8604 = vmatprep.subr.bf16.mxu1 %v15436_v63  ;;  %v15440_v63 = vld [vmem:[%s19448_s3 + $0x550] ss:$8 sps:$4 sm:$0xff]  }
 0x54d   : > { %8605 = vmatpush1.bf16.msra.mxu1 %v15434_v16  ;;  %v7231_v16 = vld [vmem:[#allocation3 + $0x110] sm:$0xff] }
 0x54e   : > { %8606 = vmatprep.subr.bf16.mxu1 %v15439_v8  ;;  %v15445_v8 = vld [vmem:[%s19448_s3 + $0x564] ss:$8 sps:$4 sm:$0xff]   ;;  %v18150_v7 = vpack.c.bf16 %v17850_v43, %v7231_v16  ;;  %v7240_v16 = vld [vmem:[#allocation3 + $0x198] sm:$0xff] }
 0x54f   : > { %v15451_v43 = vld [vmem:[%s19448_s3 + $0x584] ss:$8 sps:$4 sm:$0xff]  }
 0x550   : > { %8458 = vmatmul.mubr.bf16.gmra.mrb[40].mxu1 %v17834_v50 }
 0x551   : > { %8467 = vmatprep.mubr.bf16.mxu1 %v18136_v35  ;;  %8607 = vmatpush1.bf16.msra.mxu1 %v15437_v44  ;;  %v15448_v44 = vld [vmem:[%s19448_s3 + $0x574] ss:$8 sps:$4 sm:$0xff]  }
 0x552   : > { %8608 = vmatprep.subr.bf16.mxu1 %v15442_v4  ;;  %v18156_v4 = vpack.c.bf16 %v17854_v25, %v7236_v11  ;;  %v15449_v25 = vld [vmem:[%s19448_s3 + $0x580] ss:$8 sps:$4 sm:$0xff]  }
 0x555   : > { %8609 = vmatpush1.bf16.msra.mxu1 %v15440_v63  ;;  %v15446_v63 = vld [vmem:[%s19448_s3 + $0x570] ss:$8 sps:$4 sm:$0xff]  }
 0x556   : > { %8610 = vmatprep.subr.bf16.mxu1 %v15445_v8  ;;  %v7235_v8 = vld [vmem:[#allocation3 + $0x150] sm:$0xff] }
 0x557   : > { %v18170_v11 = vpack.c.bf16 %v17878_v38, %v7235_v8  ;;  %v15457_v38 = vld [vmem:[%s19448_s3 + $0x5a4] ss:$8 sps:$4 sm:$0xff]  }
 0x558   : > { %8468 = vmatmul.mubr.bf16.gmra.mrb[44].mxu1 %v18150_v7 }
 0x559   : > { %8477 = vmatprep.mubr.bf16.mxu1 %v18156_v4  ;;  %8611 = vmatpush1.bf16.msra.mxu1 %v15443_v42  ;;  %v15454_v42 = vld [vmem:[%s19448_s3 + $0x594] ss:$8 sps:$4 sm:$0xff]  }
 0x55a   : > { %8612 = vmatprep.subr.bf16.mxu1 %v15448_v44  ;;  %v18176_v44 = vpack.c.bf16 %v17882_v2, %v7240_v16  ;;  %v15455_v2 = vld [vmem:[%s19448_s3 + $0x5a0] ss:$8 sps:$4 sm:$0xff]   ;;  %v7244_v16 = vld [vmem:[#allocation3 + $0x1d8] sm:$0xff] }
 0x55d   : > { %8613 = vmatpush1.bf16.msra.mxu1 %v15446_v63  ;;  %v15452_v63 = vld [vmem:[%s19448_s3 + $0x590] ss:$8 sps:$4 sm:$0xff]  }
 0x55e   : > { %8614 = vmatprep.subr.bf16.mxu1 %v15451_v43  ;;  %v7239_v43 = vld [vmem:[#allocation3 + $0x190] sm:$0xff] }
 0x55f   : > { %v18190_v8 = vpack.c.bf16 %v17906_v36, %v7239_v43  ;;  %v15463_v36 = vld [vmem:[%s19448_s3 + $0x5c4] ss:$8 sps:$4 sm:$0xff]  }
 0x560   : > { %8478 = vmatmul.mubr.bf16.gmra.mrb[48].mxu1 %v18170_v11 }
 0x561   : > { %8487 = vmatprep.mubr.bf16.mxu1 %v18176_v44  ;;  %8615 = vmatpush1.bf16.msra.mxu1 %v15449_v25  ;;  %v15460_v25 = vld [vmem:[%s19448_s3 + $0x5b4] ss:$8 sps:$4 sm:$0xff]  }
 0x562   : > { %8616 = vmatprep.subr.bf16.mxu1 %v15454_v42  ;;  %v18196_v42 = vpack.c.bf16 %v17910_v10, %v7244_v16  ;;  %v15461_v10 = vld [vmem:[%s19448_s3 + $0x5c0] ss:$8 sps:$4 sm:$0xff]   ;;  %v7248_v16 = vld [vmem:[#allocation3 + $0x218] sm:$0xff] }
 0x565   : > { %8617 = vmatpush1.bf16.msra.mxu1 %v15452_v63  ;;  %v15458_v63 = vld [vmem:[%s19448_s3 + $0x5b0] ss:$8 sps:$4 sm:$0xff]  }
 0x566   : > { %8618 = vmatprep.subr.bf16.mxu1 %v15457_v38  ;;  %v7243_v38 = vld [vmem:[#allocation3 + $0x1d0] sm:$0xff] }
 0x567   : > { %v18210_v43 = vpack.c.bf16 %v17934_v26, %v7243_v38  ;;  %v15469_v26 = vld [vmem:[%s19448_s3 + $0x5e4] ss:$8 sps:$4 sm:$0xff]  }
 0x568   : > { %8488 = vmatmul.mubr.bf16.gmra.mrb[52].mxu1 %v18190_v8 }
 0x569   : > { %8497 = vmatprep.mubr.bf16.mxu1 %v18196_v42  ;;  %8619 = vmatpush1.bf16.msra.mxu1 %v15455_v2  ;;  %v15466_v2 = vld [vmem:[%s19448_s3 + $0x5d4] ss:$8 sps:$4 sm:$0xff]  }
 0x56a   : > { %8620 = vmatprep.subr.bf16.mxu1 %v15460_v25  ;;  %v18216_v25 = vpack.c.bf16 %v17938_v57, %v7248_v16  ;;  %v15467_v57 = vld [vmem:[%s19448_s3 + $0x5e0] ss:$8 sps:$4 sm:$0xff]   ;;  %v7252_v16 = vld [vmem:[#allocation3 + $0x258] sm:$0xff] }
 0x56d   : > { %8621 = vmatpush1.bf16.msra.mxu1 %v15458_v63  ;;  %v15464_v63 = vld [vmem:[%s19448_s3 + $0x5d0] ss:$8 sps:$4 sm:$0xff]  }
 0x56e   : > { %8622 = vmatprep.subr.bf16.mxu1 %v15463_v36  ;;  %v7247_v36 = vld [vmem:[#allocation3 + $0x210] sm:$0xff] }
 0x56f   : > { %v18230_v38 = vpack.c.bf16 %v17962_v51, %v7247_v36  ;;  %v15475_v51 = vld [vmem:[%s19448_s3 + $0x604] ss:$8 sps:$4 sm:$0xff]  }
 0x570   : > { %8498 = vmatmul.mubr.bf16.gmra.mrb[56].mxu1 %v18210_v43 }
 0x571   : > { %8507 = vmatprep.mubr.bf16.mxu1 %v18216_v25  ;;  %8623 = vmatpush1.bf16.msra.mxu1 %v15461_v10  ;;  %v15472_v10 = vld [vmem:[%s19448_s3 + $0x5f4] ss:$8 sps:$4 sm:$0xff]  }
 0x572   : > { %8624 = vmatprep.subr.bf16.mxu1 %v15466_v2  ;;  %v18236_v2 = vpack.c.bf16 %v17966_v58, %v7252_v16  ;;  %v7256_v58 = vld [vmem:[#allocation3 + $0x298] sm:$0xff] }
 0x573   : > { %v18250_v16 = vpack.c.bf16 %v17982_v21, %v7256_v58  ;;  %v7272_v58 = vld [vmem:[#allocation3 + $0x398] sm:$0xff] }
 0x575   : > { %8625 = vmatpush1.bf16.msra.mxu1 %v15464_v63  ;;  %v15470_v63 = vld [vmem:[%s19448_s3 + $0x5f0] ss:$8 sps:$4 sm:$0xff]  }
 0x576   : > { %8626 = vmatprep.subr.bf16.mxu1 %v15469_v26  ;;  %v7251_v26 = vld [vmem:[#allocation3 + $0x250] sm:$0xff] }
 0x577   : > { %v18247_v36 = vpack.c.bf16 %v17978_v61, %v7251_v26  ;;  %v7259_v61 = vld [vmem:[#allocation3 + $0x2d0] sm:$0xff]  ;;  %v18274_v26 = vpack.c.bf16 %v18030_v24, %v7268_v19  ;;  %v7280_v19 = vld [vmem:[#allocation3 + $0x418] sm:$0xff] }
 0x578   : > { %8508 = vmatmul.mubr.bf16.gmra.mrb[60].mxu1 %v18230_v38  ;;  %v18263_v21 = vpack.c.bf16 %v18010_v39, %v7259_v61  ;;  %v7267_v39 = vld [vmem:[#allocation3 + $0x350] sm:$0xff]  ;;  %v7276_v61 = vld [vmem:[#allocation3 + $0x3d8] sm:$0xff] }
 0x579   : > { %8517 = vmatprep.mubr.bf16.mxu1 %v18236_v2  ;;  %8627 = vmatpush1.bf16.msra.mxu1 %v15467_v57  ;;  %v7255_v57 = vld [vmem:[#allocation3 + $0x290] sm:$0xff] }
 0x57a   : > { %8628 = vmatprep.subr.bf16.mxu1 %v15472_v10  ;;  %v18255_v10 = vpack.c.bf16 %v17994_v59, %v7255_v57  ;;  %v7263_v59 = vld [vmem:[#allocation3 + $0x310] sm:$0xff]  ;;  %v18282_v57 = vpack.c.bf16 %v18046_v6, %v7272_v58 }
 0x57b   : > { %v18271_v0 = vpack.c.bf16 %v18026_v41, %v7263_v59  ;;  %v7271_v41 = vld [vmem:[#allocation3 + $0x390] sm:$0xff] }
 0x57c   : > { %v18287_v24 = vpack.c.bf16 %v18058_v60, %v7271_v41  ;;  %v7275_v59 = vld [vmem:[#allocation3 + $0x3d0] sm:$0xff]  ;;  %v7281_v60 = vld [vmem:[#allocation3 + $0x420] sm:$0xff] }
 0x57d   : > { %8629 = vmatpush1.bf16.msra.mxu1 %v15470_v63  ;;  %v7264_v63 = vld [vmem:[#allocation3 + $0x318] sm:$0xff]  ;;  %v18295_v6 = vpack.c.bf16 %v18074_v46, %v7275_v59  ;;  %v7279_v58 = vld [vmem:[#allocation3 + $0x410] sm:$0xff]  ;;  %v15473_v46 = vld [vmem:[%s19448_s3 + $0x600] ss:$8 sps:$4 sm:$0xff]  }
 0x57e   : > { %11289 = vmatprep.subr.bf16.mxu1 %v15475_v51  ;;  %v18266_v51 = vpack.c.bf16 %v18014_v23, %v7264_v63  ;;  %v18279_v23 = vpack.c.bf16 %v18042_v45, %v7267_v39  ;;  %v18290_v63 = vpack.c.bf16 %v18062_v1, %v7276_v61  ;;  %v7282_v45 = vld [vmem:[#allocation3 + $0x428] sm:$0xff]  ;;  %v18301_v1 = vpack.c.bf16 %v7281_v60, %v7279_v58  ;;  %v15478_v41 = vld [vmem:[%s19448_s3 + $0x614] ss:$8 sps:$4 sm:$0xff]   ;;  %v15476_v61 = vld [vmem:[%s19448_s3 + $0x610] ss:$8 sps:$4 sm:$0xff]  }
 0x57f   : > { %v18297_v39 = vpack.c.bf16 %v7282_v45, %v7280_v19  ;;  %v15479_v45 = vld [vmem:[%s19448_s3 + $0x620] ss:$8 sps:$4 sm:$0xff]   ;;  %v15487_v59 = vld [vmem:[%s19448_s3 + $0x644] ss:$8 sps:$4 sm:$0xff]  }
 0x580   : > { %8518 = vmatmul.mubr.bf16.gmra.mrb[0].mxu1 %v18247_v36  ;;  %v15485_v19 = vld [vmem:[%s19448_s3 + $0x640] ss:$8 sps:$4 sm:$0xff]   ;;  %v15493_v60 = vld [vmem:[%s19448_s3 + $0x664] ss:$8 sps:$4 sm:$0xff]  }
 0x581   : > { %8527 = vmatprep.mubr.bf16.mxu1 %v18250_v16  ;;  %v15491_v58 = vld [vmem:[%s19448_s3 + $0x660] ss:$8 sps:$4 sm:$0xff]  }
 0x588   : > { %8528 = vmatmul.mubr.bf16.gmra.mrb[4].mxu1 %v18255_v10 }
 0x589   : > { %8537 = vmatprep.mubr.bf16.mxu1 %v18258_v55 }
 0x590   : > { %8538 = vmatmul.mubr.bf16.gmra.mrb[8].mxu1 %v18263_v21 }
 0x591   : > { %8547 = vmatprep.mubr.bf16.mxu1 %v18266_v51 }
 0x598   : > { %8548 = vmatmul.mubr.bf16.gmra.mrb[12].mxu1 %v18271_v0 }
 0x599   : > { %8557 = vmatprep.mubr.bf16.mxu1 %v18274_v26 }
 0x5a0   : > { %8558 = vmatmul.mubr.bf16.gmra.mrb[16].mxu1 %v18279_v23 }
 0x5a1   : > { %8567 = vmatprep.mubr.bf16.mxu1 %v18282_v57 }
 0x5a8   : > { %8568 = vmatmul.mubr.bf16.gmra.mrb[20].mxu1 %v18287_v24 }
 0x5a9   : > { %8577 = vmatprep.mubr.bf16.mxu1 %v18290_v63 }
 0x5b0   : > { %8578 = vmatmul.mubr.bf16.gmra.mrb[24].mxu1 %v18295_v6 }
 0x5b1   : > { %8587 = vmatprep.mubr.bf16.mxu1 %v18297_v39 }
 0x5b8   : > { %8588 = vmatmul.mubr.bf16.gmra.mrb[28].mxu1 %v18301_v1 }
 0x5b9   : > { %8630 = vmatprep.mubr.bf16.mxu1 %v17785_v5  ;;  %v15481_v5 = vld [vmem:[%s19448_s3 + $0x624] ss:$8 sps:$4 sm:$0xff]  }
 0x5c0   : > { %8631 = vmatmul.mubr.bf16.vlgmr.msra.gmra.mrb[32].mxu1 %v17806_v40  ;;  %v15484_v40 = vld [vmem:[%s19448_s3 + $0x634] ss:$8 sps:$4 sm:$0xff]  }
 0x5c1   : > { %8640 = vmatprep.mubr.bf16.mxu1 %v17811_v3  ;;  %11290 = vmatpush1.bf16.msra.mxu1 %v15473_v46  ;;  %v15482_v3 = vld [vmem:[%s19448_s3 + $0x630] ss:$8 sps:$4 sm:$0xff]   ;;  %v15499_v46 = vld [vmem:[%s19448_s3 + $0x684] ss:$8 sps:$4 sm:$0xff]  }
 0x5c2   : > { %11291 = vmatprep.subr.bf16.mxu1 %v15478_v41  ;;  %v15497_v41 = vld [vmem:[%s19448_s3 + $0x680] ss:$8 sps:$4 sm:$0xff]  }
 0x5c5   : > { %11292 = vmatpush1.bf16.msra.mxu1 %v15476_v61  ;;  %v15505_v61 = vld [vmem:[%s19448_s3 + $0x6a4] ss:$8 sps:$4 sm:$0xff]  }
 0x5c6   : > { %11293 = vmatprep.subr.bf16.mxu1 %v15481_v5  ;;  %v15503_v5 = vld [vmem:[%s19448_s3 + $0x6a0] ss:$8 sps:$4 sm:$0xff]  }
 0x5c8   : > { %8641 = vmatmul.mubr.bf16.gmra.mrb[36].mxu1 %v17834_v50  ;;  %v15488_v50 = vld [vmem:[%s19448_s3 + $0x650] ss:$8 sps:$4 sm:$0xff]  }
 0x5c9   : > { %8650 = vmatprep.mubr.bf16.mxu1 %v18136_v35  ;;  %11294 = vmatpush1.bf16.msra.mxu1 %v15479_v45  ;;  %v15490_v35 = vld [vmem:[%s19448_s3 + $0x654] ss:$8 sps:$4 sm:$0xff]   ;;  %v15511_v45 = vld [vmem:[%s19448_s3 + $0x6c4] ss:$8 sps:$4 sm:$0xff]  }
 0x5ca   : > { %11295 = vmatprep.subr.bf16.mxu1 %v15484_v40  ;;  %v15509_v40 = vld [vmem:[%s19448_s3 + $0x6c0] ss:$8 sps:$4 sm:$0xff]  }
 0x5cd   : > { %11296 = vmatpush1.bf16.msra.mxu1 %v15482_v3  ;;  %v15517_v3 = vld [vmem:[%s19448_s3 + $0x6e4] ss:$8 sps:$4 sm:$0xff]  }
 0x5ce   : > { %11297 = vmatprep.subr.bf16.mxu1 %v15487_v59  ;;  %v15515_v59 = vld [vmem:[%s19448_s3 + $0x6e0] ss:$8 sps:$4 sm:$0xff]  }
 0x5d0   : > { %8651 = vmatmul.mubr.bf16.gmra.mrb[40].mxu1 %v18150_v7  ;;  %v15496_v7 = vld [vmem:[%s19448_s3 + $0x674] ss:$8 sps:$4 sm:$0xff]  }
 0x5d1   : > { %8660 = vmatprep.mubr.bf16.mxu1 %v18156_v4  ;;  %11298 = vmatpush1.bf16.msra.mxu1 %v15485_v19  ;;  %v15494_v4 = vld [vmem:[%s19448_s3 + $0x670] ss:$8 sps:$4 sm:$0xff]   ;;  %v15523_v19 = vld [vmem:[%s19448_s3 + $0x704] ss:$8 sps:$4 sm:$0xff]  }
 0x5d2   : > { %11299 = vmatprep.subr.bf16.mxu1 %v15490_v35  ;;  %v15526_v35 = vld [vmem:[%s19448_s3 + $0x714] ss:$8 sps:$4 sm:$0xff]  }
 0x5d5   : > { %11300 = vmatpush1.bf16.msra.mxu1 %v15488_v50 }
 0x5d6   : > { %11301 = vmatprep.subr.bf16.mxu1 %v15493_v60 }
 0x5d8   : > { %8661 = vmatmul.mubr.bf16.gmra.mrb[44].mxu1 %v18170_v11  ;;  %v15502_v11 = vld [vmem:[%s19448_s3 + $0x694] ss:$8 sps:$4 sm:$0xff]  }
 0x5d9   : > { %8670 = vmatprep.mubr.bf16.mxu1 %v18176_v44  ;;  %11302 = vmatpush1.bf16.msra.mxu1 %v15491_v58  ;;  %v15500_v44 = vld [vmem:[%s19448_s3 + $0x690] ss:$8 sps:$4 sm:$0xff]  }
 0x5da   : > { %11303 = vmatprep.subr.bf16.mxu1 %v15496_v7  ;;  %v8996_v7 = vld [vmem:[#allocation3 + $0x98] sm:$0xfe] }
 0x5dd   : > { %11304 = vmatpush1.bf16.msra.mxu1 %v15494_v4 }
 0x5de   : > { %11305 = vmatprep.subr.bf16.mxu1 %v15499_v46 }
 0x5e0   : > { %8671 = vmatmul.mubr.bf16.gmra.mrb[48].mxu1 %v18190_v8  ;;  %v15508_v8 = vld [vmem:[%s19448_s3 + $0x6b4] ss:$8 sps:$4 sm:$0xff]  }
 0x5e1   : > { %8680 = vmatprep.mubr.bf16.mxu1 %v18196_v42  ;;  %11306 = vmatpush1.bf16.msra.mxu1 %v15497_v41  ;;  %v15506_v42 = vld [vmem:[%s19448_s3 + $0x6b0] ss:$8 sps:$4 sm:$0xff]  }
 0x5e2   : > { %11307 = vmatprep.subr.bf16.mxu1 %v15502_v11  ;;  %v15524_v11 = vld [vmem:[%s19448_s3 + $0x710] ss:$8 sps:$4 sm:$0xff]  }
 0x5e5   : > { %11308 = vmatpush1.bf16.msra.mxu1 %v15500_v44  ;;  %v9199_v44 = vrot.slane %v8996_v7, 1  ;;  %v9010_v7 = vld [vmem:[#allocation3 + $0x128] sm:$0xff] }
 0x5e6   : > { %11309 = vmatprep.subr.bf16.mxu1 %v15505_v61  ;;  %v15529_v61 = vld [vmem:[%s19448_s3 + $0x724] ss:$8 sps:$4 sm:$0xff]  }
 0x5e8   : > { %8681 = vmatmul.mubr.bf16.gmra.mrb[52].mxu1 %v18210_v43  ;;  %v15514_v43 = vld [vmem:[%s19448_s3 + $0x6d4] ss:$8 sps:$4 sm:$0xff]  }
 0x5e9   : > { %8690 = vmatprep.mubr.bf16.mxu1 %v18216_v25  ;;  %11310 = vmatpush1.bf16.msra.mxu1 %v15503_v5  ;;  %v15512_v25 = vld [vmem:[%s19448_s3 + $0x6d0] ss:$8 sps:$4 sm:$0xff]  }
 0x5ea   : > { %11311 = vmatprep.subr.bf16.mxu1 %v15508_v8 }
 0x5ed   : > { %11312 = vmatpush1.bf16.msra.mxu1 %v15506_v42 }
 0x5ee   : > { %11313 = vmatprep.subr.bf16.mxu1 %v15511_v45 }
 0x5f0   : > { %8691 = vmatmul.mubr.bf16.gmra.mrb[56].mxu1 %v18230_v38  ;;  %v15520_v38 = vld [vmem:[%s19448_s3 + $0x6f4] ss:$8 sps:$4 sm:$0xff]  }
 0x5f1   : > { %8700 = vmatprep.mubr.bf16.mxu1 %v18236_v2  ;;  %11314 = vmatpush1.bf16.msra.mxu1 %v15509_v40  ;;  %v15518_v2 = vld [vmem:[%s19448_s3 + $0x6f0] ss:$8 sps:$4 sm:$0xff]   ;;  %v8997_v40 = vld [vmem:[#allocation3 + $0xa0] sm:$0xff] }
 0x5f2   : > { %11315 = vmatprep.subr.bf16.mxu1 %v15514_v43  ;;  %v8999_v43 = vld [vmem:[#allocation3 + $0xb0] sm:$0x1] }
 0x5f5   : > { %11316 = vmatpush1.bf16.msra.mxu1 %v15512_v25  ;;  %v15527_v25 = vld [vmem:[%s19448_s3 + $0x720] ss:$8 sps:$4 sm:$0xff]  }
 0x5f6   : > { %11317 = vmatprep.subr.bf16.mxu1 %v15517_v3  ;;  %v9004_v3 = vld [vmem:[#allocation3 + $0xe8] sm:$0xff] }
 0x5f8   : > { %8701 = vmatmul.mubr.bf16.gmra.mrb[60].mxu1 %v18247_v36  ;;  %v8992_v36 = vld [vmem:[#allocation3 + $0x68] sm:$0xff] }
 0x5f9   : > { %8710 = vmatprep.mubr.bf16.mxu1 %v18250_v16  ;;  %11318 = vmatpush1.bf16.msra.mxu1 %v15515_v59  ;;  %v8994_v16 = vld [vmem:[#allocation3 + $0x78] sm:$0x1] }
 0x5fa   : > { %11319 = vmatprep.subr.bf16.mxu1 %v15520_v38  ;;  %v9006_v59 = vld [vmem:[#allocation3 + $0xf8] sm:$0x1] }
 0x5fd   : > { %11320 = vmatpush1.bf16.msra.mxu1 %v15518_v2  ;;  %v8995_v2 = vld [vmem:[#allocation3 + $0x90] sm:$0xfe] }
 0x5fe   : > { %11482 = vmatprep.subr.bf16.mxu1 %v15523_v19  ;;  %v15532_v19 = vld [vmem:[%s19448_s3 + $0x734] ss:$8 sps:$4 sm:$0xff]  }
 0x600   : > { %8711 = vmatmul.mubr.bf16.gmra.mrb[0].mxu1 %v18255_v10  ;;  %v8990_v10 = vld [vmem:[#allocation3 + $0x58] sm:$0xfe] }
 0x601   : > { %8720 = vmatprep.mubr.bf16.mxu1 %v18258_v55  ;;  %v19510_v55 = vmov 0.0|0.0  }
 0x608   : > { %8721 = vmatmul.mubr.bf16.gmra.mrb[4].mxu1 %v18263_v21  ;;  %v18432_v21 = vrot.slane %v8992_v36, 1 }
 0x609   : > { %8730 = vmatprep.mubr.bf16.mxu1 %v18266_v51  ;;  %v9194_v51 = vrot.slane %v8994_v16, 1  ;;  %v18472_v16 = vrot.slane %v8997_v40, 1  ;;  %v18504_v40 = vrot.slane %v9010_v7, 1 }
 0x610   : > { %8731 = vmatmul.mubr.bf16.gmra.mrb[8].mxu1 %v18271_v0  ;;  %v9189_v0 = vrot.slane %v8990_v10, 1  ;;  %v9202_v10 = vrot.slane %v8999_v43, 1 }
 0x611   : > { %8740 = vmatprep.mubr.bf16.mxu1 %v18274_v26 }
 0x612   : > { %v9191_v26 = vsel %vm9175_vm6, %v9189_v0, %v18432_v21  ;;  %v18476_v0 = vrot.slane %v9004_v3, 1  ;;  %v15536_v3 = vld [vmem:[%s19448_s3 + $0x750] ss:$8 sps:$4 sm:$0xff]  }
 0x618   : > { %8741 = vmatmul.mubr.bf16.gmra.mrb[12].mxu1 %v18279_v23  ;;  %v9195_v23 = vsel %vm9175_vm6, %v18432_v21, %v9194_v51  ;;  %v9002_v51 = vld [vmem:[#allocation3 + $0xd8] sm:$0xfe] }
 0x619   : > { %8750 = vmatprep.mubr.bf16.mxu1 %v18282_v57  ;;  %v8991_v57 = vld [vmem:[#allocation3 + $0x60] sm:$0xff]  ;;  %v13770_v50 = vpack.c.bf16 %v9195_v23, %v9191_v26  ;;  %v9214_v26 = vrot.slane %v9006_v59, 1  ;;  %v9196_v23 = vrot.slane %v8995_v2, 1 }
 0x61a   : > { %v18445_v60 = vrot.slane %v8991_v57, 1  ;;  %v15530_v57 = vld [vmem:[%s19448_s3 + $0x730] ss:$8 sps:$4 sm:$0xff]  }
 0x620   : > { %8751 = vmatmul.mubr.bf16.gmra.mrb[16].mxu1 %v18287_v24  ;;  %v8993_v24 = vld [vmem:[#allocation3 + $0x70] sm:$0x1] }
 0x621   : > { %8760 = vmatprep.mubr.bf16.mxu1 %v18290_v63  ;;  %v15521_v63 = vld [vmem:[%s19448_s3 + $0x700] ss:$8 sps:$4 sm:$0xff]   ;;  %v9192_v58 = vrot.slane %v8993_v24, 1  ;;  %v9209_v24 = vrot.slane %v9002_v51, 1 }
 0x622   : > { %v9009_v51 = vld [vmem:[#allocation3 + $0x120] sm:$0xff] }
 0x623   : > { %v9193_v8 = vsel %vm9175_vm6, %v18445_v60, %v9192_v58  ;;  %v9005_v58 = vld [vmem:[#allocation3 + $0xf0] sm:$0x1] }
 0x628   : > { %8761 = vmatmul.mubr.bf16.gmra.mrb[20].mxu1 %v18295_v6  ;;  %v8998_v6 = vld [vmem:[#allocation3 + $0xa8] sm:$0xff] }
 0x629   : > { %8770 = vmatprep.mubr.bf16.mxu1 %v18297_v39  ;;  %v9000_v39 = vld [vmem:[#allocation3 + $0xb8] sm:$0x1]  ;;  %v18448_v4 = vrot.slane %v8998_v6, 1  ;;  %v9198_v6 = vsel %vm9175_vm6, %v9196_v23, %v18472_v16  ;;  %v9016_v23 = vld [vmem:[#allocation3 + $0x168] sm:$0xff] }
 0x62a   : > { %v9204_v46 = vrot.slane %v9000_v39, 1  ;;  %v9203_v39 = vsel %vm9175_vm6, %v18472_v16, %v9202_v10  ;;  %v18532_v7 = vrot.slane %v9016_v23, 1 }
 0x62b   : > { %v9201_v42 = vsel %vm9175_vm6, %v9199_v44, %v18448_v4  ;;  %v9001_v44 = vld [vmem:[#allocation3 + $0xd0] sm:$0xfe] }
 0x62c   : > { %v9205_v45 = vsel %vm9175_vm6, %v18448_v4, %v9204_v46  ;;  %v9012_v46 = vld [vmem:[#allocation3 + $0x138] sm:$0x1] }
 0x62d   : > { %v13776_v36 = vpack.c.bf16 %v9205_v45, %v9201_v42  ;;  %v9212_v42 = vrot.slane %v9005_v58, 1  ;;  %v9008_v45 = vld [vmem:[#allocation3 + $0x118] sm:$0xfe]  ;;  %v9224_v43 = vrot.slane %v9012_v46, 1 }
 0x62e   : > { %v9219_v59 = vrot.slane %v9008_v45, 1  ;;  %v9014_v58 = vld [vmem:[#allocation3 + $0x158] sm:$0xfe] }
 0x62f   : > { %v9225_v10 = vsel %vm9175_vm6, %v18504_v40, %v9224_v43 }
 0x630   : > { %8771 = vmatmul.mubr.bf16.gmra.mrb[24].mxu1 %v18301_v1  ;;  %v8989_v1 = vld [vmem:[#allocation3 + $0x50] sm:$0xfe] }
 0x631   : > { %8780 = vmatprep.mubr.bf16.mxu1 %v19510_v55  ;;  %v9186_v41 = vrot.slane %v8989_v1, 1  ;;  %v9211_v1 = vsel %vm9175_vm6, %v9209_v24, %v18476_v0  ;;  %v15539_v24 = vld [vmem:[%s19448_s3 + $0x760] ss:$8 sps:$4 sm:$0xff]  }
 0x633   : > { %v9188_v5 = vsel %vm9175_vm6, %v9186_v41, %v18445_v60  ;;  %v15533_v41 = vld [vmem:[%s19448_s3 + $0x740] ss:$8 sps:$4 sm:$0xff]  }
 0x634   : > { %v13773_v38 = vpack.c.bf16 %v9193_v8, %v9188_v5 }
 0x638   : > { %8781 = vmatmul.mubr.bf16.gmra.mrb[28].mxu1 %v19510_v55 }
 0x639   : > { %11321 = vmatprep.mubr.bf16.mxu1 %v19510_v55 }
 0x640   : > { %11322 = vmatmul.mubr.bf16.vlgmr.msra.gmra.mrb[32].mxu1 %v19510_v55 }
 0x641   : > { %13771 = vmatprep.mubr.msk.bf16.mxu1 %vm16412_vm4, %v13770_v50  ;;  %11483 = vmatpush1.bf16.msra.mxu1 %v15521_v63  ;;  %v15535_v63 = vld [vmem:[%s19448_s3 + $0x744] ss:$8 sps:$4 sm:$0xff]  }
 0x642   : > { %11484 = vmatprep.subr.bf16.mxu1 %v15526_v35  ;;  %v9215_v35 = vsel %vm9175_vm6, %v18476_v0, %v9214_v26  ;;  %v9003_v50 = vld [vmem:[#allocation3 + $0xe0] sm:$0xff]  ;;  %v9011_v26 = vld [vmem:[#allocation3 + $0x130] sm:$0x1] }
 0x643   : > { %v13782_v5 = vpack.c.bf16 %v9215_v35, %v9211_v1  ;;  %v18500_v8 = vrot.slane %v9003_v50, 1  ;;  %v18528_v35 = vrot.slane %v9009_v51, 1  ;;  %v9222_v50 = vrot.slane %v9011_v26, 1 }
 0x645   : > { %11485 = vmatpush1.bf16.msra.mxu1 %v15524_v11  ;;  %v13779_v11 = vpack.c.bf16 %v9203_v39, %v9198_v6  ;;  %v9007_v6 = vld [vmem:[#allocation3 + $0x110] sm:$0xfe] }
 0x646   : > { %11486 = vmatprep.subr.bf16.mxu1 %v15529_v61  ;;  %v15538_v61 = vld [vmem:[%s19448_s3 + $0x754] ss:$8 sps:$4 sm:$0xff]  }
 0x647   : > { %v15544_v39 = vld [vmem:[%s19448_s3 + $0x774] ss:$8 sps:$4 sm:$0xff]  }
 0x648   : > { %13774 = vmatmul.mubr.msk.bf16.gmra.mrb[36].mxu1 %vm16412_vm4, %v13773_v38  ;;  %v15541_v38 = vld [vmem:[%s19448_s3 + $0x764] ss:$8 sps:$4 sm:$0xff]  }
 0x649   : > { %13777 = vmatprep.mubr.msk.bf16.mxu1 %vm16412_vm4, %v13776_v36  ;;  %11487 = vmatpush1.bf16.msra.mxu1 %v15527_v25  ;;  %v9206_v25 = vrot.slane %v9001_v44, 1  ;;  %v9221_v36 = vsel %vm9175_vm6, %v9219_v59, %v18504_v40  ;;  %v9229_v44 = vrot.slane %v9014_v58, 1  ;;  %v9022_v59 = vld [vmem:[#allocation3 + $0x1a8] sm:$0xff] }
 0x64a   : > { %11488 = vmatprep.subr.bf16.mxu1 %v15532_v19  ;;  %v9213_v19 = vsel %vm9175_vm6, %v18500_v8, %v9212_v42  ;;  %v13788_v1 = vpack.c.bf16 %v9225_v10, %v9221_v36  ;;  %v9223_v42 = vsel %vm9175_vm6, %v18528_v35, %v9222_v50  ;;  %v9013_v36 = vld [vmem:[#allocation3 + $0x150] sm:$0xfe]  ;;  %v15553_v50 = vld [vmem:[%s19448_s3 + $0x7a4] ss:$8 sps:$4 sm:$0xff]  }
 0x64b   : > { %v9208_v2 = vsel %vm9175_vm6, %v9206_v25, %v18500_v8  ;;  %v9231_v45 = vsel %vm9175_vm6, %v9229_v44, %v18532_v7  ;;  %v9015_v25 = vld [vmem:[#allocation3 + $0x160] sm:$0xff]  ;;  %v15550_v10 = vld [vmem:[%s19448_s3 + $0x794] ss:$8 sps:$4 sm:$0xff]  }
 0x64c   : > { %v18556_v26 = vrot.slane %v9015_v25, 1  ;;  %v9021_v44 = vld [vmem:[#allocation3 + $0x1a0] sm:$0xff]  ;;  %v9019_v25 = vld [vmem:[#allocation3 + $0x190] sm:$0xfe] }
 0x64d   : > { %11489 = vmatpush1.bf16.msra.mxu1 %v15530_v57  ;;  %v9018_v57 = vld [vmem:[#allocation3 + $0x178] sm:$0x1] }
 0x64e   : > { %11490 = vmatprep.subr.bf16.mxu1 %v15535_v63  ;;  %v13785_v63 = vpack.c.bf16 %v9213_v19, %v9208_v2  ;;  %v9234_v46 = vrot.slane %v9018_v57, 1  ;;  %v15545_v2 = vld [vmem:[%s19448_s3 + $0x780] ss:$8 sps:$4 sm:$0xff]   ;;  %v9020_v57 = vld [vmem:[#allocation3 + $0x198] sm:$0xfe] }
 0x650   : > { %13780 = vmatmul.mubr.msk.bf16.gmra.mrb[40].mxu1 %vm16412_vm4, %v13779_v11  ;;  %v15542_v11 = vld [vmem:[%s19448_s3 + $0x770] ss:$8 sps:$4 sm:$0xff]   ;;  %v9235_v43 = vsel %vm9175_vm6, %v18532_v7, %v9234_v46 }
 0x651   : > { %13783 = vmatprep.mubr.msk.bf16.mxu1 %vm16412_vm4, %v13782_v5  ;;  %11491 = vmatpush1.bf16.msra.mxu1 %v15533_v41  ;;  %v9216_v41 = vrot.slane %v9007_v6, 1  ;;  %v13794_v51 = vpack.c.bf16 %v9235_v43, %v9231_v45  ;;  %v9226_v6 = vrot.slane %v9013_v36, 1  ;;  %v15551_v45 = vld [vmem:[%s19448_s3 + $0x7a0] ss:$8 sps:$4 sm:$0xff]  }
 0x652   : > { %11492 = vmatprep.subr.bf16.mxu1 %v15538_v61  ;;  %v15547_v61 = vld [vmem:[%s19448_s3 + $0x784] ss:$8 sps:$4 sm:$0xff]  }
 0x653   : > { %v9218_v5 = vsel %vm9175_vm6, %v9216_v41, %v18528_v35  ;;  %v9228_v58 = vsel %vm9175_vm6, %v9226_v6, %v18556_v26 }
 0x654   : > { %v13791_v19 = vpack.c.bf16 %v9223_v42, %v9218_v5  ;;  %v9028_v5 = vld [vmem:[#allocation3 + $0x1e8] sm:$0xff]  ;;  %v9030_v42 = vld [vmem:[#allocation3 + $0x1f8] sm:$0x1] }
 0x655   : > { %11493 = vmatpush1.bf16.msra.mxu1 %v15536_v3  ;;  %v9017_v3 = vld [vmem:[#allocation3 + $0x170] sm:$0x1]  ;;  %v18588_v36 = vrot.slane %v9028_v5, 1  ;;  %v9025_v5 = vld [vmem:[#allocation3 + $0x1d0] sm:$0xfe] }
 0x656   : > { %11494 = vmatprep.subr.bf16.mxu1 %v15541_v38  ;;  %v9024_v38 = vld [vmem:[#allocation3 + $0x1b8] sm:$0x1]  ;;  %v9232_v23 = vrot.slane %v9017_v3, 1  ;;  %v15556_v3 = vld [vmem:[%s19448_s3 + $0x7b4] ss:$8 sps:$4 sm:$0xff]  }
 0x658   : > { %13786 = vmatmul.mubr.msk.bf16.gmra.mrb[44].mxu1 %vm16412_vm4, %v13785_v63  ;;  %v9244_v63 = vrot.slane %v9024_v38, 1  ;;  %v9233_v46 = vsel %vm9175_vm6, %v18556_v26, %v9232_v23  ;;  %v18584_v38 = vrot.slane %v9021_v44, 1  ;;  %v15554_v23 = vld [vmem:[%s19448_s3 + $0x7b0] ss:$8 sps:$4 sm:$0xff]   ;;  %v15557_v44 = vld [vmem:[%s19448_s3 + $0x7c0] ss:$8 sps:$4 sm:$0xff]  }
 0x659   : > { %13789 = vmatprep.mubr.msk.bf16.mxu1 %vm16412_vm4, %v13788_v1  ;;  %11495 = vmatpush1.bf16.msra.mxu1 %v15539_v24  ;;  %v18560_v24 = vrot.slane %v9022_v59, 1  ;;  %v9239_v1 = vrot.slane %v9020_v57, 1  ;;  %v13797_v43 = vpack.c.bf16 %v9233_v46, %v9228_v58  ;;  %v9027_v58 = vld [vmem:[#allocation3 + $0x1e0] sm:$0xff]  ;;  %v9029_v46 = vld [vmem:[#allocation3 + $0x1f0] sm:$0x1] }
 0x65a   : > { %11496 = vmatprep.subr.bf16.mxu1 %v15544_v39  ;;  %v15548_v39 = vld [vmem:[%s19448_s3 + $0x790] ss:$8 sps:$4 sm:$0xff]  }
 0x65b   : > { %v9241_v41 = vsel %vm9175_vm6, %v9239_v1, %v18560_v24 }
 0x65d   : > { %11497 = vmatpush1.bf16.msra.mxu1 %v15542_v11  ;;  %v9245_v11 = vsel %vm9175_vm6, %v18560_v24, %v9244_v63  ;;  %v15559_v63 = vld [vmem:[%s19448_s3 + $0x7c4] ss:$8 sps:$4 sm:$0xff]  }
 0x65e   : > { %11498 = vmatprep.subr.bf16.mxu1 %v15547_v61  ;;  %v9023_v61 = vld [vmem:[#allocation3 + $0x1b0] sm:$0x1]  ;;  %v13800_v59 = vpack.c.bf16 %v9245_v11, %v9241_v41  ;;  %v9034_v41 = vld [vmem:[#allocation3 + $0x228] sm:$0xff]  ;;  %v9036_v11 = vld [vmem:[#allocation3 + $0x238] sm:$0x1] }
 0x660   : > { %13792 = vmatmul.mubr.msk.bf16.gmra.mrb[48].mxu1 %vm16412_vm4, %v13791_v19  ;;  %v9026_v19 = vld [vmem:[#allocation3 + $0x1d8] sm:$0xfe] }
 0x661   : > { %13795 = vmatprep.mubr.msk.bf16.mxu1 %vm16412_vm4, %v13794_v51  ;;  %11499 = vmatpush1.bf16.msra.mxu1 %v15545_v2  ;;  %v9242_v2 = vrot.slane %v9023_v61, 1  ;;  %v9236_v51 = vrot.slane %v9019_v25, 1  ;;  %v9249_v57 = vrot.slane %v9026_v19, 1  ;;  %v9252_v25 = vrot.slane %v9029_v46, 1  ;;  %v9042_v46 = vld [vmem:[#allocation3 + $0x278] sm:$0x1] }
 0x662   : > { %11500 = vmatprep.subr.bf16.mxu1 %v15550_v10  ;;  %v9254_v10 = vrot.slane %v9030_v42, 1  ;;  %v15562_v42 = vld [vmem:[%s19448_s3 + $0x7d4] ss:$8 sps:$4 sm:$0xff]   ;;  %v9246_v19 = vrot.slane %v9025_v5, 1 }
 0x663   : > { %v9238_v6 = vsel %vm9175_vm6, %v9236_v51, %v18584_v38  ;;  %v9251_v1 = vsel %vm9175_vm6, %v9249_v57, %v18588_v36 }
 0x665   : > { %11501 = vmatpush1.bf16.msra.mxu1 %v15548_v39  ;;  %v9243_v39 = vsel %vm9175_vm6, %v18584_v38, %v9242_v2  ;;  %v9264_v2 = vrot.slane %v9036_v11, 1 }
 0x666   : > { %11502 = vmatprep.subr.bf16.mxu1 %v15553_v50  ;;  %v9255_v50 = vsel %vm9175_vm6, %v18588_v36, %v9254_v10  ;;  %v13803_v61 = vpack.c.bf16 %v9243_v39, %v9238_v6  ;;  %v15560_v10 = vld [vmem:[%s19448_s3 + $0x7d0] ss:$8 sps:$4 sm:$0xff]  }
 0x668   : > { %13798 = vmatmul.mubr.msk.bf16.gmra.mrb[52].mxu1 %vm16412_vm4, %v13797_v43  ;;  %v18612_v43 = vrot.slane %v9027_v58, 1  ;;  %v9040_v58 = vld [vmem:[#allocation3 + $0x268] sm:$0xff] }
 0x669   : > { %13801 = vmatprep.mubr.msk.bf16.mxu1 %vm16412_vm4, %v13800_v59  ;;  %11503 = vmatpush1.bf16.msra.mxu1 %v15551_v45  ;;  %v13806_v45 = vpack.c.bf16 %v9255_v50, %v9251_v1  ;;  %v18616_v59 = vrot.slane %v9034_v41, 1  ;;  %v9033_v1 = vld [vmem:[#allocation3 + $0x220] sm:$0xff]  ;;  %v9035_v50 = vld [vmem:[#allocation3 + $0x230] sm:$0x1] }
 0x66a   : > { %11504 = vmatprep.subr.bf16.mxu1 %v15556_v3  ;;  %v9032_v3 = vld [vmem:[#allocation3 + $0x218] sm:$0xfe]  ;;  %v9248_v57 = vsel %vm9175_vm6, %v9246_v19, %v18612_v43  ;;  %v15563_v41 = vld [vmem:[%s19448_s3 + $0x7e0] ss:$8 sps:$4 sm:$0xff]  }
 0x66b   : > { %v9259_v51 = vrot.slane %v9032_v3, 1  ;;  %v9265_v39 = vsel %vm9175_vm6, %v18616_v59, %v9264_v2  ;;  %v18644_v3 = vrot.slane %v9040_v58, 1  ;;  %v9274_v2 = vrot.slane %v9042_v46, 1  ;;  %v9046_v58 = vld [vmem:[#allocation3 + $0x2a8] sm:$0xff]  ;;  %v9048_v46 = vld [vmem:[#allocation3 + $0x2b8] sm:$0x1] }
 0x66d   : > { %11505 = vmatpush1.bf16.msra.mxu1 %v15554_v23  ;;  %v15565_v23 = vld [vmem:[%s19448_s3 + $0x7e4] ss:$8 sps:$4 sm:$0xff]   ;;  %v9261_v6 = vsel %vm9175_vm6, %v9259_v51, %v18616_v59 }
 0x66e   : > { %11506 = vmatprep.subr.bf16.mxu1 %v15559_v63  ;;  %v9253_v63 = vsel %vm9175_vm6, %v18612_v43, %v9252_v25  ;;  %v13812_v5 = vpack.c.bf16 %v9265_v39, %v9261_v6  ;;  %v9038_v25 = vld [vmem:[#allocation3 + $0x258] sm:$0xfe]  ;;  %v9275_v39 = vsel %vm9175_vm6, %v18644_v3, %v9274_v2 }
 0x66f   : > { %v13809_v11 = vpack.c.bf16 %v9253_v63, %v9248_v57  ;;  %v9269_v51 = vrot.slane %v9038_v25, 1  ;;  %v9044_v25 = vld [vmem:[#allocation3 + $0x298] sm:$0xfe] }
 0x670   : > { %13804 = vmatmul.mubr.msk.bf16.gmra.mrb[56].mxu1 %vm16412_vm4, %v13803_v61  ;;  %v15568_v61 = vld [vmem:[%s19448_s3 + $0x7f4] ss:$8 sps:$4 sm:$0xff]  }
 0x671   : > { %13807 = vmatprep.mubr.msk.bf16.mxu1 %vm16412_vm4, %v13806_v45  ;;  %11507 = vmatpush1.bf16.msra.mxu1 %v15557_v44  ;;  %v9031_v44 = vld [vmem:[#allocation3 + $0x210] sm:$0xfe]  ;;  %v9262_v45 = vrot.slane %v9035_v50, 1  ;;  %v9271_v6 = vsel %vm9175_vm6, %v9269_v51, %v18644_v3  ;;  %v9041_v50 = vld [vmem:[#allocation3 + $0x270] sm:$0x1]  ;;  %v9279_v51 = vrot.slane %v9044_v25, 1 }
 0x672   : > { %11508 = vmatprep.subr.bf16.mxu1 %v15562_v42  ;;  %v18640_v42 = vrot.slane %v9033_v1, 1  ;;  %v9256_v19 = vrot.slane %v9031_v44, 1  ;;  %v9039_v1 = vld [vmem:[#allocation3 + $0x260] sm:$0xff]  ;;  %v13818_v44 = vpack.c.bf16 %v9275_v39, %v9271_v6  ;;  %v9047_v39 = vld [vmem:[#allocation3 + $0x2b0] sm:$0x1] }
 0x673   : > { %v9045_v6 = vld [vmem:[#allocation3 + $0x2a0] sm:$0xff]  ;;  %v9050_v25 = vld [vmem:[#allocation3 + $0x2d8] sm:$0xfe] }
 0x674   : > { %v9258_v57 = vsel %vm9175_vm6, %v9256_v19, %v18640_v42  ;;  %v9263_v63 = vsel %vm9175_vm6, %v18640_v42, %v9262_v45  ;;  %v18666_v45 = vrot.slane %v9046_v58, 1  ;;  %v9284_v19 = vrot.slane %v9048_v46, 1  ;;  %v9043_v46 = vld [vmem:[#allocation3 + $0x290] sm:$0xfe] }
 0x675   : > { %11509 = vmatpush1.bf16.msra.mxu1 %v15560_v10  ;;  %v15566_v10 = vld [vmem:[%s19448_s3 + $0x7f0] ss:$8 sps:$4 sm:$0xff]  }
 0x676   : > { %11510 = vmatprep.subr.bf16.mxu1 %v15565_v23  ;;  %v15571_v23 = vld [vmem:[%s19448_s3 + $0x804] ss:$8 sps:$4 sm:$0xff]  }
 0x678   : > { %13810 = vmatmul.mubr.msk.bf16.gmra.mrb[60].mxu1 %vm16412_vm4, %v13809_v11  ;;  %v9037_v11 = vld [vmem:[#allocation3 + $0x250] sm:$0xfe] }
 0x679   : > { %13813 = vmatprep.mubr.msk.bf16.mxu1 %vm16412_vm4, %v13812_v5  ;;  %11511 = vmatpush1.bf16.msra.mxu1 %v15563_v41  ;;  %v13815_v41 = vpack.c.bf16 %v9263_v63, %v9258_v57  ;;  %v9272_v5 = vrot.slane %v9041_v50, 1  ;;  %v9266_v2 = vrot.slane %v9037_v11, 1  ;;  %v9281_v57 = vsel %vm9175_vm6, %v9279_v51, %v18666_v45  ;;  %v9054_v50 = vld [vmem:[#allocation3 + $0x2f8] sm:$0x1] }
 0x67a   : > { %11512 = vmatprep.subr.bf16.mxu1 %v15568_v61  ;;  %v18662_v61 = vrot.slane %v9039_v1, 1  ;;  %v9285_v63 = vsel %vm9175_vm6, %v18666_v45, %v9284_v19  ;;  %v9052_v1 = vld [vmem:[#allocation3 + $0x2e8] sm:$0xff]  ;;  %v18678_v11 = vrot.slane %v9045_v6, 1  ;;  %v9276_v19 = vrot.slane %v9043_v46, 1  ;;  %v9051_v6 = vld [vmem:[#allocation3 + $0x2e0] sm:$0xff] }
 0x67b   : > { %v9289_v51 = vrot.slane %v9050_v25, 1  ;;  %v18694_v25 = vrot.slane %v9051_v6, 1  ;;  %v9057_v6 = vld [vmem:[#allocation3 + $0x320] sm:$0xff] }
 0x67d   : > { %11513 = vmatpush1.bf16.msra.mxu1 %v15566_v10  ;;  %v9268_v10 = vsel %vm9175_vm6, %v9266_v2, %v18662_v61  ;;  %v9294_v2 = vrot.slane %v9054_v50, 1  ;;  %v9060_v50 = vld [vmem:[#allocation3 + $0x338] sm:$0x1] }
 0x67e   : > { %11675 = vmatprep.subr.bf16.mxu1 %v15571_v23  ;;  %v9273_v23 = vsel %vm9175_vm6, %v18662_v61, %v9272_v5  ;;  %v18682_v5 = vrot.slane %v9052_v1, 1  ;;  %v9058_v1 = vld [vmem:[#allocation3 + $0x328] sm:$0xff] }
 0x67f   : > { %v13821_v58 = vpack.c.bf16 %v9273_v23, %v9268_v10  ;;  %v9278_v10 = vsel %vm9175_vm6, %v9276_v19, %v18678_v11  ;;  %v9056_v19 = vld [vmem:[#allocation3 + $0x318] sm:$0xfe] }
 0x680   : > { %13816 = vmatmul.mubr.msk.bf16.gmra.mrb[0].mxu1 %vm16412_vm4, %v13815_v41  ;;  %v13824_v41 = vpack.c.bf16 %v9285_v63, %v9281_v57  ;;  %v9291_v57 = vsel %vm9175_vm6, %v9289_v51, %v18682_v5  ;;  %v9295_v63 = vsel %vm9175_vm6, %v18682_v5, %v9294_v2  ;;  %v9304_v51 = vrot.slane %v9060_v50, 1  ;;  %v9066_v50 = vld [vmem:[#allocation3 + $0x378] sm:$0x1] }
 0x681   : > { %13819 = vmatprep.mubr.msk.bf16.mxu1 %vm16412_vm4, %v13818_v44  ;;  %v9282_v44 = vrot.slane %v9047_v39, 1  ;;  %v9053_v39 = vld [vmem:[#allocation3 + $0x2f0] sm:$0x1]  ;;  %v13830_v46 = vpack.c.bf16 %v9295_v63, %v9291_v57  ;;  %v9299_v13 = vrot.slane %v9056_v19, 1  ;;  %v18710_v19 = vrot.slane %v9057_v6, 1  ;;  %v9063_v6 = vld [vmem:[#allocation3 + $0x360] sm:$0xff] }
 0x682   : > { %v9292_v33 = vrot.slane %v9053_v39, 1  ;;  %v9059_v39 = vld [vmem:[#allocation3 + $0x330] sm:$0x1] }
 0x683   : > { %v9283_v23 = vsel %vm9175_vm6, %v18678_v11, %v9282_v44  ;;  %v18698_v44 = vrot.slane %v9058_v1, 1  ;;  %v9064_v1 = vld [vmem:[#allocation3 + $0x368] sm:$0xff]  ;;  %v9302_v53 = vrot.slane %v9059_v39, 1  ;;  %v9065_v39 = vld [vmem:[#allocation3 + $0x370] sm:$0x1] }
 0x684   : > { %v9312_v48 = vrot.slane %v9065_v39, 1  ;;  %v9071_v39 = vld [vmem:[#allocation3 + $0x3b0] sm:$0x1] }
 0x685   : > { %v9301_v57 = vsel %vm9175_vm6, %v9299_v13, %v18698_v44  ;;  %v9305_v63 = vsel %vm9175_vm6, %v18698_v44, %v9304_v51  ;;  %v9314_v13 = vrot.slane %v9066_v50, 1  ;;  %v9072_v50 = vld [vmem:[#allocation3 + $0x3b8] sm:$0x1]  ;;  %v9322_v17 = vrot.slane %v9071_v39, 1  ;;  %v9077_v39 = vld [vmem:[#allocation3 + $0x3f0] sm:$0x1] }
 0x688   : > { %13822 = vmatmul.mubr.msk.bf16.gmra.mrb[4].mxu1 %vm16412_vm4, %v13821_v58  ;;  %v13827_v58 = vpack.c.bf16 %v9283_v23, %v9278_v10  ;;  %v9293_v23 = vsel %vm9175_vm6, %v18694_v25, %v9292_v33  ;;  %v18714_v33 = vrot.slane %v9064_v1, 1  ;;  %v9070_v1 = vld [vmem:[#allocation3 + $0x3a8] sm:$0xff] }
 0x689   : > { %13825 = vmatprep.mubr.msk.bf16.mxu1 %vm16412_vm4, %v13824_v41  ;;  %v9049_v41 = vld [vmem:[#allocation3 + $0x2d0] sm:$0xfe] }
 0x68a   : > { %v9286_v2 = vrot.slane %v9049_v41, 1  ;;  %v13836_v41 = vpack.c.bf16 %v9305_v63, %v9301_v57  ;;  %v9315_v63 = vsel %vm9175_vm6, %v18714_v33, %v9314_v13 }
 0x68c   : > { %v9288_v10 = vsel %vm9175_vm6, %v9286_v2, %v18694_v25  ;;  %v9062_v2 = vld [vmem:[#allocation3 + $0x358] sm:$0xfe] }
 0x68d   : > { %v9309_v27 = vrot.slane %v9062_v2, 1  ;;  %v18726_v2 = vrot.slane %v9063_v6, 1  ;;  %v9069_v6 = vld [vmem:[#allocation3 + $0x3a0] sm:$0xff] }
 0x68f   : > { %v9311_v57 = vsel %vm9175_vm6, %v9309_v27, %v18714_v33  ;;  %v9324_v27 = vrot.slane %v9072_v50, 1  ;;  %v9078_v50 = vld [vmem:[#allocation3 + $0x3f8] sm:$0x1] }
 0x690   : > { %13828 = vmatmul.mubr.msk.bf16.gmra.mrb[8].mxu1 %vm16412_vm4, %v13827_v58  ;;  %v13833_v58 = vpack.c.bf16 %v9293_v23, %v9288_v10  ;;  %v9303_v23 = vsel %vm9175_vm6, %v18710_v19, %v9302_v53  ;;  %v18730_v53 = vrot.slane %v9070_v1, 1  ;;  %v9076_v1 = vld [vmem:[#allocation3 + $0x3e8] sm:$0xff] }
 0x691   : > { %13831 = vmatprep.mubr.msk.bf16.mxu1 %vm16412_vm4, %v13830_v46  ;;  %v9055_v46 = vld [vmem:[#allocation3 + $0x310] sm:$0xfe] }
 0x692   : > { %v9296_v51 = vrot.slane %v9055_v46, 1  ;;  %v13842_v46 = vpack.c.bf16 %v9315_v63, %v9311_v57  ;;  %v9325_v63 = vsel %vm9175_vm6, %v18730_v53, %v9324_v27 }
 0x694   : > { %v9298_v10 = vsel %vm9175_vm6, %v9296_v51, %v18710_v19  ;;  %v9068_v51 = vld [vmem:[#allocation3 + $0x398] sm:$0xfe] }
 0x695   : > { %v9319_v54 = vrot.slane %v9068_v51, 1  ;;  %v18742_v51 = vrot.slane %v9069_v6, 1  ;;  %v9075_v6 = vld [vmem:[#allocation3 + $0x3e0] sm:$0xff] }
 0x697   : > { %v9321_v57 = vsel %vm9175_vm6, %v9319_v54, %v18730_v53  ;;  %v9334_v54 = vrot.slane %v9078_v50, 1 }
 0x698   : > { %13834 = vmatmul.mubr.msk.bf16.gmra.mrb[12].mxu1 %vm16412_vm4, %v13833_v58  ;;  %v13839_v58 = vpack.c.bf16 %v9303_v23, %v9298_v10  ;;  %v9313_v23 = vsel %vm9175_vm6, %v18726_v2, %v9312_v48  ;;  %v18746_v48 = vrot.slane %v9076_v1, 1  ;;  %v9533_v1 = vld [vmem:[#allocation3 + $0x78] sm:$0x1] }
 0x699   : > { %13837 = vmatprep.mubr.msk.bf16.mxu1 %vm16412_vm4, %v13836_v41  ;;  %v9061_v41 = vld [vmem:[#allocation3 + $0x350] sm:$0xfe] }
 0x69a   : > { %v9306_v13 = vrot.slane %v9061_v41, 1  ;;  %v13848_v41 = vpack.c.bf16 %v9325_v63, %v9321_v57  ;;  %v9335_v63 = vsel %vm9175_vm6, %v18746_v48, %v9334_v54 }
 0x69c   : > { %v9308_v10 = vsel %vm9175_vm6, %v9306_v13, %v18726_v2  ;;  %v9074_v13 = vld [vmem:[#allocation3 + $0x3d8] sm:$0xfe] }
 0x69d   : > { %v9329_v20 = vrot.slane %v9074_v13, 1  ;;  %v9332_v13 = vrot.slane %v9077_v39, 1 }
 0x69f   : > { %v9331_v57 = vsel %vm9175_vm6, %v9329_v20, %v18746_v48 }
 0x6a0   : > { %13840 = vmatmul.mubr.msk.bf16.gmra.mrb[16].mxu1 %vm16412_vm4, %v13839_v58  ;;  %v13845_v58 = vpack.c.bf16 %v9313_v23, %v9308_v10  ;;  %v9323_v23 = vsel %vm9175_vm6, %v18742_v51, %v9322_v17  ;;  %v9728_v17 = vrot.slane %v9533_v1, 1  ;;  %v9528_v1 = vld [vmem:[#allocation3 + $0x50] sm:$0xfe] }
 0x6a1   : > { %13843 = vmatprep.mubr.msk.bf16.mxu1 %vm16412_vm4, %v13842_v46  ;;  %v9067_v46 = vld [vmem:[#allocation3 + $0x390] sm:$0xfe] }
 0x6a2   : > { %v9316_v27 = vrot.slane %v9067_v46, 1  ;;  %v18758_v46 = vrot.slane %v9075_v6, 1  ;;  %v9539_v6 = vld [vmem:[#allocation3 + $0xb8] sm:$0x1] }
 0x6a4   : > { %v9318_v10 = vsel %vm9175_vm6, %v9316_v27, %v18742_v51  ;;  %v9723_v27 = vrot.slane %v9529_v32, 1  ;;  %v9738_v32 = vrot.slane %v9539_v6, 1  ;;  %v9534_v6 = vld [vmem:[#allocation3 + $0x90] sm:$0xfe] }
 0x6a5   : > { %v13851_v50 = vpack.c.bf16 %v9323_v23, %v9318_v10  ;;  %v9333_v10 = vsel %vm9175_vm6, %v18758_v46, %v9332_v13  ;;  %v9720_v13 = vrot.slane %v9528_v1, 1 }
 0x6a6   : > { %v9725_v23 = vsel %vm9175_vm6, %v9723_v27, %v18432_v21 }
 0x6a7   : > { %v9722_v27 = vsel %vm9175_vm6, %v9720_v13, %v18445_v60  ;;  %v15577_v13 = vld [vmem:[%s19448_s3 + $0x824] ss:$8 sps:$4 sm:$0xff]  }
 0x6a8   : > { %13846 = vmatmul.mubr.msk.bf16.gmra.mrb[20].mxu1 %vm16412_vm4, %v13845_v58  ;;  %v9073_v58 = vld [vmem:[#allocation3 + $0x3d0] sm:$0xfe] }
 0x6a9   : > { %13849 = vmatprep.mubr.msk.bf16.mxu1 %vm16412_vm4, %v13848_v41  ;;  %v13854_v41 = vpack.c.bf16 %v9335_v63, %v9331_v57  ;;  %v9326_v20 = vrot.slane %v9073_v58, 1  ;;  %v9729_v57 = vsel %vm9175_vm6, %v18432_v21, %v9728_v17  ;;  %v9532_v63 = vld [vmem:[#allocation3 + $0x70] sm:$0x1]  ;;  %v9535_v58 = vld [vmem:[#allocation3 + $0x98] sm:$0xfe] }
 0x6ab   : > { %v9328_v54 = vsel %vm9175_vm6, %v9326_v20, %v18758_v46  ;;  %v9733_v20 = vrot.slane %v9535_v58, 1  ;;  %v15572_v58 = vld [vmem:[%s19448_s3 + $0x810] ss:$8 sps:$4 sm:$0xff]  }
 0x6ac   : > { %v13857_v39 = vpack.c.bf16 %v9333_v10, %v9328_v54  ;;  %v9739_v54 = vsel %vm9175_vm6, %v18448_v4, %v9738_v32  ;;  %v9538_v10 = vld [vmem:[#allocation3 + $0xb0] sm:$0x1] }
 0x6ad   : > { %v9735_v17 = vsel %vm9175_vm6, %v9733_v20, %v18448_v4  ;;  %v9730_v4 = vrot.slane %v9534_v6, 1 }
 0x6ae   : > { %v13866_v1 = vpack.c.bf16 %v9739_v54, %v9735_v17  ;;  %v9544_v54 = vld [vmem:[#allocation3 + $0xf0] sm:$0x1] }
 0x6af   : > { %v9732_v20 = vsel %vm9175_vm6, %v9730_v4, %v18472_v16  ;;  %v15583_v4 = vld [vmem:[%s19448_s3 + $0x844] ss:$8 sps:$4 sm:$0xff]  }
 0x6b0   : > { %13852 = vmatmul.mubr.msk.bf16.gmra.mrb[24].mxu1 %vm16412_vm4, %v13851_v50  ;;  %v13860_v50 = vpack.c.bf16 %v9729_v57, %v9725_v23  ;;  %v15569_v23 = vld [vmem:[%s19448_s3 + $0x800] ss:$8 sps:$4 sm:$0xff]   ;;  %v9545_v57 = vld [vmem:[#allocation3 + $0xf8] sm:$0x1] }
 0x6b1   : > { %13855 = vmatprep.mubr.msk.bf16.mxu1 %vm16412_vm4, %v13854_v41  ;;  %v9726_v41 = vrot.slane %v9532_v63, 1 }
 0x6b3   : > { %v9727_v21 = vsel %vm9175_vm6, %v18445_v60, %v9726_v41  ;;  %v9736_v60 = vrot.slane %v9538_v10, 1  ;;  %v9748_v41 = vrot.slane %v9545_v57, 1  ;;  %v15575_v10 = vld [vmem:[%s19448_s3 + $0x820] ss:$8 sps:$4 sm:$0xff]  }
 0x6b4   : > { %v13863_v63 = vpack.c.bf16 %v9727_v21, %v9722_v27 }
 0x6b5   : > { %v9737_v27 = vsel %vm9175_vm6, %v18472_v16, %v9736_v60  ;;  %v9749_v17 = vsel %vm9175_vm6, %v18476_v0, %v9748_v41  ;;  %v15580_v16 = vld [vmem:[%s19448_s3 + $0x834] ss:$8 sps:$4 sm:$0xff]  }
 0x6b6   : > { %v13869_v57 = vpack.c.bf16 %v9737_v27, %v9732_v20  ;;  %v9550_v27 = vld [vmem:[#allocation3 + $0x130] sm:$0x1] }
 0x6b8   : > { %13858 = vmatmul.mubr.msk.bf16.gmra.mrb[28].mxu1 %vm16412_vm4, %v13857_v39  ;;  %v15574_v39 = vld [vmem:[%s19448_s3 + $0x814] ss:$8 sps:$4 sm:$0xff]  }
 0x6b9   : > { %13861 = vmatprep.mubr.msk.bf16.mxu1 %vm16412_vm4, %v13860_v50  ;;  %v9541_v50 = vld [vmem:[#allocation3 + $0xd8] sm:$0xfe] }
 0x6ba   : > { %v9743_v32 = vrot.slane %v9541_v50, 1  ;;  %v15578_v50 = vld [vmem:[%s19448_s3 + $0x830] ss:$8 sps:$4 sm:$0xff]  }
 0x6bc   : > { %v9745_v21 = vsel %vm9175_vm6, %v9743_v32, %v18476_v0 }
 0x6bd   : > { %v13872_v6 = vpack.c.bf16 %v9749_v17, %v9745_v21  ;;  %v9557_v21 = vld [vmem:[#allocation3 + $0x178] sm:$0x1]  ;;  %v15581_v17 = vld [vmem:[%s19448_s3 + $0x840] ss:$8 sps:$4 sm:$0xff]  }
 0x6c0   : > { %13864 = vmatmul.mubr.msk.bf16.vlgmr.msra.gmra.mrb[32].mxu1 %vm16412_vm4, %v13863_v63  ;;  %v9540_v63 = vld [vmem:[#allocation3 + $0xd0] sm:$0xfe] }
 0x6c1   : > { %13867 = vmatprep.mubr.msk.bf16.mxu1 %vm16412_vm4, %v13866_v1  ;;  %11676 = vmatpush1.bf16.msra.mxu1 %v15569_v23  ;;  %v9551_v23 = vld [vmem:[#allocation3 + $0x138] sm:$0x1]  ;;  %v9547_v1 = vld [vmem:[#allocation3 + $0x118] sm:$0xfe]  ;;  %v9740_v60 = vrot.slane %v9540_v63, 1 }
 0x6c2   : > { %11677 = vmatprep.subr.bf16.mxu1 %v15574_v39  ;;  %v9746_v39 = vrot.slane %v9544_v54, 1  ;;  %v9758_v0 = vrot.slane %v9551_v23, 1  ;;  %v9753_v41 = vrot.slane %v9547_v1, 1  ;;  %v9553_v63 = vld [vmem:[#allocation3 + $0x158] sm:$0xfe] }
 0x6c3   : > { %v15589_v1 = vld [vmem:[%s19448_s3 + $0x864] ss:$8 sps:$4 sm:$0xff]  }
 0x6c4   : > { %v9747_v32 = vsel %vm9175_vm6, %v18500_v8, %v9746_v39  ;;  %v9759_v20 = vsel %vm9175_vm6, %v18504_v40, %v9758_v0  ;;  %v9763_v39 = vrot.slane %v9553_v63, 1 }
 0x6c5   : > { %11678 = vmatpush1.bf16.msra.mxu1 %v15572_v58  ;;  %v9742_v58 = vsel %vm9175_vm6, %v9740_v60, %v18500_v8  ;;  %v15586_v8 = vld [vmem:[%s19448_s3 + $0x854] ss:$8 sps:$4 sm:$0xff]  }
 0x6c6   : > { %11679 = vmatprep.subr.bf16.mxu1 %v15577_v13  ;;  %v9755_v13 = vsel %vm9175_vm6, %v9753_v41, %v18504_v40  ;;  %v13875_v54 = vpack.c.bf16 %v9747_v32, %v9742_v58  ;;  %v9768_v40 = vrot.slane %v9557_v21, 1  ;;  %v9563_v58 = vld [vmem:[#allocation3 + $0x1b8] sm:$0x1]  ;;  %v15587_v32 = vld [vmem:[%s19448_s3 + $0x860] ss:$8 sps:$4 sm:$0xff]  }
 0x6c7   : > { %v13878_v23 = vpack.c.bf16 %v9759_v20, %v9755_v13  ;;  %v9552_v20 = vld [vmem:[#allocation3 + $0x150] sm:$0xfe] }
 0x6c8   : > { %13870 = vmatmul.mubr.msk.bf16.gmra.mrb[36].mxu1 %vm16412_vm4, %v13869_v57  ;;  %v9756_v57 = vrot.slane %v9550_v27, 1  ;;  %v9769_v41 = vsel %vm9175_vm6, %v18532_v7, %v9768_v40 }
 0x6c9   : > { %13873 = vmatprep.mubr.msk.bf16.mxu1 %vm16412_vm4, %v13872_v6  ;;  %11680 = vmatpush1.bf16.msra.mxu1 %v15575_v10  ;;  %v9546_v10 = vld [vmem:[#allocation3 + $0x110] sm:$0xfe] }
 0x6ca   : > { %11681 = vmatprep.subr.bf16.mxu1 %v15580_v16  ;;  %v9750_v16 = vrot.slane %v9546_v10, 1  ;;  %v15584_v6 = vld [vmem:[%s19448_s3 + $0x850] ss:$8 sps:$4 sm:$0xff]   ;;  %v9757_v60 = vsel %vm9175_vm6, %v18528_v35, %v9756_v57 }
 0x6cb   : > { %v15590_v10 = vld [vmem:[%s19448_s3 + $0x870] ss:$8 sps:$4 sm:$0xff]  }
 0x6cc   : > { %v9752_v0 = vsel %vm9175_vm6, %v9750_v16, %v18528_v35  ;;  %v15592_v35 = vld [vmem:[%s19448_s3 + $0x874] ss:$8 sps:$4 sm:$0xff]  }
 0x6cd   : > { %11682 = vmatpush1.bf16.msra.mxu1 %v15578_v50  ;;  %v9765_v50 = vsel %vm9175_vm6, %v9763_v39, %v18532_v7  ;;  %v13881_v13 = vpack.c.bf16 %v9757_v60, %v9752_v0  ;;  %v9778_v7 = vrot.slane %v9563_v58, 1  ;;  %v9569_v39 = vld [vmem:[#allocation3 + $0x1f8] sm:$0x1]  ;;  %v9558_v60 = vld [vmem:[#allocation3 + $0x190] sm:$0xfe] }
 0x6ce   : > { %11683 = vmatprep.subr.bf16.mxu1 %v15583_v4  ;;  %v9556_v4 = vld [vmem:[#allocation3 + $0x170] sm:$0x1]  ;;  %v13884_v27 = vpack.c.bf16 %v9769_v41, %v9765_v50  ;;  %v9770_v58 = vrot.slane %v9558_v60, 1 }
 0x6cf   : > { %v9766_v21 = vrot.slane %v9556_v4, 1  ;;  %v9779_v16 = vsel %vm9175_vm6, %v18560_v24, %v9778_v7  ;;  %v9565_v4 = vld [vmem:[#allocation3 + $0x1d8] sm:$0xfe]  ;;  %v9568_v7 = vld [vmem:[#allocation3 + $0x1f0] sm:$0x1] }
 0x6d0   : > { %13876 = vmatmul.mubr.msk.bf16.gmra.mrb[40].mxu1 %vm16412_vm4, %v13875_v54  ;;  %v9760_v54 = vrot.slane %v9552_v20, 1  ;;  %v15601_v20 = vld [vmem:[%s19448_s3 + $0x8a4] ss:$8 sps:$4 sm:$0xff]  }
 0x6d1   : > { %13879 = vmatprep.mubr.msk.bf16.mxu1 %vm16412_vm4, %v13878_v23  ;;  %11684 = vmatpush1.bf16.msra.mxu1 %v15581_v17  ;;  %v9559_v17 = vld [vmem:[#allocation3 + $0x198] sm:$0xfe]  ;;  %v15595_v23 = vld [vmem:[%s19448_s3 + $0x884] ss:$8 sps:$4 sm:$0xff]   ;;  %v9767_v63 = vsel %vm9175_vm6, %v18556_v26, %v9766_v21 }
 0x6d2   : > { %11685 = vmatprep.subr.bf16.mxu1 %v15586_v8  ;;  %v9773_v8 = vrot.slane %v9559_v17, 1  ;;  %v9762_v57 = vsel %vm9175_vm6, %v9760_v54, %v18556_v26  ;;  %v15598_v26 = vld [vmem:[%s19448_s3 + $0x894] ss:$8 sps:$4 sm:$0xff]   ;;  %v9575_v54 = vld [vmem:[#allocation3 + $0x238] sm:$0x1] }
 0x6d3   : > { %v13887_v0 = vpack.c.bf16 %v9767_v63, %v9762_v57  ;;  %v9786_v63 = vrot.slane %v9568_v7, 1  ;;  %v15613_v7 = vld [vmem:[%s19448_s3 + $0x8e4] ss:$8 sps:$4 sm:$0xff]  }
 0x6d4   : > { %v9775_v40 = vsel %vm9175_vm6, %v9773_v8, %v18560_v24  ;;  %v9788_v24 = vrot.slane %v9569_v39, 1 }
 0x6d5   : > { %11686 = vmatpush1.bf16.msra.mxu1 %v15584_v6  ;;  %v9562_v6 = vld [vmem:[#allocation3 + $0x1b0] sm:$0x1]  ;;  %v13890_v50 = vpack.c.bf16 %v9779_v16, %v9775_v40  ;;  %v9571_v40 = vld [vmem:[#allocation3 + $0x218] sm:$0xfe]  ;;  %v9787_v60 = vsel %vm9175_vm6, %v18612_v43, %v9786_v63  ;;  %v15611_v63 = vld [vmem:[%s19448_s3 + $0x8e0] ss:$8 sps:$4 sm:$0xff]  }
 0x6d6   : > { %11687 = vmatprep.subr.bf16.mxu1 %v15589_v1  ;;  %v15593_v1 = vld [vmem:[%s19448_s3 + $0x880] ss:$8 sps:$4 sm:$0xff]   ;;  %v9776_v41 = vrot.slane %v9562_v6, 1  ;;  %v9789_v17 = vsel %vm9175_vm6, %v18588_v36, %v9788_v24  ;;  %v15602_v6 = vld [vmem:[%s19448_s3 + $0x8b0] ss:$8 sps:$4 sm:$0xff]   ;;  %v9793_v39 = vrot.slane %v9571_v40, 1 }
 0x6d7   : > { %v15605_v24 = vld [vmem:[%s19448_s3 + $0x8c0] ss:$8 sps:$4 sm:$0xff]  }
 0x6d8   : > { %13882 = vmatmul.mubr.msk.bf16.gmra.mrb[44].mxu1 %vm16412_vm4, %v13881_v13  ;;  %v9783_v13 = vrot.slane %v9565_v4, 1  ;;  %v9581_v4 = vld [vmem:[#allocation3 + $0x278] sm:$0x1] }
 0x6d9   : > { %13885 = vmatprep.mubr.msk.bf16.mxu1 %vm16412_vm4, %v13884_v27  ;;  %11688 = vmatpush1.bf16.msra.mxu1 %v15587_v32  ;;  %v15596_v32 = vld [vmem:[%s19448_s3 + $0x890] ss:$8 sps:$4 sm:$0xff]   ;;  %v9777_v27 = vsel %vm9175_vm6, %v18584_v38, %v9776_v41 }
 0x6da   : > { %11689 = vmatprep.subr.bf16.mxu1 %v15592_v35  ;;  %v9772_v35 = vsel %vm9175_vm6, %v9770_v58, %v18584_v38  ;;  %v9785_v21 = vsel %vm9175_vm6, %v9783_v13, %v18588_v36  ;;  %v15604_v38 = vld [vmem:[%s19448_s3 + $0x8b4] ss:$8 sps:$4 sm:$0xff]   ;;  %v9798_v36 = vrot.slane %v9575_v54, 1  ;;  %v9574_v41 = vld [vmem:[#allocation3 + $0x230] sm:$0x1] }
 0x6db   : > { %v13893_v8 = vpack.c.bf16 %v9777_v27, %v9772_v35  ;;  %v13896_v57 = vpack.c.bf16 %v9789_v17, %v9785_v21  ;;  %v9577_v35 = vld [vmem:[#allocation3 + $0x258] sm:$0xfe] }
 0x6dc   : > { %v15608_v21 = vld [vmem:[%s19448_s3 + $0x8d0] ss:$8 sps:$4 sm:$0xff]   ;;  %v9803_v17 = vrot.slane %v9577_v35, 1 }
 0x6dd   : > { %11690 = vmatpush1.bf16.msra.mxu1 %v15590_v10  ;;  %v15599_v10 = vld [vmem:[%s19448_s3 + $0x8a0] ss:$8 sps:$4 sm:$0xff]   ;;  %v9589_v35 = vld [vmem:[#allocation3 + $0x2d8] sm:$0xfe] }
 0x6de   : > { %11691 = vmatprep.subr.bf16.mxu1 %v15595_v23  ;;  %v9564_v23 = vld [vmem:[#allocation3 + $0x1d0] sm:$0xfe] }
 0x6df   : > { %v9780_v16 = vrot.slane %v9564_v23, 1 }
 0x6e0   : > { %13888 = vmatmul.mubr.msk.bf16.gmra.mrb[48].mxu1 %vm16412_vm4, %v13887_v0 }
 0x6e1   : > { %13891 = vmatprep.mubr.msk.bf16.mxu1 %vm16412_vm4, %v13890_v50  ;;  %11692 = vmatpush1.bf16.msra.mxu1 %v15593_v1  ;;  %v15607_v1 = vld [vmem:[%s19448_s3 + $0x8c4] ss:$8 sps:$4 sm:$0xff]   ;;  %v9782_v0 = vsel %vm9175_vm6, %v9780_v16, %v18612_v43  ;;  %v9799_v50 = vsel %vm9175_vm6, %v18616_v59, %v9798_v36  ;;  %v15610_v43 = vld [vmem:[%s19448_s3 + $0x8d4] ss:$8 sps:$4 sm:$0xff]  }
 0x6e2   : > { %11693 = vmatprep.subr.bf16.mxu1 %v15598_v26  ;;  %v9795_v26 = vsel %vm9175_vm6, %v9793_v39, %v18616_v59  ;;  %v13899_v58 = vpack.c.bf16 %v9787_v60, %v9782_v0  ;;  %v9808_v59 = vrot.slane %v9581_v4, 1  ;;  %v9576_v36 = vld [vmem:[#allocation3 + $0x250] sm:$0xfe]  ;;  %v9583_v39 = vld [vmem:[#allocation3 + $0x298] sm:$0xfe] }
 0x6e3   : > { %v13902_v13 = vpack.c.bf16 %v9799_v50, %v9795_v26  ;;  %v15614_v0 = vld [vmem:[%s19448_s3 + $0x8f0] ss:$8 sps:$4 sm:$0xff]   ;;  %v9813_v60 = vrot.slane %v9583_v39, 1 }
 0x6e4   : > { %v9809_v23 = vsel %vm9175_vm6, %v18644_v3, %v9808_v59  ;;  %v9598_v39 = vld [vmem:[#allocation3 + $0x330] sm:$0x1] }
 0x6e5   : > { %11694 = vmatpush1.bf16.msra.mxu1 %v15596_v32  ;;  %v9570_v32 = vld [vmem:[#allocation3 + $0x210] sm:$0xfe] }
 0x6e6   : > { %11695 = vmatprep.subr.bf16.mxu1 %v15601_v20  ;;  %v9796_v20 = vrot.slane %v9574_v41, 1  ;;  %v9790_v27 = vrot.slane %v9570_v32, 1  ;;  %v9815_v41 = vsel %vm9175_vm6, %v9813_v60, %v18666_v45 }
 0x6e8   : > { %13894 = vmatmul.mubr.msk.bf16.gmra.mrb[52].mxu1 %vm16412_vm4, %v13893_v8  ;;  %v9792_v54 = vsel %vm9175_vm6, %v9790_v27, %v18640_v42  ;;  %v9805_v8 = vsel %vm9175_vm6, %v9803_v17, %v18644_v3  ;;  %v9823_v27 = vrot.slane %v9589_v35, 1  ;;  %v9600_v35 = vld [vmem:[#allocation3 + $0x350] sm:$0xfe] }
 0x6e9   : > { %13897 = vmatprep.mubr.msk.bf16.mxu1 %vm16412_vm4, %v13896_v57  ;;  %11696 = vmatpush1.bf16.msra.mxu1 %v15599_v10  ;;  %v9797_v10 = vsel %vm9175_vm6, %v18640_v42, %v9796_v20  ;;  %v9587_v57 = vld [vmem:[#allocation3 + $0x2b8] sm:$0x1]  ;;  %v15616_v42 = vld [vmem:[%s19448_s3 + $0x8f4] ss:$8 sps:$4 sm:$0xff]   ;;  %v13908_v16 = vpack.c.bf16 %v9809_v23, %v9805_v8 }
 0x6ea   : > { %11697 = vmatprep.subr.bf16.mxu1 %v15604_v38  ;;  %v9580_v38 = vld [vmem:[#allocation3 + $0x270] sm:$0x1]  ;;  %v13905_v40 = vpack.c.bf16 %v9797_v10, %v9792_v54  ;;  %v9818_v3 = vrot.slane %v9587_v57, 1  ;;  %v9825_v17 = vsel %vm9175_vm6, %v9823_v27, %v18682_v5  ;;  %v9599_v10 = vld [vmem:[#allocation3 + $0x338] sm:$0x1] }
 0x6eb   : > { %v9592_v54 = vld [vmem:[#allocation3 + $0x2f0] sm:$0x1]  ;;  %v9588_v23 = vld [vmem:[#allocation3 + $0x2d0] sm:$0xfe]  ;;  %v9607_v27 = vld [vmem:[#allocation3 + $0x398] sm:$0xfe] }
 0x6ec   : > { %v9819_v4 = vsel %vm9175_vm6, %v18666_v45, %v9818_v3  ;;  %v9826_v57 = vrot.slane %v9592_v54, 1  ;;  %v9605_v3 = vld [vmem:[#allocation3 + $0x378] sm:$0x1] }
 0x6ed   : > { %11698 = vmatpush1.bf16.msra.mxu1 %v15602_v6  ;;  %v9806_v6 = vrot.slane %v9580_v38, 1 }
 0x6ee   : > { %11699 = vmatprep.subr.bf16.mxu1 %v15607_v1  ;;  %v9800_v1 = vrot.slane %v9576_v36, 1 }
 0x6ef   : > { %v9807_v50 = vsel %vm9175_vm6, %v18662_v61, %v9806_v6 }
 0x6f0   : > { %13900 = vmatmul.mubr.msk.bf16.gmra.mrb[56].mxu1 %vm16412_vm4, %v13899_v58  ;;  %v9802_v26 = vsel %vm9175_vm6, %v9800_v1, %v18662_v61  ;;  %v9593_v58 = vld [vmem:[#allocation3 + $0x2f8] sm:$0x1] }
 0x6f1   : > { %13903 = vmatprep.mubr.msk.bf16.mxu1 %vm16412_vm4, %v13902_v13  ;;  %11700 = vmatpush1.bf16.msra.mxu1 %v15605_v24  ;;  %v9586_v24 = vld [vmem:[#allocation3 + $0x2b0] sm:$0x1]  ;;  %v13911_v32 = vpack.c.bf16 %v9807_v50, %v9802_v26  ;;  %v13914_v13 = vpack.c.bf16 %v9819_v4, %v9815_v41  ;;  %v9828_v59 = vrot.slane %v9593_v58, 1  ;;  %v9836_v26 = vrot.slane %v9598_v39, 1  ;;  %v9601_v50 = vld [vmem:[#allocation3 + $0x358] sm:$0xfe] }
 0x6f2   : > { %11701 = vmatprep.subr.bf16.mxu1 %v15610_v43  ;;  %v9582_v43 = vld [vmem:[#allocation3 + $0x290] sm:$0xfe]  ;;  %v9816_v20 = vrot.slane %v9586_v24, 1  ;;  %v9848_v41 = vrot.slane %v9605_v3, 1  ;;  %v9843_v4 = vrot.slane %v9601_v50, 1  ;;  %v9621_v39 = vld [vmem:[#allocation3 + $0x428] sm:$0xff] }
 0x6f3   : > { %v9810_v61 = vrot.slane %v9582_v43, 1  ;;  %v9604_v43 = vld [vmem:[#allocation3 + $0x370] sm:$0x1]  ;;  %v9623_v3 = vld [vmem:[#allocation3 + $0x438] sm:$0x1] }
 0x6f4   : > { %v9845_v58 = vsel %vm9175_vm6, %v9843_v4, %v18714_v33  ;;  %v9619_v50 = vld [vmem:[#allocation3 + $0x418] sm:$0xfe] }
 0x6f5   : > { %11702 = vmatpush1.bf16.msra.mxu1 %v15608_v21  ;;  %v9812_v45 = vsel %vm9175_vm6, %v9810_v61, %v18678_v11  ;;  %v9817_v21 = vsel %vm9175_vm6, %v18678_v11, %v9816_v20  ;;  %v9820_v11 = vrot.slane %v9588_v23, 1  ;;  %v9846_v61 = vrot.slane %v9604_v43, 1  ;;  %v9622_v43 = vld [vmem:[#allocation3 + $0x430] sm:$0x1] }
 0x6f6   : > { %11703 = vmatprep.subr.bf16.mxu1 %v15613_v7  ;;  %v9829_v7 = vsel %vm9175_vm6, %v18682_v5, %v9828_v59  ;;  %v13917_v8 = vpack.c.bf16 %v9817_v21, %v9812_v45  ;;  %v9827_v5 = vsel %vm9175_vm6, %v18694_v25, %v9826_v57  ;;  %v9853_v21 = vrot.slane %v9607_v27, 1 }
 0x6f7   : > { %v13920_v38 = vpack.c.bf16 %v9829_v7, %v9825_v17  ;;  %v9873_v4 = vrot.slane %v9619_v50, 1  ;;  %v10082_v50 = vld [vmem:[#allocation3 + $0xf0] sm:$0x1] }
 0x6f8   : > { %13906 = vmatmul.mubr.msk.bf16.gmra.mrb[60].mxu1 %vm16412_vm4, %v13905_v40  ;;  %v9838_v40 = vrot.slane %v9599_v10, 1  ;;  %v9855_v7 = vsel %vm9175_vm6, %v9853_v21, %v18730_v53  ;;  %v9610_v10 = vld [vmem:[#allocation3 + $0x3b0] sm:$0x1] }
 0x6f9   : > { %13909 = vmatprep.mubr.msk.bf16.mxu1 %vm16412_vm4, %v13908_v16  ;;  %11704 = vmatpush1.bf16.msra.mxu1 %v15611_v63  ;;  %v9595_v63 = vld [vmem:[#allocation3 + $0x318] sm:$0xfe] }
 0x6fa   : > { %11705 = vmatprep.subr.bf16.mxu1 %v15616_v42  ;;  %v9833_v36 = vrot.slane %v9595_v63, 1  ;;  %v9822_v42 = vsel %vm9175_vm6, %v9820_v11, %v18694_v25  ;;  %v9839_v6 = vsel %vm9175_vm6, %v18698_v44, %v9838_v40  ;;  %v9856_v63 = vrot.slane %v9610_v10, 1  ;;  %v9613_v40 = vld [vmem:[#allocation3 + $0x3d8] sm:$0xfe] }
 0x6fb   : > { %v13923_v1 = vpack.c.bf16 %v9827_v5, %v9822_v42 }
 0x6fc   : > { %v9835_v16 = vsel %vm9175_vm6, %v9833_v36, %v18698_v44  ;;  %v9837_v44 = vsel %vm9175_vm6, %v18710_v19, %v9836_v26  ;;  %v9863_v36 = vrot.slane %v9613_v40, 1 }
 0x6fd   : > { %11706 = vmatpush1.bf16.msra.mxu1 %v15614_v0  ;;  %v9594_v0 = vld [vmem:[#allocation3 + $0x310] sm:$0xfe]  ;;  %v13926_v60 = vpack.c.bf16 %v9839_v6, %v9835_v16  ;;  %v9616_v6 = vld [vmem:[#allocation3 + $0x3f0] sm:$0x1] }
 0x6fe   : > { %v9830_v25 = vrot.slane %v9594_v0, 1  ;;  %v9865_v5 = vsel %vm9175_vm6, %v9863_v36, %v18746_v48  ;;  %v9612_v0 = vld [vmem:[#allocation3 + $0x3d0] sm:$0xfe]  ;;  %v9866_v26 = vrot.slane %v9616_v6, 1 }
 0x700   : > { %13912 = vmatmul.mubr.msk.bf16.gmra.mrb[0].mxu1 %vm16412_vm4, %v13911_v32  ;;  %v9832_v24 = vsel %vm9175_vm6, %v9830_v25, %v18710_v19  ;;  %v9849_v32 = vsel %vm9175_vm6, %v18714_v33, %v9848_v41  ;;  %v9840_v19 = vrot.slane %v9600_v35, 1  ;;  %v9847_v33 = vsel %vm9175_vm6, %v18726_v2, %v9846_v61 }
 0x701   : > { %13915 = vmatprep.mubr.msk.bf16.mxu1 %vm16412_vm4, %v13914_v13  ;;  %v9611_v13 = vld [vmem:[#allocation3 + $0x3b8] sm:$0x1]  ;;  %v13929_v20 = vpack.c.bf16 %v9837_v44, %v9832_v24  ;;  %v13932_v59 = vpack.c.bf16 %v9849_v32, %v9845_v58  ;;  %v19035_v41 = vrot.slane %v9621_v39, 1  ;;  %v9860_v25 = vrot.slane %v9612_v0, 1  ;;  %v9620_v32 = vld [vmem:[#allocation3 + $0x420] sm:$0xff] }
 0x702   : > { %v9858_v45 = vrot.slane %v9611_v13, 1  ;;  %v9842_v17 = vsel %vm9175_vm6, %v9840_v19, %v18726_v2  ;;  %v9867_v24 = vsel %vm9175_vm6, %v18758_v46, %v9866_v26  ;;  %v10075_v13 = vld [vmem:[#allocation3 + $0xa8] sm:$0xff]  ;;  %v19047_v27 = vrot.slane %v9620_v32, 1  ;;  %v10073_v19 = vld [vmem:[#allocation3 + $0x98] sm:$0xfe]  ;;  %v10080_v26 = vld [vmem:[#allocation3 + $0xe0] sm:$0xff] }
 0x703   : > { %v13935_v23 = vpack.c.bf16 %v9847_v33, %v9842_v17  ;;  %v9875_v44 = vsel %vm9175_vm6, %v9873_v4, %v19035_v41  ;;  %v10267_v33 = vrot.slane %v10073_v19, 1  ;;  %v10085_v32 = vld [vmem:[#allocation3 + $0x118] sm:$0xfe] }
 0x704   : > { %v9859_v54 = vsel %vm9175_vm6, %v18730_v53, %v9858_v45  ;;  %v9857_v53 = vsel %vm9175_vm6, %v18742_v51, %v9856_v63  ;;  %v9876_v45 = vrot.slane %v9622_v43, 1  ;;  %v10083_v63 = vld [vmem:[#allocation3 + $0xf8] sm:$0x1] }
 0x705   : > { %v13938_v57 = vpack.c.bf16 %v9859_v54, %v9855_v7 }
 0x706   : > { %v9877_v54 = vsel %vm9175_vm6, %v19047_v27, %v9876_v45 }
 0x708   : > { %13918 = vmatmul.mubr.msk.bf16.gmra.mrb[4].mxu1 %vm16412_vm4, %v13917_v8  ;;  %v9617_v8 = vld [vmem:[#allocation3 + $0x3f8] sm:$0x1] }
 0x709   : > { %13921 = vmatprep.mubr.msk.bf16.mxu1 %vm16412_vm4, %v13920_v38  ;;  %v9606_v38 = vld [vmem:[#allocation3 + $0x390] sm:$0xfe]  ;;  %v9868_v11 = vrot.slane %v9617_v8, 1 }
 0x70a   : > { %v9850_v2 = vrot.slane %v9606_v38, 1  ;;  %v10076_v38 = vld [vmem:[#allocation3 + $0xb0] sm:$0x1] }
 0x70b   : > { %v9869_v16 = vsel %vm9175_vm6, %v18746_v48, %v9868_v11  ;;  %v9862_v48 = vsel %vm9175_vm6, %v9860_v25, %v18758_v46  ;;  %v10268_v46 = vrot.slane %v10075_v13, 1  ;;  %v10072_v11 = vld [vmem:[#allocation3 + $0x90] sm:$0xfe]  ;;  %v10089_v25 = vld [vmem:[#allocation3 + $0x138] sm:$0x1] }
 0x70c   : > { %v9852_v42 = vsel %vm9175_vm6, %v9850_v2, %v18742_v51  ;;  %v9878_v51 = vrot.slane %v9623_v3, 1  ;;  %v13947_v35 = vpack.c.bf16 %v9867_v24, %v9862_v48  ;;  %v10264_v6 = vrot.slane %v10072_v11, 1  ;;  %v10078_v48 = vld [vmem:[#allocation3 + $0xd0] sm:$0xfe] }
 0x70d   : > { %v10269_v10 = vsel %vm9175_vm6, %v10267_v33, %v10268_v46  ;;  %v10292_v13 = vrot.slane %v10089_v25, 1  ;;  %v10095_v33 = vld [vmem:[#allocation3 + $0x178] sm:$0x1] }
 0x70e   : > { %v9879_v58 = vsel %vm9175_vm6, %v19035_v41, %v9878_v51  ;;  %v10087_v51 = vld [vmem:[#allocation3 + $0x128] sm:$0xff] }
 0x70f   : > { %v13950_v61 = vpack.c.bf16 %v9879_v58, %v9875_v44  ;;  %v10275_v44 = vrot.slane %v10080_v26, 1  ;;  %v10280_v58 = vrot.slane %v10082_v50, 1  ;;  %v10288_v43 = vrot.slane %v10087_v51, 1  ;;  %v10097_v50 = vld [vmem:[#allocation3 + $0x198] sm:$0xfe] }
 0x710   : > { %13924 = vmatmul.mubr.msk.bf16.gmra.mrb[8].mxu1 %vm16412_vm4, %v13923_v1  ;;  %v13941_v1 = vpack.c.bf16 %v9857_v53, %v9852_v42  ;;  %v10270_v42 = vrot.slane %v10076_v38, 1  ;;  %v10079_v53 = vld [vmem:[#allocation3 + $0xd8] sm:$0xfe] }
 0x711   : > { %13927 = vmatprep.mubr.msk.bf16.mxu1 %vm16412_vm4, %v13926_v60  ;;  %v13944_v60 = vpack.c.bf16 %v9869_v16, %v9865_v5  ;;  %v10282_v16 = vrot.slane %v10083_v63, 1  ;;  %v10277_v39 = vrot.slane %v10079_v53, 1  ;;  %v10293_v19 = vsel %vm9175_vm6, %v10288_v43, %v10292_v13  ;;  %v10091_v38 = vld [vmem:[#allocation3 + $0x158] sm:$0xfe]  ;;  %v10100_v13 = vld [vmem:[#allocation3 + $0x1b0] sm:$0x1] }
 0x712   : > { %v10302_v63 = vrot.slane %v10095_v33, 1  ;;  %v10297_v11 = vrot.slane %v10091_v38, 1 }
 0x718   : > { %13930 = vmatmul.mubr.msk.bf16.gmra.mrb[12].mxu1 %vm16412_vm4, %v13929_v20  ;;  %v10077_v20 = vld [vmem:[#allocation3 + $0xb8] sm:$0x1] }
 0x719   : > { %13933 = vmatprep.mubr.msk.bf16.mxu1 %vm16412_vm4, %v13932_v59  ;;  %v9618_v59 = vld [vmem:[#allocation3 + $0x410] sm:$0xfe]  ;;  %v10272_v21 = vrot.slane %v10077_v20, 1  ;;  %v10274_v20 = vrot.slane %v10078_v48, 1  ;;  %v10307_v48 = vrot.slane %v10097_v50, 1 }
 0x71a   : > { %v9870_v17 = vrot.slane %v9618_v59, 1 }
 0x71b   : > { %v10273_v8 = vsel %vm9175_vm6, %v10268_v46, %v10272_v21  ;;  %v10276_v59 = vsel %vm9175_vm6, %v10274_v20, %v10275_v44  ;;  %v10086_v46 = vld [vmem:[#allocation3 + $0x120] sm:$0xff]  ;;  %v10088_v21 = vld [vmem:[#allocation3 + $0x130] sm:$0x1]  ;;  %v10105_v20 = vld [vmem:[#allocation3 + $0x1e8] sm:$0xff] }
 0x71c   : > { %v9872_v7 = vsel %vm9175_vm6, %v9870_v17, %v19047_v27  ;;  %v13956_v2 = vpack.c.bf16 %v10273_v8, %v10269_v10  ;;  %v10093_v17 = vld [vmem:[#allocation3 + $0x168] sm:$0xff]  ;;  %v10285_v8 = vrot.slane %v10086_v46, 1  ;;  %v10310_v46 = vrot.slane %v10100_v13, 1  ;;  %v10115_v13 = vld [vmem:[#allocation3 + $0x258] sm:$0xfe] }
 0x71d   : > { %v13953_v40 = vpack.c.bf16 %v9877_v54, %v9872_v7  ;;  %v10084_v54 = vld [vmem:[#allocation3 + $0x110] sm:$0xfe] }
 0x720   : > { %13936 = vmatmul.mubr.msk.bf16.gmra.mrb[16].mxu1 %vm16412_vm4, %v13935_v23  ;;  %v10074_v23 = vld [vmem:[#allocation3 + $0xa0] sm:$0xff] }
 0x721   : > { %13939 = vmatprep.mubr.msk.bf16.mxu1 %vm16412_vm4, %v13938_v57  ;;  %v10081_v57 = vld [vmem:[#allocation3 + $0xe8] sm:$0xff]  ;;  %v10265_v36 = vrot.slane %v10074_v23, 1  ;;  %v10290_v23 = vrot.slane %v10088_v21, 1  ;;  %v10103_v21 = vld [vmem:[#allocation3 + $0x1d8] sm:$0xfe] }
 0x722   : > { %v10278_v5 = vrot.slane %v10081_v57, 1  ;;  %v10298_v57 = vrot.slane %v10093_v17, 1  ;;  %v10318_v17 = vrot.slane %v10105_v20, 1 }
 0x723   : > { %v10266_v3 = vsel %vm9175_vm6, %v10264_v6, %v10265_v36  ;;  %v10099_v6 = vld [vmem:[#allocation3 + $0x1a8] sm:$0xff] }
 0x724   : > { %v10279_v0 = vsel %vm9175_vm6, %v10277_v39, %v10278_v5  ;;  %v10303_v53 = vsel %vm9175_vm6, %v10298_v57, %v10302_v63  ;;  %v10101_v39 = vld [vmem:[#allocation3 + $0x1b8] sm:$0x1]  ;;  %v10308_v51 = vrot.slane %v10099_v6, 1  ;;  %v10106_v63 = vld [vmem:[#allocation3 + $0x1f0] sm:$0x1] }
 0x725   : > { %v10312_v25 = vrot.slane %v10101_v39, 1 }
 0x728   : > { %13942 = vmatmul.mubr.msk.bf16.gmra.mrb[20].mxu1 %vm16412_vm4, %v13941_v1  ;;  %v10271_v1 = vsel %vm9175_vm6, %v10265_v36, %v10270_v42  ;;  %v10291_v36 = vsel %vm9175_vm6, %v10285_v8, %v10290_v23  ;;  %v10299_v42 = vsel %vm9175_vm6, %v10297_v11, %v10298_v57  ;;  %v10104_v57 = vld [vmem:[#allocation3 + $0x1e0] sm:$0xff]  ;;  %v10113_v11 = vld [vmem:[#allocation3 + $0x238] sm:$0x1] }
 0x729   : > { %13945 = vmatprep.mubr.msk.bf16.mxu1 %vm16412_vm4, %v13944_v60  ;;  %v10283_v60 = vsel %vm9175_vm6, %v10278_v5, %v10282_v16  ;;  %v13959_v4 = vpack.c.bf16 %v10271_v1, %v10266_v3  ;;  %v10092_v5 = vld [vmem:[#allocation3 + $0x160] sm:$0xff]  ;;  %v10094_v16 = vld [vmem:[#allocation3 + $0x170] sm:$0x1]  ;;  %v10090_v1 = vld [vmem:[#allocation3 + $0x150] sm:$0xfe]  ;;  %v10332_v39 = vrot.slane %v10113_v11, 1 }
 0x72a   : > { %v13962_v24 = vpack.c.bf16 %v10283_v60, %v10279_v0  ;;  %v13974_v0 = vpack.c.bf16 %v10303_v53, %v10299_v42  ;;  %v10295_v60 = vrot.slane %v10092_v5, 1  ;;  %v10300_v26 = vrot.slane %v10094_v16, 1  ;;  %v10109_v16 = vld [vmem:[#allocation3 + $0x218] sm:$0xfe] }
 0x72b   : > { %v10315_v53 = vrot.slane %v10104_v57, 1  ;;  %v10320_v5 = vrot.slane %v10106_v63, 1  ;;  %v10121_v63 = vld [vmem:[#allocation3 + $0x298] sm:$0xfe] }
 0x730   : > { %13948 = vmatmul.mubr.msk.bf16.gmra.mrb[24].mxu1 %vm16412_vm4, %v13947_v35  ;;  %v10287_v35 = vrot.slane %v10085_v32, 1  ;;  %v10313_v32 = vsel %vm9175_vm6, %v10308_v51, %v10312_v25  ;;  %v10112_v25 = vld [vmem:[#allocation3 + $0x230] sm:$0x1] }
 0x731   : > { %13951 = vmatprep.mubr.msk.bf16.mxu1 %vm16412_vm4, %v13950_v61  ;;  %v10281_v61 = vsel %vm9175_vm6, %v10275_v44, %v10280_v58  ;;  %v10301_v44 = vsel %vm9175_vm6, %v10295_v60, %v10300_v26  ;;  %v10309_v58 = vsel %vm9175_vm6, %v10307_v48, %v10308_v51  ;;  %v10110_v51 = vld [vmem:[#allocation3 + $0x220] sm:$0xff]  ;;  %v10119_v48 = vld [vmem:[#allocation3 + $0x278] sm:$0x1] }
 0x732   : > { %v10289_v45 = vsel %vm9175_vm6, %v10287_v35, %v10288_v43  ;;  %v13965_v7 = vpack.c.bf16 %v10281_v61, %v10276_v59  ;;  %v10098_v43 = vld [vmem:[#allocation3 + $0x1a0] sm:$0xff]  ;;  %v10107_v35 = vld [vmem:[#allocation3 + $0x1f8] sm:$0x1]  ;;  %v10096_v61 = vld [vmem:[#allocation3 + $0x190] sm:$0xfe] }
 0x733   : > { %v13968_v10 = vpack.c.bf16 %v10293_v19, %v10289_v45  ;;  %v13980_v45 = vpack.c.bf16 %v10313_v32, %v10309_v58  ;;  %v10305_v19 = vrot.slane %v10098_v43, 1  ;;  %v10322_v33 = vrot.slane %v10107_v35, 1 }
 0x734   : > { %v10325_v32 = vrot.slane %v10110_v51, 1  ;;  %v10330_v43 = vrot.slane %v10112_v25, 1  ;;  %v10342_v35 = vrot.slane %v10119_v48, 1  ;;  %v10127_v25 = vld [vmem:[#allocation3 + $0x2d8] sm:$0xfe] }
 0x735   : > { %v10323_v38 = vsel %vm9175_vm6, %v10318_v17, %v10322_v33  ;;  %v10118_v33 = vld [vmem:[#allocation3 + $0x270] sm:$0x1] }
 0x736   : > { %v10340_v57 = vrot.slane %v10118_v33, 1  ;;  %v10133_v33 = vld [vmem:[#allocation3 + $0x318] sm:$0xfe] }
 0x738   : > { %13954 = vmatmul.mubr.msk.bf16.gmra.mrb[28].mxu1 %vm16412_vm4, %v13953_v40  ;;  %v10284_v40 = vrot.slane %v10084_v54, 1  ;;  %v10317_v54 = vrot.slane %v10103_v21, 1 }
 0x739   : > { %13957 = vmatprep.mubr.msk.bf16.mxu1 %vm16412_vm4, %v13956_v2 }
 0x73a   : > { %v10286_v2 = vsel %vm9175_vm6, %v10284_v40, %v10285_v8  ;;  %v10311_v8 = vsel %vm9175_vm6, %v10305_v19, %v10310_v46  ;;  %v10319_v23 = vsel %vm9175_vm6, %v10317_v54, %v10318_v17  ;;  %v10111_v40 = vld [vmem:[#allocation3 + $0x228] sm:$0xff]  ;;  %v10116_v17 = vld [vmem:[#allocation3 + $0x260] sm:$0xff]  ;;  %v10125_v54 = vld [vmem:[#allocation3 + $0x2b8] sm:$0x1] }
 0x73b   : > { %v13971_v3 = vpack.c.bf16 %v10291_v36, %v10286_v2  ;;  %v10102_v36 = vld [vmem:[#allocation3 + $0x1d0] sm:$0xfe]  ;;  %v13986_v42 = vpack.c.bf16 %v10323_v38, %v10319_v23  ;;  %v10328_v6 = vrot.slane %v10111_v40, 1  ;;  %v10335_v38 = vrot.slane %v10116_v17, 1 }
 0x73c   : > { %v10352_v11 = vrot.slane %v10125_v54, 1 }
 0x73d   : > { %v10333_v50 = vsel %vm9175_vm6, %v10328_v6, %v10332_v39  ;;  %v10124_v39 = vld [vmem:[#allocation3 + $0x2b0] sm:$0x1] }
 0x73e   : > { %v10350_v51 = vrot.slane %v10124_v39, 1  ;;  %v10139_v39 = vld [vmem:[#allocation3 + $0x358] sm:$0xfe] }
 0x740   : > { %13960 = vmatmul.mubr.msk.bf16.vlgmr.msra.gmra.mrb[32].mxu1 %vm16412_vm4, %v13959_v4  ;;  %v10294_v4 = vrot.slane %v10090_v1, 1  ;;  %v10327_v1 = vrot.slane %v10109_v16, 1 }
 0x741   : > { %13963 = vmatprep.mubr.msk.bf16.mxu1 %vm16412_vm4, %v13962_v24 }
 0x742   : > { %v10296_v24 = vsel %vm9175_vm6, %v10294_v4, %v10295_v60  ;;  %v10321_v60 = vsel %vm9175_vm6, %v10315_v53, %v10320_v5  ;;  %v10329_v26 = vsel %vm9175_vm6, %v10327_v1, %v10328_v6  ;;  %v10117_v4 = vld [vmem:[#allocation3 + $0x268] sm:$0xff]  ;;  %v10122_v6 = vld [vmem:[#allocation3 + $0x2a0] sm:$0xff]  ;;  %v10131_v1 = vld [vmem:[#allocation3 + $0x2f8] sm:$0x1] }
 0x743   : > { %v13977_v59 = vpack.c.bf16 %v10301_v44, %v10296_v24  ;;  %v10108_v44 = vld [vmem:[#allocation3 + $0x210] sm:$0xfe]  ;;  %v13992_v58 = vpack.c.bf16 %v10333_v50, %v10329_v26  ;;  %v10338_v20 = vrot.slane %v10117_v4, 1  ;;  %v10345_v50 = vrot.slane %v10122_v6, 1 }
 0x744   : > { %v10362_v48 = vrot.slane %v10131_v1, 1 }
 0x745   : > { %v10343_v21 = vsel %vm9175_vm6, %v10338_v20, %v10342_v35  ;;  %v10130_v35 = vld [vmem:[#allocation3 + $0x2f0] sm:$0x1] }
 0x746   : > { %v10360_v17 = vrot.slane %v10130_v35, 1  ;;  %v10145_v35 = vld [vmem:[#allocation3 + $0x398] sm:$0xfe] }
 0x748   : > { %13966 = vmatmul.mubr.msk.bf16.gmra.mrb[36].mxu1 %vm16412_vm4, %v13965_v7  ;;  %v10304_v7 = vrot.slane %v10096_v61, 1  ;;  %v10337_v61 = vrot.slane %v10115_v13, 1 }
 0x749   : > { %13969 = vmatprep.mubr.msk.bf16.mxu1 %vm16412_vm4, %v13968_v10 }
 0x74a   : > { %v10306_v10 = vsel %vm9175_vm6, %v10304_v7, %v10305_v19  ;;  %v10331_v19 = vsel %vm9175_vm6, %v10325_v32, %v10330_v43  ;;  %v10339_v46 = vsel %vm9175_vm6, %v10337_v61, %v10338_v20  ;;  %v10123_v7 = vld [vmem:[#allocation3 + $0x2a8] sm:$0xff]  ;;  %v10128_v20 = vld [vmem:[#allocation3 + $0x2e0] sm:$0xff]  ;;  %v10137_v61 = vld [vmem:[#allocation3 + $0x338] sm:$0x1] }
 0x74b   : > { %v13983_v2 = vpack.c.bf16 %v10311_v8, %v10306_v10  ;;  %v10114_v8 = vld [vmem:[#allocation3 + $0x250] sm:$0xfe]  ;;  %v13998_v23 = vpack.c.bf16 %v10343_v21, %v10339_v46  ;;  %v10348_v40 = vrot.slane %v10123_v7, 1  ;;  %v10355_v21 = vrot.slane %v10128_v20, 1 }
 0x74c   : > { %v10372_v54 = vrot.slane %v10137_v61, 1 }
 0x74d   : > { %v10353_v16 = vsel %vm9175_vm6, %v10348_v40, %v10352_v11  ;;  %v10136_v11 = vld [vmem:[#allocation3 + $0x330] sm:$0x1] }
 0x74e   : > { %v10370_v6 = vrot.slane %v10136_v11, 1  ;;  %v10151_v11 = vld [vmem:[#allocation3 + $0x3d8] sm:$0xfe] }
 0x750   : > { %13972 = vmatmul.mubr.msk.bf16.gmra.mrb[40].mxu1 %vm16412_vm4, %v13971_v3  ;;  %v10314_v3 = vrot.slane %v10102_v36, 1  ;;  %v10347_v36 = vrot.slane %v10121_v63, 1 }
 0x751   : > { %13975 = vmatprep.mubr.msk.bf16.mxu1 %vm16412_vm4, %v13974_v0 }
 0x752   : > { %v10316_v0 = vsel %vm9175_vm6, %v10314_v3, %v10315_v53  ;;  %v10341_v53 = vsel %vm9175_vm6, %v10335_v38, %v10340_v57  ;;  %v10349_v5 = vsel %vm9175_vm6, %v10347_v36, %v10348_v40  ;;  %v10129_v3 = vld [vmem:[#allocation3 + $0x2e8] sm:$0xff]  ;;  %v10134_v40 = vld [vmem:[#allocation3 + $0x320] sm:$0xff]  ;;  %v10143_v36 = vld [vmem:[#allocation3 + $0x378] sm:$0x1] }
 0x753   : > { %v13989_v24 = vpack.c.bf16 %v10321_v60, %v10316_v0  ;;  %v10120_v60 = vld [vmem:[#allocation3 + $0x290] sm:$0xfe]  ;;  %v14004_v26 = vpack.c.bf16 %v10353_v16, %v10349_v5  ;;  %v10358_v4 = vrot.slane %v10129_v3, 1  ;;  %v10365_v16 = vrot.slane %v10134_v40, 1 }
 0x754   : > { %v10382_v1 = vrot.slane %v10143_v36, 1 }
 0x755   : > { %v10363_v13 = vsel %vm9175_vm6, %v10358_v4, %v10362_v48  ;;  %v10142_v48 = vld [vmem:[#allocation3 + $0x370] sm:$0x1] }
 0x756   : > { %v10380_v20 = vrot.slane %v10142_v48, 1 }
 0x758   : > { %13978 = vmatmul.mubr.msk.bf16.gmra.mrb[44].mxu1 %vm16412_vm4, %v13977_v59  ;;  %v10324_v59 = vrot.slane %v10108_v44, 1  ;;  %v10357_v44 = vrot.slane %v10127_v25, 1 }
 0x759   : > { %13981 = vmatprep.mubr.msk.bf16.mxu1 %vm16412_vm4, %v13980_v45 }
 0x75a   : > { %v10326_v45 = vsel %vm9175_vm6, %v10324_v59, %v10325_v32  ;;  %v10351_v32 = vsel %vm9175_vm6, %v10345_v50, %v10350_v51  ;;  %v10359_v43 = vsel %vm9175_vm6, %v10357_v44, %v10358_v4  ;;  %v10135_v59 = vld [vmem:[#allocation3 + $0x328] sm:$0xff]  ;;  %v10140_v4 = vld [vmem:[#allocation3 + $0x360] sm:$0xff]  ;;  %v10149_v44 = vld [vmem:[#allocation3 + $0x3b8] sm:$0x1] }
 0x75b   : > { %v13995_v10 = vpack.c.bf16 %v10331_v19, %v10326_v45  ;;  %v10126_v19 = vld [vmem:[#allocation3 + $0x2d0] sm:$0xfe]  ;;  %v14010_v46 = vpack.c.bf16 %v10363_v13, %v10359_v43  ;;  %v10368_v7 = vrot.slane %v10135_v59, 1  ;;  %v10375_v13 = vrot.slane %v10140_v4, 1  ;;  %v10157_v4 = vld [vmem:[#allocation3 + $0x418] sm:$0xfe] }
 0x75c   : > { %v10392_v61 = vrot.slane %v10149_v44, 1  ;;  %v10407_v44 = vrot.slane %v10157_v4, 1 }
 0x75d   : > { %v10373_v63 = vsel %vm9175_vm6, %v10368_v7, %v10372_v54  ;;  %v10148_v54 = vld [vmem:[#allocation3 + $0x3b0] sm:$0x1] }
 0x75e   : > { %v10390_v40 = vrot.slane %v10148_v54, 1 }
 0x760   : > { %13984 = vmatmul.mubr.msk.bf16.gmra.mrb[48].mxu1 %vm16412_vm4, %v13983_v2  ;;  %v10334_v2 = vrot.slane %v10114_v8, 1  ;;  %v10367_v8 = vrot.slane %v10133_v33, 1 }
 0x761   : > { %13987 = vmatprep.mubr.msk.bf16.mxu1 %vm16412_vm4, %v13986_v42 }
 0x762   : > { %v10336_v42 = vsel %vm9175_vm6, %v10334_v2, %v10335_v38  ;;  %v10361_v38 = vsel %vm9175_vm6, %v10355_v21, %v10360_v17  ;;  %v10369_v57 = vsel %vm9175_vm6, %v10367_v8, %v10368_v7  ;;  %v10141_v2 = vld [vmem:[#allocation3 + $0x368] sm:$0xff]  ;;  %v10146_v7 = vld [vmem:[#allocation3 + $0x3a0] sm:$0xff]  ;;  %v10155_v8 = vld [vmem:[#allocation3 + $0x3f8] sm:$0x1] }
 0x763   : > { %v14001_v0 = vpack.c.bf16 %v10341_v53, %v10336_v42  ;;  %v10132_v53 = vld [vmem:[#allocation3 + $0x310] sm:$0xfe]  ;;  %v14016_v5 = vpack.c.bf16 %v10373_v63, %v10369_v57  ;;  %v10378_v3 = vrot.slane %v10141_v2, 1  ;;  %v10385_v63 = vrot.slane %v10146_v7, 1 }
 0x764   : > { %v10402_v36 = vrot.slane %v10155_v8, 1 }
 0x765   : > { %v10383_v25 = vsel %vm9175_vm6, %v10378_v3, %v10382_v1  ;;  %v10154_v1 = vld [vmem:[#allocation3 + $0x3f0] sm:$0x1] }
 0x768   : > { %13990 = vmatmul.mubr.msk.bf16.gmra.mrb[52].mxu1 %vm16412_vm4, %v13989_v24  ;;  %v10344_v24 = vrot.slane %v10120_v60, 1  ;;  %v10377_v60 = vrot.slane %v10139_v39, 1 }
 0x769   : > { %13993 = vmatprep.mubr.msk.bf16.mxu1 %vm16412_vm4, %v13992_v58 }
 0x76a   : > { %v10346_v58 = vsel %vm9175_vm6, %v10344_v24, %v10345_v50  ;;  %v10371_v50 = vsel %vm9175_vm6, %v10365_v16, %v10370_v6  ;;  %v10379_v51 = vsel %vm9175_vm6, %v10377_v60, %v10378_v3  ;;  %v10147_v24 = vld [vmem:[#allocation3 + $0x3a8] sm:$0xff]  ;;  %v10152_v3 = vld [vmem:[#allocation3 + $0x3e0] sm:$0xff] }
 0x76b   : > { %v14007_v45 = vpack.c.bf16 %v10351_v32, %v10346_v58  ;;  %v10138_v32 = vld [vmem:[#allocation3 + $0x350] sm:$0xfe]  ;;  %v14022_v43 = vpack.c.bf16 %v10383_v25, %v10379_v51  ;;  %v10388_v59 = vrot.slane %v10147_v24, 1  ;;  %v10395_v51 = vrot.slane %v10152_v3, 1 }
 0x76c   : > { %v10400_v25 = vrot.slane %v10154_v1, 1 }
 0x76d   : > { %v10393_v33 = vsel %vm9175_vm6, %v10388_v59, %v10392_v61 }
 0x770   : > { %13996 = vmatmul.mubr.msk.bf16.gmra.mrb[56].mxu1 %vm16412_vm4, %v13995_v10  ;;  %v10354_v10 = vrot.slane %v10126_v19, 1  ;;  %v10387_v19 = vrot.slane %v10145_v35, 1 }
 0x771   : > { %13999 = vmatprep.mubr.msk.bf16.mxu1 %vm16412_vm4, %v13998_v23 }
 0x772   : > { %v10356_v23 = vsel %vm9175_vm6, %v10354_v10, %v10355_v21  ;;  %v10381_v21 = vsel %vm9175_vm6, %v10375_v13, %v10380_v20  ;;  %v10389_v17 = vsel %vm9175_vm6, %v10387_v19, %v10388_v59  ;;  %v10153_v10 = vld [vmem:[#allocation3 + $0x3e8] sm:$0xff]  ;;  %v10160_v20 = vld [vmem:[#allocation3 + $0x430] sm:$0x1]  ;;  %v10156_v59 = vld [vmem:[#allocation3 + $0x410] sm:$0xfe] }
 0x773   : > { %v14013_v42 = vpack.c.bf16 %v10361_v38, %v10356_v23  ;;  %v10144_v38 = vld [vmem:[#allocation3 + $0x390] sm:$0xfe]  ;;  %v14028_v57 = vpack.c.bf16 %v10393_v33, %v10389_v17  ;;  %v10398_v2 = vrot.slane %v10153_v10, 1  ;;  %v10404_v19 = vrot.slane %v10156_v59, 1  ;;  %v12124_v17 = vld [vmem:[%s19449_s4] sm:$0x3] }
 0x774   : > { %v19511_v33 = vsub.s32 0, %v15815_v18 }
 0x775   : > { %v10403_v39 = vsel %vm9175_vm6, %v10398_v2, %v10402_v36 }
 0x776   : > { %v19191_v7 = vrot.slane %v12124_v17, %v19511_v33  ;;  %v19513_v33 = vld [vmem:[#allocation43_spill] sm:$0xff] }
 0x778   : > { %14002 = vmatmul.mubr.msk.bf16.gmra.mrb[60].mxu1 %vm16412_vm4, %v14001_v0  ;;  %v10364_v0 = vrot.slane %v10132_v53, 1  ;;  %v10397_v53 = vrot.slane %v10151_v11, 1 }
 0x779   : > { %14005 = vmatprep.mubr.msk.bf16.mxu1 %vm16412_vm4, %v14004_v26 }
 0x77a   : > { %v10366_v26 = vsel %vm9175_vm6, %v10364_v0, %v10365_v16  ;;  %v10391_v16 = vsel %vm9175_vm6, %v10385_v63, %v10390_v40  ;;  %v10399_v6 = vsel %vm9175_vm6, %v10397_v53, %v10398_v2  ;;  %v10161_v0 = vld [vmem:[#allocation3 + $0x438] sm:$0x1] }
 0x77b   : > { %v14019_v58 = vpack.c.bf16 %v10371_v50, %v10366_v26  ;;  %v10150_v26 = vld [vmem:[#allocation3 + $0x3d0] sm:$0xfe]  ;;  %v14034_v50 = vpack.c.bf16 %v10403_v39, %v10399_v6  ;;  %v10412_v48 = vrot.slane %v10161_v0, 1 }
 0x77c   : > { %v10394_v24 = vrot.slane %v10150_v26, 1 }
 0x780   : > { %14008 = vmatmul.mubr.msk.bf16.gmra.mrb[0].mxu1 %vm16412_vm4, %v14007_v45  ;;  %v10374_v45 = vrot.slane %v10138_v32, 1  ;;  %v10401_v32 = vsel %vm9175_vm6, %v10395_v51, %v10400_v25 }
 0x781   : > { %14011 = vmatprep.mubr.msk.bf16.mxu1 %vm16412_vm4, %v14010_v46 }
 0x782   : > { %v10376_v46 = vsel %vm9175_vm6, %v10374_v45, %v10375_v13  ;;  %v10413_v13 = vsel %vm9175_vm6, %v19035_v41, %v10412_v48  ;;  %v10410_v45 = vrot.slane %v10160_v20, 1 }
 0x783   : > { %v14025_v23 = vpack.c.bf16 %v10381_v21, %v10376_v46  ;;  %v10406_v46 = vsel %vm9175_vm6, %v10404_v19, %v19047_v27 }
 0x788   : > { %14014 = vmatmul.mubr.msk.bf16.gmra.mrb[4].mxu1 %vm16412_vm4, %v14013_v42  ;;  %v10384_v42 = vrot.slane %v10144_v38, 1 }
 0x789   : > { %14017 = vmatprep.mubr.msk.bf16.mxu1 %vm16412_vm4, %v14016_v5 }
 0x78a   : > { %v10386_v5 = vsel %vm9175_vm6, %v10384_v42, %v10385_v63 }
 0x78b   : > { %v14031_v60 = vpack.c.bf16 %v10391_v16, %v10386_v5 }
 0x790   : > { %14020 = vmatmul.mubr.msk.bf16.gmra.mrb[8].mxu1 %vm16412_vm4, %v14019_v58  ;;  %v10396_v58 = vsel %vm9175_vm6, %v10394_v24, %v10395_v51 }
 0x791   : > { %14023 = vmatprep.mubr.msk.bf16.mxu1 %vm16412_vm4, %v14022_v43  ;;  %v10409_v43 = vsel %vm9175_vm6, %v10407_v44, %v19035_v41  ;;  %v14037_v35 = vpack.c.bf16 %v10401_v32, %v10396_v58  ;;  %v10411_v41 = vsel %vm9175_vm6, %v19047_v27, %v10410_v45  ;;  %v19512_v27 = vsub.s32 1, %v15815_v18 }
 0x792   : > { %v14040_v61 = vpack.c.bf16 %v10413_v13, %v10409_v43  ;;  %v14043_v21 = vpack.c.bf16 %v10411_v41, %v10406_v46 }
 0x793   : > { %v19195_v10 = vrot.slane %v12124_v17, %v19512_v27 }
 0x798   : > { %14026 = vmatmul.mubr.msk.bf16.gmra.mrb[12].mxu1 %vm16412_vm4, %v14025_v23 }
 0x799   : > { %14029 = vmatprep.mubr.msk.bf16.mxu1 %vm16412_vm4, %v14028_v57 }
 0x7a0   : > { %14032 = vmatmul.mubr.msk.bf16.gmra.mrb[16].mxu1 %vm16412_vm4, %v14031_v60 }
 0x7a1   : > { %14035 = vmatprep.mubr.msk.bf16.mxu1 %vm16412_vm4, %v14034_v50 }
 0x7a8   : > { %14038 = vmatmul.mubr.msk.bf16.gmra.mrb[20].mxu1 %vm16412_vm4, %v14037_v35 }
 0x7a9   : > { %14041 = vmatprep.mubr.msk.bf16.mxu1 %vm16412_vm4, %v14040_v61 }
 0x7b0   : > { %14044 = vmatmul.mubr.msk.bf16.gmra.mrb[24].mxu1 %vm16412_vm4, %v14043_v21 }
 0x7b1   : > { %11857 = vmatprep.mubr.bf16.mxu1 %v19510_v55 }
 0x7b8   : > { %11858 = vmatmul.mubr.bf16.gmra.mrb[28].mxu1 %v19510_v55 }
 0x813   : > { %v11709_v54 = vpop.f32.mrb[32].mxu1 }
 0x814   : > { %v14077_v49 = vadd.f32 %v11709_v54, %v17992_v15  ;;  %v11711_v8 = vpop.f32.mrb[33].mxu1 }
 0x815   : > { %v14078_v55 = vadd.f32 %v11711_v8, %v17996_v9  ;;  %v11713_v23 = vpop.f32.mrb[34].mxu1 }
 0x816   : > { %v12136_v38 = vadd.f32 %v14077_v49, %v19191_v7  ;;  %v14079_v57 = vadd.f32 %v11713_v23, %v18000_v62  ;;  %v11715_v63 = vpop.f32.mrb[35].mxu1 }
 0x817   : > { %v12137_v40 = vadd.f32 %v14078_v55, %v19195_v10  ;;  %v14080_v11 = vadd.f32 %v11715_v63, %v18002_v37  ;;  %v19515_v63 = vld [vmem:[#allocation45_spill] sm:$0xff] }
 0x818   : > { %v12200_v18 = vmax.f32 %v12136_v38, 0.0  ;;  %v12138_v2 = vadd.f32 %v14079_v57, %v19191_v7 }
 0x819   : > { %v12201_v36 = vmax.f32 %v12137_v40, 0.0  ;;  %v12139_v42 = vadd.f32 %v14080_v11, %v19195_v10 }
 0x81a   : > { %12264 = vst [vmem:[%s19207_s15] sm:$0xff] %v12200_v18  ;;  %v12202_v15 = vmax.f32 %v12138_v2, 0.0  ;;  %v19516_v2 = vld [vmem:[#allocation46_spill] sm:$0xff] }
 0x81b   : > { %12265 = vst [vmem:[%s19207_s15 + $0x8] sm:$0xff] %v12201_v36  ;;  %v12203_v62 = vmax.f32 %v12139_v42, 0.0  ;;  %v11719_v9 = vpop.f32.mrb[36].mxu1 }
 0x81c   : > { %12266 = vst [vmem:[%s19207_s15 + $0x10] sm:$0xff] %v12202_v15  ;;  %v14081_v37 = vadd.f32 %v11719_v9, %v18008_v56  ;;  %v11721_v53 = vpop.f32.mrb[37].mxu1 }
 0x81d   : > { %12267 = vst [vmem:[%s19207_s15 + $0x18] sm:$0xff] %v12203_v62  ;;  %v14082_v5 = vadd.f32 %v11721_v53, %v18012_v30  ;;  %v11723_v16 = vpop.f32.mrb[38].mxu1  ;;  %v19517_v62 = vld [vmem:[#allocation47_spill] sm:$0xff] }
 0x81e   : > { %v12140_v6 = vadd.f32 %v14081_v37, %v19191_v7  ;;  %v14083_v39 = vadd.f32 %v11723_v16, %v18016_v31  ;;  %v11725_v3 = vpop.f32.mrb[39].mxu1 }
 0x81f   : > { %v12141_v1 = vadd.f32 %v14082_v5, %v19195_v10  ;;  %v14084_v0 = vadd.f32 %v11725_v3, %v18018_v29 }
 0x820   : > { %v12204_v60 = vmax.f32 %v12140_v6, 0.0  ;;  %v12142_v56 = vadd.f32 %v14083_v39, %v19191_v7 }
 0x821   : > { %v12205_v26 = vmax.f32 %v12141_v1, 0.0  ;;  %v12143_v50 = vadd.f32 %v14084_v0, %v19195_v10  ;;  %v19518_v1 = vld [vmem:[#allocation48_spill] sm:$0xff] }
 0x822   : > { %12268 = vst [vmem:[%s19207_s15 + $0x20] sm:$0xff] %v12204_v60  ;;  %v12206_v30 = vmax.f32 %v12142_v56, 0.0  ;;  %v19519_v56 = vld [vmem:[#allocation49_spill] sm:$0xff] }
 0x823   : > { %12269 = vst [vmem:[%s19207_s15 + $0x28] sm:$0xff] %v12205_v26  ;;  %v12207_v51 = vmax.f32 %v12143_v50, 0.0  ;;  %v11729_v25 = vpop.f32.mrb[40].mxu1 }
 0x824   : > { %12270 = vst [vmem:[%s19207_s15 + $0x30] sm:$0xff] %v12206_v30  ;;  %v14085_v31 = vadd.f32 %v11729_v25, %v18024_v12  ;;  %v11731_v4 = vpop.f32.mrb[41].mxu1 }
 0x825   : > { %12271 = vst [vmem:[%s19207_s15 + $0x38] sm:$0xff] %v12207_v51  ;;  %v14086_v29 = vadd.f32 %v11731_v4, %v18028_v34  ;;  %v11733_v48 = vpop.f32.mrb[42].mxu1  ;;  %v19520_v51 = vld [vmem:[#allocation50_spill] sm:$0xff] }
 0x826   : > { %v12144_v24 = vadd.f32 %v14085_v31, %v19191_v7  ;;  %v14087_v44 = vadd.f32 %v11733_v48, %v18032_v52  ;;  %v11735_v58 = vpop.f32.mrb[43].mxu1 }
 0x827   : > { %v12145_v32 = vadd.f32 %v14086_v29, %v19195_v10  ;;  %v14088_v43 = vadd.f32 %v11735_v58, %v18034_v28  ;;  %v19521_v29 = vld [vmem:[#allocation51_spill] sm:$0xff] }
 0x828   : > { %v12208_v13 = vmax.f32 %v12144_v24, 0.0  ;;  %v12146_v12 = vadd.f32 %v14087_v44, %v19191_v7 }
 0x829   : > { %v12209_v20 = vmax.f32 %v12145_v32, 0.0  ;;  %v12147_v35 = vadd.f32 %v14088_v43, %v19195_v10 }
 0x82a   : > { %12272 = vst [vmem:[%s19207_s15 + $0x40] sm:$0xff] %v12208_v13  ;;  %v12210_v34 = vmax.f32 %v12146_v12, 0.0 }
 0x82b   : > { %12273 = vst [vmem:[%s19207_s15 + $0x48] sm:$0xff] %v12209_v20  ;;  %v12211_v59 = vmax.f32 %v12147_v35, 0.0  ;;  %v11739_v61 = vpop.f32.mrb[44].mxu1  ;;  %v19522_v20 = vld [vmem:[#allocation52_spill] sm:$0xff] }
 0x82c   : > { %12274 = vst [vmem:[%s19207_s15 + $0x50] sm:$0xff] %v12210_v34  ;;  %v14089_v52 = vadd.f32 %v11739_v61, %v18040_v47  ;;  %v11741_v45 = vpop.f32.mrb[45].mxu1 }
 0x82d   : > { %12275 = vst [vmem:[%s19207_s15 + $0x58] sm:$0xff] %v12211_v59  ;;  %v14090_v28 = vadd.f32 %v11741_v45, %v18044_v22  ;;  %v11743_v19 = vpop.f32.mrb[46].mxu1  ;;  %v19523_v59 = vld [vmem:[#allocation53_spill] sm:$0xff] }
 0x82e   : > { %v12148_v46 = vadd.f32 %v14089_v52, %v19191_v7  ;;  %v14091_v41 = vadd.f32 %v11743_v19, %v18048_v14  ;;  %v11745_v21 = vpop.f32.mrb[47].mxu1  ;;  %v19514_v14 = vld [vmem:[#allocation44_spill] sm:$0xff] }
 0x82f   : > { %v12149_v17 = vadd.f32 %v14090_v28, %v19195_v10  ;;  %v14092_v54 = vadd.f32 %v11745_v21, %v19513_v33  ;;  %v19524_v28 = vld [vmem:[#allocation54_spill] sm:$0xff]  ;;  %v19525_v21 = vld [vmem:[#allocation55_spill] sm:$0xff] }
 0x830   : > { %v12212_v27 = vmax.f32 %v12148_v46, 0.0  ;;  %v12150_v47 = vadd.f32 %v14091_v41, %v19191_v7 }
 0x831   : > { %v12213_v49 = vmax.f32 %v12149_v17, 0.0  ;;  %v12151_v8 = vadd.f32 %v14092_v54, %v19195_v10 }
 0x832   : > { %12276 = vst [vmem:[%s19207_s15 + $0x60] sm:$0xff] %v12212_v27  ;;  %v12214_v22 = vmax.f32 %v12150_v47, 0.0 }
 0x833   : > { %12277 = vst [vmem:[%s19207_s15 + $0x68] sm:$0xff] %v12213_v49  ;;  %v12215_v55 = vmax.f32 %v12151_v8, 0.0  ;;  %v11749_v23 = vpop.f32.mrb[48].mxu1 }
 0x834   : > { %12278 = vst [vmem:[%s19207_s15 + $0x70] sm:$0xff] %v12214_v22  ;;  %v14093_v38 = vadd.f32 %v11749_v23, %v19514_v14  ;;  %v11751_v57 = vpop.f32.mrb[49].mxu1 }
 0x835   : > { %12279 = vst [vmem:[%s19207_s15 + $0x78] sm:$0xff] %v12215_v55  ;;  %v14094_v40 = vadd.f32 %v11751_v57, %v19515_v63  ;;  %v11753_v11 = vpop.f32.mrb[50].mxu1  ;;  %v19526_v55 = vld [vmem:[#allocation56_spill] sm:$0xff] }
 0x836   : > { %v12152_v18 = vadd.f32 %v14093_v38, %v19191_v7  ;;  %v14095_v36 = vadd.f32 %v11753_v11, %v19516_v2  ;;  %v11755_v42 = vpop.f32.mrb[51].mxu1  ;;  %v19527_v38 = vld [vmem:[#allocation57_spill] sm:$0xff]  ;;  %v19528_v11 = vld [vmem:[#allocation58_spill] sm:$0xff] }
 0x837   : > { %v12153_v15 = vadd.f32 %v14094_v40, %v19195_v10  ;;  %v14096_v9 = vadd.f32 %v11755_v42, %v19517_v62  ;;  %v19529_v42 = vld [vmem:[#allocation59_spill] sm:$0xff] }
 0x838   : > { %v12216_v37 = vmax.f32 %v12152_v18, 0.0  ;;  %v12154_v53 = vadd.f32 %v14095_v36, %v19191_v7 }
 0x839   : > { %v12217_v5 = vmax.f32 %v12153_v15, 0.0  ;;  %v12155_v16 = vadd.f32 %v14096_v9, %v19195_v10 }
 0x83a   : > { %12280 = vst [vmem:[%s19207_s15 + $0x80] sm:$0xff] %v12216_v37  ;;  %v12218_v6 = vmax.f32 %v12154_v53, 0.0 }
 0x83b   : > { %12281 = vst [vmem:[%s19207_s15 + $0x88] sm:$0xff] %v12217_v5  ;;  %v12219_v39 = vmax.f32 %v12155_v16, 0.0  ;;  %v11759_v3 = vpop.f32.mrb[52].mxu1 }
 0x83c   : > { %12282 = vst [vmem:[%s19207_s15 + $0x90] sm:$0xff] %v12218_v6  ;;  %v14097_v0 = vadd.f32 %v11759_v3, %v19518_v1  ;;  %v11761_v60 = vpop.f32.mrb[53].mxu1 }
 0x83d   : > { %12283 = vst [vmem:[%s19207_s15 + $0x98] sm:$0xff] %v12219_v39  ;;  %v14098_v26 = vadd.f32 %v11761_v60, %v19519_v56  ;;  %v11763_v50 = vpop.f32.mrb[54].mxu1  ;;  %v19530_v39 = vld [vmem:[#allocation11_spill] sm:$0xff] }
 0x83e   : > { %v12156_v30 = vadd.f32 %v14097_v0, %v19191_v7  ;;  %v14099_v25 = vadd.f32 %v11763_v50, %v19520_v51  ;;  %v11765_v31 = vpop.f32.mrb[55].mxu1  ;;  %v19531_v0 = vld [vmem:[#allocation12_spill] sm:$0xff]  ;;  %v19532_v50 = vld [vmem:[#allocation13_spill] sm:$0xff] }
 0x83f   : > { %v12157_v4 = vadd.f32 %v14098_v26, %v19195_v10  ;;  %v14100_v48 = vadd.f32 %v11765_v31, %v19521_v29  ;;  %v19533_v31 = vld [vmem:[#allocation14_spill] sm:$0xff] }
 0x840   : > { %v12220_v24 = vmax.f32 %v12156_v30, 0.0  ;;  %v12158_v44 = vadd.f32 %v14099_v25, %v19191_v7 }
 0x841   : > { %v12221_v58 = vmax.f32 %v12157_v4, 0.0  ;;  %v12159_v32 = vadd.f32 %v14100_v48, %v19195_v10 }
 0x842   : > { %12284 = vst [vmem:[%s19207_s15 + $0xa0] sm:$0xff] %v12220_v24  ;;  %v12222_v43 = vmax.f32 %v12158_v44, 0.0 }
 0x843   : > { %12285 = vst [vmem:[%s19207_s15 + $0xa8] sm:$0xff] %v12221_v58  ;;  %v12223_v13 = vmax.f32 %v12159_v32, 0.0  ;;  %v11769_v12 = vpop.f32.mrb[56].mxu1 }
 0x844   : > { %12286 = vst [vmem:[%s19207_s15 + $0xb0] sm:$0xff] %v12222_v43  ;;  %v14101_v35 = vadd.f32 %v11769_v12, %v19522_v20  ;;  %v11771_v34 = vpop.f32.mrb[57].mxu1 }
 0x845   : > { %12287 = vst [vmem:[%s19207_s15 + $0xb8] sm:$0xff] %v12223_v13  ;;  %v14102_v61 = vadd.f32 %v11771_v34, %v19523_v59  ;;  %v11773_v52 = vpop.f32.mrb[58].mxu1  ;;  %v19534_v13 = vld [vmem:[#allocation15_spill] sm:$0xff] }
 0x846   : > { %v12160_v45 = vadd.f32 %v14101_v35, %v19191_v7  ;;  %v14103_v19 = vadd.f32 %v11773_v52, %v19524_v28  ;;  %v11775_v46 = vpop.f32.mrb[59].mxu1  ;;  %v19535_v35 = vld [vmem:[#allocation16_spill] sm:$0xff]  ;;  %v19536_v52 = vld [vmem:[#allocation17_spill] sm:$0xff] }
 0x847   : > { %v12161_v41 = vadd.f32 %v14102_v61, %v19195_v10  ;;  %v14104_v17 = vadd.f32 %v11775_v46, %v19525_v21  ;;  %v19537_v46 = vld [vmem:[#allocation18_spill] sm:$0xff] }
 0x848   : > { %v12224_v33 = vmax.f32 %v12160_v45, 0.0  ;;  %v12162_v54 = vadd.f32 %v14103_v19, %v19191_v7 }
 0x849   : > { %v12225_v27 = vmax.f32 %v12161_v41, 0.0  ;;  %v12163_v47 = vadd.f32 %v14104_v17, %v19195_v10 }
 0x84a   : > { %12288 = vst [vmem:[%s19207_s15 + $0xc0] sm:$0xff] %v12224_v33  ;;  %v12226_v49 = vmax.f32 %v12162_v54, 0.0 }
 0x84b   : > { %12289 = vst [vmem:[%s19207_s15 + $0xc8] sm:$0xff] %v12225_v27  ;;  %v12227_v8 = vmax.f32 %v12163_v47, 0.0  ;;  %v11779_v22 = vpop.f32.mrb[60].mxu1 }
 0x84c   : > { %12290 = vst [vmem:[%s19207_s15 + $0xd0] sm:$0xff] %v12226_v49  ;;  %v14105_v23 = vadd.f32 %v11779_v22, %v19526_v55  ;;  %v11781_v14 = vpop.f32.mrb[61].mxu1 }
 0x84d   : > { %12291 = vst [vmem:[%s19207_s15 + $0xd8] sm:$0xff] %v12227_v8  ;;  %v14106_v57 = vadd.f32 %v11781_v14, %v19527_v38  ;;  %v11783_v63 = vpop.f32.mrb[62].mxu1  ;;  %v19538_v8 = vld [vmem:[#allocation19_spill] sm:$0xff] }
 0x84e   : > { %v12164_v40 = vadd.f32 %v14105_v23, %v19191_v7  ;;  %v14107_v18 = vadd.f32 %v11783_v63, %v19528_v11  ;;  %v11785_v2 = vpop.f32.mrb[63].mxu1  ;;  %v19539_v23 = vld [vmem:[#allocation20_spill] sm:$0xff]  ;;  %v19540_v63 = vld [vmem:[#allocation21_spill] sm:$0xff] }
 0x84f   : > { %v12165_v36 = vadd.f32 %v14106_v57, %v19195_v10  ;;  %v14108_v15 = vadd.f32 %v11785_v2, %v19529_v42  ;;  %v19541_v2 = vld [vmem:[#allocation22_spill] sm:$0xff] }
 0x850   : > { %v12228_v62 = vmax.f32 %v12164_v40, 0.0  ;;  %v12166_v9 = vadd.f32 %v14107_v18, %v19191_v7 }
 0x851   : > { %v12229_v37 = vmax.f32 %v12165_v36, 0.0  ;;  %v12167_v53 = vadd.f32 %v14108_v15, %v19195_v10 }
 0x852   : > { %12292 = vst [vmem:[%s19207_s15 + $0xe0] sm:$0xff] %v12228_v62  ;;  %v12230_v5 = vmax.f32 %v12166_v9, 0.0 }
 0x853   : > { %12293 = vst [vmem:[%s19207_s15 + $0xe8] sm:$0xff] %v12229_v37  ;;  %v12231_v16 = vmax.f32 %v12167_v53, 0.0  ;;  %v11789_v6 = vpop.f32.mrb[0].mxu1 }
 0x854   : > { %12294 = vst [vmem:[%s19207_s15 + $0xf0] sm:$0xff] %v12230_v5  ;;  %v14109_v3 = vadd.f32 %v11789_v6, %v19530_v39  ;;  %v11791_v1 = vpop.f32.mrb[1].mxu1 }
 0x855   : > { %12295 = vst [vmem:[%s19207_s15 + $0xf8] sm:$0xff] %v12231_v16  ;;  %v14110_v60 = vadd.f32 %v11791_v1, %v19531_v0  ;;  %v11793_v56 = vpop.f32.mrb[2].mxu1  ;;  %v19542_v16 = vld [vmem:[#allocation23_spill] sm:$0xff] }
 0x856   : > { %v12168_v26 = vadd.f32 %v14109_v3, %v19191_v7  ;;  %v14111_v30 = vadd.f32 %v11793_v56, %v19532_v50  ;;  %v11795_v51 = vpop.f32.mrb[3].mxu1  ;;  %v19543_v3 = vld [vmem:[#allocation24_spill] sm:$0xff]  ;;  %v19544_v56 = vld [vmem:[#allocation25_spill] sm:$0xff] }
 0x857   : > { %v12169_v25 = vadd.f32 %v14110_v60, %v19195_v10  ;;  %v14112_v4 = vadd.f32 %v11795_v51, %v19533_v31  ;;  %v19545_v51 = vld [vmem:[#allocation26_spill] sm:$0xff] }
 0x858   : > { %v12232_v29 = vmax.f32 %v12168_v26, 0.0  ;;  %v12170_v48 = vadd.f32 %v14111_v30, %v19191_v7 }
 0x859   : > { %v12233_v24 = vmax.f32 %v12169_v25, 0.0  ;;  %v12171_v44 = vadd.f32 %v14112_v4, %v19195_v10 }
 0x85a   : > { %12296 = vst [vmem:[%s19207_s15 + $0x100] sm:$0xff] %v12232_v29  ;;  %v12234_v58 = vmax.f32 %v12170_v48, 0.0 }
 0x85b   : > { %12297 = vst [vmem:[%s19207_s15 + $0x108] sm:$0xff] %v12233_v24  ;;  %v12235_v32 = vmax.f32 %v12171_v44, 0.0  ;;  %v11799_v43 = vpop.f32.mrb[4].mxu1 }
 0x85c   : > { %12298 = vst [vmem:[%s19207_s15 + $0x110] sm:$0xff] %v12234_v58  ;;  %v14113_v12 = vadd.f32 %v11799_v43, %v19534_v13  ;;  %v11801_v20 = vpop.f32.mrb[5].mxu1 }
 0x85d   : > { %12299 = vst [vmem:[%s19207_s15 + $0x118] sm:$0xff] %v12235_v32  ;;  %v14114_v34 = vadd.f32 %v11801_v20, %v19535_v35  ;;  %v11803_v59 = vpop.f32.mrb[6].mxu1  ;;  %v19546_v32 = vld [vmem:[#allocation27_spill] sm:$0xff] }
 0x85e   : > { %v12172_v61 = vadd.f32 %v14113_v12, %v19191_v7  ;;  %v14115_v45 = vadd.f32 %v11803_v59, %v19536_v52  ;;  %v11805_v28 = vpop.f32.mrb[7].mxu1  ;;  %v19547_v12 = vld [vmem:[#allocation28_spill] sm:$0xff]  ;;  %v19548_v59 = vld [vmem:[#allocation29_spill] sm:$0xff] }
 0x85f   : > { %v12173_v19 = vadd.f32 %v14114_v34, %v19195_v10  ;;  %v14116_v41 = vadd.f32 %v11805_v28, %v19537_v46  ;;  %v19549_v28 = vld [vmem:[#allocation30_spill] sm:$0xff] }
 0x860   : > { %v12236_v21 = vmax.f32 %v12172_v61, 0.0  ;;  %v12174_v17 = vadd.f32 %v14115_v45, %v19191_v7 }
 0x861   : > { %v12237_v33 = vmax.f32 %v12173_v19, 0.0  ;;  %v12175_v54 = vadd.f32 %v14116_v41, %v19195_v10 }
 0x862   : > { %12300 = vst [vmem:[%s19207_s15 + $0x120] sm:$0xff] %v12236_v21  ;;  %v12238_v27 = vmax.f32 %v12174_v17, 0.0 }
 0x863   : > { %12301 = vst [vmem:[%s19207_s15 + $0x128] sm:$0xff] %v12237_v33  ;;  %v12239_v47 = vmax.f32 %v12175_v54, 0.0  ;;  %v11809_v49 = vpop.f32.mrb[8].mxu1 }
 0x864   : > { %12302 = vst [vmem:[%s19207_s15 + $0x130] sm:$0xff] %v12238_v27  ;;  %v14117_v22 = vadd.f32 %v11809_v49, %v19538_v8  ;;  %v11811_v55 = vpop.f32.mrb[9].mxu1 }
 0x865   : > { %12303 = vst [vmem:[%s19207_s15 + $0x138] sm:$0xff] %v12239_v47  ;;  %v14118_v14 = vadd.f32 %v11811_v55, %v19539_v23  ;;  %v11813_v38 = vpop.f32.mrb[10].mxu1  ;;  %v19550_v47 = vld [vmem:[#allocation31_spill] sm:$0xff] }
 0x866   : > { %v12176_v57 = vadd.f32 %v14117_v22, %v19191_v7  ;;  %v14119_v40 = vadd.f32 %v11813_v38, %v19540_v63  ;;  %v11815_v11 = vpop.f32.mrb[11].mxu1  ;;  %v19551_v22 = vld [vmem:[#allocation32_spill] sm:$0xff]  ;;  %v19552_v38 = vld [vmem:[#allocation33_spill] sm:$0xff] }
 0x867   : > { %v12177_v18 = vadd.f32 %v14118_v14, %v19195_v10  ;;  %v14120_v36 = vadd.f32 %v11815_v11, %v19541_v2  ;;  %v19553_v11 = vld [vmem:[#allocation34_spill] sm:$0xff] }
 0x868   : > { %v12240_v42 = vmax.f32 %v12176_v57, 0.0  ;;  %v12178_v15 = vadd.f32 %v14119_v40, %v19191_v7 }
 0x869   : > { %v12241_v62 = vmax.f32 %v12177_v18, 0.0  ;;  %v12179_v9 = vadd.f32 %v14120_v36, %v19195_v10 }
 0x86a   : > { %12304 = vst [vmem:[%s19207_s15 + $0x140] sm:$0xff] %v12240_v42  ;;  %v12242_v37 = vmax.f32 %v12178_v15, 0.0 }
 0x86b   : > { %12305 = vst [vmem:[%s19207_s15 + $0x148] sm:$0xff] %v12241_v62  ;;  %v12243_v53 = vmax.f32 %v12179_v9, 0.0  ;;  %v11819_v5 = vpop.f32.mrb[12].mxu1 }
 0x86c   : > { %12306 = vst [vmem:[%s19207_s15 + $0x150] sm:$0xff] %v12242_v37  ;;  %v14121_v6 = vadd.f32 %v11819_v5, %v19542_v16  ;;  %v11821_v39 = vpop.f32.mrb[13].mxu1 }
 0x86d   : > { %12307 = vst [vmem:[%s19207_s15 + $0x158] sm:$0xff] %v12243_v53  ;;  %v14122_v1 = vadd.f32 %v11821_v39, %v19543_v3  ;;  %v11823_v0 = vpop.f32.mrb[14].mxu1  ;;  %v19554_v53 = vld [vmem:[#allocation35_spill] sm:$0xff] }
 0x86e   : > { %v12180_v60 = vadd.f32 %v14121_v6, %v19191_v7  ;;  %v14123_v26 = vadd.f32 %v11823_v0, %v19544_v56  ;;  %v11825_v50 = vpop.f32.mrb[15].mxu1  ;;  %v19555_v6 = vld [vmem:[#allocation36_spill] sm:$0xff]  ;;  %v19556_v0 = vld [vmem:[#allocation37_spill] sm:$0xff] }
 0x86f   : > { %v12181_v30 = vadd.f32 %v14122_v1, %v19195_v10  ;;  %v14124_v25 = vadd.f32 %v11825_v50, %v19545_v51  ;;  %v19557_v50 = vld [vmem:[#allocation38_spill] sm:$0xff] }
 0x870   : > { %v12244_v31 = vmax.f32 %v12180_v60, 0.0  ;;  %v12182_v4 = vadd.f32 %v14123_v26, %v19191_v7 }
 0x871   : > { %v12245_v29 = vmax.f32 %v12181_v30, 0.0  ;;  %v12183_v48 = vadd.f32 %v14124_v25, %v19195_v10 }
 0x872   : > { %12308 = vst [vmem:[%s19207_s15 + $0x160] sm:$0xff] %v12244_v31  ;;  %v12246_v24 = vmax.f32 %v12182_v4, 0.0 }
 0x873   : > { %12309 = vst [vmem:[%s19207_s15 + $0x168] sm:$0xff] %v12245_v29  ;;  %v12247_v44 = vmax.f32 %v12183_v48, 0.0  ;;  %v11829_v58 = vpop.f32.mrb[16].mxu1 }
 0x874   : > { %12310 = vst [vmem:[%s19207_s15 + $0x170] sm:$0xff] %v12246_v24  ;;  %v14125_v43 = vadd.f32 %v11829_v58, %v19546_v32  ;;  %v11831_v13 = vpop.f32.mrb[17].mxu1 }
 0x875   : > { %12311 = vst [vmem:[%s19207_s15 + $0x178] sm:$0xff] %v12247_v44  ;;  %v14126_v20 = vadd.f32 %v11831_v13, %v19547_v12  ;;  %v11833_v35 = vpop.f32.mrb[18].mxu1  ;;  %v19558_v44 = vld [vmem:[#allocation39_spill] sm:$0xff] }
 0x876   : > { %v12184_v34 = vadd.f32 %v14125_v43, %v19191_v7  ;;  %v14127_v61 = vadd.f32 %v11833_v35, %v19548_v59  ;;  %v11835_v52 = vpop.f32.mrb[19].mxu1  ;;  %v19559_v43 = vld [vmem:[#allocation40_spill] sm:$0xff]  ;;  %v19560_v35 = vld [vmem:[#allocation41_spill] sm:$0xff] }
 0x877   : > { %v12185_v45 = vadd.f32 %v14126_v20, %v19195_v10  ;;  %v14128_v19 = vadd.f32 %v11835_v52, %v19549_v28  ;;  %v19561_v52 = vld [vmem:[#allocation42_spill] sm:$0xff] }
 0x878   : > { %v12248_v46 = vmax.f32 %v12184_v34, 0.0  ;;  %v12186_v41 = vadd.f32 %v14127_v61, %v19191_v7 }
 0x879   : > { %v12249_v21 = vmax.f32 %v12185_v45, 0.0  ;;  %v12187_v17 = vadd.f32 %v14128_v19, %v19195_v10 }
 0x87a   : > { %12312 = vst [vmem:[%s19207_s15 + $0x180] sm:$0xff] %v12248_v46  ;;  %v12250_v33 = vmax.f32 %v12186_v41, 0.0 }
 0x87b   : > { %12313 = vst [vmem:[%s19207_s15 + $0x188] sm:$0xff] %v12249_v21  ;;  %v12251_v54 = vmax.f32 %v12187_v17, 0.0  ;;  %v11839_v27 = vpop.f32.mrb[20].mxu1 }
 0x87c   : > { %12314 = vst [vmem:[%s19207_s15 + $0x190] sm:$0xff] %v12250_v33  ;;  %v14129_v49 = vadd.f32 %v11839_v27, %v19550_v47  ;;  %v11841_v8 = vpop.f32.mrb[21].mxu1 }
 0x87d   : > { %12315 = vst [vmem:[%s19207_s15 + $0x198] sm:$0xff] %v12251_v54  ;;  %v14130_v55 = vadd.f32 %v11841_v8, %v19551_v22  ;;  %v11843_v23 = vpop.f32.mrb[22].mxu1 }
 0x87e   : > { %v12188_v14 = vadd.f32 %v14129_v49, %v19191_v7  ;;  %v14131_v57 = vadd.f32 %v11843_v23, %v19552_v38  ;;  %v11845_v63 = vpop.f32.mrb[23].mxu1 }
 0x87f   : > { %v12189_v40 = vadd.f32 %v14130_v55, %v19195_v10  ;;  %v14132_v18 = vadd.f32 %v11845_v63, %v19553_v11 }
 0x880   : > { %v12252_v2 = vmax.f32 %v12188_v14, 0.0  ;;  %v12190_v36 = vadd.f32 %v14131_v57, %v19191_v7 }
 0x881   : > { %v12253_v42 = vmax.f32 %v12189_v40, 0.0  ;;  %v12191_v15 = vadd.f32 %v14132_v18, %v19195_v10 }
 0x882   : > { %12316 = vst [vmem:[%s19207_s15 + $0x1a0] sm:$0xff] %v12252_v2  ;;  %v12254_v62 = vmax.f32 %v12190_v36, 0.0 }
 0x883   : > { %12317 = vst [vmem:[%s19207_s15 + $0x1a8] sm:$0xff] %v12253_v42  ;;  %v12255_v9 = vmax.f32 %v12191_v15, 0.0  ;;  %v11849_v37 = vpop.f32.mrb[24].mxu1 }
 0x884   : > { %12318 = vst [vmem:[%s19207_s15 + $0x1b0] sm:$0xff] %v12254_v62  ;;  %v14133_v5 = vadd.f32 %v11849_v37, %v19554_v53  ;;  %v11851_v16 = vpop.f32.mrb[25].mxu1 }
 0x885   : > { %12319 = vst [vmem:[%s19207_s15 + $0x1b8] sm:$0xff] %v12255_v9  ;;  %v14134_v39 = vadd.f32 %v11851_v16, %v19555_v6  ;;  %v11853_v3 = vpop.f32.mrb[26].mxu1 }
 0x886   : > { %v12192_v1 = vadd.f32 %v14133_v5, %v19191_v7  ;;  %v14135_v60 = vadd.f32 %v11853_v3, %v19556_v0  ;;  %v11855_v56 = vpop.f32.mrb[27].mxu1 }
 0x887   : > { %v12193_v26 = vadd.f32 %v14134_v39, %v19195_v10  ;;  %v14136_v30 = vadd.f32 %v11855_v56, %v19557_v50 }
 0x888   : > { %v12256_v51 = vmax.f32 %v12192_v1, 0.0  ;;  %v12194_v25 = vadd.f32 %v14135_v60, %v19191_v7 }
 0x889   : > { %v12257_v31 = vmax.f32 %v12193_v26, 0.0  ;;  %v12195_v4 = vadd.f32 %v14136_v30, %v19195_v10 }
 0x88a   : > { %12320 = vst [vmem:[%s19207_s15 + $0x1c0] sm:$0xff] %v12256_v51  ;;  %v12258_v29 = vmax.f32 %v12194_v25, 0.0 }
 0x88b   : > { %12321 = vst [vmem:[%s19207_s15 + $0x1c8] sm:$0xff] %v12257_v31  ;;  %v12259_v48 = vmax.f32 %v12195_v4, 0.0  ;;  %v11859_v24 = vpop.f32.mrb[28].mxu1 }
 0x88c   : > { %12322 = vst [vmem:[%s19207_s15 + $0x1d0] sm:$0xff] %v12258_v29  ;;  %v14137_v58 = vadd.f32 %v11859_v24, %v19558_v44  ;;  %v11861_v32 = vpop.f32.mrb[29].mxu1 }
 0x88d   : > { %12323 = vst [vmem:[%s19207_s15 + $0x1d8] sm:$0xff] %v12259_v48  ;;  %v14138_v13 = vadd.f32 %v11861_v32, %v19559_v43  ;;  %v11863_v12 = vpop.f32.mrb[30].mxu1 }
 0x88e   : > { %v12196_v20 = vadd.f32 %v14137_v58, %v19191_v7  ;;  %v14139_v34 = vadd.f32 %v11863_v12, %v19560_v35  ;;  %v11865_v59 = vpop.f32.mrb[31].mxu1 }
 0x88f   : > { %v12197_v61 = vadd.f32 %v14138_v13, %v19195_v10  ;;  %v14140_v45 = vadd.f32 %v11865_v59, %v19561_v52 }
 0x890   : > { %v12260_v28 = vmax.f32 %v12196_v20, 0.0  ;;  %v12198_v19 = vadd.f32 %v14139_v34, %v19191_v7 }
 0x891   : > { %v12261_v46 = vmax.f32 %v12197_v61, 0.0  ;;  %v12199_v41 = vadd.f32 %v14140_v45, %v19195_v10 }
 0x892   : > { %12324 = vst [vmem:[%s19207_s15 + $0x1e0] sm:$0xff] %v12260_v28  ;;  %v12262_v21 = vmax.f32 %v12198_v19, 0.0 }
 0x893   : > { %12325 = vst [vmem:[%s19207_s15 + $0x1e8] sm:$0xff] %v12261_v46  ;;  %v12263_v17 = vmax.f32 %v12199_v41, 0.0 }
 0x894   : > { %12326 = vst [vmem:[%s19207_s15 + $0x1f0] sm:$0xff] %v12262_v21 }
 0x895   : > { %12327 = vst [vmem:[%s19207_s15 + $0x1f8] sm:$0xff] %v12263_v17 }
 0x896   : > { %15630 = shalt.err (!%p15627_p3)
}
 0x897   : > { %s15631_s30 = scalar_lea.hbm %s19395_s16, 8192  ;;  %s15635_s8 = scalar_lea.hbm %s19450_s5, 16384 }
 0x898   : > { %p15632_p4 = scmp.ne.s32.totalorder %s19395_s16, %s15631_s30  ;;  %p15636_p9 = scmp.lt.u32.totalorder %s19395_s16, %s19450_s5 }
 0x899   : > { %p15637_p10 = scmp.lt.u32.totalorder %s15635_s8, %s15631_s30  ;;  %p15639_p12 = scmp.lt.u32.totalorder %s15631_s30, %s19395_s16 }
 0x89a   : > { %p15633_p7 = pnand %p15632_p4, %p15755_p5 }
 0x89b   : > { %p15638_p11 = por %p15637_p10, %p15636_p9 }
 0x89c   : > { %p15634_p8 = pneg %p15633_p7 }
 0x89d   : > { %p15640_p13 = por %p15639_p12, %p15638_p11 }
 0x89f   : > { %p15641_p0 = pnand %p15640_p13, %p15634_p8 }
 0x8a1   : > { %15644 = shalt.err (!%p15641_p0)
}
 0x8a2   : > { %s15685_s15 = smov 256   ;;  %s15686_s11 = smov 16  }
 0x8a3   : > { %14909 = dma.vmem_to_hbm [thread:$0]  (%p15755_p5), %s19397_s12, 8192, %s19395_s16, %s19404_s22, %s15685_s15, %s15685_s15, %s15686_s11  }
 0x8a4 PF: > { %p14915_p1 = scmp.ge.s32.totalorder %s15679_s21, 2  ;;  %s12357_s13 = sand.u32 1, %s15667_s18  }
 0x8a5   : > { %s12358_s14 = scalar_lea.sflag [#allocation9], %s12357_s13 }
 0x8a6   : > { %p14912_p2 = pnand %p14915_p1, %p15759_p6 }
 0x8a8   : > { %15662 = dma.done.wait (!%p14912_p2), %s12358_s14, 8192  }
 0x8a9   : > { %15664 = vsyncadd (!%p14912_p2), %s12358_s14, 4294959104  ;;  %p15_p3 = scmp.ge.s32.totalorder %s15742_s24, 4   ;;  %s19562_s18 = smov %s15671_s19 }
 0x8aa   : > { %s19563_s19 = smov %s15675_s20  ;;  %s19564_s20 = smov %s15753_s27 }
 0x8ab   : > { %s19565_s21 = smov %s15742_s24  ;;  %17 = sbr.rel (!%p15_p3) target bundleno = 3 (0x3), region = 83 }
 0x8b2   :  { %12363 = vsyncpa [#allocation9], 1 }
 0x8b3   :  { %12365 = vsyncpa [#allocation9 + $0x1], 1 }

</bundles_post_ra>
